<compile_context>
chip_gen: v7x
topology: tpu7x:2x2x1
jax: 0.10.0
libtpu: 0.0.40
codegen_flags: <defaults>
</compile_context>

<pallas_src>
import math
import functools

import jax
import jax.numpy as jnp
from jax import lax
from jax.experimental import pallas as pl
from jax.experimental.pallas import tpu as pltpu


def _self_attention_kernel(
    x_ref,        # (b_tile, C, N)  activation dtype (bf16), channel-major as in HBM
    vecs_ref,     # (8, C)   f32: ln1_g, ln1_b, bo, ln2_g, ln2_b, b1, b2, pad
    wqkv_ref,     # (C, 3C)  bf16 fused in-proj weight (q columns pre-scaled by 1/sqrt(hd))
    bqkv_ref,     # (1, 3C)  f32  fused in-proj bias   (q part pre-scaled)
    wo_ref,       # (C, C)   bf16 out_proj.weight^T
    w1_ref,       # (C, C)   bf16 ff linear1 weight^T
    w2_ref,       # (C, C)   bf16 ff linear2 weight^T
    o_ref,        # (b_tile, C, N)  activation dtype
    headcat_ref,  # VMEM scratch (b_tile*N, C) bf16: head outputs concatenated on lanes
    *, num_heads: int,
):
    bt, C, N = x_ref.shape
    H = num_heads
    hd = C // H
    R = bt * N
    eps = 1e-5

    # ---- single fused relayout: (bt, C, N) -> (R, C), tokens on sublanes ----
    if bt == 1:
        x = x_ref[0].astype(jnp.float32).T                                   # (N, C)
    else:
        x = jnp.transpose(x_ref[...].astype(jnp.float32), (0, 2, 1)).reshape(R, C)

    def layer_norm(z, g, b):
        mu = jnp.mean(z, axis=-1, keepdims=True)
        var = jnp.mean(z * z, axis=-1, keepdims=True) - mu * mu              # single pass
        return (z - mu) * lax.rsqrt(var + eps) * g + b

    # ---- LayerNorm 1 ----
    x_ln = layer_norm(x, vecs_ref[0], vecs_ref[1])

    # ---- fused lane-dense qkv projection: one (R,C)x(C,3C) MXU matmul ----
    qkv = jnp.dot(x_ln.astype(jnp.bfloat16), wqkv_ref[...],
                  preferred_element_type=jnp.float32)
    qkv = (qkv + bqkv_ref[0]).astype(jnp.bfloat16)           # bias + bf16 cast, once

    # ---- per-head attention.  H is tiny and static, so the loop is unrolled; each
    # head's (N,N) score tile is consumed by the headcat store, bounding live ranges.
    for h in range(H):
        q_h = qkv[:, h * hd:(h + 1) * hd]
        k_h = qkv[:, C + h * hd:C + (h + 1) * hd]
        v_h = qkv[:, 2 * C + h * hd:2 * C + (h + 1) * hd]
        for b in range(bt):                                  # default b_tile=1 -> 1 iter
            rows = slice(b * N, (b + 1) * N)
            s = lax.dot_general(q_h[rows], k_h[rows],
                                dimension_numbers=(((1,), (1,)), ((), ())),
                                preferred_element_type=jnp.float32)          # (N, N)
            s = s - jnp.max(s, axis=-1, keepdims=True)
            p = jnp.exp(s)
            p = p * pl.reciprocal(jnp.sum(p, axis=-1, keepdims=True), approx=True)
            oh = jnp.dot(p.astype(jnp.bfloat16), v_h[rows],
                         preferred_element_type=jnp.float32)                 # (N, hd)
            headcat_ref[rows, h * hd:(h + 1) * hd] = oh.astype(jnp.bfloat16)

    # ---- single K=C output projection over the concatenated heads ----
    attn = jnp.dot(headcat_ref[...], wo_ref[...],
                   preferred_element_type=jnp.float32) + vecs_ref[2]
    h1 = attn + x                                            # residual 1 (f32)

    # ---- feed-forward: LN -> Linear -> GELU(exact erf) -> Linear -> residual ----
    h_ln = layer_norm(h1, vecs_ref[3], vecs_ref[4])
    ff = jnp.dot(h_ln.astype(jnp.bfloat16), w1_ref[...],
                 preferred_element_type=jnp.float32) + vecs_ref[5]
    ff = 0.5 * ff * (1.0 + lax.erf(ff * (1.0 / math.sqrt(2.0))))
    ff = jnp.dot(ff.astype(jnp.bfloat16), w2_ref[...],
                 preferred_element_type=jnp.float32) + vecs_ref[6]
    out = ff + h1                                            # (R, C) f32

    # ---- single fused relayout + one store, channel-major (lane-dense for N >= 128).
    # TODO(synk): for N < 128 stages emit token-major (b, N, C) output and fold the
    # relayout into the adjacent conv to avoid masked vst on the lane axis.
    if bt == 1:
        o_ref[0] = out.T.astype(o_ref.dtype)
    else:
        o_ref[...] = jnp.transpose(out.reshape(bt, N, C), (0, 2, 1)).astype(o_ref.dtype)


def _prepare_params(params, num_heads):
    """Host-side (free, one-time) weight re-layout for the kernel."""
    (ln1_g, ln1_b, wqkv, bqkv, wo, bo, ln2_g, ln2_b, w1, b1, w2, b2) = params
    C = ln1_g.shape[-1]
    hd = C // num_heads
    scale = 1.0 / math.sqrt(hd)

    # Fused, lane-dense (C, 3C) qkv weight with the softmax scale folded into q.
    scale_vec = jnp.concatenate([jnp.full((C,), scale, jnp.float32),
                                 jnp.ones((2 * C,), jnp.float32)])
    wqkv_f = (wqkv.T * scale_vec).astype(jnp.bfloat16)                     # (C, 3C)
    bqkv_f = (bqkv * scale_vec).reshape(1, 3 * C).astype(jnp.float32)      # (1, 3C)

    wo_t = wo.T.astype(jnp.bfloat16)                                       # (C, C)
    w1_t = w1.T.astype(jnp.bfloat16)
    w2_t = w2.T.astype(jnp.bfloat16)

    vecs = jnp.stack([ln1_g, ln1_b, bo, ln2_g, ln2_b, b1, b2,
                      jnp.zeros_like(b2)], axis=0).astype(jnp.float32)     # (8, C)
    return vecs, wqkv_f, bqkv_f, wo_t, w1_t, w2_t


def _vmem_bytes_estimate(b_tile, C, N, act_bytes):
    """Rough per-grid-step VMEM footprint used to size vmem_limit_bytes."""
    R = b_tile * N
    io = 2 * 2 * b_tile * C * N * act_bytes          # double-buffered in + out blocks
    weights = 6 * C * C * 2 + (8 * C + 3 * C) * 4    # bf16 weight slabs + f32 vectors
    inter = 6 * R * C * 4 + N * N * 4 + R * C * 2    # f32 slabs, 1 live score tile, headcat
    return io + weights + inter


def self_attention_forward(x, params, *, num_heads=4, b_tile=None,
                           act_dtype=jnp.bfloat16, core_parallel_batch=False):
    """x: (B, C, H, W) float32 (NCHW, like the PyTorch module)."""
    B, C, H, W = x.shape
    N = H * W
    if b_tile is None:
        # One batch element per grid step: >=2 pipeline steps (DMA hides behind
        # compute), weights stay resident, and the per-step VMEM footprint fits
        # v7x's 64 MiB / v5e's 16 MiB scoped default for real UNet stage shapes.
        b_tile = 1
    assert B % b_tile == 0 and C % num_heads == 0

    x_seq = x.reshape(B, C, N).astype(act_dtype)     # free reshape; bf16 halves HBM DMA

    vecs, wqkv_f, bqkv_f, wo_t, w1_t, w2_t = _prepare_params(params, num_heads)

    full = lambda a: pl.BlockSpec(a.shape, lambda i: (0, 0))

    vmem_est = _vmem_bytes_estimate(b_tile, C, N, jnp.dtype(act_dtype).itemsize)
    vmem_limit = int(min(max(2 * vmem_est, 32 << 20), 56 << 20))  # headroom under v7x 64MiB

    # On v7x pass core_parallel_batch=True so the batch grid axis is split across
    # the two TensorCores; plain "parallel" remains the portable default.
    batch_sem = pltpu.CORE_PARALLEL if core_parallel_batch else "parallel"

    out_seq = pl.pallas_call(
        functools.partial(_self_attention_kernel, num_heads=num_heads),
        out_shape=jax.ShapeDtypeStruct((B, C, N), act_dtype),
        grid=(B // b_tile,),
        in_specs=[
            pl.BlockSpec((b_tile, C, N), lambda i: (i, 0, 0)),   # x (pipelined)
            full(vecs),                                          # packed (C,)-vectors
            full(wqkv_f), full(bqkv_f),                          # fused qkv projection
            full(wo_t), full(w1_t), full(w2_t),                  # out-proj / ff weights
        ],
        out_specs=pl.BlockSpec((b_tile, C, N), lambda i: (i, 0, 0)),
        scratch_shapes=[pltpu.VMEM((b_tile * N, C), jnp.bfloat16)],   # head-concat slab
        compiler_params=pltpu.CompilerParams(
            dimension_semantics=(batch_sem,),
            vmem_limit_bytes=vmem_limit),
    )(x_seq, vecs, wqkv_f, bqkv_f, wo_t, w1_t, w2_t)

    return out_seq.reshape(B, C, H, W).astype(x.dtype)   # free reshape, no HBM transpose


def self_attention_reference(x, params, *, num_heads=4):
    """Pure-JAX f32 reference matching the PyTorch SelfAttention module."""
    B, C, H, W = x.shape
    N = H * W
    hd = C // num_heads
    (ln1_g, ln1_b, wqkv, bqkv, wo, bo, ln2_g, ln2_b, w1, b1, w2, b2) = params
    xs = x.reshape(B, C, N).transpose(0, 2, 1)              # (B, N, C)

    def ln(z, g, b):
        mu = jnp.mean(z, -1, keepdims=True)
        var = jnp.mean((z - mu) ** 2, -1, keepdims=True)
        return (z - mu) / jnp.sqrt(var + 1e-5) * g + b

    x_ln = ln(xs, ln1_g, ln1_b)
    qkv = jnp.einsum('bnc,dc->bnd', x_ln, wqkv) + bqkv
    q, k, v = qkv[..., :C], qkv[..., C:2 * C], qkv[..., 2 * C:]

    def split(t):
        return t.reshape(B, N, num_heads, hd).transpose(0, 2, 1, 3)

    q, k, v = split(q) / math.sqrt(hd), split(k), split(v)
    s = jnp.einsum('bhqd,bhkd->bhqk', q, k)
    p = jax.nn.softmax(s, axis=-1)
    o = jnp.einsum('bhqk,bhkd->bhqd', p, v).transpose(0, 2, 1, 3).reshape(B, N, C)
    attn = jnp.einsum('bnc,dc->bnd', o, wo) + bo
    h1 = attn + xs
    h_ln = ln(h1, ln2_g, ln2_b)
    ff = jnp.einsum('bnc,dc->bnd', h_ln, w1) + b1
    ff = 0.5 * ff * (1.0 + lax.erf(ff * (1.0 / math.sqrt(2.0))))
    ff = jnp.einsum('bnc,dc->bnd', ff, w2) + b2
    out = ff + h1
    return out.transpose(0, 2, 1).reshape(B, C, H, W)


def make_params(key, channels):
    """Deterministic synthetic parameters with the PyTorch module's shapes."""
    C = channels
    keys = jax.random.split(key, 8)
    s = 0.05
    ln1_g = jnp.ones((C,), jnp.float32)
    ln1_b = jnp.zeros((C,), jnp.float32)
    wqkv = jax.random.normal(keys[0], (3 * C, C), jnp.float32) * s   # in_proj_weight
    bqkv = jax.random.normal(keys[1], (3 * C,), jnp.float32) * s     # in_proj_bias
    wo = jax.random.normal(keys[2], (C, C), jnp.float32) * s         # out_proj.weight
    bo = jax.random.normal(keys[3], (C,), jnp.float32) * s           # out_proj.bias
    ln2_g = jnp.ones((C,), jnp.float32)
    ln2_b = jnp.zeros((C,), jnp.float32)
    w1 = jax.random.normal(keys[4], (C, C), jnp.float32) * s         # ff_self[1].weight
    b1 = jax.random.normal(keys[5], (C,), jnp.float32) * s
    w2 = jax.random.normal(keys[6], (C, C), jnp.float32) * s         # ff_self[3].weight
    b2 = jax.random.normal(keys[7], (C,), jnp.float32) * s
    return (ln1_g, ln1_b, wqkv, bqkv, wo, bo, ln2_g, ln2_b, w1, b1, w2, b2)


if __name__ == "__main__":
    # Small but representative shapes (lane-dense N=256, like the sa5/sa6 stages).
    B, C, H, W = 2, 64, 16, 16
    key = jax.random.PRNGKey(0)
    k_x, k_p = jax.random.split(key)
    x = jax.random.normal(k_x, (B, C, H, W), jnp.float32)
    params = make_params(k_p, C)

    out = self_attention_forward(x, params, num_heads=4)
    out = jax.block_until_ready(out)
    assert out.shape == (B, C, H, W), out.shape
    assert bool(jnp.all(jnp.isfinite(out)))

    ref = self_attention_reference(x, params, num_heads=4)
    err = float(jnp.max(jnp.abs(out - ref)))
    # bf16 activations at the kernel boundary + bf16 matmul operands -> ~1e-1 abs tol.
    assert err < 1e-1, f"max abs err vs f32 reference: {err}"
    print("KERNEL_OK")
</pallas_src>

<mosaic_0001>
module attributes {stable_mosaic.version = 11 : i64} {
  func.func @_self_attention_kernel(%arg0: i32, %arg1: memref<1x64x256xbf16, #tpu.memory_space<vmem>>, %arg2: memref<8x64xf32, #tpu.memory_space<vmem>>, %arg3: memref<64x192xbf16, #tpu.memory_space<vmem>>, %arg4: memref<1x192xf32, #tpu.memory_space<vmem>>, %arg5: memref<64x64xbf16, #tpu.memory_space<vmem>>, %arg6: memref<64x64xbf16, #tpu.memory_space<vmem>>, %arg7: memref<64x64xbf16, #tpu.memory_space<vmem>>, %arg8: memref<1x64x256xbf16, #tpu.memory_space<vmem>>, %arg9: memref<256x64xbf16, #tpu.memory_space<vmem>>) attributes {dimension_semantics = [#tpu.dimension_semantics<parallel>], iteration_bounds = array<i64: 2>, scalar_prefetch = 0 : i64, scratch_operands = 1 : i64, tpu.core_type = #tpu.core_type<tc>, window_params = [{transform_indices = @transform_0, window_bounds = array<i64: 1, 64, 256>}, {pipeline_mode = #tpu.pipeline_mode<synchronous>, transform_indices = @transform_1, window_bounds = array<i64: 8, 64>}, {pipeline_mode = #tpu.pipeline_mode<synchronous>, transform_indices = @transform_2, window_bounds = array<i64: 64, 192>}, {pipeline_mode = #tpu.pipeline_mode<synchronous>, transform_indices = @transform_3, window_bounds = array<i64: 1, 192>}, {pipeline_mode = #tpu.pipeline_mode<synchronous>, transform_indices = @transform_4, window_bounds = array<i64: 64, 64>}, {pipeline_mode = #tpu.pipeline_mode<synchronous>, transform_indices = @transform_5, window_bounds = array<i64: 64, 64>}, {pipeline_mode = #tpu.pipeline_mode<synchronous>, transform_indices = @transform_6, window_bounds = array<i64: 64, 64>}, {transform_indices = @transform_7, window_bounds = array<i64: 1, 64, 256>}]} {
    %c0 = arith.constant 0 : index
    %c0_0 = arith.constant 0 : index
    %c0_1 = arith.constant 0 : index
    %0 = vector.load %arg1[%c0, %c0_0, %c0_1] : memref<1x64x256xbf16, #tpu.memory_space<vmem>>, vector<1x64x256xbf16>
    %1 = vector.shape_cast %0 : vector<1x64x256xbf16> to vector<64x256xbf16>
    %2 = arith.extf %1 : vector<64x256xbf16> to vector<64x256xf32>
    %3 = tpu.transpose %2, [1, 0] : vector<64x256xf32> -> vector<256x64xf32>
    %c0_2 = arith.constant 0 : index
    %c0_3 = arith.constant 0 : index
    %4 = vector.load %arg2[%c0_2, %c0_3] : memref<8x64xf32, #tpu.memory_space<vmem>>, vector<1x64xf32>
    %5 = vector.shape_cast %4 : vector<1x64xf32> to vector<64xf32>
    %c1 = arith.constant 1 : index
    %c0_4 = arith.constant 0 : index
    %6 = vector.load %arg2[%c1, %c0_4] : memref<8x64xf32, #tpu.memory_space<vmem>>, vector<1x64xf32>
    %7 = vector.shape_cast %6 : vector<1x64xf32> to vector<64xf32>
    %cst = arith.constant dense<0.000000e+00> : vector<256xf32>
    %8 = vector.multi_reduction <add>, %3, %cst [1] : vector<256x64xf32> to vector<256xf32>
    %9 = vector.shape_cast %8 : vector<256xf32> to vector<256x1xf32>
    %cst_5 = arith.constant 6.400000e+01 : f32
    %10 = vector.broadcast %cst_5 : f32 to vector<256x1xf32>
    %11 = arith.divf %9, %10 : vector<256x1xf32>
    %12 = arith.mulf %3, %3 : vector<256x64xf32>
    %cst_6 = arith.constant dense<0.000000e+00> : vector<256xf32>
    %13 = vector.multi_reduction <add>, %12, %cst_6 [1] : vector<256x64xf32> to vector<256xf32>
    %14 = vector.shape_cast %13 : vector<256xf32> to vector<256x1xf32>
    %cst_7 = arith.constant 6.400000e+01 : f32
    %15 = vector.broadcast %cst_7 : f32 to vector<256x1xf32>
    %16 = arith.divf %14, %15 : vector<256x1xf32>
    %17 = arith.mulf %11, %11 : vector<256x1xf32>
    %18 = arith.subf %16, %17 : vector<256x1xf32>
    %19 = vector.broadcast %11 : vector<256x1xf32> to vector<256x64xf32>
    %20 = arith.subf %3, %19 : vector<256x64xf32>
    %cst_8 = arith.constant 9.99999974E-6 : f32
    %21 = vector.broadcast %cst_8 : f32 to vector<256x1xf32>
    %22 = arith.addf %18, %21 : vector<256x1xf32>
    %23 = math.rsqrt %22 : vector<256x1xf32>
    %24 = vector.broadcast %23 : vector<256x1xf32> to vector<256x64xf32>
    %25 = arith.mulf %20, %24 : vector<256x64xf32>
    %26 = vector.shape_cast %5 : vector<64xf32> to vector<1x64xf32>
    %27 = vector.broadcast %26 : vector<1x64xf32> to vector<256x64xf32>
    %28 = arith.mulf %25, %27 : vector<256x64xf32>
    %29 = vector.shape_cast %7 : vector<64xf32> to vector<1x64xf32>
    %30 = vector.broadcast %29 : vector<1x64xf32> to vector<256x64xf32>
    %31 = arith.addf %28, %30 : vector<256x64xf32>
    %32 = arith.truncf %31 : vector<256x64xf32> to vector<256x64xbf16>
    %c0_9 = arith.constant 0 : index
    %c0_10 = arith.constant 0 : index
    %33 = vector.load %arg3[%c0_9, %c0_10] : memref<64x192xbf16, #tpu.memory_space<vmem>>, vector<64x192xbf16>
    %cst_11 = arith.constant dense<0.000000e+00> : vector<256x192xf32>
    %34 = tpu.matmul %32, %33, %cst_11 {dimension_numbers = #tpu.dot_dimension_numbers<[1], [0], [0], [1], [0, 0, 1, 1], [], []>} : vector<256x64xbf16>, vector<64x192xbf16>, vector<256x192xf32> -> vector<256x192xf32>
    %c0_12 = arith.constant 0 : index
    %c0_13 = arith.constant 0 : index
    %35 = vector.load %arg4[%c0_12, %c0_13] : memref<1x192xf32, #tpu.memory_space<vmem>>, vector<1x192xf32>
    %36 = vector.shape_cast %35 : vector<1x192xf32> to vector<192xf32>
    %37 = vector.shape_cast %36 : vector<192xf32> to vector<1x192xf32>
    %38 = vector.broadcast %37 : vector<1x192xf32> to vector<256x192xf32>
    %39 = arith.addf %34, %38 : vector<256x192xf32>
    %40 = arith.truncf %39 : vector<256x192xf32> to vector<256x192xbf16>
    %41 = vector.extract_strided_slice %40 {offsets = [0, 0], sizes = [256, 16], strides = [1, 1]} : vector<256x192xbf16> to vector<256x16xbf16>
    %42 = vector.extract_strided_slice %40 {offsets = [0, 64], sizes = [256, 16], strides = [1, 1]} : vector<256x192xbf16> to vector<256x16xbf16>
    %43 = vector.extract_strided_slice %40 {offsets = [0, 128], sizes = [256, 16], strides = [1, 1]} : vector<256x192xbf16> to vector<256x16xbf16>
    %cst_14 = arith.constant dense<0.000000e+00> : vector<256x256xf32>
    %44 = tpu.matmul %41, %42, %cst_14 {dimension_numbers = #tpu.dot_dimension_numbers<[1], [1], [0], [0], [0, 0, 1, 0], [], []>} : vector<256x16xbf16>, vector<256x16xbf16>, vector<256x256xf32> -> vector<256x256xf32>
    %cst_15 = arith.constant dense<0xFF800000> : vector<256xf32>
    %45 = vector.multi_reduction <maximumf>, %44, %cst_15 [1] : vector<256x256xf32> to vector<256xf32>
    %46 = vector.shape_cast %45 : vector<256xf32> to vector<256x1xf32>
    %47 = vector.broadcast %46 : vector<256x1xf32> to vector<256x256xf32>
    %48 = arith.subf %44, %47 : vector<256x256xf32>
    %49 = math.exp %48 : vector<256x256xf32>
    %cst_16 = arith.constant dense<0.000000e+00> : vector<256xf32>
    %50 = vector.multi_reduction <add>, %49, %cst_16 [1] : vector<256x256xf32> to vector<256xf32>
    %51 = vector.shape_cast %50 : vector<256xf32> to vector<256x1xf32>
    %52 = tpu.reciprocal %51 {approx = true} : vector<256x1xf32> -> vector<256x1xf32>
    %53 = vector.broadcast %52 : vector<256x1xf32> to vector<256x256xf32>
    %54 = arith.mulf %49, %53 : vector<256x256xf32>
    %55 = arith.truncf %54 : vector<256x256xf32> to vector<256x256xbf16>
    %cst_17 = arith.constant dense<0.000000e+00> : vector<256x16xf32>
    %56 = tpu.matmul %55, %43, %cst_17 {dimension_numbers = #tpu.dot_dimension_numbers<[1], [0], [0], [1], [0, 0, 1, 1], [], []>} : vector<256x256xbf16>, vector<256x16xbf16>, vector<256x16xf32> -> vector<256x16xf32>
    %57 = arith.truncf %56 : vector<256x16xf32> to vector<256x16xbf16>
    %c0_18 = arith.constant 0 : index
    %c0_19 = arith.constant 0 : index
    %58 = vector.load %arg9[%c0_18, %c0_19] : memref<256x64xbf16, #tpu.memory_space<vmem>>, vector<256x16xbf16>
    tpu.vector_store %arg9[%c0_18, %c0_19], %57 {strides = array<i32>} : memref<256x64xbf16, #tpu.memory_space<vmem>>, vector<256x16xbf16>,
    %59 = vector.extract_strided_slice %40 {offsets = [0, 16], sizes = [256, 16], strides = [1, 1]} : vector<256x192xbf16> to vector<256x16xbf16>
    %60 = vector.extract_strided_slice %40 {offsets = [0, 80], sizes = [256, 16], strides = [1, 1]} : vector<256x192xbf16> to vector<256x16xbf16>
    %61 = vector.extract_strided_slice %40 {offsets = [0, 144], sizes = [256, 16], strides = [1, 1]} : vector<256x192xbf16> to vector<256x16xbf16>
    %cst_20 = arith.constant dense<0.000000e+00> : vector<256x256xf32>
    %62 = tpu.matmul %59, %60, %cst_20 {dimension_numbers = #tpu.dot_dimension_numbers<[1], [1], [0], [0], [0, 0, 1, 0], [], []>} : vector<256x16xbf16>, vector<256x16xbf16>, vector<256x256xf32> -> vector<256x256xf32>
    %cst_21 = arith.constant dense<0xFF800000> : vector<256xf32>
    %63 = vector.multi_reduction <maximumf>, %62, %cst_21 [1] : vector<256x256xf32> to vector<256xf32>
    %64 = vector.shape_cast %63 : vector<256xf32> to vector<256x1xf32>
    %65 = vector.broadcast %64 : vector<256x1xf32> to vector<256x256xf32>
    %66 = arith.subf %62, %65 : vector<256x256xf32>
    %67 = math.exp %66 : vector<256x256xf32>
    %cst_22 = arith.constant dense<0.000000e+00> : vector<256xf32>
    %68 = vector.multi_reduction <add>, %67, %cst_22 [1] : vector<256x256xf32> to vector<256xf32>
    %69 = vector.shape_cast %68 : vector<256xf32> to vector<256x1xf32>
    %70 = tpu.reciprocal %69 {approx = true} : vector<256x1xf32> -> vector<256x1xf32>
    %71 = vector.broadcast %70 : vector<256x1xf32> to vector<256x256xf32>
    %72 = arith.mulf %67, %71 : vector<256x256xf32>
    %73 = arith.truncf %72 : vector<256x256xf32> to vector<256x256xbf16>
    %cst_23 = arith.constant dense<0.000000e+00> : vector<256x16xf32>
    %74 = tpu.matmul %73, %61, %cst_23 {dimension_numbers = #tpu.dot_dimension_numbers<[1], [0], [0], [1], [0, 0, 1, 1], [], []>} : vector<256x256xbf16>, vector<256x16xbf16>, vector<256x16xf32> -> vector<256x16xf32>
    %75 = arith.truncf %74 : vector<256x16xf32> to vector<256x16xbf16>
    %c0_24 = arith.constant 0 : index
    %c16 = arith.constant 16 : index
    %76 = vector.load %arg9[%c0_24, %c16] : memref<256x64xbf16, #tpu.memory_space<vmem>>, vector<256x16xbf16>
    tpu.vector_store %arg9[%c0_24, %c16], %75 {strides = array<i32>} : memref<256x64xbf16, #tpu.memory_space<vmem>>, vector<256x16xbf16>,
    %77 = vector.extract_strided_slice %40 {offsets = [0, 32], sizes = [256, 16], strides = [1, 1]} : vector<256x192xbf16> to vector<256x16xbf16>
    %78 = vector.extract_strided_slice %40 {offsets = [0, 96], sizes = [256, 16], strides = [1, 1]} : vector<256x192xbf16> to vector<256x16xbf16>
    %79 = vector.extract_strided_slice %40 {offsets = [0, 160], sizes = [256, 16], strides = [1, 1]} : vector<256x192xbf16> to vector<256x16xbf16>
    %cst_25 = arith.constant dense<0.000000e+00> : vector<256x256xf32>
    %80 = tpu.matmul %77, %78, %cst_25 {dimension_numbers = #tpu.dot_dimension_numbers<[1], [1], [0], [0], [0, 0, 1, 0], [], []>} : vector<256x16xbf16>, vector<256x16xbf16>, vector<256x256xf32> -> vector<256x256xf32>
    %cst_26 = arith.constant dense<0xFF800000> : vector<256xf32>
    %81 = vector.multi_reduction <maximumf>, %80, %cst_26 [1] : vector<256x256xf32> to vector<256xf32>
    %82 = vector.shape_cast %81 : vector<256xf32> to vector<256x1xf32>
    %83 = vector.broadcast %82 : vector<256x1xf32> to vector<256x256xf32>
    %84 = arith.subf %80, %83 : vector<256x256xf32>
    %85 = math.exp %84 : vector<256x256xf32>
    %cst_27 = arith.constant dense<0.000000e+00> : vector<256xf32>
    %86 = vector.multi_reduction <add>, %85, %cst_27 [1] : vector<256x256xf32> to vector<256xf32>
    %87 = vector.shape_cast %86 : vector<256xf32> to vector<256x1xf32>
    %88 = tpu.reciprocal %87 {approx = true} : vector<256x1xf32> -> vector<256x1xf32>
    %89 = vector.broadcast %88 : vector<256x1xf32> to vector<256x256xf32>
    %90 = arith.mulf %85, %89 : vector<256x256xf32>
    %91 = arith.truncf %90 : vector<256x256xf32> to vector<256x256xbf16>
    %cst_28 = arith.constant dense<0.000000e+00> : vector<256x16xf32>
    %92 = tpu.matmul %91, %79, %cst_28 {dimension_numbers = #tpu.dot_dimension_numbers<[1], [0], [0], [1], [0, 0, 1, 1], [], []>} : vector<256x256xbf16>, vector<256x16xbf16>, vector<256x16xf32> -> vector<256x16xf32>
    %93 = arith.truncf %92 : vector<256x16xf32> to vector<256x16xbf16>
    %c0_29 = arith.constant 0 : index
    %c32 = arith.constant 32 : index
    %94 = vector.load %arg9[%c0_29, %c32] : memref<256x64xbf16, #tpu.memory_space<vmem>>, vector<256x16xbf16>
    tpu.vector_store %arg9[%c0_29, %c32], %93 {strides = array<i32>} : memref<256x64xbf16, #tpu.memory_space<vmem>>, vector<256x16xbf16>,
    %95 = vector.extract_strided_slice %40 {offsets = [0, 48], sizes = [256, 16], strides = [1, 1]} : vector<256x192xbf16> to vector<256x16xbf16>
    %96 = vector.extract_strided_slice %40 {offsets = [0, 112], sizes = [256, 16], strides = [1, 1]} : vector<256x192xbf16> to vector<256x16xbf16>
    %97 = vector.extract_strided_slice %40 {offsets = [0, 176], sizes = [256, 16], strides = [1, 1]} : vector<256x192xbf16> to vector<256x16xbf16>
    %cst_30 = arith.constant dense<0.000000e+00> : vector<256x256xf32>
    %98 = tpu.matmul %95, %96, %cst_30 {dimension_numbers = #tpu.dot_dimension_numbers<[1], [1], [0], [0], [0, 0, 1, 0], [], []>} : vector<256x16xbf16>, vector<256x16xbf16>, vector<256x256xf32> -> vector<256x256xf32>
    %cst_31 = arith.constant dense<0xFF800000> : vector<256xf32>
    %99 = vector.multi_reduction <maximumf>, %98, %cst_31 [1] : vector<256x256xf32> to vector<256xf32>
    %100 = vector.shape_cast %99 : vector<256xf32> to vector<256x1xf32>
    %101 = vector.broadcast %100 : vector<256x1xf32> to vector<256x256xf32>
    %102 = arith.subf %98, %101 : vector<256x256xf32>
    %103 = math.exp %102 : vector<256x256xf32>
    %cst_32 = arith.constant dense<0.000000e+00> : vector<256xf32>
    %104 = vector.multi_reduction <add>, %103, %cst_32 [1] : vector<256x256xf32> to vector<256xf32>
    %105 = vector.shape_cast %104 : vector<256xf32> to vector<256x1xf32>
    %106 = tpu.reciprocal %105 {approx = true} : vector<256x1xf32> -> vector<256x1xf32>
    %107 = vector.broadcast %106 : vector<256x1xf32> to vector<256x256xf32>
    %108 = arith.mulf %103, %107 : vector<256x256xf32>
    %109 = arith.truncf %108 : vector<256x256xf32> to vector<256x256xbf16>
    %cst_33 = arith.constant dense<0.000000e+00> : vector<256x16xf32>
    %110 = tpu.matmul %109, %97, %cst_33 {dimension_numbers = #tpu.dot_dimension_numbers<[1], [0], [0], [1], [0, 0, 1, 1], [], []>} : vector<256x256xbf16>, vector<256x16xbf16>, vector<256x16xf32> -> vector<256x16xf32>
    %111 = arith.truncf %110 : vector<256x16xf32> to vector<256x16xbf16>
    %c0_34 = arith.constant 0 : index
    %c48 = arith.constant 48 : index
    %112 = vector.load %arg9[%c0_34, %c48] : memref<256x64xbf16, #tpu.memory_space<vmem>>, vector<256x16xbf16>
    tpu.vector_store %arg9[%c0_34, %c48], %111 {strides = array<i32>} : memref<256x64xbf16, #tpu.memory_space<vmem>>, vector<256x16xbf16>,
    %c0_35 = arith.constant 0 : index
    %c0_36 = arith.constant 0 : index
    %113 = vector.load %arg9[%c0_35, %c0_36] : memref<256x64xbf16, #tpu.memory_space<vmem>>, vector<256x64xbf16>
    %c0_37 = arith.constant 0 : index
    %c0_38 = arith.constant 0 : index
    %114 = vector.load %arg5[%c0_37, %c0_38] : memref<64x64xbf16, #tpu.memory_space<vmem>>, vector<64x64xbf16>
    %cst_39 = arith.constant dense<0.000000e+00> : vector<256x64xf32>
    %115 = tpu.matmul %113, %114, %cst_39 {dimension_numbers = #tpu.dot_dimension_numbers<[1], [0], [0], [1], [0, 0, 1, 1], [], []>} : vector<256x64xbf16>, vector<64x64xbf16>, vector<256x64xf32> -> vector<256x64xf32>
    %c2 = arith.constant 2 : index
    %c0_40 = arith.constant 0 : index
    %116 = vector.load %arg2[%c2, %c0_40] : memref<8x64xf32, #tpu.memory_space<vmem>>, vector<1x64xf32>
    %117 = vector.shape_cast %116 : vector<1x64xf32> to vector<64xf32>
    %118 = vector.shape_cast %117 : vector<64xf32> to vector<1x64xf32>
    %119 = vector.broadcast %118 : vector<1x64xf32> to vector<256x64xf32>
    %120 = arith.addf %115, %119 : vector<256x64xf32>
    %121 = arith.addf %120, %3 : vector<256x64xf32>
    %c3 = arith.constant 3 : index
    %c0_41 = arith.constant 0 : index
    %122 = vector.load %arg2[%c3, %c0_41] : memref<8x64xf32, #tpu.memory_space<vmem>>, vector<1x64xf32>
    %123 = vector.shape_cast %122 : vector<1x64xf32> to vector<64xf32>
    %c4 = arith.constant 4 : index
    %c0_42 = arith.constant 0 : index
    %124 = vector.load %arg2[%c4, %c0_42] : memref<8x64xf32, #tpu.memory_space<vmem>>, vector<1x64xf32>
    %125 = vector.shape_cast %124 : vector<1x64xf32> to vector<64xf32>
    %cst_43 = arith.constant dense<0.000000e+00> : vector<256xf32>
    %126 = vector.multi_reduction <add>, %121, %cst_43 [1] : vector<256x64xf32> to vector<256xf32>
    %127 = vector.shape_cast %126 : vector<256xf32> to vector<256x1xf32>
    %cst_44 = arith.constant 6.400000e+01 : f32
    %128 = vector.broadcast %cst_44 : f32 to vector<256x1xf32>
    %129 = arith.divf %127, %128 : vector<256x1xf32>
    %130 = arith.mulf %121, %121 : vector<256x64xf32>
    %cst_45 = arith.constant dense<0.000000e+00> : vector<256xf32>
    %131 = vector.multi_reduction <add>, %130, %cst_45 [1] : vector<256x64xf32> to vector<256xf32>
    %132 = vector.shape_cast %131 : vector<256xf32> to vector<256x1xf32>
    %cst_46 = arith.constant 6.400000e+01 : f32
    %133 = vector.broadcast %cst_46 : f32 to vector<256x1xf32>
    %134 = arith.divf %132, %133 : vector<256x1xf32>
    %135 = arith.mulf %129, %129 : vector<256x1xf32>
    %136 = arith.subf %134, %135 : vector<256x1xf32>
    %137 = vector.broadcast %129 : vector<256x1xf32> to vector<256x64xf32>
    %138 = arith.subf %121, %137 : vector<256x64xf32>
    %cst_47 = arith.constant 9.99999974E-6 : f32
    %139 = vector.broadcast %cst_47 : f32 to vector<256x1xf32>
    %140 = arith.addf %136, %139 : vector<256x1xf32>
    %141 = math.rsqrt %140 : vector<256x1xf32>
    %142 = vector.broadcast %141 : vector<256x1xf32> to vector<256x64xf32>
    %143 = arith.mulf %138, %142 : vector<256x64xf32>
    %144 = vector.shape_cast %123 : vector<64xf32> to vector<1x64xf32>
    %145 = vector.broadcast %144 : vector<1x64xf32> to vector<256x64xf32>
    %146 = arith.mulf %143, %145 : vector<256x64xf32>
    %147 = vector.shape_cast %125 : vector<64xf32> to vector<1x64xf32>
    %148 = vector.broadcast %147 : vector<1x64xf32> to vector<256x64xf32>
    %149 = arith.addf %146, %148 : vector<256x64xf32>
    %150 = arith.truncf %149 : vector<256x64xf32> to vector<256x64xbf16>
    %c0_48 = arith.constant 0 : index
    %c0_49 = arith.constant 0 : index
    %151 = vector.load %arg6[%c0_48, %c0_49] : memref<64x64xbf16, #tpu.memory_space<vmem>>, vector<64x64xbf16>
    %cst_50 = arith.constant dense<0.000000e+00> : vector<256x64xf32>
    %152 = tpu.matmul %150, %151, %cst_50 {dimension_numbers = #tpu.dot_dimension_numbers<[1], [0], [0], [1], [0, 0, 1, 1], [], []>} : vector<256x64xbf16>, vector<64x64xbf16>, vector<256x64xf32> -> vector<256x64xf32>
    %c5 = arith.constant 5 : index
    %c0_51 = arith.constant 0 : index
    %153 = vector.load %arg2[%c5, %c0_51] : memref<8x64xf32, #tpu.memory_space<vmem>>, vector<1x64xf32>
    %154 = vector.shape_cast %153 : vector<1x64xf32> to vector<64xf32>
    %155 = vector.shape_cast %154 : vector<64xf32> to vector<1x64xf32>
    %156 = vector.broadcast %155 : vector<1x64xf32> to vector<256x64xf32>
    %157 = arith.addf %152, %156 : vector<256x64xf32>
    %cst_52 = arith.constant 5.000000e-01 : f32
    %158 = vector.broadcast %cst_52 : f32 to vector<256x64xf32>
    %159 = arith.mulf %158, %157 : vector<256x64xf32>
    %cst_53 = arith.constant 0.707106769 : f32
    %160 = vector.broadcast %cst_53 : f32 to vector<256x64xf32>
    %161 = arith.mulf %157, %160 : vector<256x64xf32>
    %162 = math.erf %161 : vector<256x64xf32>
    %cst_54 = arith.constant 1.000000e+00 : f32
    %163 = vector.broadcast %cst_54 : f32 to vector<256x64xf32>
    %164 = arith.addf %163, %162 : vector<256x64xf32>
    %165 = arith.mulf %159, %164 : vector<256x64xf32>
    %166 = arith.truncf %165 : vector<256x64xf32> to vector<256x64xbf16>
    %c0_55 = arith.constant 0 : index
    %c0_56 = arith.constant 0 : index
    %167 = vector.load %arg7[%c0_55, %c0_56] : memref<64x64xbf16, #tpu.memory_space<vmem>>, vector<64x64xbf16>
    %cst_57 = arith.constant dense<0.000000e+00> : vector<256x64xf32>
    %168 = tpu.matmul %166, %167, %cst_57 {dimension_numbers = #tpu.dot_dimension_numbers<[1], [0], [0], [1], [0, 0, 1, 1], [], []>} : vector<256x64xbf16>, vector<64x64xbf16>, vector<256x64xf32> -> vector<256x64xf32>
    %c6 = arith.constant 6 : index
    %c0_58 = arith.constant 0 : index
    %169 = vector.load %arg2[%c6, %c0_58] : memref<8x64xf32, #tpu.memory_space<vmem>>, vector<1x64xf32>
    %170 = vector.shape_cast %169 : vector<1x64xf32> to vector<64xf32>
    %171 = vector.shape_cast %170 : vector<64xf32> to vector<1x64xf32>
    %172 = vector.broadcast %171 : vector<1x64xf32> to vector<256x64xf32>
    %173 = arith.addf %168, %172 : vector<256x64xf32>
    %174 = arith.addf %173, %121 : vector<256x64xf32>
    %175 = tpu.transpose %174, [1, 0] : vector<256x64xf32> -> vector<64x256xf32>
    %176 = arith.truncf %175 : vector<64x256xf32> to vector<64x256xbf16>
    %c0_59 = arith.constant 0 : index
    %c0_60 = arith.constant 0 : index
    %c0_61 = arith.constant 0 : index
    %177 = vector.load %arg8[%c0_59, %c0_60, %c0_61] : memref<1x64x256xbf16, #tpu.memory_space<vmem>>, vector<1x64x256xbf16>
    %178 = vector.shape_cast %177 : vector<1x64x256xbf16> to vector<64x256xbf16>
    %179 = vector.shape_cast %176 : vector<64x256xbf16> to vector<1x64x256xbf16>
    tpu.vector_store %arg8[%c0_59, %c0_60, %c0_61], %179 {strides = array<i32>} : memref<1x64x256xbf16, #tpu.memory_space<vmem>>, vector<1x64x256xbf16>,
    return
  }
  func.func @transform_0(%arg0: i32) -> (i32, i32, i32) {
    %c0_i32 = arith.constant 0 : i32
    %c0_i32_0 = arith.constant 0 : i32
    %c0_i32_1 = arith.constant 0 : i32
    return %arg0, %c0_i32, %c0_i32_0 : i32, i32, i32
  }
  func.func @transform_1(%arg0: i32) -> (i32, i32) {
    %c0_i32 = arith.constant 0 : i32
    %c0_i32_0 = arith.constant 0 : i32
    %c0_i32_1 = arith.constant 0 : i32
    return %c0_i32, %c0_i32_0 : i32, i32
  }
  func.func @transform_2(%arg0: i32) -> (i32, i32) {
    %c0_i32 = arith.constant 0 : i32
    %c0_i32_0 = arith.constant 0 : i32
    %c0_i32_1 = arith.constant 0 : i32
    return %c0_i32, %c0_i32_0 : i32, i32
  }
  func.func @transform_3(%arg0: i32) -> (i32, i32) {
    %c0_i32 = arith.constant 0 : i32
    %c0_i32_0 = arith.constant 0 : i32
    %c0_i32_1 = arith.constant 0 : i32
    return %c0_i32, %c0_i32_0 : i32, i32
  }
  func.func @transform_4(%arg0: i32) -> (i32, i32) {
    %c0_i32 = arith.constant 0 : i32
    %c0_i32_0 = arith.constant 0 : i32
    %c0_i32_1 = arith.constant 0 : i32
    return %c0_i32, %c0_i32_0 : i32, i32
  }
  func.func @transform_5(%arg0: i32) -> (i32, i32) {
    %c0_i32 = arith.constant 0 : i32
    %c0_i32_0 = arith.constant 0 : i32
    %c0_i32_1 = arith.constant 0 : i32
    return %c0_i32, %c0_i32_0 : i32, i32
  }
  func.func @transform_6(%arg0: i32) -> (i32, i32) {
    %c0_i32 = arith.constant 0 : i32
    %c0_i32_0 = arith.constant 0 : i32
    %c0_i32_1 = arith.constant 0 : i32
    return %c0_i32, %c0_i32_0 : i32, i32
  }
  func.func @transform_7(%arg0: i32) -> (i32, i32, i32) {
    %c0_i32 = arith.constant 0 : i32
    %c0_i32_0 = arith.constant 0 : i32
    %c0_i32_1 = arith.constant 0 : i32
    return %arg0, %c0_i32, %c0_i32_0 : i32, i32, i32
  }
}

</mosaic_0001>

<bundles_post_ra>
// kernel: tpu_custom_call.1
= control target key start
LH: loop header
LB: loop body
LE: loop exit
PB: predicated region body
PF: predicated region fallthrough
CT: control target
= control target key end

     0   :  { %s16025_s0 = inlined_call_operand.hbm [shape: bf16[2,64,256], index: 0, kind: input, shape index: {}]   ;;  %s16026_s1 = inlined_call_operand.hbm [shape: f32[8,64], index: 1, kind: input, shape index: {}]   ;;  %s16027_s2 = inlined_call_operand.hbm [shape: bf16[64,192], index: 2, kind: input, shape index: {}]   ;;  %s16028_s3 = inlined_call_operand.vmem [shape: f32[1,192], index: 3, kind: input, shape index: {}]   ;;  %s16029_s4 = inlined_call_operand.hbm [shape: bf16[64,64], index: 4, kind: input, shape index: {}]   ;;  %s16030_s5 = inlined_call_operand.hbm [shape: bf16[64,64], index: 5, kind: input, shape index: {}]   ;;  %s16031_s6 = inlined_call_operand.hbm [shape: bf16[64,64], index: 6, kind: input, shape index: {}]   ;;  %s16032_s7 = inlined_call_operand.hbm [shape: bf16[2,64,256], index: 7, kind: output, shape index: {}]  }
   0x1   :  { %16635 = sst [smem:[#allocation241_spill]] %s16026_s1 }
   0x2   :  { %12 = vsyncpa [#allocation4], 0 }
   0x3   :  { %14 = vsyncpa [#allocation4 + $0x1], 0 }
   0x4   :  { %15 = vsyncpa [#allocation7], 0 }
   0x5   :  { %16 = vsyncpa [#allocation10], 0 }
   0x6   :  { %17 = vsyncpa [#allocation13], 0 }
   0x7   :  { %18 = vsyncpa [#allocation5], 0 }
   0x8   :  { %20 = vsyncpa [#allocation5 + $0x1], 0  ;;  %s10385_s24 = smov 0   ;;  %s10387_s25 = smov 0  }
   0x9   :  { %s10389_s26 = smov 0   ;;  %s10391_s27 = smov 0  }
   0xa LB: > { %s10324_s28 = smov [#allocation6]   ;;  %s10406_s30 = sadd.s32 4294967295, %s10322_s27   ;;  %s10322_s27 = sphi %s10391_s27, %s17778_s27   ;;  %s10318_s26 = sphi %s10389_s26, %s17777_s26   ;;  %s10314_s25 = sphi %s10387_s25, %s17776_s25   ;;  %s10310_s24 = sphi %s10385_s24, %s17775_s24  }
   0xb   : > { %s222_s29 = sshll.u32 %s10324_s28, 4  ;;  %p7754_p0 = scmp.ge.s32.totalorder %s10322_s27, 1  ;;  %s223_s29 = int_to_ptr.vmem [resolvable:$true] %s222_s29 }
   0xc   : > { %p16033_p1 = scmp.eq.s32.totalorder %s10406_s30, 0  ;;  %p209_p2 = scmp.lt.s32.totalorder %s10322_s27, 3 }
   0xd   : > { %s10325_s9 = smov [#allocation9]   ;;  %s10326_s12 = smov [#allocation8]  }
   0xe   : > { %p10411_p3 = pnand %p7754_p0, %p209_p2  ;;  %s248_s10 = sshll.u32 %s10325_s9, 4  ;;  %s10418_s10 = int_to_ptr.vmem [resolvable:$true] %s248_s10 }
   0xf   : > { %s232_s13 = sshll.u32 %s10326_s12, 4  ;;  %s16638_s1 = sld [smem:[#allocation241_spill]]  ;;  %s10426_s13 = int_to_ptr.vmem [resolvable:$true] %s232_s13 }
  0x10   : > { %s16636_s8 = scalar_select %p10411_p3, 1, 0 }
  0x11   : > { %p8834_p5 = pneg %p10411_p3 }
  0x13   : > { %p10422_p6 = pnand %p8834_p5, %p16033_p1 }
  0x15   : > { %s10074_s16 = scalar_lea.hbm %s16638_s1, 128  ;;  %p10436_p8 = pneg %p10422_p6 }
  0x16   : > { %p10075_p7 = scmp.ne.s32.totalorder %s16638_s1, %s10074_s16  ;;  %p10081_p11 = scmp.lt.u32.totalorder %s10074_s16, %s16638_s1 }
  0x18   : > { %p10077_p9 = pnand %p10436_p8, %p10075_p7 }
  0x1a   : > { %p10078_p10 = pneg %p10077_p9 }
  0x1c   : > { %p10083_p12 = pnand %p10081_p11, %p10078_p10 }
  0x1e   : > { %10086 = shalt.err (!%p10083_p12)
}
  0x1f   : > { %s10087_s22 = scalar_lea.vmem %s223_s29, 128  ;;  %p10095_p5 = scmp.lt.s32.totalorder %s223_s29, %s223_s29 }
  0x20   : > { %p10088_p13 = scmp.ne.s32.totalorder %s223_s29, %s10087_s22  ;;  %p10096_p4 = scmp.lt.s32.totalorder %s10087_s22, %s10087_s22 }
  0x22   : > { %p10090_p0 = pnand %p10088_p13, %p10436_p8  ;;  %p10097_p1 = por %p10096_p4, %p10095_p5 }
  0x24   : > { %p10091_p2 = pneg %p10090_p0 }
  0x26   : > { %p10098_p3 = pnand %p10097_p1, %p10091_p2 }
  0x28   : > { %10101 = shalt.err (!%p10098_p3)
}
  0x29   : > { %8837 = dma.hbm_to_vmem [thread:$0]  (!%p10422_p6), %s16638_s1, 128, %s223_s29, [#allocation7]  }
  0x2a   : > { %s10102_s14 = scalar_lea.hbm %s16029_s4, 512 }
  0x2b   : > { %p10103_p7 = scmp.ne.s32.totalorder %s16029_s4, %s10102_s14  ;;  %p10109_p1 = scmp.lt.u32.totalorder %s10102_s14, %s16029_s4 }
  0x2d   : > { %p10105_p9 = pnand %p10103_p7, %p10436_p8 }
  0x2f   : > { %p10106_p4 = pneg %p10105_p9 }
  0x31   : > { %p10111_p3 = pnand %p10109_p1, %p10106_p4 }
  0x33   : > { %10114 = shalt.err (!%p10111_p3)
}
  0x34   : > { %s10115_s29 = scalar_lea.vmem %s10418_s10, 512  ;;  %p10123_p13 = scmp.lt.s32.totalorder %s10418_s10, %s10418_s10 }
  0x35   : > { %p10116_p10 = scmp.ne.s32.totalorder %s10418_s10, %s10115_s29  ;;  %p10124_p0 = scmp.lt.s32.totalorder %s10115_s29, %s10115_s29 }
  0x37   : > { %p10118_p11 = pnand %p10116_p10, %p10436_p8  ;;  %p10125_p2 = por %p10124_p0, %p10123_p13 }
  0x39   : > { %p10119_p12 = pneg %p10118_p11 }
  0x3b   : > { %p10126_p5 = pnand %p10125_p2, %p10119_p12 }
  0x3d   : > { %10129 = shalt.err (!%p10126_p5)
}
  0x3e   : > { %s16035_s20 = smov 64   ;;  %s16037_s21 = smov 4  }
  0x3f   : > { %8843 = dma.hbm_to_vmem [thread:$0]  (!%p10422_p6), %s16029_s4, 512, %s10418_s10, [#allocation10], %s16035_s20, %s16035_s20, %s16037_s21  }
  0x40   : > { %s10130_s12 = scalar_lea.hbm %s16027_s2, 1024 }
  0x41   : > { %p10131_p7 = scmp.ne.s32.totalorder %s16027_s2, %s10130_s12  ;;  %p10137_p1 = scmp.lt.u32.totalorder %s10130_s12, %s16027_s2 }
  0x43   : > { %p10133_p9 = pnand %p10131_p7, %p10436_p8 }
  0x45   : > { %p10134_p4 = pneg %p10133_p9 }
  0x47   : > { %p10139_p3 = pnand %p10137_p1, %p10134_p4 }
  0x49   : > { %10142 = shalt.err (!%p10139_p3)
}
  0x4a   : > { %s10143_s10 = scalar_lea.vmem %s10426_s13, 1024  ;;  %p10151_p13 = scmp.lt.s32.totalorder %s10426_s13, %s10426_s13 }
  0x4b   : > { %p10144_p10 = scmp.ne.s32.totalorder %s10426_s13, %s10143_s10  ;;  %p10152_p0 = scmp.lt.s32.totalorder %s10143_s10, %s10143_s10 }
  0x4d   : > { %p10146_p11 = pnand %p10144_p10, %p10436_p8  ;;  %p10153_p2 = por %p10152_p0, %p10151_p13 }
  0x4f   : > { %p10147_p12 = pneg %p10146_p11 }
  0x51   : > { %p10154_p5 = pnand %p10153_p2, %p10147_p12 }
  0x53   : > { %10157 = shalt.err (!%p10154_p5)
}
  0x54   : > { %s10329_s18 = smov 128   ;;  %s10330_s29 = smov 8  }
  0x55   : > { %8840 = dma.hbm_to_vmem [thread:$0]  (!%p10422_p6), %s16027_s2, 1024, %s10426_s13, [#allocation7], %s10329_s18, %s10329_s18, %s10330_s29  }
  0x56   : > { %s10331_s28 = smov [#allocation11]   ;;  %s10332_s12 = smov [#allocation12]  }
  0x57   : > { %s261_s9 = sshll.u32 %s10331_s28, 4  ;;  %s274_s14 = sshll.u32 %s10332_s12, 4  ;;  %s262_s9 = int_to_ptr.vmem [resolvable:$true] %s261_s9  ;;  %s275_s14 = int_to_ptr.vmem [resolvable:$true] %s274_s14 }
  0x58   : > { %s10158_s17 = scalar_lea.hbm %s16030_s5, 512 }
  0x59   : > { %p10159_p7 = scmp.ne.s32.totalorder %s16030_s5, %s10158_s17  ;;  %p10165_p1 = scmp.lt.u32.totalorder %s10158_s17, %s16030_s5 }
  0x5b   : > { %p10161_p9 = pnand %p10159_p7, %p10436_p8 }
  0x5d   : > { %p10162_p4 = pneg %p10161_p9 }
  0x5f   : > { %p10167_p3 = pnand %p10165_p1, %p10162_p4 }
  0x61   : > { %10170 = shalt.err (!%p10167_p3)
}
  0x62   : > { %s10171_s13 = scalar_lea.vmem %s262_s9, 512  ;;  %p10179_p13 = scmp.lt.s32.totalorder %s262_s9, %s262_s9 }
  0x63   : > { %p10172_p10 = scmp.ne.s32.totalorder %s262_s9, %s10171_s13  ;;  %p10180_p0 = scmp.lt.s32.totalorder %s10171_s13, %s10171_s13 }
  0x65   : > { %p10174_p11 = pnand %p10172_p10, %p10436_p8  ;;  %p10181_p2 = por %p10180_p0, %p10179_p13 }
  0x67   : > { %p10175_p12 = pneg %p10174_p11 }
  0x69   : > { %p10182_p5 = pnand %p10181_p2, %p10175_p12 }
  0x6b   : > { %10185 = shalt.err (!%p10182_p5)
}
  0x6c   : > { %s16640_s20 = smov 4   ;;  %s16641_s22 = smov 64  }
  0x6d   : > { %8846 = dma.hbm_to_vmem [thread:$0]  (!%p10422_p6), %s16030_s5, 512, %s262_s9, [#allocation10], %s16641_s22, %s16641_s22, %s16640_s20  }
  0x6e   : > { %s10186_s12 = scalar_lea.hbm %s16031_s6, 512 }
  0x6f   : > { %p10187_p7 = scmp.ne.s32.totalorder %s16031_s6, %s10186_s12  ;;  %p10193_p1 = scmp.lt.u32.totalorder %s10186_s12, %s16031_s6 }
  0x71   : > { %p10189_p9 = pnand %p10187_p7, %p10436_p8 }
  0x73   : > { %p10190_p4 = pneg %p10189_p9 }
  0x75   : > { %p10195_p3 = pnand %p10193_p1, %p10190_p4 }
  0x77   : > { %10198 = shalt.err (!%p10195_p3)
}
  0x78   : > { %s10199_s13 = scalar_lea.vmem %s275_s14, 512  ;;  %p10207_p13 = scmp.lt.s32.totalorder %s275_s14, %s275_s14 }
  0x79   : > { %p10200_p10 = scmp.ne.s32.totalorder %s275_s14, %s10199_s13  ;;  %p10208_p0 = scmp.lt.s32.totalorder %s10199_s13, %s10199_s13 }
  0x7b   : > { %p10202_p11 = pnand %p10200_p10, %p10436_p8  ;;  %p10209_p2 = por %p10208_p0, %p10207_p13 }
  0x7d   : > { %p10203_p12 = pneg %p10202_p11 }
  0x7f   : > { %p10210_p5 = pnand %p10209_p2, %p10203_p12 }
  0x81   : > { %10213 = shalt.err (!%p10210_p5)
}
  0x82   : > { %8849 = dma.hbm_to_vmem [thread:$0]  (!%p10422_p6), %s16031_s6, 512, %s275_s14, [#allocation13], %s16641_s22, %s16641_s22, %s16640_s20  }
  0x83   : > { %s7753_s11 = sadd.s32 4294967294, %s10322_s27   ;;  %s10548_s19 = sadd.s32 1, %s10322_s27  }
  0x84   : > { %s33_s21 = sadd.s32 1, %s10318_s26  ;;  %s30_s23 = ssub.s32 %s10322_s27, %s10548_s19 }
  0x85   : > { %p40_p8 = scmp.ne.s32.totalorder %s10318_s26, %s10314_s25  ;;  %p31_p7 = scmp.eq.s32.totalorder %s30_s23, 0 }
  0x86   : > { %p41_p9 = scmp.eq.s32.totalorder %s10322_s27, 0  ;;  %p46_p4 = scmp.ne.s32.totalorder %s10314_s25, %s10310_s24 }
  0x87   : > { %p196_p1 = scmp.eq.s32.totalorder %s10406_s30, 1  ;;  %p16642_p10 = scmp.eq.s32.totalorder %s10406_s30, 0 }
  0x88   : > { %s10560_s28 = scalar_select %p31_p7, %s10318_s26, %s33_s21  }
  0x89   : > { %p42_p3 = por %p41_p9, %p40_p8  ;;  %p10564_p11 = por %p16642_p10, %p46_p4 }
  0x8a   : > { %p10568_p6 = por %p196_p1, %p40_p8  ;;  %p202_p12 = scmp.eq.s32.totalorder %s7753_s11, 1 }
  0x8b   : > { %p8863_p13 = scmp.lt.s32.totalorder %s10322_s27, 2  ;;  %s288_s20 = sand.u32 1, %s10318_s26  }
  0x8c   : > { %s16644_s14 = scalar_select %p10568_p6, 1, 0 }
  0x8d   : > { %p10574_p0 = por %p202_p12, %p46_p4  ;;  %s7761_s15 = sshll.u32 %s288_s20, 6 }
  0x8e   : > { %s7940_s16 = sshll.u32 %s10322_s27, 10  ;;  %s292_s9 = scalar_lea.vmem [#allocation3], %s7761_s15 }
  0x8f   : > { %s16645_s22 = scalar_select %p10574_p0, 1, 0 }
  0x90   : > { %s10582_s13 = scalar_lea.hbm %s16025_s0, %s7940_s16  ;;  %s299_s1 = sshll.u32 %s292_s9, 4  ;;  %s10588_s1 = int_to_ptr.vmem [resolvable:$true] %s299_s1 }
  0x91   : > { %p10584_p2 = pnand %p8863_p13, %p42_p3  ;;  %s10590_s21 = scalar_lea.sflag [#allocation4], %s288_s20 }
  0x92   : > { %s10214_s23 = scalar_lea.hbm %s10582_s13, 1024  ;;  %s10219_s17 = scalar_lea.hbm %s16025_s0, 2048 }
  0x93   : > { %p10215_p5 = scmp.ne.s32.totalorder %s10582_s13, %s10214_s23  ;;  %p10216_p8 = pneg %p10584_p2 }
  0x94   : > { %p10220_p4 = scmp.lt.u32.totalorder %s10582_s13, %s16025_s0  ;;  %p10221_p1 = scmp.lt.u32.totalorder %s10219_s17, %s10214_s23 }
  0x95   : > { %p10217_p7 = pnand %p10216_p8, %p10215_p5  ;;  %p10223_p10 = scmp.lt.u32.totalorder %s10214_s23, %s10582_s13 }
  0x96   : > { %p10222_p3 = por %p10221_p1, %p10220_p4 }
  0x97   : > { %p10218_p9 = pneg %p10217_p7 }
  0x98   : > { %p10224_p12 = por %p10223_p10, %p10222_p3 }
  0x9a   : > { %p10225_p13 = pnand %p10224_p12, %p10218_p9 }
  0x9c   : > { %10228 = shalt.err (!%p10225_p13)
}
  0x9d   : > { %s10229_s20 = scalar_lea.vmem %s10588_s1, 1024  ;;  %s10333_s15 = smov [#allocation3]  }
  0x9e   : > { %p10230_p5 = scmp.ne.s32.totalorder %s10588_s1, %s10229_s20  ;;  %s10234_s16 = sshll.u32 %s10333_s15, 4  ;;  %s10235_s16 = int_to_ptr.vmem [resolvable:$false] %s10234_s16 }
  0x9f   : > { %s10236_s10 = scalar_lea.vmem %s10235_s16, 2048  ;;  %p10237_p6 = scmp.lt.s32.totalorder %s10588_s1, %s10235_s16 }
  0xa0   : > { %p10232_p7 = pnand %p10230_p5, %p10216_p8  ;;  %p10238_p4 = scmp.lt.s32.totalorder %s10236_s10, %s10229_s20 }
  0xa2   : > { %p10233_p0 = pneg %p10232_p7  ;;  %p10239_p1 = por %p10238_p4, %p10237_p6 }
  0xa4   : > { %p10240_p3 = pnand %p10239_p1, %p10233_p0 }
  0xa6   : > { %10243 = shalt.err (!%p10240_p3)
}
  0xa7   : > { %8853 = dma.hbm_to_vmem [thread:$0]  (!%p10584_p2), %s10582_s13, 1024, %s10588_s1, %s10590_s21, %s10329_s18, %s10329_s18, %s10330_s29  }
  0xa8   : > { %p16647_p8 = scmp.ne.s32.totalorder %s16636_s8, 0 }
  0xaa   : > { %311 = sbr.rel (%p16647_p8) target bundleno = 4490 (0x118a), region = 48 }
  0xb1   : > { %s10624_s23 = sand.u32 1, %s10314_s25  }
  0xb2   : > { %s7765_s17 = sshll.u32 %s10624_s23, 6  ;;  %s314_s9 = scalar_lea.sflag [#allocation4], %s10624_s23 }
  0xb3   : > { %s10630_s11 = scalar_lea.vmem [#allocation3], %s7765_s17 }
  0xb4   : > { %10289 = dma.done.wait (%p10564_p11), %s314_s9, 1024  }
  0xb5   : > { %10291 = vsyncadd (%p10564_p11), %s314_s9, 4294966272  ;;  %p16648_p6 = scmp.eq.s32.totalorder %s10406_s30, 0 }
  0xb7   : > { %10293 = dma.done.wait (%p16648_p6), [#allocation7], 1152   ;;  %p16649_p0 = pmov %p16648_p6 }
  0xb9   : > { %10295 = vsyncadd (%p16649_p0), [#allocation7], 4294966144  ;;  %p16650_p2 = pmov %p16649_p0 }
  0xba   : > { %p16651_p9 = pmov %p16649_p0 }
  0xbb   : > { %10297 = dma.done.wait (%p16650_p2), [#allocation10], 1024  }
  0xbc   : > { %10299 = vsyncadd (%p16651_p9), [#allocation10], 4294966272  ;;  %p16652_p10 = pmov %p16649_p0 }
  0xbd   : > { %p16653_p12 = pmov %p16649_p0 }
  0xbe   : > { %10301 = dma.done.wait (%p16652_p10), [#allocation13], 512  }
  0xbf   : > { %10303 = vsyncadd (%p16653_p12), [#allocation13], 4294966784  ;;  %v369_v0 = vld [vmem:[%s10630_s11] sm:$0xff]  ;;  %v370_v1 = vld [vmem:[%s10630_s11 + $0x8] sm:$0xff]  ;;  %vm459_vm0 = vcmask 523264   ;;  %vm1410_vm1 = vcmask 130048  }
  0xc0   : > { %v377_v2 = vunpack.c.l.bf16 %v369_v0  ;;  %v378_v3 = vunpack.c.h.bf16 %v369_v0  ;;  %v379_v4 = vunpack.c.l.bf16 %v370_v1  ;;  %v380_v5 = vunpack.c.h.bf16 %v370_v1  ;;  %v371_v6 = vld [vmem:[%s10630_s11 + $0x10] sm:$0xff]  ;;  %v372_v8 = vld [vmem:[%s10630_s11 + $0x18] sm:$0xff]  ;;  %v373_v12 = vld [vmem:[%s10630_s11 + $0x20] sm:$0xff]  ;;  %s10335_s29 = smov 48   ;;  %s10336_s12 = smov 64  }
  0xc1   : > { %v381_v10 = vunpack.c.l.bf16 %v371_v6  ;;  %v382_v11 = vunpack.c.h.bf16 %v371_v6  ;;  %v383_v14 = vunpack.c.l.bf16 %v372_v8  ;;  %v384_v15 = vunpack.c.h.bf16 %v372_v8  ;;  %v374_v19 = vld [vmem:[%s10630_s11 + $0x28] sm:$0xff]  ;;  %v375_v23 = vld [vmem:[%s10630_s11 + $0x30] sm:$0xff]  ;;  %v376_v27 = vld [vmem:[%s10630_s11 + $0x38] sm:$0xff]  ;;  %s10337_s13 = smov 112   ;;  %s10338_s1 = smov 32  }
  0xc2   : > { %v8922_v7 = vpack.i.bf16 %v378_v3, %v377_v2  ;;  %v8924_v9 = vpack.i.bf16 %v380_v5, %v379_v4  ;;  %v385_v17 = vunpack.c.l.bf16 %v373_v12  ;;  %v386_v18 = vunpack.c.h.bf16 %v373_v12  ;;  %s10339_s21 = smov 96   ;;  %s10340_s20 = smov 16  }
  0xc3   : > { %v8926_v13 = vpack.i.bf16 %v382_v11, %v381_v10  ;;  %v8928_v16 = vpack.i.bf16 %v384_v15, %v383_v14  ;;  %v387_v21 = vunpack.c.l.bf16 %v374_v19  ;;  %v388_v22 = vunpack.c.h.bf16 %v374_v19  ;;  %s10341_s15 = smov 80   ;;  %s15964_s16 = scalar_lea.vmem [#allocation14], %s7765_s17 }
  0xc4   : > { %8923 = vxpose.xlu0.b32.start [1/8] (short) %v8922_v7, 128  ;;  %v8930_v20 = vpack.i.bf16 %v386_v18, %v385_v17  ;;  %v389_v25 = vunpack.c.l.bf16 %v375_v23  ;;  %v390_v26 = vunpack.c.h.bf16 %v375_v23  ;;  %v391_v29 = vunpack.c.l.bf16 %v376_v27  ;;  %s7949_s10 = sshll.u32 %s10406_s30, 10  ;;  %s7632_s17 = sshll.u32 %s15964_s16, 4  ;;  %s15980_s17 = int_to_ptr.vmem [resolvable:$true] %s7632_s17 }
  0xc5   : > { %v8932_v24 = vpack.i.bf16 %v388_v22, %v387_v21  ;;  %v392_v30 = vunpack.c.h.bf16 %v376_v27  ;;  %v9090_v27 = vld [vmem:[#allocation8 + $0x4] ss:$8 sps:$4 sm:$0xff]   ;;  %vm3575_vm2 = vcmask 261248   ;;  %vm4746_vm3 = vcmask 392448   ;;  %s15978_s8 = scalar_lea.hbm %s16032_s7, %s7949_s10  ;;  %s7619_s18 = scalar_lea.sflag [#allocation5], %s10624_s23 }
  0xc6   : > { %v8934_v28 = vpack.i.bf16 %v390_v26, %v389_v25  ;;  %1137 = vmatprep.subr.bf16.mxu0 %v9090_v27  ;;  %vm5917_vm4 = vcmask 523648   ;;  %p17772_p13 = scmp.ne.s32.totalorder %s16644_s14, 0  ;;  %s10342_s30 = smov [#allocation14]  }
  0xc7   : > { %v8936_v31 = vpack.i.bf16 %v392_v30, %v391_v29  ;;  %v9092_v29 = vld [vmem:[#allocation8] ss:$8 sps:$4 sm:$0xff]  }
  0xc8   : > { %8925 = vxpose.xlu0.b32.cont [2/8] (short) %v8924_v9, 128  ;;  %1138 = vmatpush1.bf16.msra.mxu0 %v9092_v29 }
  0xcc   : > { %8927 = vxpose.xlu0.b32.cont [3/8] (short) %v8926_v13, 128 }
  0xd0   : > { %8929 = vxpose.xlu0.b32.cont [4/8] (short) %v8928_v16, 128 }
  0xd4   : > { %8931 = vxpose.xlu0.b32.cont [5/8] (short) %v8930_v20, 128 }
  0xd8   : > { %8933 = vxpose.xlu0.b32.cont [6/8] (short) %v8932_v24, 128 }
  0xdc   : > { %8935 = vxpose.xlu0.b32.cont [7/8] (short) %v8934_v28, 128 }
  0xe0   : > { %8937 = vxpose.xlu0.b32.end [8/8] (short) %v8936_v31, 128 }
 0x144   : > { %v8938_v32 = vpop.trf.xlu0 }
 0x145   : > { %v10656_v33 = vunpack.i.l.bf16 %v8938_v32  ;;  %v10660_v35 = vunpack.i.h.bf16 %v8938_v32 }
 0x147   : > { %16654 = vst [vmem:[#allocation20_spill] sm:$0xff] %v10656_v33  ;;  %v460_v34 = vsel %vm459_vm0, %v10656_v33, 0.0  ;;  %16655 = vst [vmem:[#allocation21_spill] sm:$0xff] %v10660_v35  ;;  %v508_v39 = vsel %vm459_vm0, %v10660_v35, 0.0  ;;  %v589_v41 = vmul.f32 %v10656_v33, %v10656_v33  ;;  %v605_v45 = vmul.f32 %v10660_v35, %v10660_v35 }
 0x148   : > { %v8943_v36 = vpop.trf.xlu0  ;;  %461 = vadd.xlane.f32.xlu1 %v460_v34 }
 0x149   : > { %v10662_v37 = vunpack.i.h.bf16 %v8943_v36  ;;  %v621_v44 = vsel %vm459_vm0, %v589_v41, 0.0  ;;  %v10676_v47 = vunpack.i.l.bf16 %v8943_v36  ;;  %v669_v50 = vsel %vm459_vm0, %v605_v45, 0.0  ;;  %v9093_v36 = vld [vmem:[#allocation8 + $0x14] ss:$8 sps:$4 sm:$0xff]  }
 0x14a   : > { %1139 = vmatprep.subr.bf16.mxu0 %v9093_v36 }
 0x14b   : > { %16656 = vst [vmem:[#allocation22_spill] sm:$0xff] %v10662_v37  ;;  %v511_v38 = vsel %vm459_vm0, %v10662_v37, 0.0  ;;  %v606_v40 = vmul.f32 %v10662_v37, %v10662_v37  ;;  %16657 = vst [vmem:[#allocation23_spill] sm:$0xff] %v10676_v47  ;;  %v463_v53 = vsel %vm459_vm0, %v10676_v47, 0.0  ;;  %v590_v56 = vmul.f32 %v10676_v47, %v10676_v47 }
 0x14c   : > { %v8948_v42 = vpop.trf.xlu0  ;;  %512 = vadd.xlane.f32.xlu0 %v511_v38  ;;  %509 = vadd.xlane.f32.xlu1 %v508_v39  ;;  %v9095_v39 = vld [vmem:[#allocation8 + $0x10] ss:$8 sps:$4 sm:$0xff]  }
 0x14d   : > { %v672_v43 = vsel %vm459_vm0, %v606_v40, 0.0  ;;  %v10694_v58 = vunpack.i.l.bf16 %v8948_v42  ;;  %v624_v61 = vsel %vm459_vm0, %v590_v56, 0.0  ;;  %v10710_v2 = vunpack.i.h.bf16 %v8948_v42  ;;  %1140 = vmatpush1.bf16.msra.mxu0 %v9095_v39  ;;  %v9101_v56 = vld [vmem:[#allocation8 + $0x30] ss:$8 sps:$4 sm:$0xff]  }
 0x14f   : > { %16660 = vst [vmem:[#allocation26_spill] sm:$0xff] %v10694_v58  ;;  %v466_v63 = vsel %vm459_vm0, %v10694_v58, 0.0  ;;  %16662 = vst [vmem:[#allocation28_spill] sm:$0xff] %v10710_v2  ;;  %v514_v6 = vsel %vm459_vm0, %v10710_v2, 0.0  ;;  %v591_v7 = vmul.f32 %v10694_v58, %v10694_v58  ;;  %v607_v12 = vmul.f32 %v10710_v2, %v10710_v2 }
 0x150   : > { %v8953_v46 = vpop.trf.xlu0  ;;  %673 = vadd.xlane.f32.xlu0 %v672_v43  ;;  %622 = vadd.xlane.f32.xlu1 %v621_v44  ;;  %v9096_v43 = vld [vmem:[#allocation8 + $0x24] ss:$8 sps:$4 sm:$0xff]  }
 0x151   : > { %v10678_v48 = vunpack.i.h.bf16 %v8953_v46  ;;  %v627_v11 = vsel %vm459_vm0, %v591_v7, 0.0  ;;  %v10733_v14 = vunpack.i.l.bf16 %v8953_v46  ;;  %v675_v17 = vsel %vm459_vm0, %v607_v12, 0.0  ;;  %v9098_v46 = vld [vmem:[#allocation8 + $0x20] ss:$8 sps:$4 sm:$0xff]   ;;  %1141 = vmatprep.subr.bf16.mxu0 %v9096_v43 }
 0x152   : > { %1142 = vmatpush1.bf16.msra.mxu0 %v9098_v46 }
 0x153   : > { %16658 = vst [vmem:[#allocation24_spill] sm:$0xff] %v10678_v48  ;;  %v517_v49 = vsel %vm459_vm0, %v10678_v48, 0.0  ;;  %v608_v51 = vmul.f32 %v10678_v48, %v10678_v48  ;;  %16664 = vst [vmem:[#allocation30_spill] sm:$0xff] %v10733_v14  ;;  %v469_v19 = vsel %vm459_vm0, %v10733_v14, 0.0  ;;  %v592_v22 = vmul.f32 %v10733_v14, %v10733_v14 }
 0x154   : > { %518 = vadd.xlane.f32.xlu0 %v517_v49  ;;  %670 = vadd.xlane.f32.xlu1 %v669_v50  ;;  %v8958_v52 = vpop.trf.xlu0 }
 0x155   : > { %v678_v54 = vsel %vm459_vm0, %v608_v51, 0.0  ;;  %v10688_v55 = vunpack.i.l.bf16 %v8958_v52  ;;  %v10752_v24 = vunpack.i.h.bf16 %v8958_v52  ;;  %v630_v28 = vsel %vm459_vm0, %v592_v22, 0.0 }
 0x157   : > { %16659 = vst [vmem:[#allocation25_spill] sm:$0xff] %v10688_v55  ;;  %v472_v59 = vsel %vm459_vm0, %v10688_v55, 0.0  ;;  %16666 = vst [vmem:[#allocation32_spill] sm:$0xff] %v10752_v24  ;;  %v520_v31 = vsel %vm459_vm0, %v10752_v24, 0.0  ;;  %v593_v38 = vmul.f32 %v10688_v55, %v10688_v55  ;;  %v609_v45 = vmul.f32 %v10752_v24, %v10752_v24 }
 0x158   : > { %679 = vadd.xlane.f32.xlu0 %v678_v54  ;;  %464 = vadd.xlane.f32.xlu1 %v463_v53  ;;  %v10692_v57 = vpop.trf.xlu0  ;;  %v9099_v53 = vld [vmem:[#allocation8 + $0x34] ss:$8 sps:$4 sm:$0xff]  }
 0x159   : > { %v10699_v60 = vunpack.i.h.bf16 %v10692_v57  ;;  %v633_v44 = vsel %vm459_vm0, %v593_v38, 0.0  ;;  %v10781_v50 = vunpack.i.l.bf16 %v10692_v57  ;;  %v681_v54 = vsel %vm459_vm0, %v609_v45, 0.0  ;;  %1143 = vmatprep.subr.bf16.mxu0 %v9099_v53 }
 0x15a   : > { %1144 = vmatpush1.bf16.msra.mxu0 %v9101_v56 }
 0x15b   : > { %16661 = vst [vmem:[#allocation27_spill] sm:$0xff] %v10699_v60  ;;  %v523_v0 = vsel %vm459_vm0, %v10699_v60, 0.0  ;;  %v610_v1 = vmul.f32 %v10699_v60, %v10699_v60  ;;  %16669 = vst [vmem:[#allocation35_spill] sm:$0xff] %v10781_v50 }
 0x15c   : > { %473 = vadd.xlane.f32.xlu0 %v472_v59  ;;  %625 = vadd.xlane.f32.xlu1 %v624_v61  ;;  %v10702_v62 = vpop.trf.xlu0  ;;  %v475_v61 = vsel %vm459_vm0, %v10781_v50, 0.0 }
 0x15d   : > { %v684_v4 = vsel %vm459_vm0, %v610_v1, 0.0  ;;  %v16040_v1 = vmov 0   ;;  %v10801_v7 = vunpack.i.l.bf16 %v10702_v62 }
 0x15e   : > { %1169 = vmatprep.mubr.bf16.mxu0 %v16040_v1 }
 0x15f   : > { %16671 = vst [vmem:[#allocation37_spill] sm:$0xff] %v10801_v7 }
 0x160   : > { %524 = vadd.xlane.f32.xlu0 %v523_v0  ;;  %467 = vadd.xlane.f32.xlu1 %v466_v63  ;;  %v10712_v3 = vpop.trf.xlu0  ;;  %v594_v0 = vmul.f32 %v10781_v50, %v10781_v50 }
 0x161   : > { %v10716_v5 = vunpack.i.h.bf16 %v10712_v3  ;;  %v10825_v27 = vunpack.i.l.bf16 %v10712_v3 }
 0x163   : > { %16663 = vst [vmem:[#allocation29_spill] sm:$0xff] %v10716_v5  ;;  %v529_v9 = vsel %vm459_vm0, %v10716_v5, 0.0  ;;  %v612_v10 = vmul.f32 %v10716_v5, %v10716_v5  ;;  %16674 = vst [vmem:[#allocation40_spill] sm:$0xff] %v10825_v27  ;;  %v481_v29 = vsel %vm459_vm0, %v10825_v27, 0.0 }
 0x164   : > { %685 = vadd.xlane.f32.xlu0 %v684_v4  ;;  %515 = vadd.xlane.f32.xlu1 %v514_v6  ;;  %v10722_v8 = vpop.trf.xlu0 }
 0x165   : > { %v690_v15 = vsel %vm459_vm0, %v612_v10, 0.0  ;;  %v10839_v36 = vunpack.i.h.bf16 %v10722_v8 }
 0x167   : > { %16676 = vst [vmem:[#allocation42_spill] sm:$0xff] %v10839_v36  ;;  %v532_v38 = vsel %vm459_vm0, %v10839_v36, 0.0  ;;  %v613_v43 = vmul.f32 %v10839_v36, %v10839_v36 }
 0x168   : > { %530 = vadd.xlane.f32.xlu0 %v529_v9  ;;  %628 = vadd.xlane.f32.xlu1 %v627_v11  ;;  %v10731_v13 = vpop.trf.xlu0  ;;  %v636_v9 = vsel %vm459_vm0, %v594_v0, 0.0  ;;  %v478_v11 = vsel %vm459_vm0, %v10801_v7, 0.0 }
 0x169   : > { %v10737_v16 = vunpack.i.h.bf16 %v10731_v13 }
 0x16b   : > { %16665 = vst [vmem:[#allocation31_spill] sm:$0xff] %v10737_v16  ;;  %v535_v20 = vsel %vm459_vm0, %v10737_v16, 0.0  ;;  %v614_v21 = vmul.f32 %v10737_v16, %v10737_v16 }
 0x16c   : > { %691 = vadd.xlane.f32.xlu0 %v690_v15  ;;  %676 = vadd.xlane.f32.xlu1 %v675_v17  ;;  %v10740_v18 = vpop.trf.xlu0  ;;  %v10810_v15 = vunpack.i.h.bf16 %v10702_v62 }
 0x16d   : > { %v696_v25 = vsel %vm459_vm0, %v614_v21, 0.0  ;;  %v595_v21 = vmul.f32 %v10801_v7, %v10801_v7  ;;  %v10863_v53 = vunpack.i.h.bf16 %v10740_v18 }
 0x16e   : > { %16673 = vst [vmem:[#allocation39_spill] sm:$0xff] %v10810_v15 }
 0x16f   : > { %v639_v62 = vsel %vm459_vm0, %v595_v21, 0.0  ;;  %16679 = vst [vmem:[#allocation45_spill] sm:$0xff] %v10863_v53 }
 0x170   : > { %536 = vadd.xlane.f32.xlu0 %v535_v20  ;;  %470 = vadd.xlane.f32.xlu1 %v469_v19  ;;  %v10750_v23 = vpop.trf.xlu0  ;;  %v526_v20 = vsel %vm459_vm0, %v10810_v15, 0.0 }
 0x171   : > { %v10756_v26 = vunpack.i.h.bf16 %v10750_v23 }
 0x173   : > { %16667 = vst [vmem:[#allocation33_spill] sm:$0xff] %v10756_v26  ;;  %v541_v32 = vsel %vm459_vm0, %v10756_v26, 0.0  ;;  %v616_v34 = vmul.f32 %v10756_v26, %v10756_v26 }
 0x174   : > { %697 = vadd.xlane.f32.xlu0 %v696_v25  ;;  %631 = vadd.xlane.f32.xlu1 %v630_v28  ;;  %v10759_v30 = vpop.trf.xlu0  ;;  %v611_v25 = vmul.f32 %v10810_v15, %v10810_v15 }
 0x175   : > { %v702_v41 = vsel %vm459_vm0, %v616_v34, 0.0 }
 0x176   : > { %v687_v28 = vsel %vm459_vm0, %v611_v25, 0.0 }
 0x178   : > { %542 = vadd.xlane.f32.xlu0 %v541_v32  ;;  %521 = vadd.xlane.f32.xlu1 %v520_v31  ;;  %v10769_v40 = vpop.trf.xlu0  ;;  %v596_v31 = vmul.f32 %v10825_v27, %v10825_v27  ;;  %v10833_v32 = vunpack.i.l.bf16 %v10722_v8  ;;  %v693_v8 = vsel %vm459_vm0, %v613_v43, 0.0 }
 0x179   : > { %v10773_v42 = vunpack.i.h.bf16 %v10769_v40  ;;  %v10896_v21 = vunpack.i.l.bf16 %v10769_v40 }
 0x17a   : > { %16675 = vst [vmem:[#allocation41_spill] sm:$0xff] %v10833_v32  ;;  %v642_v34 = vsel %vm459_vm0, %v596_v31, 0.0  ;;  %v484_v3 = vsel %vm459_vm0, %v10833_v32, 0.0  ;;  %v597_v39 = vmul.f32 %v10833_v32, %v10833_v32 }
 0x17b   : > { %16668 = vst [vmem:[#allocation34_spill] sm:$0xff] %v10773_v42  ;;  %v547_v51 = vsel %vm459_vm0, %v10773_v42, 0.0  ;;  %v618_v52 = vmul.f32 %v10773_v42, %v10773_v42  ;;  %16683 = vst [vmem:[#allocation49_spill] sm:$0xff] %v10896_v21  ;;  %v499_v25 = vsel %vm459_vm0, %v10896_v21, 0.0 }
 0x17c   : > { %703 = vadd.xlane.f32.xlu0 %v702_v41  ;;  %634 = vadd.xlane.f32.xlu1 %v633_v44  ;;  %v10778_v49 = vpop.trf.xlu0  ;;  %v645_v41 = vsel %vm459_vm0, %v597_v39, 0.0  ;;  %v10849_v44 = vunpack.i.l.bf16 %v10731_v13 }
 0x17d   : > { %v708_v57 = vsel %vm459_vm0, %v618_v52, 0.0 }
 0x17e   : > { %16677 = vst [vmem:[#allocation43_spill] sm:$0xff] %v10849_v44  ;;  %v487_v45 = vsel %vm459_vm0, %v10849_v44, 0.0  ;;  %v598_v46 = vmul.f32 %v10849_v44, %v10849_v44 }
 0x180   : > { %548 = vadd.xlane.f32.xlu0 %v547_v51  ;;  %682 = vadd.xlane.f32.xlu1 %v681_v54  ;;  %v9013_v59 = vpop.trf.xlu0  ;;  %v10857_v51 = vunpack.i.l.bf16 %v10740_v18  ;;  %v648_v52 = vsel %vm459_vm0, %v598_v46, 0.0  ;;  %v538_v54 = vsel %vm459_vm0, %v10863_v53, 0.0 }
 0x181   : > { %v10791_v63 = vunpack.i.l.bf16 %v9013_v59  ;;  %v10807_v12 = vunpack.i.h.bf16 %v9013_v59 }
 0x182   : > { %16678 = vst [vmem:[#allocation44_spill] sm:$0xff] %v10857_v51  ;;  %v490_v13 = vsel %vm459_vm0, %v10857_v51, 0.0  ;;  %v599_v56 = vmul.f32 %v10857_v51, %v10857_v51 }
 0x183   : > { %16670 = vst [vmem:[#allocation36_spill] sm:$0xff] %v10791_v63  ;;  %v505_v4 = vsel %vm459_vm0, %v10791_v63, 0.0  ;;  %v604_v6 = vmul.f32 %v10791_v63, %v10791_v63  ;;  %16672 = vst [vmem:[#allocation38_spill] sm:$0xff] %v10807_v12  ;;  %v553_v17 = vsel %vm459_vm0, %v10807_v12, 0.0  ;;  %v620_v19 = vmul.f32 %v10807_v12, %v10807_v12 }
 0x184   : > { %709 = vadd.xlane.f32.xlu0 %v708_v57  ;;  %476 = vadd.xlane.f32.xlu1 %v475_v61  ;;  %v651_v59 = vsel %vm459_vm0, %v599_v56, 0.0  ;;  %v615_v61 = vmul.f32 %v10863_v53, %v10863_v53  ;;  %v10873_v57 = vunpack.i.l.bf16 %v10750_v23 }
 0x185   : > { %v666_v10 = vsel %vm459_vm0, %v604_v6, 0.0  ;;  %v714_v22 = vsel %vm459_vm0, %v620_v19, 0.0  ;;  %v10881_v6 = vunpack.i.l.bf16 %v10759_v30 }
 0x186   : > { %16680 = vst [vmem:[#allocation46_spill] sm:$0xff] %v10873_v57  ;;  %v699_v18 = vsel %vm459_vm0, %v615_v61, 0.0  ;;  %v493_v0 = vsel %vm459_vm0, %v10873_v57, 0.0 }
 0x187   : > { %16681 = vst [vmem:[#allocation47_spill] sm:$0xff] %v10881_v6  ;;  %v496_v23 = vsel %vm459_vm0, %v10881_v6, 0.0  ;;  %v601_v19 = vmul.f32 %v10881_v6, %v10881_v6 }
 0x188   : > { %506 = vadd.xlane.f32.xlu0 %v505_v4  ;;  %637 = vadd.xlane.f32.xlu1 %v636_v9  ;;  %v600_v4 = vmul.f32 %v10873_v57, %v10873_v57 }
 0x18a   : > { %v654_v9 = vsel %vm459_vm0, %v600_v4, 0.0 }
 0x18c   : > { %667 = vadd.xlane.f32.xlu0 %v666_v10  ;;  %479 = vadd.xlane.f32.xlu1 %v478_v11  ;;  %v10887_v10 = vunpack.i.h.bf16 %v10759_v30 }
 0x18e   : > { %16682 = vst [vmem:[#allocation48_spill] sm:$0xff] %v10887_v10  ;;  %v617_v56 = vmul.f32 %v10887_v10, %v10887_v10 }
 0x190   : > { %554 = vadd.xlane.f32.xlu0 %v553_v17  ;;  %527 = vadd.xlane.f32.xlu1 %v526_v20  ;;  %v544_v17 = vsel %vm459_vm0, %v10887_v10, 0.0  ;;  %v705_v4 = vsel %vm459_vm0, %v617_v56, 0.0 }
 0x194   : > { %715 = vadd.xlane.f32.xlu0 %v714_v22  ;;  %640 = vadd.xlane.f32.xlu1 %v639_v62  ;;  %v657_v22 = vsel %vm459_vm0, %v601_v19, 0.0 }
 0x198   : > { %688 = vadd.xlane.f32.xlu1 %v687_v28 }
 0x19c   : > { %482 = vadd.xlane.f32.xlu1 %v481_v29  ;;  %v602_v29 = vmul.f32 %v10896_v21, %v10896_v21 }
 0x1a0   : > { %643 = vadd.xlane.f32.xlu1 %v642_v34 }
 0x1a4   : > { %485 = vadd.xlane.f32.xlu1 %v484_v3  ;;  %v10906_v3 = vunpack.i.l.bf16 %v10778_v49 }
 0x1a6   : > { %16684 = vst [vmem:[#allocation50_spill] sm:$0xff] %v10906_v3 }
 0x1a8   : > { %533 = vadd.xlane.f32.xlu1 %v532_v38  ;;  %v660_v38 = vsel %vm459_vm0, %v602_v29, 0.0 }
 0x1ac   : > { %646 = vadd.xlane.f32.xlu1 %v645_v41  ;;  %v502_v41 = vsel %vm459_vm0, %v10906_v3, 0.0 }
 0x1b0   : > { %694 = vadd.xlane.f32.xlu1 %v693_v8 }
 0x1b4   : > { %488 = vadd.xlane.f32.xlu1 %v487_v45  ;;  %v603_v45 = vmul.f32 %v10906_v3, %v10906_v3 }
 0x1b8   : > { %649 = vadd.xlane.f32.xlu1 %v648_v52 }
 0x1bc   : > { %491 = vadd.xlane.f32.xlu1 %v490_v13 }
 0x1c0   : > { %539 = vadd.xlane.f32.xlu1 %v538_v54  ;;  %v663_v54 = vsel %vm459_vm0, %v603_v45, 0.0 }
 0x1c4   : > { %652 = vadd.xlane.f32.xlu1 %v651_v59 }
 0x1c8   : > { %700 = vadd.xlane.f32.xlu1 %v699_v18 }
 0x1cc   : > { %494 = vadd.xlane.f32.xlu1 %v493_v0 }
 0x1d0   : > { %655 = vadd.xlane.f32.xlu1 %v654_v9  ;;  %v10920_v9 = vunpack.i.h.bf16 %v10778_v49 }
 0x1d2   : > { %16685 = vst [vmem:[#allocation51_spill] sm:$0xff] %v10920_v9 }
 0x1d4   : > { %497 = vadd.xlane.f32.xlu1 %v496_v23 }
 0x1d5   : > { %v462_v11 = vpop.xlane.xlu1 %461 }
 0x1d6   : > { %v557_v62 = vmul.f32 0.015625, %v462_v11  ;;  %v550_v11 = vsel %vm459_vm0, %v10920_v9, 0.0 }
 0x1d8   : > { %545 = vadd.xlane.f32.xlu1 %v544_v17  ;;  %v749_v31 = vmul.f32 %v557_v62, %v557_v62  ;;  %v619_v17 = vmul.f32 %v10920_v9, %v10920_v9 }
 0x1d9   : > { %v10893_v20 = vpop.xlane.xlu1 %509  ;;  %v10916_v0 = vpop.xlane.xlu0 %512 }
 0x1da   : > { %v711_v49 = vsel %vm459_vm0, %v619_v17, 0.0 }
 0x1dc   : > { %658 = vadd.xlane.f32.xlu1 %v657_v22  ;;  %v813_v22 = vsub.f32 %v10656_v33, %v557_v62 }
 0x1dd   : > { %v623_v30 = vpop.xlane.xlu1 %622 }
 0x1de   : > { %v717_v28 = vmul.f32 0.015625, %v623_v30  ;;  %v10929_v30 = vpop.xlane.xlu0 %673 }
 0x1e0   : > { %500 = vadd.xlane.f32.xlu1 %v499_v25  ;;  %v781_v40 = vsub.f32 %v717_v28, %v749_v31 }
 0x1e1   : > { %v10903_v34 = vpop.xlane.xlu1 %670 }
 0x1e2   : > { %v845_v43 = vadd.f32 1e-05, %v781_v40  ;;  %v10932_v40 = vld [vmem:[#allocation6] ss:$0 sm:$0xff]  ;;  %v10937_v45 = vpop.xlane.xlu0 %518 }
 0x1e4   : > { %661 = vadd.xlane.f32.xlu1 %v660_v38  ;;  %9114 = vrsqrt.f32 %v845_v43 }
 0x1e5   : > { %v465_v39 = vpop.xlane.xlu1 %464 }
 0x1e6   : > { %v558_v8 = vmul.f32 0.015625, %v465_v39 }
 0x1e8   : > { %503 = vadd.xlane.f32.xlu1 %v502_v41  ;;  %v750_v52 = vmul.f32 %v558_v8, %v558_v8  ;;  %v814_v38 = vsub.f32 %v10676_v47, %v558_v8 }
 0x1e9   : > { %v626_v46 = vpop.xlane.xlu1 %625 }
 0x1ea   : > { %v718_v13 = vmul.f32 0.015625, %v626_v46 }
 0x1ec   : > { %v782_v59 = vsub.f32 %v718_v13, %v750_v52  ;;  %664 = vadd.xlane.f32.xlu1 %v663_v54  ;;  %v10940_v13 = vld [vmem:[#allocation6 + $0x1] ss:$0 sm:$0xff] }
 0x1ed   : > { %v468_v61 = vpop.xlane.xlu1 %467 }
 0x1ee   : > { %v846_v18 = vadd.f32 1e-05, %v782_v59  ;;  %v9115_v19 = vpop.eup %9114  ;;  %v559_v28 = vmul.f32 0.015625, %v468_v61 }
 0x1ef   : > { %v909_v29 = vmul.f32 %v9115_v19, %v813_v22 }
 0x1f0   : > { %9116 = vrsqrt.f32 %v846_v18  ;;  %706 = vadd.xlane.f32.xlu1 %v705_v4  ;;  %v751_v43 = vmul.f32 %v559_v28, %v559_v28  ;;  %v10945_v4 = vpop.xlane.xlu0 %679 }
 0x1f1   : > { %v10922_v23 = vpop.xlane.xlu1 %515  ;;  %v945_v46 = vmul.f32 %v10932_v40, %v909_v29 }
 0x1f3   : > { %v981_v61 = vadd.f32 %v10940_v13, %v945_v46 }
 0x1f4   : > { %551 = vadd.xlane.f32.xlu1 %v550_v11 }
 0x1f5   : > { %v629_v25 = vpop.xlane.xlu1 %628 }
 0x1f6   : > { %v719_v31 = vmul.f32 0.015625, %v629_v25 }
 0x1f8   : > { %712 = vadd.xlane.f32.xlu1 %v711_v49  ;;  %v783_v52 = vsub.f32 %v719_v31, %v751_v43  ;;  %v474_v31 = vpop.xlane.xlu0 %473 }
 0x1f9   : > { %v10935_v39 = vpop.xlane.xlu1 %676 }
 0x1fa   : > { %v9117_v41 = vpop.eup %9116  ;;  %v847_v18 = vadd.f32 1e-05, %v783_v52 }
 0x1fb   : > { %v910_v62 = vmul.f32 %v9117_v41, %v814_v38  ;;  %v561_v41 = vmul.f32 0.015625, %v474_v31 }
 0x1fc   : > { %9118 = vrsqrt.f32 %v847_v18 }
 0x1fd   : > { %v471_v54 = vpop.xlane.xlu1 %470  ;;  %v946_v56 = vmul.f32 %v10932_v40, %v910_v62  ;;  %v753_v62 = vmul.f32 %v561_v41, %v561_v41 }
 0x1fe   : > { %v560_v59 = vmul.f32 0.015625, %v471_v54 }
 0x1ff   : > { %v982_v8 = vadd.f32 %v10940_v13, %v946_v56  ;;  %v815_v56 = vsub.f32 %v10694_v58, %v559_v28 }
 0x200   : > { %v752_v19 = vmul.f32 %v560_v59, %v560_v59 }
 0x201   : > { %v632_v11 = vpop.xlane.xlu1 %631  ;;  %v1013_v17 = vpack.c.bf16 %v982_v8, %v981_v61 }
 0x202   : > { %v720_v22 = vmul.f32 0.015625, %v632_v11 }
 0x203   : > { %7782 = vmatmul.mubr.msk.bf16.vlgmr.msra.gmra.mrb[0].mxu0 %vm459_vm0, %v1013_v17 }
 0x204   : > { %v784_v25 = vsub.f32 %v720_v22, %v752_v19  ;;  %1179 = vmatprep.mubr.bf16.mxu0 %v16040_v1  ;;  %v816_v19 = vsub.f32 %v10733_v14, %v560_v59 }
 0x205   : > { %v10949_v49 = vpop.xlane.xlu1 %521 }
 0x206   : > { %v848_v29 = vadd.f32 1e-05, %v784_v25  ;;  %v9119_v52 = vpop.eup %9118 }
 0x207   : > { %v911_v8 = vmul.f32 %v9119_v52, %v815_v56  ;;  %v16686_v56 = vmov 0  }
 0x208   : > { %9120 = vrsqrt.f32 %v848_v29 }
 0x209   : > { %v635_v38 = vpop.xlane.xlu1 %634  ;;  %v947_v29 = vmul.f32 %v10932_v40, %v911_v8 }
 0x20a   : > { %v721_v43 = vmul.f32 0.015625, %v635_v38 }
 0x20b   : > { %v983_v28 = vadd.f32 %v10940_v13, %v947_v29 }
 0x20c   : > { %v785_v54 = vsub.f32 %v721_v43, %v753_v62 }
 0x20d   : > { %v10951_v46 = vpop.xlane.xlu1 %682 }
 0x20e   : > { %v849_v18 = vadd.f32 1e-05, %v785_v54 }
 0x210   : > { %9122 = vrsqrt.f32 %v849_v18  ;;  %v817_v18 = vsub.f32 %v10688_v55, %v561_v41 }
 0x211   : > { %v477_v61 = vpop.xlane.xlu1 %476 }
 0x212   : > { %v562_v11 = vmul.f32 0.015625, %v477_v61  ;;  %v9121_v17 = vpop.eup %9120 }
 0x213   : > { %v912_v25 = vmul.f32 %v9121_v17, %v816_v19 }
 0x214   : > { %v754_v31 = vmul.f32 %v562_v11, %v562_v11  ;;  %v818_v29 = vsub.f32 %v10781_v50, %v562_v11 }
 0x215   : > { %v638_v22 = vpop.xlane.xlu1 %637  ;;  %v948_v1 = vmul.f32 %v10932_v40, %v912_v25 }
 0x216   : > { %v722_v38 = vmul.f32 0.015625, %v638_v22 }
 0x217   : > { %v984_v62 = vadd.f32 %v10940_v13, %v948_v1 }
 0x218   : > { %v786_v47 = vsub.f32 %v722_v38, %v754_v31 }
 0x219   : > { %v480_v43 = vpop.xlane.xlu1 %479  ;;  %v1014_v54 = vpack.c.bf16 %v984_v62, %v983_v28  ;;  %v10968_v62 = vpop.xlane.xlu0 %524 }
 0x21a   : > { %v850_v52 = vadd.f32 1e-05, %v786_v47  ;;  %v9123_v61 = vpop.eup %9122  ;;  %v563_v8 = vmul.f32 0.015625, %v480_v43 }
 0x21b   : > { %7783 = vmatmul.mubr.msk.bf16.gmra.mrb[4].mxu0 %vm459_vm0, %v1014_v54  ;;  %v913_v22 = vmul.f32 %v9123_v61, %v817_v18 }
 0x21c   : > { %9124 = vrsqrt.f32 %v850_v52  ;;  %1189 = vmatprep.mubr.bf16.mxu0 %v16686_v56  ;;  %v755_v25 = vmul.f32 %v563_v8, %v563_v8 }
 0x21d   : > { %v10960_v59 = vpop.xlane.xlu1 %527  ;;  %v949_v28 = vmul.f32 %v10932_v40, %v913_v22 }
 0x221   : > { %v641_v17 = vpop.xlane.xlu1 %640 }
 0x222   : > { %v723_v19 = vmul.f32 0.015625, %v641_v17  ;;  %v985_v17 = vadd.f32 %v10940_v13, %v949_v28 }
 0x224   : > { %v787_v31 = vsub.f32 %v723_v19, %v755_v25  ;;  %v10973_v19 = vpop.xlane.xlu0 %685 }
 0x225   : > { %v10965_v1 = vpop.xlane.xlu1 %688 }
 0x226   : > { %v9125_v47 = vpop.eup %9124  ;;  %v851_v54 = vadd.f32 1e-05, %v787_v31 }
 0x227   : > { %v914_v38 = vmul.f32 %v9125_v47, %v818_v29 }
 0x228   : > { %9126 = vrsqrt.f32 %v851_v54  ;;  %v10977_v47 = vpop.xlane.xlu0 %530 }
 0x229   : > { %v483_v52 = vpop.xlane.xlu1 %482  ;;  %v950_v43 = vmul.f32 %v10932_v40, %v914_v38 }
 0x22a   : > { %v564_v41 = vmul.f32 0.015625, %v483_v52  ;;  %v819_v52 = vsub.f32 %v10801_v7, %v563_v8 }
 0x22b   : > { %v986_v61 = vadd.f32 %v10940_v13, %v950_v43 }
 0x22c   : > { %v756_v50 = vmul.f32 %v564_v41, %v564_v41 }
 0x22d   : > { %v644_v18 = vpop.xlane.xlu1 %643  ;;  %v1015_v11 = vpack.c.bf16 %v986_v61, %v985_v17  ;;  %v10982_v17 = vpop.xlane.xlu0 %691 }
 0x22e   : > { %v724_v55 = vmul.f32 0.015625, %v644_v18 }
 0x22f   : > { %7784 = vmatmul.mubr.msk.bf16.gmra.mrb[8].mxu0 %vm459_vm0, %v1015_v11 }
 0x230   : > { %v788_v22 = vsub.f32 %v724_v55, %v756_v50  ;;  %1199 = vmatprep.mubr.bf16.mxu0 %v16686_v56  ;;  %v820_v55 = vsub.f32 %v10825_v27, %v564_v41 }
 0x231   : > { %v486_v25 = vpop.xlane.xlu1 %485  ;;  %v10988_v14 = vpop.xlane.xlu0 %536 }
 0x232   : > { %v852_v29 = vadd.f32 1e-05, %v788_v22  ;;  %v9127_v38 = vpop.eup %9126  ;;  %v565_v28 = vmul.f32 0.015625, %v486_v25 }
 0x233   : > { %v915_v61 = vmul.f32 %v9127_v38, %v819_v52 }
 0x234   : > { %9128 = vrsqrt.f32 %v852_v29  ;;  %v757_v18 = vmul.f32 %v565_v28, %v565_v28 }
 0x235   : > { %v10979_v31 = vpop.xlane.xlu1 %533  ;;  %v951_v58 = vmul.f32 %v10932_v40, %v915_v61 }
 0x237   : > { %v987_v33 = vadd.f32 %v10940_v13, %v951_v58 }
 0x239   : > { %v647_v43 = vpop.xlane.xlu1 %646 }
 0x23a   : > { %v725_v54 = vmul.f32 0.015625, %v647_v43 }
 0x23c   : > { %v789_v22 = vsub.f32 %v725_v54, %v757_v18  ;;  %v10993_v54 = vpop.xlane.xlu0 %697 }
 0x23d   : > { %v10985_v50 = vpop.xlane.xlu1 %694 }
 0x23e   : > { %v9129_v11 = vpop.eup %9128  ;;  %v853_v7 = vadd.f32 1e-05, %v789_v22 }
 0x23f   : > { %v916_v29 = vmul.f32 %v9129_v11, %v820_v55 }
 0x240   : > { %9130 = vrsqrt.f32 %v853_v7  ;;  %v10997_v11 = vpop.xlane.xlu0 %542 }
 0x241   : > { %v489_v25 = vpop.xlane.xlu1 %488  ;;  %v952_v8 = vmul.f32 %v10932_v40, %v916_v29 }
 0x242   : > { %v566_v43 = vmul.f32 0.015625, %v489_v25  ;;  %v1039_v25 = vlaneseq }
 0x243   : > { %v988_v38 = vadd.f32 %v10940_v13, %v952_v8 }
 0x244   : > { %v758_v27 = vmul.f32 %v566_v43, %v566_v43 }
 0x245   : > { %v650_v52 = vpop.xlane.xlu1 %649  ;;  %v1016_v41 = vpack.c.bf16 %v988_v38, %v987_v33  ;;  %v821_v33 = vsub.f32 %v10833_v32, %v565_v28  ;;  %v11002_v38 = vpop.xlane.xlu0 %703 }
 0x246   : > { %v726_v12 = vmul.f32 0.015625, %v650_v52 }
 0x247   : > { %7785 = vmatmul.mubr.msk.bf16.gmra.mrb[12].mxu0 %vm459_vm0, %v1016_v41  ;;  %v822_v41 = vsub.f32 %v10849_v44, %v566_v43 }
 0x248   : > { %v790_v61 = vsub.f32 %v726_v12, %v758_v27  ;;  %1209 = vmatprep.mubr.bf16.mxu0 %v16686_v56  ;;  %v11004_v12 = vshrl.u32 %v1039_v25, 7 }
 0x249   : > { %v492_v18 = vpop.xlane.xlu1 %491 }
 0x24a   : > { %v854_v55 = vadd.f32 1e-05, %v790_v61  ;;  %v9131_v22 = vpop.eup %9130  ;;  %v567_v29 = vmul.f32 0.015625, %v492_v18  ;;  %16687 = vst [vmem:[#allocation52_spill] sm:$0xff] %v11004_v12  ;;  %v1045_v32 = vsub.s32 1, %v11004_v12 }
 0x24b   : > { %v917_v52 = vmul.f32 %v9131_v22, %v821_v33  ;;  %v11019_v33 = vpop.xlane.xlu0 %548 }
 0x24c   : > { %9132 = vrsqrt.f32 %v854_v55  ;;  %v759_v27 = vmul.f32 %v567_v29, %v567_v29  ;;  %v11012_v55 = vld [vmem:[%s16028_s3] sm:$0x3] }
 0x24d   : > { %v10999_v58 = vpop.xlane.xlu1 %539  ;;  %16688 = vst [vmem:[#allocation53_spill] sm:$0xff] %v11012_v55  ;;  %v953_v9 = vmul.f32 %v10932_v40, %v917_v52  ;;  %v11017_v22 = vrot.slane %v11012_v55, %v1045_v32 }
 0x24f   : > { %16689 = vst [vmem:[#allocation54_spill] sm:$0xff] %v11017_v22  ;;  %v989_v10 = vadd.f32 %v10940_v13, %v953_v9  ;;  %v11024_v52 = vpop.xlane.xlu0 %709 }
 0x250   : > { %16690 = vst [vmem:[#allocation55_spill] sm:$0xff] %v11024_v52 }
 0x251   : > { %v653_v7 = vpop.xlane.xlu1 %652 }
 0x252   : > { %v727_v8 = vmul.f32 0.015625, %v653_v7 }
 0x254   : > { %v791_v28 = vsub.f32 %v727_v8, %v759_v27 }
 0x255   : > { %v11007_v61 = vpop.xlane.xlu1 %700 }
 0x256   : > { %v9133_v18 = vpop.eup %9132  ;;  %v855_v44 = vadd.f32 1e-05, %v791_v28  ;;  %v507_v28 = vpop.xlane.xlu0 %506 }
 0x257   : > { %v918_v7 = vmul.f32 %v9133_v18, %v822_v41  ;;  %v11031_v53 = vmul.f32 0.015625, %v507_v28 }
 0x258   : > { %9134 = vrsqrt.f32 %v855_v44 }
 0x259   : > { %v495_v43 = vpop.xlane.xlu1 %494  ;;  %v954_v25 = vmul.f32 %v10932_v40, %v918_v7 }
 0x25a   : > { %v568_v42 = vmul.f32 0.015625, %v495_v43  ;;  %v668_v55 = vpop.xlane.xlu0 %667 }
 0x25b   : > { %v990_v26 = vadd.f32 %v10940_v13, %v954_v25  ;;  %v732_v16 = vmul.f32 0.015625, %v668_v55  ;;  %v733_v55 = vmul.f32 0.015625, %v10903_v34 }
 0x25c   : > { %v760_v41 = vmul.f32 %v568_v42, %v568_v42 }
 0x25d   : > { %v656_v8 = vpop.xlane.xlu1 %655  ;;  %v1017_v27 = vpack.c.bf16 %v990_v26, %v989_v10  ;;  %v823_v26 = vsub.f32 %v10857_v51, %v567_v29 }
 0x25e   : > { %v728_v18 = vmul.f32 0.015625, %v656_v8 }
 0x25f   : > { %7786 = vmatmul.mubr.msk.bf16.gmra.mrb[16].mxu0 %vm459_vm0, %v1017_v27 }
 0x260   : > { %v792_v32 = vsub.f32 %v728_v18, %v760_v41  ;;  %1219 = vmatprep.mubr.bf16.mxu0 %v16686_v56  ;;  %v824_v41 = vsub.f32 %v10873_v57, %v568_v42 }
 0x261   : > { %v498_v22 = vpop.xlane.xlu1 %497 }
 0x262   : > { %v856_v7 = vadd.f32 1e-05, %v792_v32  ;;  %v569_v9 = vmul.f32 0.015625, %v498_v22  ;;  %v9135_v25 = vpop.eup %9134 }
 0x263   : > { %v919_v12 = vmul.f32 %v9135_v25, %v823_v26 }
 0x264   : > { %9136 = vrsqrt.f32 %v856_v7  ;;  %v761_v10 = vmul.f32 %v569_v9, %v569_v9  ;;  %v764_v7 = vmul.f32 %v11031_v53, %v11031_v53 }
 0x265   : > { %v11028_v43 = vpop.xlane.xlu1 %545  ;;  %v955_v29 = vmul.f32 %v10932_v40, %v919_v12 }
 0x266   : > { %v796_v26 = vsub.f32 %v732_v16, %v764_v7  ;;  %v734_v16 = vmul.f32 0.015625, %v10929_v30 }
 0x268   : > { %v860_v7 = vadd.f32 1e-05, %v796_v26  ;;  %v11058_v26 = vmul.f32 0.015625, %v10937_v45 }
 0x269   : > { %v659_v44 = vpop.xlane.xlu1 %658 }
 0x26a   : > { %v729_v8 = vmul.f32 0.015625, %v659_v44  ;;  %v11038_v44 = vmul.f32 0.015625, %v10893_v20 }
 0x26c   : > { %v793_v27 = vsub.f32 %v729_v8, %v761_v10  ;;  %v11042_v8 = vmul.f32 0.015625, %v10916_v0 }
 0x26d   : > { %v501_v18 = vpop.xlane.xlu1 %500 }
 0x26e   : > { %v9137_v32 = vpop.eup %9136  ;;  %v857_v22 = vadd.f32 1e-05, %v793_v27  ;;  %v570_v36 = vmul.f32 0.015625, %v501_v18  ;;  %v991_v27 = vadd.f32 %v10940_v13, %v955_v29  ;;  %v766_v20 = vmul.f32 %v11042_v8, %v11042_v8 }
 0x26f   : > { %v920_v52 = vmul.f32 %v9137_v32, %v824_v41 }
 0x270   : > { %9138 = vrsqrt.f32 %v857_v22  ;;  %v762_v42 = vmul.f32 %v570_v36, %v570_v36  ;;  %v798_v34 = vsub.f32 %v734_v16, %v766_v20  ;;  %v768_v20 = vmul.f32 %v11058_v26, %v11058_v26 }
 0x271   : > { %v662_v25 = vpop.xlane.xlu1 %661  ;;  %v956_v28 = vmul.f32 %v10932_v40, %v920_v52  ;;  %v765_v52 = vmul.f32 %v11038_v44, %v11038_v44  ;;  %v826_v45 = vsub.f32 %v10896_v21, %v570_v36 }
 0x272   : > { %v730_v10 = vmul.f32 0.015625, %v662_v25 }
 0x273   : > { %v992_v41 = vadd.f32 %v10940_v13, %v956_v28  ;;  %v797_v25 = vsub.f32 %v733_v55, %v765_v52  ;;  %v11055_v28 = vmul.f32 0.015625, %v10922_v23  ;;  %v735_v55 = vmul.f32 0.015625, %v10935_v39 }
 0x274   : > { %v794_v12 = vsub.f32 %v730_v10, %v762_v42  ;;  %v736_v23 = vmul.f32 0.015625, %v10945_v4 }
 0x275   : > { %v504_v18 = vpop.xlane.xlu1 %503  ;;  %v1018_v32 = vpack.c.bf16 %v992_v41, %v991_v27  ;;  %v861_v30 = vadd.f32 1e-05, %v797_v25  ;;  %v862_v41 = vadd.f32 1e-05, %v798_v34  ;;  %v767_v52 = vmul.f32 %v11055_v28, %v11055_v28 }
 0x276   : > { %v858_v0 = vadd.f32 1e-05, %v794_v12  ;;  %v571_v22 = vmul.f32 0.015625, %v504_v18  ;;  %v825_v12 = vsub.f32 %v10881_v6, %v569_v9  ;;  %v11069_v9 = vmul.f32 0.015625, %v10949_v49 }
 0x277   : > { %7787 = vmatmul.mubr.msk.bf16.gmra.mrb[20].mxu0 %vm459_vm0, %v1018_v32  ;;  %v799_v32 = vsub.f32 %v735_v55, %v767_v52  ;;  %v11073_v34 = vmul.f32 0.015625, %v10968_v62 }
 0x278   : > { %9140 = vrsqrt.f32 %v858_v0  ;;  %1229 = vmatprep.mubr.bf16.mxu0 %v16686_v56  ;;  %v763_v42 = vmul.f32 %v571_v22, %v571_v22  ;;  %v769_v55 = vmul.f32 %v11069_v9, %v11069_v9 }
 0x279   : > { %v665_v29 = vpop.xlane.xlu1 %664  ;;  %9142 = vrsqrt.f32 %v860_v7  ;;  %v800_v7 = vsub.f32 %v736_v23, %v768_v20  ;;  %v770_v49 = vmul.f32 %v11073_v34, %v11073_v34 }
 0x27a   : > { %v731_v10 = vmul.f32 0.015625, %v665_v29  ;;  %v9139_v57 = vpop.eup %9138  ;;  %9144 = vrsqrt.f32 %v861_v30  ;;  %v863_v29 = vadd.f32 1e-05, %v799_v32  ;;  %v738_v30 = vmul.f32 0.015625, %v10973_v19 }
 0x27b   : > { %v921_v18 = vmul.f32 %v9139_v57, %v825_v12  ;;  %v737_v57 = vmul.f32 0.015625, %v10951_v46  ;;  %v829_v19 = vsub.f32 %v10660_v35, %v11038_v44 }
 0x27c   : > { %v795_v27 = vsub.f32 %v731_v10, %v763_v42  ;;  %v828_v42 = vsub.f32 %v10791_v63, %v11031_v53  ;;  %v864_v10 = vadd.f32 1e-05, %v800_v7  ;;  %v827_v53 = vsub.f32 %v10906_v3, %v571_v22 }
 0x27d   : > { %v957_v25 = vmul.f32 %v10932_v40, %v921_v18  ;;  %v801_v46 = vsub.f32 %v737_v57, %v769_v55  ;;  %v802_v52 = vsub.f32 %v738_v30, %v770_v49  ;;  %v739_v7 = vmul.f32 0.015625, %v10965_v1 }
 0x27e   : > { %v859_v16 = vadd.f32 1e-05, %v795_v27  ;;  %v11111_v55 = vmul.f32 0.015625, %v10979_v31  ;;  %v832_v31 = vsub.f32 %v10678_v48, %v11058_v26 }
 0x27f   : > { %v993_v62 = vadd.f32 %v10940_v13, %v957_v25  ;;  %v865_v22 = vadd.f32 1e-05, %v801_v46  ;;  %v866_v25 = vadd.f32 1e-05, %v802_v52  ;;  %v742_v52 = vmul.f32 0.015625, %v10993_v54 }
 0x280   : > { %9146 = vrsqrt.f32 %v859_v16  ;;  %v11088_v16 = vmul.f32 0.015625, %v10960_v59  ;;  %v830_v59 = vsub.f32 %v10662_v37, %v11042_v8  ;;  %v833_v54 = vsub.f32 %v10752_v24, %v11069_v9 }
 0x281   : > { %9148 = vrsqrt.f32 %v862_v41 }
 0x282   : > { %v9141_v39 = vpop.eup %9140  ;;  %9150 = vrsqrt.f32 %v863_v29  ;;  %v740_v29 = vmul.f32 0.015625, %v10982_v17  ;;  %v831_v17 = vsub.f32 %v10710_v2, %v11055_v28 }
 0x283   : > { %v922_v0 = vmul.f32 %v9141_v39, %v826_v45  ;;  %v9143_v4 = vpop.eup %9142  ;;  %9152 = vrsqrt.f32 %v864_v10  ;;  %v11095_v39 = vmul.f32 0.015625, %v10977_v47  ;;  %v771_v47 = vmul.f32 %v11088_v16, %v11088_v16 }
 0x284   : > { %v924_v41 = vmul.f32 %v9143_v4, %v828_v42  ;;  %v9145_v12 = vpop.eup %9144  ;;  %9154 = vrsqrt.f32 %v865_v22 }
 0x285   : > { %v958_v36 = vmul.f32 %v10932_v40, %v922_v0  ;;  %v925_v44 = vmul.f32 %v9145_v12, %v829_v19  ;;  %v772_v4 = vmul.f32 %v11095_v39, %v11095_v39  ;;  %9156 = vrsqrt.f32 %v866_v25 }
 0x286   : > { %v960_v32 = vmul.f32 %v10932_v40, %v924_v41  ;;  %v11118_v41 = vmul.f32 0.015625, %v10988_v14  ;;  %v741_v12 = vmul.f32 0.015625, %v10985_v50  ;;  %v773_v14 = vmul.f32 %v11111_v55, %v11111_v55 }
 0x287   : > { %v994_v27 = vadd.f32 %v10940_v13, %v958_v36  ;;  %v803_v36 = vsub.f32 %v739_v7, %v771_v47  ;;  %v961_v10 = vmul.f32 %v10932_v40, %v925_v44  ;;  %v804_v30 = vsub.f32 %v740_v29, %v772_v4  ;;  %v707_v29 = vpop.xlane.xlu1 %706 }
 0x288   : > { %v996_v1 = vadd.f32 %v10940_v13, %v960_v32  ;;  %v11133_v7 = vmul.f32 0.015625, %v10999_v58  ;;  %v11140_v44 = vmul.f32 0.015625, %v10997_v11  ;;  %v743_v4 = vmul.f32 0.015625, %v11007_v61 }
 0x289   : > { %v1019_v20 = vpack.c.bf16 %v994_v27, %v993_v62  ;;  %v867_v46 = vadd.f32 1e-05, %v803_v36  ;;  %v868_v28 = vadd.f32 1e-05, %v804_v30  ;;  %v834_v58 = vsub.f32 %v10699_v60, %v11073_v34 }
 0x28a   : > { %v9147_v23 = vpop.eup %9146  ;;  %v775_v11 = vmul.f32 %v11133_v7, %v11133_v7 }
 0x28b   : > { %7788 = vmatmul.mubr.msk.bf16.gmra.mrb[24].mxu0 %vm459_vm0, %v1019_v20  ;;  %v923_v18 = vmul.f32 %v9147_v23, %v827_v53  ;;  %v9149_v45 = vpop.eup %9148  ;;  %v997_v53 = vadd.f32 %v10940_v13, %v961_v10  ;;  %v774_v23 = vmul.f32 %v11118_v41, %v11118_v41  ;;  %9158 = vrsqrt.f32 %v867_v46 }
 0x28c   : > { %1239 = vmatprep.mubr.bf16.mxu0 %v16686_v56  ;;  %v926_v42 = vmul.f32 %v9149_v45, %v830_v59  ;;  %v9151_v49 = vpop.eup %9150  ;;  %9160 = vrsqrt.f32 %v868_v28 }
 0x28d   : > { %v959_v0 = vmul.f32 %v10932_v40, %v923_v18  ;;  %v9153_v27 = vpop.eup %9152  ;;  %v927_v20 = vmul.f32 %v9151_v49, %v831_v17  ;;  %v805_v18 = vsub.f32 %v741_v12, %v773_v14  ;;  %v806_v22 = vsub.f32 %v742_v52, %v774_v23  ;;  %v16691_v14 = vld [vmem:[#allocation55_spill] sm:$0xff] }
 0x28e   : > { %v962_v62 = vmul.f32 %v10932_v40, %v926_v42  ;;  %v928_v50 = vmul.f32 %v9153_v27, %v832_v31  ;;  %v9155_v45 = vpop.eup %9154  ;;  %v744_v42 = vmul.f32 0.015625, %v11002_v38  ;;  %v11155_v17 = vmul.f32 0.015625, %v11028_v43 }
 0x28f   : > { %v995_v57 = vadd.f32 %v10940_v13, %v959_v0  ;;  %v963_v26 = vmul.f32 %v10932_v40, %v927_v20  ;;  %v9157_v0 = vpop.eup %9156  ;;  %v869_v25 = vadd.f32 1e-05, %v805_v18  ;;  %v929_v9 = vmul.f32 %v9155_v45, %v833_v54  ;;  %v555_v20 = vpop.xlane.xlu0 %554 }
 0x290   : > { %v998_v19 = vadd.f32 %v10940_v13, %v962_v62  ;;  %v964_v59 = vmul.f32 %v10932_v40, %v928_v50  ;;  %v930_v36 = vmul.f32 %v9157_v0, %v834_v58  ;;  %v835_v38 = vsub.f32 %v10810_v15, %v11088_v16  ;;  %v552_v62 = vpop.xlane.xlu1 %551 }
 0x291   : > { %v1020_v8 = vpack.c.bf16 %v996_v1, %v995_v57  ;;  %v999_v47 = vadd.f32 %v10940_v13, %v963_v26  ;;  %v870_v57 = vadd.f32 1e-05, %v806_v22  ;;  %v776_v1 = vmul.f32 %v11140_v44, %v11140_v44 }
 0x292   : > { %v1021_v32 = vpack.c.bf16 %v998_v19, %v997_v53  ;;  %v1000_v61 = vadd.f32 %v10940_v13, %v964_v59  ;;  %9162 = vrsqrt.f32 %v869_v25  ;;  %v965_v34 = vmul.f32 %v10932_v40, %v929_v9  ;;  %v16692_v25 = vld [vmem:[#allocation42_spill] sm:$0xff] }
 0x293   : > { %7789 = vmatmul.mubr.msk.bf16.gmra.mrb[28].mxu0 %vm459_vm0, %v1020_v8  ;;  %v807_v8 = vsub.f32 %v743_v4, %v775_v11  ;;  %9164 = vrsqrt.f32 %v870_v57  ;;  %v808_v30 = vsub.f32 %v744_v42, %v776_v1  ;;  %v966_v27 = vmul.f32 %v10932_v40, %v930_v36  ;;  %v716_v0 = vpop.xlane.xlu0 %715  ;;  %v16693_v1 = vld [vmem:[#allocation31_spill] sm:$0xff] }
 0x294   : > { %1249 = vmatprep.mubr.bf16.mxu0 %v16686_v56  ;;  %v1022_v10 = vpack.c.bf16 %v1000_v61, %v999_v47  ;;  %v11162_v12 = vmul.f32 0.015625, %v11019_v33  ;;  %v745_v53 = vmul.f32 0.015625, %v707_v29  ;;  %v836_v43 = vsub.f32 %v10716_v5, %v11095_v39  ;;  %v713_v26 = vpop.xlane.xlu1 %712 }
 0x295   : > { %v9159_v49 = vpop.eup %9158  ;;  %v871_v31 = vadd.f32 1e-05, %v807_v8  ;;  %v1001_v28 = vadd.f32 %v10940_v13, %v965_v34  ;;  %v872_v23 = vadd.f32 1e-05, %v808_v30  ;;  %v746_v19 = vmul.f32 0.015625, %v16691_v14 }
 0x296   : > { %v9161_v46 = vpop.eup %9160  ;;  %v931_v16 = vmul.f32 %v9159_v49, %v835_v38  ;;  %v778_v52 = vmul.f32 %v11162_v12, %v11162_v12  ;;  %v777_v33 = vmul.f32 %v11155_v17, %v11155_v17  ;;  %v1002_v50 = vadd.f32 %v10940_v13, %v966_v27 }
 0x297   : > { %v932_v18 = vmul.f32 %v9161_v46, %v836_v43  ;;  %9166 = vrsqrt.f32 %v871_v31  ;;  %v11175_v59 = vmul.f32 0.015625, %v552_v62  ;;  %v837_v4 = vsub.f32 %v16692_v25, %v11111_v55  ;;  %v16694_v46 = vld [vmem:[#allocation45_spill] sm:$0xff] }
 0x298   : > { %v1023_v39 = vpack.c.bf16 %v1002_v50, %v1001_v28  ;;  %v967_v45 = vmul.f32 %v10932_v40, %v931_v16  ;;  %9168 = vrsqrt.f32 %v872_v23  ;;  %v810_v54 = vsub.f32 %v746_v19, %v778_v52  ;;  %v16695_v28 = vld [vmem:[#allocation33_spill] sm:$0xff] }
 0x299   : > { %v968_v58 = vmul.f32 %v10932_v40, %v932_v18  ;;  %v588_v47 = vmul.f32 0.015625, %v555_v20  ;;  %v747_v57 = vmul.f32 0.015625, %v713_v26  ;;  %v838_v42 = vsub.f32 %v16693_v1, %v11118_v41 }
 0x29a   : > { %v1003_v11 = vadd.f32 %v10940_v13, %v967_v45  ;;  %v874_v36 = vadd.f32 1e-05, %v810_v54  ;;  %v779_v55 = vmul.f32 %v11175_v59, %v11175_v59  ;;  %v839_v31 = vsub.f32 %v16694_v46, %v11133_v7  ;;  %v16697_v45 = vld [vmem:[#allocation34_spill] sm:$0xff] }
 0x29b   : > { %7790 = vmatmul.mubr.msk.bf16.gmra.mrb[32].mxu0 %vm459_vm0, %v1021_v32  ;;  %v809_v32 = vsub.f32 %v745_v53, %v777_v33  ;;  %v780_v8 = vmul.f32 %v588_v47, %v588_v47  ;;  %v1004_v34 = vadd.f32 %v10940_v13, %v968_v58  ;;  %v840_v16 = vsub.f32 %v16695_v28, %v11140_v44 }
 0x29c   : > { %1259 = vmatprep.mubr.bf16.mxu0 %v16686_v56  ;;  %v9163_v22 = vpop.eup %9162  ;;  %v811_v30 = vsub.f32 %v747_v57, %v779_v55  ;;  %v16698_v57 = vld [vmem:[#allocation51_spill] sm:$0xff] }
 0x29d   : > { %v9165_v29 = vpop.eup %9164  ;;  %v873_v9 = vadd.f32 1e-05, %v809_v32  ;;  %v933_v61 = vmul.f32 %v9163_v22, %v837_v4  ;;  %v1024_v38 = vpack.c.bf16 %v1004_v34, %v1003_v11  ;;  %v16696_v32 = vld [vmem:[#allocation48_spill] sm:$0xff]  ;;  %v842_v22 = vsub.f32 %v16697_v45, %v11162_v12  ;;  %v16699_v12 = vld [vmem:[#allocation38_spill] sm:$0xff] }
 0x29e   : > { %v934_v49 = vmul.f32 %v9165_v29, %v838_v42  ;;  %v875_v20 = vadd.f32 1e-05, %v811_v30  ;;  %v841_v26 = vsub.f32 %v16696_v32, %v11155_v17  ;;  %v843_v42 = vsub.f32 %v16698_v57, %v11175_v59 }
 0x29f   : > { %9170 = vrsqrt.f32 %v873_v9  ;;  %v969_v62 = vmul.f32 %v10932_v40, %v933_v61 }
 0x2a0   : > { %9172 = vrsqrt.f32 %v874_v36  ;;  %v970_v53 = vmul.f32 %v10932_v40, %v934_v49  ;;  %v844_v36 = vsub.f32 %v16699_v12, %v588_v47 }
 0x2a1   : > { %v9167_v27 = vpop.eup %9166  ;;  %v1005_v23 = vadd.f32 %v10940_v13, %v969_v62  ;;  %9174 = vrsqrt.f32 %v875_v20 }
 0x2a2   : > { %v9169_v43 = vpop.eup %9168  ;;  %v935_v52 = vmul.f32 %v9167_v27, %v839_v31  ;;  %v1006_v19 = vadd.f32 %v10940_v13, %v970_v53  ;;  %v16700_v27 = vld [vmem:[#allocation52_spill] sm:$0xff]  ;;  %v16701_v31 = vld [vmem:[#allocation53_spill] sm:$0xff] }
 0x2a3   : > { %7791 = vmatmul.mubr.msk.bf16.gmra.mrb[36].mxu0 %vm459_vm0, %v1022_v10  ;;  %v748_v10 = vmul.f32 0.015625, %v716_v0  ;;  %v936_v33 = vmul.f32 %v9169_v43, %v840_v16  ;;  %v16702_v16 = vld [vmem:[#allocation54_spill] sm:$0xff] }
 0x2a4   : > { %1269 = vmatprep.mubr.bf16.mxu0 %v16686_v56  ;;  %v1025_v7 = vpack.c.bf16 %v1006_v19, %v1005_v23  ;;  %v971_v50 = vmul.f32 %v10932_v40, %v935_v52 }
 0x2a5   : > { %v812_v41 = vsub.f32 %v748_v10, %v780_v8  ;;  %v972_v44 = vmul.f32 %v10932_v40, %v936_v33 }
 0x2a6   : > { %v1007_v54 = vadd.f32 %v10940_v13, %v971_v50 }
 0x2a7   : > { %v876_v14 = vadd.f32 1e-05, %v812_v41  ;;  %v1008_v4 = vadd.f32 %v10940_v13, %v972_v44  ;;  %v1041_v41 = vsub.s32 0, %v16700_v27 }
 0x2a9   : > { %v9171_v18 = vpop.eup %9170  ;;  %9176 = vrsqrt.f32 %v876_v14  ;;  %v1026_v29 = vpack.c.bf16 %v1008_v4, %v1007_v54  ;;  %v11226_v53 = vrot.slane %v16701_v31, %v1041_v41 }
 0x2aa   : > { %v937_v0 = vmul.f32 %v9171_v18, %v841_v26 }
 0x2ab   : > { %7792 = vmatmul.mubr.msk.bf16.gmra.mrb[40].mxu0 %vm459_vm0, %v1023_v39  ;;  %v9173_v39 = vpop.eup %9172 }
 0x2ac   : > { %1279 = vmatprep.mubr.bf16.mxu0 %v16686_v56  ;;  %v938_v58 = vmul.f32 %v9173_v39, %v842_v22  ;;  %v973_v9 = vmul.f32 %v10932_v40, %v937_v0  ;;  %v9175_v17 = vpop.eup %9174 }
 0x2ad   : > { %v939_v10 = vmul.f32 %v9175_v17, %v843_v42 }
 0x2ae   : > { %v974_v11 = vmul.f32 %v10932_v40, %v938_v58  ;;  %v1009_v8 = vadd.f32 %v10940_v13, %v973_v9 }
 0x2af   : > { %v975_v30 = vmul.f32 %v10932_v40, %v939_v10 }
 0x2b0   : > { %v1010_v55 = vadd.f32 %v10940_v13, %v974_v11 }
 0x2b2   : > { %v1027_v49 = vpack.c.bf16 %v1010_v55, %v1009_v8 }
 0x2b3   : > { %7793 = vmatmul.mubr.msk.bf16.gmra.mrb[44].mxu0 %vm459_vm0, %v1024_v38  ;;  %v9177_v61 = vpop.eup %9176  ;;  %v1011_v38 = vadd.f32 %v10940_v13, %v975_v30 }
 0x2b4   : > { %1289 = vmatprep.mubr.bf16.mxu0 %v16686_v56  ;;  %v940_v34 = vmul.f32 %v9177_v61, %v844_v36 }
 0x2b6   : > { %v976_v59 = vmul.f32 %v10932_v40, %v940_v34 }
 0x2b8   : > { %v1012_v62 = vadd.f32 %v10940_v13, %v976_v59 }
 0x2ba   : > { %v1028_v47 = vpack.c.bf16 %v1012_v62, %v1011_v38 }
 0x2bb   : > { %7794 = vmatmul.mubr.msk.bf16.gmra.mrb[48].mxu0 %vm459_vm0, %v1025_v7 }
 0x2bc   : > { %1299 = vmatprep.mubr.bf16.mxu0 %v16686_v56 }
 0x2c3   : > { %7795 = vmatmul.mubr.msk.bf16.gmra.mrb[52].mxu0 %vm459_vm0, %v1026_v29 }
 0x2c4   : > { %1309 = vmatprep.mubr.bf16.mxu0 %v16686_v56 }
 0x2cb   : > { %7796 = vmatmul.mubr.msk.bf16.gmra.mrb[56].mxu0 %vm459_vm0, %v1027_v49 }
 0x2cc   : > { %1319 = vmatprep.mubr.bf16.mxu0 %v16686_v56 }
 0x2d3   : > { %7797 = vmatmul.mubr.msk.bf16.gmra.mrb[60].mxu0 %vm459_vm0, %v1028_v47 }
 0x2d6   : > { %v1171_v43 = vpop.f32.mrb[0].mxu0 }
 0x2d7   : > { %v1173_v20 = vpop.f32.mrb[1].mxu0  ;;  %v1172_v40 = vadd.f32 %v1171_v43, %v11226_v53 }
 0x2d8   : > { %v1174_v23 = vadd.f32 %v1173_v20, %v16702_v16  ;;  %v1175_v52 = vpop.f32.mrb[2].mxu0 }
 0x2d9   : > { %v1176_v56 = vadd.f32 %v1175_v52, %v11226_v53  ;;  %v1177_v14 = vpop.f32.mrb[3].mxu0 }
 0x2da   : > { %v1178_v13 = vadd.f32 %v1177_v14, %v16702_v16 }
 0x2db   : > { %v11232_v19 = vpack.c.bf16 %v1176_v56, %v1172_v40 }
 0x2dc   : > { %v11234_v33 = vpack.c.bf16 %v1178_v13, %v1174_v23 }
 0x2dd   : > { %2437 = vrot.lane.b32.xlu0 %v11232_v19, %s10335_s29  ;;  %1378 = vrot.lane.b32.xlu1 %v11232_v19, %s10336_s12 }
 0x2de   : > { %16703 = vst [vmem:[#allocation55_spill] sm:$0xff] %v11234_v33  ;;  %7966 = vmatprep.mubr.msk.bf16.mxu1 %vm1410_vm1, %v11232_v19 }
 0x2e1   : > { %2405 = vrot.lane.b32.xlu0 %v11232_v19, %s10337_s13  ;;  %3624 = vrot.lane.b32.xlu1 %v11232_v19, %s10338_s1 }
 0x2e5   : > { %3592 = vrot.lane.b32.xlu0 %v11232_v19, %s10339_s21  ;;  %4795 = vrot.lane.b32.xlu1 %v11232_v19, %s10340_s20 }
 0x2e9   : > { %4763 = vrot.lane.b32.xlu1 %v11232_v19, %s10341_s15 }
 0x2ee   : > { %v1181_v7 = vpop.f32.mrb[4].mxu0 }
 0x2ef   : > { %v1183_v50 = vpop.f32.mrb[5].mxu0  ;;  %v1182_v44 = vadd.f32 %v1181_v7, %v11226_v53 }
 0x2f0   : > { %v1184_v18 = vadd.f32 %v1183_v50, %v16702_v16  ;;  %v1185_v26 = vpop.f32.mrb[6].mxu0 }
 0x2f1   : > { %v1186_v39 = vadd.f32 %v1185_v26, %v11226_v53  ;;  %v1187_v22 = vpop.f32.mrb[7].mxu0 }
 0x2f2   : > { %v1188_v54 = vadd.f32 %v1187_v22, %v16702_v16 }
 0x2f3   : > { %v11256_v0 = vpack.c.bf16 %v1186_v39, %v1182_v44 }
 0x2f4   : > { %v11258_v4 = vpack.c.bf16 %v1188_v54, %v1184_v18 }
 0x2f5   : > { %2439 = vrot.lane.b32.xlu0 %v11256_v0, %s10335_s29  ;;  %1380 = vrot.lane.b32.xlu1 %v11256_v0, %s10336_s12 }
 0x2f6   : > { %16704 = vst [vmem:[#allocation52_spill] sm:$0xff] %v11258_v4 }
 0x2f9   : > { %3626 = vrot.lane.b32.xlu0 %v11256_v0, %s10338_s1  ;;  %2407 = vrot.lane.b32.xlu1 %v11256_v0, %s10337_s13 }
 0x2fd   : > { %4797 = vrot.lane.b32.xlu0 %v11256_v0, %s10340_s20  ;;  %3594 = vrot.lane.b32.xlu1 %v11256_v0, %s10339_s21 }
 0x301   : > { %4765 = vrot.lane.b32.xlu0 %v11256_v0, %s10341_s15 }
 0x302   : > { %v1191_v58 = vpop.f32.mrb[8].mxu0 }
 0x303   : > { %v1193_v29 = vpop.f32.mrb[9].mxu0  ;;  %v1192_v42 = vadd.f32 %v1191_v58, %v11226_v53 }
 0x304   : > { %v1194_v9 = vadd.f32 %v1193_v29, %v16702_v16  ;;  %v1195_v17 = vpop.f32.mrb[10].mxu0 }
 0x305   : > { %v1196_v11 = vadd.f32 %v1195_v17, %v11226_v53  ;;  %v1197_v61 = vpop.f32.mrb[11].mxu0 }
 0x306   : > { %v1198_v36 = vadd.f32 %v1197_v61, %v16702_v16 }
 0x307   : > { %v11278_v8 = vpack.c.bf16 %v1196_v11, %v1192_v42 }
 0x308   : > { %v11280_v10 = vpack.c.bf16 %v1198_v36, %v1194_v9 }
 0x309   : > { %3628 = vrot.lane.b32.xlu1 %v11278_v8, %s10338_s1  ;;  %1382 = vrot.lane.b32.xlu0 %v11278_v8, %s10336_s12 }
 0x30a   : > { %16705 = vst [vmem:[#allocation53_spill] sm:$0xff] %v11280_v10 }
 0x30d   : > { %4799 = vrot.lane.b32.xlu1 %v11278_v8, %s10340_s20  ;;  %2441 = vrot.lane.b32.xlu0 %v11278_v8, %s10335_s29 }
 0x311   : > { %4767 = vrot.lane.b32.xlu1 %v11278_v8, %s10341_s15  ;;  %2409 = vrot.lane.b32.xlu0 %v11278_v8, %s10337_s13 }
 0x315   : > { %3596 = vrot.lane.b32.xlu0 %v11278_v8, %s10339_s21 }
 0x31a   : > { %v1201_v55 = vpop.f32.mrb[12].mxu0 }
 0x31b   : > { %v1203_v34 = vpop.f32.mrb[13].mxu0  ;;  %v1202_v59 = vadd.f32 %v1201_v55, %v11226_v53 }
 0x31c   : > { %v1204_v49 = vadd.f32 %v1203_v34, %v16702_v16  ;;  %v1205_v30 = vpop.f32.mrb[14].mxu0 }
 0x31d   : > { %v1206_v38 = vadd.f32 %v1205_v30, %v11226_v53  ;;  %v1207_v62 = vpop.f32.mrb[15].mxu0 }
 0x31e   : > { %v1208_v47 = vadd.f32 %v1207_v62, %v16702_v16 }
 0x31f   : > { %v11300_v27 = vpack.c.bf16 %v1206_v38, %v1202_v59 }
 0x320   : > { %v11302_v41 = vpack.c.bf16 %v1208_v47, %v1204_v49 }
 0x321   : > { %2411 = vrot.lane.b32.xlu1 %v11300_v27, %s10337_s13  ;;  %1384 = vrot.lane.b32.xlu0 %v11300_v27, %s10336_s12 }
 0x322   : > { %16706 = vst [vmem:[#allocation54_spill] sm:$0xff] %v11302_v41 }
 0x325   : > { %2443 = vrot.lane.b32.xlu0 %v11300_v27, %s10335_s29 }
 0x329   : > { %3630 = vrot.lane.b32.xlu0 %v11300_v27, %s10338_s1 }
 0x32d   : > { %3598 = vrot.lane.b32.xlu0 %v11300_v27, %s10339_s21 }
 0x331   : > { %4801 = vrot.lane.b32.xlu0 %v11300_v27, %s10340_s20 }
 0x332   : > { %v1211_v31 = vpop.f32.mrb[16].mxu0 }
 0x333   : > { %v1213_v43 = vpop.f32.mrb[17].mxu0  ;;  %v1212_v52 = vadd.f32 %v1211_v31, %v11226_v53 }
 0x334   : > { %v1214_v20 = vadd.f32 %v1213_v43, %v16702_v16  ;;  %v1215_v23 = vpop.f32.mrb[18].mxu0 }
 0x335   : > { %v1216_v40 = vadd.f32 %v1215_v23, %v11226_v53  ;;  %4769 = vrot.lane.b32.xlu0 %v11300_v27, %s10341_s15  ;;  %v1217_v56 = vpop.f32.mrb[19].mxu0 }
 0x336   : > { %v1218_v14 = vadd.f32 %v1217_v56, %v16702_v16 }
 0x337   : > { %v11322_v13 = vpack.c.bf16 %v1216_v40, %v1212_v52 }
 0x338   : > { %v11324_v7 = vpack.c.bf16 %v1218_v14, %v1214_v20 }
 0x339   : > { %3632 = vrot.lane.b32.xlu1 %v11322_v13, %s10338_s1  ;;  %1386 = vrot.lane.b32.xlu0 %v11322_v13, %s10336_s12 }
 0x33a   : > { %16707 = vst [vmem:[#allocation56_spill] sm:$0xff] %v11324_v7 }
 0x33d   : > { %3600 = vrot.lane.b32.xlu1 %v11322_v13, %s10339_s21  ;;  %2445 = vrot.lane.b32.xlu0 %v11322_v13, %s10335_s29 }
 0x341   : > { %4803 = vrot.lane.b32.xlu1 %v11322_v13, %s10340_s20  ;;  %2413 = vrot.lane.b32.xlu0 %v11322_v13, %s10337_s13 }
 0x345   : > { %4771 = vrot.lane.b32.xlu1 %v11322_v13, %s10341_s15 }
 0x34a   : > { %v1221_v50 = vpop.f32.mrb[20].mxu0 }
 0x34b   : > { %v1223_v18 = vpop.f32.mrb[21].mxu0  ;;  %v1222_v39 = vadd.f32 %v1221_v50, %v11226_v53 }
 0x34c   : > { %v1224_v26 = vadd.f32 %v1223_v18, %v16702_v16  ;;  %v1225_v44 = vpop.f32.mrb[22].mxu0 }
 0x34d   : > { %v1226_v22 = vadd.f32 %v1225_v44, %v11226_v53  ;;  %v1227_v54 = vpop.f32.mrb[23].mxu0 }
 0x34e   : > { %v1228_v58 = vadd.f32 %v1227_v54, %v16702_v16 }
 0x34f   : > { %v11344_v29 = vpack.c.bf16 %v1226_v22, %v1222_v39  ;;  %v11354_v17 = vpop.permute.xlu0 %2437 }
 0x350   : > { %v11346_v9 = vpack.c.bf16 %v1228_v58, %v1224_v26 }
 0x351   : > { %2415 = vrot.lane.b32.xlu1 %v11344_v29, %s10337_s13  ;;  %1388 = vrot.lane.b32.xlu0 %v11344_v29, %s10336_s12 }
 0x352   : > { %16708 = vst [vmem:[#allocation57_spill] sm:$0xff] %v11346_v9 }
 0x353   : > { %v11360_v11 = vpop.permute.xlu0 %2405 }
 0x355   : > { %2447 = vrot.lane.b32.xlu0 %v11344_v29, %s10335_s29 }
 0x357   : > { %v11372_v47 = vpop.permute.xlu0 %3592 }
 0x359   : > { %3634 = vrot.lane.b32.xlu0 %v11344_v29, %s10338_s1 }
 0x35d   : > { %3602 = vrot.lane.b32.xlu0 %v11344_v29, %s10339_s21 }
 0x35e   : > { %v1231_v42 = vpop.f32.mrb[24].mxu0 }
 0x35f   : > { %v1233_v61 = vpop.f32.mrb[25].mxu0  ;;  %v1232_v34 = vadd.f32 %v1231_v42, %v11226_v53 }
 0x360   : > { %v1234_v36 = vadd.f32 %v1233_v61, %v16702_v16  ;;  %v1235_v55 = vpop.f32.mrb[26].mxu0 }
 0x361   : > { %v1236_v49 = vadd.f32 %v1235_v55, %v11226_v53  ;;  %4805 = vrot.lane.b32.xlu0 %v11344_v29, %s10340_s20  ;;  %v1237_v30 = vpop.f32.mrb[27].mxu0 }
 0x362   : > { %v1238_v59 = vadd.f32 %v1237_v30, %v16702_v16 }
 0x363   : > { %v11368_v38 = vpack.c.bf16 %v1236_v49, %v1232_v34 }
 0x364   : > { %v11370_v62 = vpack.c.bf16 %v1238_v59, %v1234_v36 }
 0x365   : > { %4773 = vrot.lane.b32.xlu0 %v11344_v29, %s10341_s15  ;;  %3636 = vrot.lane.b32.xlu1 %v11368_v38, %s10338_s1 }
 0x366   : > { %16709 = vst [vmem:[#allocation58_spill] sm:$0xff] %v11370_v62  ;;  %v1241_v31 = vpop.f32.mrb[28].mxu0 }
 0x367   : > { %v1243_v43 = vpop.f32.mrb[29].mxu0  ;;  %v1242_v52 = vadd.f32 %v1241_v31, %v11226_v53  ;;  %v11380_v40 = vpop.permute.xlu0 %2439 }
 0x368   : > { %v1244_v20 = vadd.f32 %v1243_v43, %v16702_v16  ;;  %v1245_v23 = vpop.f32.mrb[30].mxu0 }
 0x369   : > { %v1246_v56 = vadd.f32 %v1245_v23, %v11226_v53  ;;  %3604 = vrot.lane.b32.xlu1 %v11368_v38, %s10339_s21  ;;  %1390 = vrot.lane.b32.xlu0 %v11368_v38, %s10336_s12  ;;  %v1247_v14 = vpop.f32.mrb[31].mxu0 }
 0x36a   : > { %v1248_v18 = vadd.f32 %v1247_v14, %v16702_v16 }
 0x36b   : > { %v11387_v50 = vpack.c.bf16 %v1246_v56, %v1242_v52  ;;  %v11392_v44 = vpop.permute.xlu0 %3626 }
 0x36c   : > { %v11390_v26 = vpack.c.bf16 %v1248_v18, %v1244_v20 }
 0x36d   : > { %4807 = vrot.lane.b32.xlu1 %v11368_v38, %s10340_s20  ;;  %2449 = vrot.lane.b32.xlu0 %v11368_v38, %s10335_s29 }
 0x36e   : > { %16710 = vst [vmem:[#allocation59_spill] sm:$0xff] %v11390_v26  ;;  %v1251_v39 = vpop.f32.mrb[32].mxu0 }
 0x36f   : > { %v1253_v22 = vpop.f32.mrb[33].mxu0  ;;  %v1252_v42 = vadd.f32 %v1251_v39, %v11226_v53  ;;  %v11405_v55 = vpop.permute.xlu0 %4797 }
 0x370   : > { %v1254_v54 = vadd.f32 %v1253_v22, %v16702_v16  ;;  %v1255_v58 = vpop.f32.mrb[34].mxu0  ;;  %16711 = vst [vmem:[#allocation60_spill] sm:$0xff] %v11405_v55 }
 0x371   : > { %v1256_v61 = vadd.f32 %v1255_v58, %v11226_v53  ;;  %4775 = vrot.lane.b32.xlu1 %v11368_v38, %s10341_s15  ;;  %2417 = vrot.lane.b32.xlu0 %v11368_v38, %s10337_s13  ;;  %v1257_v36 = vpop.f32.mrb[35].mxu0 }
 0x372   : > { %v1258_v49 = vadd.f32 %v1257_v36, %v16702_v16 }
 0x373   : > { %v11407_v34 = vpack.c.bf16 %v1256_v61, %v1252_v42  ;;  %v11419_v23 = vpop.permute.xlu0 %4765 }
 0x374   : > { %v11410_v30 = vpack.c.bf16 %v1258_v49, %v1254_v54  ;;  %16713 = vst [vmem:[#allocation62_spill] sm:$0xff] %v11419_v23 }
 0x375   : > { %2419 = vrot.lane.b32.xlu1 %v11387_v50, %s10337_s13  ;;  %1392 = vrot.lane.b32.xlu0 %v11387_v50, %s10336_s12 }
 0x376   : > { %16712 = vst [vmem:[#allocation61_spill] sm:$0xff] %v11410_v30  ;;  %v1261_v59 = vpop.f32.mrb[36].mxu0  ;;  %7998 = vmatprep.subr.bf16.mxu0 %v11410_v30 }
 0x377   : > { %v1263_v31 = vpop.f32.mrb[37].mxu0  ;;  %7999 = vmatpush3.bf16.msra.mxu0 %v11234_v33  ;;  %v1262_v52 = vadd.f32 %v1261_v59, %v11226_v53 }
 0x378   : > { %v1264_v43 = vadd.f32 %v1263_v31, %v16702_v16  ;;  %v1265_v20 = vpop.f32.mrb[38].mxu0 }
 0x379   : > { %v1266_v56 = vadd.f32 %v1265_v20, %v11226_v53  ;;  %v1267_v14 = vpop.f32.mrb[39].mxu0  ;;  %2453 = vrot.lane.b32.xlu1 %v11407_v34, %s10335_s29  ;;  %2451 = vrot.lane.b32.xlu0 %v11387_v50, %s10335_s29 }
 0x37a   : > { %v1268_v18 = vadd.f32 %v1267_v14, %v16702_v16 }
 0x37b   : > { %v11428_v39 = vpack.c.bf16 %v1266_v56, %v1262_v52  ;;  %v11432_v54 = vpop.permute.xlu0 %1382 }
 0x37c   : > { %v11430_v22 = vpack.c.bf16 %v1268_v18, %v1264_v43  ;;  %v11447_v43 = vpop.permute.xlu1 %1378 }
 0x37d   : > { %3608 = vrot.lane.b32.xlu1 %v11407_v34, %s10339_s21  ;;  %3638 = vrot.lane.b32.xlu0 %v11387_v50, %s10338_s1 }
 0x37e   : > { %16714 = vst [vmem:[#allocation63_spill] sm:$0xff] %v11430_v22  ;;  %v1271_v58 = vpop.f32.mrb[40].mxu0  ;;  %8000 = vmatprep.subr.bf16.mxu0 %v11430_v22 }
 0x37f   : > { %v1273_v42 = vpop.f32.mrb[41].mxu0  ;;  %8001 = vmatpush3.bf16.msra.mxu0 %v11258_v4  ;;  %v1272_v49 = vadd.f32 %v1271_v58, %v11226_v53  ;;  %v11450_v52 = vpop.permute.xlu0 %2441 }
 0x380   : > { %v1274_v61 = vadd.f32 %v1273_v42, %v16702_v16  ;;  %v1275_v36 = vpop.f32.mrb[42].mxu0  ;;  %v11462_v42 = vpop.permute.xlu1 %3624 }
 0x381   : > { %v1276_v59 = vadd.f32 %v1275_v36, %v11226_v53  ;;  %v1277_v31 = vpop.f32.mrb[43].mxu0  ;;  %4811 = vrot.lane.b32.xlu1 %v11407_v34, %s10340_s20  ;;  %3606 = vrot.lane.b32.xlu0 %v11387_v50, %s10339_s21 }
 0x382   : > { %v1278_v20 = vadd.f32 %v1277_v31, %v16702_v16 }
 0x383   : > { %v11452_v56 = vpack.c.bf16 %v1276_v59, %v1272_v49  ;;  %v11465_v59 = vpop.permute.xlu0 %2409 }
 0x384   : > { %v11454_v14 = vpack.c.bf16 %v1278_v20, %v1274_v61 }
 0x385   : > { %4779 = vrot.lane.b32.xlu1 %v11407_v34, %s10341_s15  ;;  %4809 = vrot.lane.b32.xlu0 %v11387_v50, %s10340_s20 }
 0x386   : > { %16715 = vst [vmem:[#allocation64_spill] sm:$0xff] %v11454_v14  ;;  %v1281_v18 = vpop.f32.mrb[44].mxu0  ;;  %8002 = vmatprep.subr.bf16.mxu0 %v11454_v14 }
 0x387   : > { %v1283_v58 = vpop.f32.mrb[45].mxu0  ;;  %8003 = vmatpush3.bf16.msra.mxu0 %v11280_v10  ;;  %v1282_v61 = vadd.f32 %v1281_v18, %v11226_v53  ;;  %v11482_v18 = vpop.permute.xlu1 %4795 }
 0x388   : > { %v1284_v36 = vadd.f32 %v1283_v58, %v16702_v16  ;;  %v1285_v49 = vpop.f32.mrb[46].mxu0  ;;  %16717 = vst [vmem:[#allocation66_spill] sm:$0xff] %v11482_v18 }
 0x389   : > { %v1286_v31 = vadd.f32 %v1285_v49, %v11226_v53  ;;  %v1287_v20 = vpop.f32.mrb[47].mxu0  ;;  %1396 = vrot.lane.b32.xlu1 %v11428_v39, %s10336_s12  ;;  %4777 = vrot.lane.b32.xlu0 %v11387_v50, %s10341_s15  ;;  %v11485_v49 = vpop.permute.xlu0 %3596 }
 0x38a   : > { %v1288_v12 = vadd.f32 %v1287_v20, %v16702_v16  ;;  %16718 = vst [vmem:[#allocation67_spill] sm:$0xff] %v11485_v49 }
 0x38b   : > { %v11474_v57 = vpack.c.bf16 %v1286_v31, %v1282_v61 }
 0x38c   : > { %v11476_v45 = vpack.c.bf16 %v1288_v12, %v1284_v36 }
 0x38d   : > { %2455 = vrot.lane.b32.xlu1 %v11428_v39, %s10335_s29  ;;  %1394 = vrot.lane.b32.xlu0 %v11407_v34, %s10336_s12 }
 0x38e   : > { %16716 = vst [vmem:[#allocation65_spill] sm:$0xff] %v11476_v45  ;;  %v1291_v58 = vpop.f32.mrb[48].mxu0  ;;  %8004 = vmatprep.subr.bf16.mxu0 %v11476_v45 }
 0x38f   : > { %v1293_v32 = vpop.f32.mrb[49].mxu0  ;;  %8005 = vmatpush3.bf16.msra.mxu0 %v11302_v41  ;;  %v1292_v36 = vadd.f32 %v1291_v58, %v11226_v53 }
 0x390   : > { %v1294_v61 = vadd.f32 %v1293_v32, %v16702_v16  ;;  %v1295_v12 = vpop.f32.mrb[50].mxu0  ;;  %v11502_v32 = vpop.permute.xlu1 %4763 }
 0x391   : > { %v1296_v31 = vadd.f32 %v1295_v12, %v11226_v53  ;;  %v1297_v20 = vpop.f32.mrb[51].mxu0  ;;  %2423 = vrot.lane.b32.xlu1 %v11428_v39, %s10337_s13  ;;  %2421 = vrot.lane.b32.xlu0 %v11407_v34, %s10337_s13  ;;  %16720 = vst [vmem:[#allocation69_spill] sm:$0xff] %v11502_v32 }
 0x392   : > { %v1298_v28 = vadd.f32 %v1297_v20, %v16702_v16 }
 0x393   : > { %v11496_v1 = vpack.c.bf16 %v1296_v31, %v1292_v36  ;;  %v11498_v46 = vpop.permute.xlu0 %1384 }
 0x394   : > { %v11500_v25 = vpack.c.bf16 %v1298_v28, %v1294_v61  ;;  %v11513_v61 = vpop.permute.xlu1 %1380  ;;  %v1469_v49 = vsel %vm1410_vm1, %v11498_v46, 0 }
 0x395   : > { %3642 = vrot.lane.b32.xlu1 %v11428_v39, %s10338_s1  ;;  %3640 = vrot.lane.b32.xlu0 %v11407_v34, %s10338_s1 }
 0x396   : > { %16719 = vst [vmem:[#allocation68_spill] sm:$0xff] %v11500_v25  ;;  %v1301_v58 = vpop.f32.mrb[52].mxu0  ;;  %8006 = vmatprep.subr.bf16.mxu0 %v11500_v25 }
 0x397   : > { %v11509_v12 = vpop.permute.xlu0 %2443  ;;  %v1303_v20 = vpop.f32.mrb[53].mxu0  ;;  %8007 = vmatpush3.bf16.msra.mxu0 %v11324_v7  ;;  %v1302_v31 = vadd.f32 %v1301_v58, %v11226_v53 }
 0x398   : > { %v1304_v36 = vadd.f32 %v1303_v20, %v16702_v16  ;;  %v1305_v28 = vpop.f32.mrb[54].mxu0 }
 0x399   : > { %v1306_v5 = vadd.f32 %v1305_v28, %v11226_v53  ;;  %v1307_v60 = vpop.f32.mrb[55].mxu0  ;;  %1398 = vrot.lane.b32.xlu1 %v11452_v56, %s10336_s12  ;;  %3610 = vrot.lane.b32.xlu0 %v11428_v39, %s10339_s21  ;;  %v11533_v28 = vpop.permute.xlu1 %2407 }
 0x39a   : > { %v1308_v15 = vadd.f32 %v1307_v60, %v16702_v16 }
 0x39b   : > { %v11522_v24 = vpack.c.bf16 %v1306_v5, %v1302_v31  ;;  %v11524_v48 = vpop.permute.xlu0 %3630 }
 0x39c   : > { %v11526_v20 = vpack.c.bf16 %v1308_v15, %v1304_v36 }
 0x39d   : > { %2457 = vrot.lane.b32.xlu1 %v11452_v56, %s10335_s29  ;;  %4813 = vrot.lane.b32.xlu0 %v11428_v39, %s10340_s20 }
 0x39e   : > { %16721 = vst [vmem:[#allocation70_spill] sm:$0xff] %v11526_v20  ;;  %v1311_v58 = vpop.f32.mrb[56].mxu0  ;;  %8008 = vmatprep.subr.bf16.mxu0 %v11526_v20 }
 0x39f   : > { %v1313_v37 = vpop.f32.mrb[57].mxu0  ;;  %8009 = vmatpush3.bf16.msra.mxu0 %v11346_v9  ;;  %v1312_v15 = vadd.f32 %v1311_v58, %v11226_v53  ;;  %v11538_v36 = vpop.permute.xlu0 %3598 }
 0x3a0   : > { %v1314_v60 = vadd.f32 %v1313_v37, %v16702_v16  ;;  %v1315_v5 = vpop.f32.mrb[58].mxu0  ;;  %16722 = vst [vmem:[#allocation71_spill] sm:$0xff] %v11538_v36  ;;  %v11550_v37 = vpop.permute.xlu1 %3594 }
 0x3a1   : > { %v1316_v31 = vadd.f32 %v1315_v5, %v11226_v53  ;;  %3612 = vrot.lane.b32.xlu1 %v11452_v56, %s10339_s21  ;;  %2425 = vrot.lane.b32.xlu0 %v11452_v56, %s10337_s13  ;;  %v1317_v2 = vpop.f32.mrb[59].mxu0  ;;  %16725 = vst [vmem:[#allocation74_spill] sm:$0xff] %v11550_v37 }
 0x3a2   : > { %v1318_v35 = vadd.f32 %v1317_v2, %v16702_v16 }
 0x3a3   : > { %v11546_v63 = vpack.c.bf16 %v1316_v31, %v1312_v15  ;;  %v11557_v5 = vpop.permute.xlu0 %4801 }
 0x3a4   : > { %v11548_v21 = vpack.c.bf16 %v1318_v35, %v1314_v60  ;;  %16726 = vst [vmem:[#allocation75_spill] sm:$0xff] %v11557_v5  ;;  %v11561_v60 = vpop.permute.xlu1 %3628  ;;  %v1460_v5 = vsel %vm1410_vm1, %v11447_v43, 0 }
 0x3a5   : > { %16723 = vst [vmem:[#allocation72_spill] sm:$0xff] %v11546_v63  ;;  %4815 = vrot.lane.b32.xlu1 %v11452_v56, %s10340_s20  ;;  %3644 = vrot.lane.b32.xlu0 %v11452_v56, %s10338_s1 }
 0x3a6   : > { %16724 = vst [vmem:[#allocation73_spill] sm:$0xff] %v11548_v21  ;;  %v1321_v58 = vpop.f32.mrb[60].mxu0  ;;  %8010 = vmatprep.subr.bf16.mxu0 %v11548_v21 }
 0x3a7   : > { %v1323_v3 = vpop.f32.mrb[61].mxu0  ;;  %8011 = vmatpush3.bf16.msra.mxu0 %v11370_v62  ;;  %v1322_v15 = vadd.f32 %v1321_v58, %v11226_v53 }
 0x3a8   : > { %v1324_v2 = vadd.f32 %v1323_v3, %v16702_v16  ;;  %v1325_v35 = vpop.f32.mrb[62].mxu0  ;;  %v11574_v3 = vpop.permute.xlu0 %4769 }
 0x3a9   : > { %v1326_v31 = vadd.f32 %v1325_v35, %v11226_v53  ;;  %1400 = vrot.lane.b32.xlu1 %v11474_v57, %s10336_s12  ;;  %3614 = vrot.lane.b32.xlu0 %v11474_v57, %s10339_s21  ;;  %v1327_v6 = vpop.f32.mrb[63].mxu0  ;;  %16729 = vst [vmem:[#allocation78_spill] sm:$0xff] %v11574_v3  ;;  %v11581_v53 = vpop.permute.xlu1 %4799 }
 0x3aa   : > { %v1328_v51 = vadd.f32 %v1327_v6, %v16702_v16  ;;  %16730 = vst [vmem:[#allocation79_spill] sm:$0xff] %v11581_v53 }
 0x3ab   : > { %v11570_v9 = vpack.c.bf16 %v1326_v31, %v1322_v15 }
 0x3ac   : > { %v11572_v62 = vpack.c.bf16 %v1328_v51, %v1324_v2  ;;  %v11588_v51 = vpop.permute.xlu0 %1386 }
 0x3ad   : > { %16727 = vst [vmem:[#allocation76_spill] sm:$0xff] %v11570_v9  ;;  %2459 = vrot.lane.b32.xlu1 %v11474_v57, %s10335_s29  ;;  %4817 = vrot.lane.b32.xlu0 %v11474_v57, %s10340_s20  ;;  %v11590_v6 = vpop.permute.xlu1 %4767 }
 0x3ae   : > { %16728 = vst [vmem:[#allocation77_spill] sm:$0xff] %v11572_v62  ;;  %8012 = vmatprep.subr.bf16.mxu0 %v11572_v62  ;;  %16731 = vst [vmem:[#allocation80_spill] sm:$0xff] %v11590_v6 }
 0x3af   : > { %8013 = vmatpush3.bf16.msra.mxu0 %v11390_v26 }
 0x3b0   : > { %v11598_v58 = vpop.permute.xlu0 %2445 }
 0x3b1   : > { %2427 = vrot.lane.b32.xlu1 %v11474_v57, %s10337_s13  ;;  %2429 = vrot.lane.b32.xlu0 %v11496_v1, %s10337_s13  ;;  %v11596_v16 = vpop.permute.xlu1 %2411 }
 0x3b4   : > { %v11610_v35 = vpop.permute.xlu0 %2413 }
 0x3b5   : > { %3646 = vrot.lane.b32.xlu1 %v11474_v57, %s10338_s1  ;;  %3648 = vrot.lane.b32.xlu0 %v11496_v1, %s10338_s1  ;;  %v11604_v2 = vpop.permute.xlu1 %3632 }
 0x3b9   : > { %1402 = vrot.lane.b32.xlu1 %v11496_v1, %s10336_s12  ;;  %3618 = vrot.lane.b32.xlu0 %v11522_v24, %s10339_s21  ;;  %v11616_v15 = vpop.permute.xlu1 %3600 }
 0x3ba   : > { %16732 = vst [vmem:[#allocation81_spill] sm:$0xff] %v11616_v15 }
 0x3bd   : > { %2461 = vrot.lane.b32.xlu1 %v11496_v1, %s10335_s29  ;;  %4821 = vrot.lane.b32.xlu0 %v11522_v24, %s10340_s20  ;;  %v11626_v62 = vpop.permute.xlu1 %4803 }
 0x3be   : > { %16733 = vst [vmem:[#allocation82_spill] sm:$0xff] %v11626_v62 }
 0x3c1   : > { %3616 = vrot.lane.b32.xlu1 %v11496_v1, %s10339_s21  ;;  %2433 = vrot.lane.b32.xlu0 %v11546_v63, %s10337_s13  ;;  %v11638_v20 = vpop.permute.xlu1 %4771 }
 0x3c2   : > { %16734 = vst [vmem:[#allocation83_spill] sm:$0xff] %v11638_v20 }
 0x3c3   : > { %v11618_v31 = vpop.permute.xlu0 %1388 }
 0x3c4   : > { %v1475_v46 = vsel %vm1410_vm1, %v11618_v31, 0 }
 0x3c5   : > { %4819 = vrot.lane.b32.xlu1 %v11496_v1, %s10340_s20  ;;  %3652 = vrot.lane.b32.xlu0 %v11546_v63, %s10338_s1  ;;  %v11646_v25 = vpop.permute.xlu1 %2415 }
 0x3c7   : > { %v11624_v26 = vpop.permute.xlu0 %2447 }
 0x3c9   : > { %1404 = vrot.lane.b32.xlu1 %v11522_v24, %s10336_s12  ;;  %3622 = vrot.lane.b32.xlu0 %v11570_v9, %s10339_s21 }
 0x3cb   : > { %v11632_v21 = vpop.permute.xlu0 %3634 }
 0x3cd   : > { %2463 = vrot.lane.b32.xlu1 %v11522_v24, %s10335_s29  ;;  %4825 = vrot.lane.b32.xlu0 %v11570_v9, %s10340_s20 }
 0x3cf   : > { %v11640_v7 = vpop.permute.xlu0 %3602 }
 0x3d0   : > { %16735 = vst [vmem:[#allocation84_spill] sm:$0xff] %v11640_v7 }
 0x3d1   : > { %2431 = vrot.lane.b32.xlu1 %v11522_v24, %s10337_s13  ;;  %4781 = vrot.lane.b32.xlu0 %v11428_v39, %s10341_s15 }
 0x3d3   : > { %v11648_v41 = vpop.permute.xlu0 %4805 }
 0x3d4   : > { %16736 = vst [vmem:[#allocation85_spill] sm:$0xff] %v11648_v41 }
 0x3d5   : > { %3650 = vrot.lane.b32.xlu1 %v11522_v24, %s10338_s1  ;;  %4785 = vrot.lane.b32.xlu0 %v11474_v57, %s10341_s15 }
 0x3d7   : > { %v11654_v45 = vpop.permute.xlu0 %4773  ;;  %v11656_v10 = vpop.permute.xlu1 %3636 }
 0x3d8   : > { %16737 = vst [vmem:[#allocation86_spill] sm:$0xff] %v11654_v45 }
 0x3d9   : > { %1406 = vrot.lane.b32.xlu1 %v11546_v63, %s10336_s12 }
 0x3db   : > { %v11660_v14 = vpop.permute.xlu0 %1390  ;;  %v11662_v4 = vpop.permute.xlu1 %3604 }
 0x3dc   : > { %16738 = vst [vmem:[#allocation87_spill] sm:$0xff] %v11662_v4 }
 0x3dd   : > { %2465 = vrot.lane.b32.xlu1 %v11546_v63, %s10335_s29 }
 0x3df   : > { %v11666_v22 = vpop.permute.xlu0 %2449  ;;  %v11668_v33 = vpop.permute.xlu1 %4807 }
 0x3e0   : > { %16739 = vst [vmem:[#allocation88_spill] sm:$0xff] %v11668_v33 }
 0x3e1   : > { %3620 = vrot.lane.b32.xlu1 %v11546_v63, %s10339_s21 }
 0x3e3   : > { %v11672_v30 = vpop.permute.xlu0 %2417  ;;  %v11674_v45 = vpop.permute.xlu1 %4775 }
 0x3e4   : > { %16740 = vst [vmem:[#allocation89_spill] sm:$0xff] %v11674_v45 }
 0x3e5   : > { %4823 = vrot.lane.b32.xlu1 %v11546_v63, %s10340_s20 }
 0x3e7   : > { %v11678_v20 = vpop.permute.xlu0 %1392  ;;  %v11680_v3 = vpop.permute.xlu1 %2419 }
 0x3e8   : > { %v1481_v31 = vsel %vm1410_vm1, %v11678_v20, 0 }
 0x3e9   : > { %1408 = vrot.lane.b32.xlu1 %v11570_v9, %s10336_s12  ;;  %s10248_s12 = sshll.u32 %s10342_s30, 4  ;;  %s10249_s12 = int_to_ptr.vmem [resolvable:$false] %s10248_s12 }
 0x3ea   : > { %p10251_p4 = scmp.lt.s32.totalorder %s15980_s17, %s10249_s12 }
 0x3eb   : > { %v11684_v6 = vpop.permute.xlu0 %2451  ;;  %v11686_v23 = vpop.permute.xlu1 %2453 }
 0x3ed   : > { %2467 = vrot.lane.b32.xlu1 %v11570_v9, %s10335_s29 }
 0x3ef   : > { %v11690_v32 = vpop.permute.xlu0 %3638  ;;  %v11692_v45 = vpop.permute.xlu1 %3608 }
 0x3f0   : > { %16741 = vst [vmem:[#allocation90_spill] sm:$0xff] %v11692_v45 }
 0x3f1   : > { %2435 = vrot.lane.b32.xlu1 %v11570_v9, %s10337_s13 }
 0x3f3   : > { %v11696_v33 = vpop.permute.xlu0 %3606  ;;  %v11698_v4 = vpop.permute.xlu1 %4811 }
 0x3f4   : > { %16742 = vst [vmem:[#allocation91_spill] sm:$0xff] %v11696_v33 }
 0x3f5   : > { %3654 = vrot.lane.b32.xlu1 %v11570_v9, %s10338_s1 }
 0x3f7   : > { %v11702_v41 = vpop.permute.xlu0 %4809  ;;  %v11704_v7 = vpop.permute.xlu1 %4779 }
 0x3f8   : > { %16743 = vst [vmem:[#allocation92_spill] sm:$0xff] %v11702_v41  ;;  %16744 = vst [vmem:[#allocation93_spill] sm:$0xff] %v11704_v7 }
 0x3f9   : > { %4783 = vrot.lane.b32.xlu1 %v11452_v56, %s10341_s15 }
 0x3fb   : > { %v11708_v62 = vpop.permute.xlu0 %4777  ;;  %v1397_v45 = vpop.permute.xlu1 %1396 }
 0x3fc   : > { %16745 = vst [vmem:[#allocation94_spill] sm:$0xff] %v11708_v62  ;;  %v1463_v62 = vsel %vm1410_vm1, %v11513_v61, 0 }
 0x3fd   : > { %4787 = vrot.lane.b32.xlu1 %v11496_v1, %s10341_s15 }
 0x3ff   : > { %v1395_v15 = vpop.permute.xlu0 %1394  ;;  %v2456_v33 = vpop.permute.xlu1 %2455 }
 0x400   : > { %8778 = vmatprep.subr.msk.bf16.mxu1 %vm1410_vm1, %v1395_v15  ;;  %v1466_v15 = vsel %vm1410_vm1, %v11432_v54, 0  ;;  %v1472_v54 = vsel %vm1410_vm1, %v11588_v51, 0  ;;  %v1478_v51 = vsel %vm1410_vm1, %v11660_v14, 0  ;;  %v2521_v14 = vsel %vm1410_vm1, %v11380_v40, 0 }
 0x401   : > { %7951 = vmatpush3.bf16.xpose.msra.mxu1 %v1460_v5 }
 0x402   : > { %8779 = vmatprep.subr.msk.bf16.mxu1 %vm1410_vm1, %v1397_v45 }
 0x403   : > { %v11716_v7 = vpop.permute.xlu1 %2423 }
 0x407   : > { %v11718_v41 = vpop.permute.xlu1 %3642 }
 0x409   : > { %7953 = vmatpush3.bf16.xpose.msra.mxu1 %v1463_v62 }
 0x40b   : > { %v1399_v36 = vpop.permute.xlu1 %1398 }
 0x40c   : > { %8780 = vmatprep.subr.msk.bf16.mxu1 %vm1410_vm1, %v1399_v36 }
 0x40f   : > { %v2458_v53 = vpop.permute.xlu1 %2457 }
 0x411   : > { %7955 = vmatpush3.bf16.xpose.msra.mxu1 %v1466_v15 }
 0x413   : > { %v11725_v43 = vpop.permute.xlu1 %3612 }
 0x414   : > { %16746 = vst [vmem:[#allocation95_spill] sm:$0xff] %v11725_v43 }
 0x417   : > { %v11727_v5 = vpop.permute.xlu1 %4815 }
 0x418   : > { %16747 = vst [vmem:[#allocation96_spill] sm:$0xff] %v11727_v5 }
 0x41b   : > { %v1401_v45 = vpop.permute.xlu1 %1400 }
 0x41c   : > { %8781 = vmatprep.subr.msk.bf16.mxu1 %vm1410_vm1, %v1401_v45 }
 0x41d   : > { %7957 = vmatpush3.bf16.xpose.msra.mxu1 %v1469_v49 }
 0x41f   : > { %v2460_v62 = vpop.permute.xlu1 %2459 }
 0x423   : > { %v11732_v61 = vpop.permute.xlu1 %2427 }
 0x427   : > { %v11734_v36 = vpop.permute.xlu1 %3646 }
 0x42b   : > { %v1403_v55 = vpop.permute.xlu1 %1402 }
 0x42c   : > { %8782 = vmatprep.subr.msk.bf16.mxu1 %vm1410_vm1, %v1403_v55 }
 0x42d   : > { %7959 = vmatpush3.bf16.xpose.msra.mxu1 %v1472_v54 }
 0x42f   : > { %v2462_v15 = vpop.permute.xlu1 %2461 }
 0x433   : > { %v11739_v43 = vpop.permute.xlu1 %3616 }
 0x434   : > { %16748 = vst [vmem:[#allocation97_spill] sm:$0xff] %v11739_v43 }
 0x437   : > { %v11741_v45 = vpop.permute.xlu1 %4819 }
 0x438   : > { %16749 = vst [vmem:[#allocation98_spill] sm:$0xff] %v11741_v45 }
 0x43b   : > { %v1405_v5 = vpop.permute.xlu1 %1404 }
 0x43c   : > { %8783 = vmatprep.subr.msk.bf16.mxu1 %vm1410_vm1, %v1405_v5 }
 0x43d   : > { %7961 = vmatpush3.bf16.xpose.msra.mxu1 %v1475_v46 }
 0x43f   : > { %v2464_v49 = vpop.permute.xlu1 %2463 }
 0x443   : > { %v11746_v37 = vpop.permute.xlu1 %2431 }
 0x447   : > { %v11748_v55 = vpop.permute.xlu1 %3650 }
 0x44b   : > { %v1407_v18 = vpop.permute.xlu1 %1406 }
 0x44c   : > { %8784 = vmatprep.subr.msk.bf16.mxu1 %vm1410_vm1, %v1407_v18  ;;  %v2518_v18 = vsel %vm1410_vm1, %v11354_v17, 0  ;;  %v2539_v17 = vsel %vm1410_vm1, %v11684_v6, 0 }
 0x44d   : > { %7963 = vmatpush3.bf16.xpose.msra.mxu1 %v1478_v51 }
 0x44f   : > { %v2466_v54 = vpop.permute.xlu1 %2465 }
 0x453   : > { %v11753_v43 = vpop.permute.xlu1 %3620 }
 0x457   : > { %v11755_v5 = vpop.permute.xlu1 %4823 }
 0x45b   : > { %v1409_v45 = vpop.permute.xlu1 %1408 }
 0x45c   : > { %8785 = vmatprep.subr.msk.bf16.mxu1 %vm1410_vm1, %v1409_v45 }
 0x45d   : > { %7965 = vmatpush3.bf16.xpose.msra.mxu1 %v1481_v31 }
 0x45e   : > { %8786 = vmatprep.subr.msk.bf16.mxu1 %vm1410_vm1, %v11686_v23 }
 0x464   : > { %7967 = vmatmul.mubr.msk.bf16.vlgmr.msra.gmra.mrb[0].mxu1 %vm1410_vm1, %v11232_v19  ;;  %v2524_v19 = vsel %vm1410_vm1, %v11450_v52, 0  ;;  %v3714_v52 = vsel %vm1410_vm1, %v11524_v48, 0 }
 0x465   : > { %7968 = vmatprep.mubr.msk.bf16.mxu1 %vm1410_vm1, %v11256_v0  ;;  %8111 = vmatpush3.bf16.xpose.msra.mxu1 %v2518_v18 }
 0x466   : > { %8787 = vmatprep.subr.msk.bf16.mxu1 %vm1410_vm1, %v2456_v33  ;;  %v2527_v33 = vsel %vm1410_vm1, %v11509_v12, 0 }
 0x46c   : > { %7969 = vmatmul.mubr.msk.bf16.gmra.mrb[4].mxu1 %vm1410_vm1, %v11256_v0  ;;  %v2530_v0 = vsel %vm1410_vm1, %v11598_v58, 0 }
 0x46d   : > { %7970 = vmatprep.mubr.msk.bf16.mxu1 %vm1410_vm1, %v11278_v8  ;;  %8113 = vmatpush3.bf16.xpose.msra.mxu1 %v2521_v14 }
 0x46e   : > { %8788 = vmatprep.subr.msk.bf16.mxu1 %vm1410_vm1, %v2458_v53 }
 0x474   : > { %7971 = vmatmul.mubr.msk.bf16.gmra.mrb[8].mxu1 %vm1410_vm1, %v11278_v8  ;;  %v2533_v8 = vsel %vm1410_vm1, %v11624_v26, 0 }
 0x475   : > { %7972 = vmatprep.mubr.msk.bf16.mxu1 %vm1410_vm1, %v11300_v27  ;;  %8115 = vmatpush3.bf16.xpose.msra.mxu1 %v2524_v19 }
 0x476   : > { %8789 = vmatprep.subr.msk.bf16.mxu1 %vm1410_vm1, %v2460_v62 }
 0x47c   : > { %7973 = vmatmul.mubr.msk.bf16.gmra.mrb[12].mxu1 %vm1410_vm1, %v11300_v27  ;;  %v2536_v27 = vsel %vm1410_vm1, %v11666_v22, 0  ;;  %v3711_v22 = vsel %vm1410_vm1, %v11561_v60, 0 }
 0x47d   : > { %7974 = vmatprep.mubr.msk.bf16.mxu1 %vm1410_vm1, %v11322_v13  ;;  %8117 = vmatpush3.bf16.xpose.msra.mxu1 %v2527_v33 }
 0x47e   : > { %8790 = vmatprep.subr.msk.bf16.mxu1 %vm1410_vm1, %v2462_v15 }
 0x484   : > { %7975 = vmatmul.mubr.msk.bf16.gmra.mrb[16].mxu1 %vm1410_vm1, %v11322_v13  ;;  %v2468_v13 = vpop.permute.xlu1 %2467 }
 0x485   : > { %7976 = vmatprep.mubr.msk.bf16.mxu1 %vm1410_vm1, %v11344_v29  ;;  %8119 = vmatpush3.bf16.xpose.msra.mxu1 %v2530_v0 }
 0x486   : > { %8791 = vmatprep.subr.msk.bf16.mxu1 %vm1410_vm1, %v2464_v49 }
 0x488   : > { %v11909_v20 = vpop.permute.xlu1 %2435 }
 0x48c   : > { %7977 = vmatmul.mubr.msk.bf16.gmra.mrb[20].mxu1 %vm1410_vm1, %v11344_v29  ;;  %v11811_v29 = vpop.permute.xlu0 %2421  ;;  %v3655_v60 = vpop.permute.xlu1 %3654 }
 0x48d   : > { %7978 = vmatprep.mubr.msk.bf16.mxu1 %vm1410_vm1, %v11368_v38  ;;  %8121 = vmatpush3.bf16.xpose.msra.mxu1 %v2533_v8 }
 0x48e   : > { %8792 = vmatprep.subr.msk.bf16.mxu1 %vm1410_vm1, %v2466_v54 }
 0x490   : > { %v3641_v40 = vpop.permute.xlu0 %3640 }
 0x494   : > { %7979 = vmatmul.mubr.msk.bf16.gmra.mrb[24].mxu1 %vm1410_vm1, %v11368_v38  ;;  %v11840_v38 = vpop.permute.xlu0 %3610 }
 0x495   : > { %7980 = vmatprep.mubr.msk.bf16.mxu1 %vm1410_vm1, %v11387_v50  ;;  %8123 = vmatpush3.bf16.xpose.msra.mxu1 %v2536_v27 }
 0x496   : > { %8793 = vmatprep.subr.msk.bf16.mxu1 %vm1410_vm1, %v2468_v13 }
 0x49c   : > { %7981 = vmatmul.mubr.msk.bf16.gmra.mrb[28].mxu1 %vm1410_vm1, %v11387_v50  ;;  %v11846_v50 = vpop.permute.xlu0 %4813 }
 0x49d   : > { %7982 = vmatprep.mubr.msk.bf16.mxu1 %vm1410_vm1, %v11407_v34  ;;  %8125 = vmatpush3.bf16.xpose.msra.mxu1 %v2539_v17 }
 0x49e   : > { %8794 = vmatprep.subr.msk.bf16.mxu1 %vm1410_vm1, %v3641_v40 }
 0x4a4   : > { %7983 = vmatmul.mubr.msk.bf16.gmra.mrb[32].mxu1 %vm1410_vm1, %v11407_v34  ;;  %v3705_v34 = vsel %vm1410_vm1, %v11462_v42, 0  ;;  %v3717_v42 = vsel %vm1410_vm1, %v11604_v2, 0 }
 0x4a5   : > { %7984 = vmatprep.mubr.msk.bf16.mxu1 %vm1410_vm1, %v11428_v39 }
 0x4ac   : > { %7985 = vmatmul.mubr.msk.bf16.gmra.mrb[36].mxu1 %vm1410_vm1, %v11428_v39  ;;  %v3708_v39 = vsel %vm1410_vm1, %v11392_v44, 0 }
 0x4ad   : > { %7986 = vmatprep.mubr.msk.bf16.mxu1 %vm1410_vm1, %v11452_v56 }
 0x4b4   : > { %7987 = vmatmul.mubr.msk.bf16.gmra.mrb[40].mxu1 %vm1410_vm1, %v11452_v56 }
 0x4b5   : > { %7988 = vmatprep.mubr.msk.bf16.mxu1 %vm1410_vm1, %v11474_v57 }
 0x4bc   : > { %7989 = vmatmul.mubr.msk.bf16.gmra.mrb[44].mxu1 %vm1410_vm1, %v11474_v57 }
 0x4bd   : > { %7990 = vmatprep.mubr.msk.bf16.mxu1 %vm1410_vm1, %v11496_v1 }
 0x4c4   : > { %7991 = vmatmul.mubr.msk.bf16.gmra.mrb[48].mxu1 %vm1410_vm1, %v11496_v1  ;;  %v2426_v1 = vpop.permute.xlu0 %2425 }
 0x4c5   : > { %7992 = vmatprep.mubr.msk.bf16.mxu1 %vm1410_vm1, %v11522_v24 }
 0x4c8   : > { %v3645_v57 = vpop.permute.xlu0 %3644 }
 0x4cc   : > { %7993 = vmatmul.mubr.msk.bf16.gmra.mrb[52].mxu1 %vm1410_vm1, %v11522_v24  ;;  %v11856_v26 = vpop.permute.xlu0 %3614 }
 0x4cd   : > { %7994 = vmatprep.mubr.msk.bf16.mxu1 %vm1410_vm1, %v11546_v63 }
 0x4d0   : > { %v11866_v23 = vpop.permute.xlu0 %4817 }
 0x4d4   : > { %7995 = vmatmul.mubr.msk.bf16.gmra.mrb[56].mxu1 %vm1410_vm1, %v11546_v63 }
 0x4d5   : > { %7996 = vmatprep.mubr.msk.bf16.mxu1 %vm1410_vm1, %v11570_v9 }
 0x4dc   : > { %7997 = vmatmul.mubr.msk.bf16.gmra.mrb[60].mxu1 %vm1410_vm1, %v11570_v9 }
 0x4dd   : > { %8126 = vmatprep.mubr.msk.bf16.mxu1 %vm1410_vm1, %v11360_v11 }
 0x4e4   : > { %8127 = vmatmul.mubr.msk.bf16.vlgmr.msra.gmra.mrb[64].mxu1 %vm1410_vm1, %v11360_v11  ;;  %v2430_v11 = vpop.permute.xlu0 %2429 }
 0x4e5   : > { %8271 = vmatpush3.bf16.xpose.msra.mxu1 %v3705_v34  ;;  %8128 = vmatprep.mubr.msk.bf16.mxu1 %vm1410_vm1, %v11533_v28  ;;  %v16751_v34 = vld [vmem:[#allocation74_spill] sm:$0xff] }
 0x4e6   : > { %8795 = vmatprep.subr.msk.bf16.mxu1 %vm1410_vm1, %v11718_v41 }
 0x4e8   : > { %v3649_v41 = vpop.permute.xlu0 %3648 }
 0x4ec   : > { %8129 = vmatmul.mubr.msk.bf16.gmra.mrb[68].mxu1 %vm1410_vm1, %v11533_v28  ;;  %v11883_v44 = vpop.permute.xlu0 %3618  ;;  %v3723_v28 = vsel %vm1410_vm1, %v11656_v10, 0 }
 0x4ed   : > { %8273 = vmatpush3.bf16.xpose.msra.mxu1 %v3708_v39  ;;  %8130 = vmatprep.mubr.msk.bf16.mxu1 %vm1410_vm1, %v11465_v59 }
 0x4ee   : > { %8796 = vmatprep.subr.msk.bf16.mxu1 %vm1410_vm1, %v3645_v57 }
 0x4f0   : > { %v11892_v56 = vpop.permute.xlu0 %4821 }
 0x4f4   : > { %8131 = vmatmul.mubr.msk.bf16.gmra.mrb[72].mxu1 %vm1410_vm1, %v11465_v59  ;;  %v2434_v48 = vpop.permute.xlu0 %2433  ;;  %v3720_v59 = vsel %vm1410_vm1, %v11632_v21, 0  ;;  %v3726_v21 = vsel %vm1410_vm1, %v11690_v32, 0 }
 0x4f5   : > { %8275 = vmatpush3.bf16.xpose.msra.mxu1 %v3711_v22  ;;  %8132 = vmatprep.mubr.msk.bf16.mxu1 %vm1410_vm1, %v11596_v16 }
 0x4f6   : > { %8797 = vmatprep.subr.msk.bf16.mxu1 %vm1410_vm1, %v11734_v36 }
 0x4f8   : > { %v3653_v12 = vpop.permute.xlu0 %3652 }
 0x4fc   : > { %8133 = vmatmul.mubr.msk.bf16.gmra.mrb[76].mxu1 %vm1410_vm1, %v11596_v16 }
 0x4fd   : > { %8277 = vmatpush3.bf16.xpose.msra.mxu1 %v3714_v52  ;;  %8134 = vmatprep.mubr.msk.bf16.mxu1 %vm1410_vm1, %v11610_v35 }
 0x4fe   : > { %8798 = vmatprep.subr.msk.bf16.mxu1 %vm1410_vm1, %v3649_v41 }
 0x504   : > { %8135 = vmatmul.mubr.msk.bf16.gmra.mrb[80].mxu1 %vm1410_vm1, %v11610_v35 }
 0x505   : > { %8279 = vmatpush3.bf16.xpose.msra.mxu1 %v3717_v42  ;;  %8136 = vmatprep.mubr.msk.bf16.mxu1 %vm1410_vm1, %v11646_v25  ;;  %v16752_v42 = vld [vmem:[#allocation60_spill] sm:$0xff] }
 0x506   : > { %8799 = vmatprep.subr.msk.bf16.mxu1 %vm1410_vm1, %v11748_v55 }
 0x50c   : > { %8137 = vmatmul.mubr.msk.bf16.gmra.mrb[84].mxu1 %vm1410_vm1, %v11646_v25 }
 0x50d   : > { %8281 = vmatpush3.bf16.xpose.msra.mxu1 %v3720_v59  ;;  %8138 = vmatprep.mubr.msk.bf16.mxu1 %vm1410_vm1, %v11672_v30  ;;  %v16754_v59 = vld [vmem:[#allocation96_spill] sm:$0xff] }
 0x50e   : > { %8800 = vmatprep.subr.msk.bf16.mxu1 %vm1410_vm1, %v3653_v12 }
 0x514   : > { %8139 = vmatmul.mubr.msk.bf16.gmra.mrb[88].mxu1 %vm1410_vm1, %v11672_v30 }
 0x515   : > { %8283 = vmatpush3.bf16.xpose.msra.mxu1 %v3723_v28  ;;  %8140 = vmatprep.mubr.msk.bf16.mxu1 %vm1410_vm1, %v11680_v3 }
 0x516   : > { %8801 = vmatprep.subr.msk.bf16.mxu1 %vm1410_vm1, %v3655_v60 }
 0x51c   : > { %8141 = vmatmul.mubr.msk.bf16.gmra.mrb[92].mxu1 %vm1410_vm1, %v11680_v3 }
 0x51d   : > { %8285 = vmatpush3.bf16.xpose.msra.mxu1 %v3726_v21  ;;  %8142 = vmatprep.mubr.msk.bf16.mxu1 %vm1410_vm1, %v11811_v29 }
 0x51e   : > { %8802 = vmatprep.subr.msk.bf16.mxu1 %vm1410_vm1, %v11698_v4 }
 0x524   : > { %8143 = vmatmul.mubr.msk.bf16.gmra.mrb[96].mxu1 %vm1410_vm1, %v11811_v29 }
 0x525   : > { %8144 = vmatprep.mubr.msk.bf16.mxu1 %vm1410_vm1, %v11716_v7 }
 0x52c   : > { %8145 = vmatmul.mubr.msk.bf16.gmra.mrb[100].mxu1 %vm1410_vm1, %v11716_v7 }
 0x52d   : > { %8146 = vmatprep.mubr.msk.bf16.mxu1 %vm1410_vm1, %v2426_v1 }
 0x534   : > { %8147 = vmatmul.mubr.msk.bf16.gmra.mrb[104].mxu1 %vm1410_vm1, %v2426_v1  ;;  %v16750_v1 = vld [vmem:[#allocation66_spill] sm:$0xff] }
 0x535   : > { %8148 = vmatprep.mubr.msk.bf16.mxu1 %vm1410_vm1, %v11732_v61  ;;  %v4876_v57 = vsel %vm1410_vm1, %v16750_v1, 0  ;;  %v16759_v1 = vld [vmem:[#allocation98_spill] sm:$0xff] }
 0x537   : > { %v11936_v25 = vpop.f32.mrb[0].mxu1 }
 0x538   : > { %v11938_v10 = vpop.f32.mrb[1].mxu1 }
 0x539   : > { %v11940_v4 = vpop.f32.mrb[2].mxu1  ;;  %v1700_v30 = vmax.f32 %v11936_v25, %v11938_v10 }
 0x53a   : > { %v11944_v32 = vpop.f32.mrb[3].mxu1 }
 0x53b   : > { %1701 = vmax.xlane.f32.xlu1 %v1700_v30  ;;  %v1703_v7 = vmax.f32 %v11940_v4, %v11944_v32 }
 0x53c   : > { %8149 = vmatmul.mubr.msk.bf16.gmra.mrb[108].mxu1 %vm1410_vm1, %v11732_v61 }
 0x53d   : > { %1704 = vmax.xlane.f32.xlu0 %v1703_v7  ;;  %8150 = vmatprep.mubr.msk.bf16.mxu1 %vm1410_vm1, %v2430_v11  ;;  %v16755_v7 = vld [vmem:[#allocation79_spill] sm:$0xff] }
 0x53f   : > { %v11951_v3 = vpop.f32.mrb[4].mxu1 }
 0x540   : > { %v11953_v53 = vpop.f32.mrb[5].mxu1 }
 0x541   : > { %v11955_v6 = vpop.f32.mrb[6].mxu1  ;;  %v1706_v16 = vmax.f32 %v11951_v3, %v11953_v53 }
 0x542   : > { %v11959_v58 = vpop.f32.mrb[7].mxu1 }
 0x543   : > { %1707 = vmax.xlane.f32.xlu1 %v1706_v16  ;;  %v1709_v2 = vmax.f32 %v11955_v6, %v11959_v58  ;;  %v4882_v16 = vsel %vm1410_vm1, %v16755_v7, 0 }
 0x544   : > { %8151 = vmatmul.mubr.msk.bf16.gmra.mrb[112].mxu1 %vm1410_vm1, %v2430_v11 }
 0x545   : > { %8152 = vmatprep.mubr.msk.bf16.mxu1 %vm1410_vm1, %v11746_v37 }
 0x547   : > { %1710 = vmax.xlane.f32.xlu1 %v1709_v2  ;;  %v11966_v35 = vpop.f32.mrb[8].mxu1  ;;  %v16756_v2 = vld [vmem:[#allocation71_spill] sm:$0xff] }
 0x548   : > { %v11968_v62 = vpop.f32.mrb[9].mxu1 }
 0x549   : > { %v11970_v61 = vpop.f32.mrb[10].mxu1  ;;  %v1712_v36 = vmax.f32 %v11966_v35, %v11968_v62 }
 0x54a   : > { %v11974_v15 = vpop.f32.mrb[11].mxu1 }
 0x54b   : > { %1713 = vmax.xlane.f32.xlu0 %v1712_v36  ;;  %v1715_v45 = vmax.f32 %v11970_v61, %v11974_v15 }
 0x54c   : > { %8153 = vmatmul.mubr.msk.bf16.gmra.mrb[116].mxu1 %vm1410_vm1, %v11746_v37 }
 0x54d   : > { %1716 = vmax.xlane.f32.xlu1 %v1715_v45  ;;  %8154 = vmatprep.mubr.msk.bf16.mxu1 %vm1410_vm1, %v2434_v48 }
 0x54f   : > { %v11981_v46 = vpop.f32.mrb[12].mxu1 }
 0x550   : > { %v11983_v49 = vpop.f32.mrb[13].mxu1 }
 0x551   : > { %v11985_v55 = vpop.f32.mrb[14].mxu1  ;;  %v1718_v51 = vmax.f32 %v11981_v46, %v11983_v49 }
 0x552   : > { %v11989_v54 = vpop.f32.mrb[15].mxu1 }
 0x553   : > { %1719 = vmax.xlane.f32.xlu1 %v1718_v51  ;;  %v1721_v31 = vmax.f32 %v11985_v55, %v11989_v54 }
 0x554   : > { %8155 = vmatmul.mubr.msk.bf16.gmra.mrb[120].mxu1 %vm1410_vm1, %v2434_v48  ;;  %v4879_v48 = vsel %vm1410_vm1, %v16752_v42, 0 }
 0x555   : > { %8156 = vmatprep.mubr.msk.bf16.mxu1 %vm1410_vm1, %v11909_v20 }
 0x557   : > { %1722 = vmax.xlane.f32.xlu1 %v1721_v31  ;;  %v11996_v37 = vpop.f32.mrb[16].mxu1 }
 0x558   : > { %v11998_v18 = vpop.f32.mrb[17].mxu1 }
 0x559   : > { %v12000_v14 = vpop.f32.mrb[18].mxu1  ;;  %v1724_v19 = vmax.f32 %v11996_v37, %v11998_v18 }
 0x55a   : > { %v12004_v33 = vpop.f32.mrb[19].mxu1 }
 0x55b   : > { %1725 = vmax.xlane.f32.xlu0 %v1724_v19  ;;  %v1727_v0 = vmax.f32 %v12000_v14, %v12004_v33 }
 0x55c   : > { %8157 = vmatmul.mubr.msk.bf16.gmra.mrb[124].mxu1 %vm1410_vm1, %v11909_v20 }
 0x55d   : > { %1728 = vmax.xlane.f32.xlu1 %v1727_v0  ;;  %8286 = vmatprep.mubr.msk.bf16.mxu1 %vm1410_vm1, %v11372_v47 }
 0x55f   : > { %v12012_v8 = vpop.f32.mrb[20].mxu1 }
 0x560   : > { %v12014_v27 = vpop.f32.mrb[21].mxu1 }
 0x561   : > { %v12016_v13 = vpop.f32.mrb[22].mxu1  ;;  %v1730_v29 = vmax.f32 %v12012_v8, %v12014_v27 }
 0x562   : > { %v12020_v17 = vpop.f32.mrb[23].mxu1 }
 0x563   : > { %1731 = vmax.xlane.f32.xlu1 %v1730_v29  ;;  %v1733_v40 = vmax.f32 %v12016_v13, %v12020_v17  ;;  %v16757_v29 = vld [vmem:[#allocation75_spill] sm:$0xff] }
 0x564   : > { %8287 = vmatmul.mubr.msk.bf16.vlgmr.msra.gmra.mrb[128].mxu1 %vm1410_vm1, %v11372_v47 }
 0x565   : > { %8431 = vmatpush3.bf16.xpose.msra.mxu1 %v4876_v57  ;;  %1734 = vmax.xlane.f32.xlu0 %v1733_v40  ;;  %v4885_v40 = vsel %vm1410_vm1, %v16757_v29, 0  ;;  %v16766_v29 = vld [vmem:[#allocation85_spill] sm:$0xff] }
 0x566   : > { %8288 = vmatprep.mubr.msk.bf16.mxu1 %vm1410_vm1, %v16751_v34  ;;  %8803 = vmatprep.subr.msk.bf16.mxu1 %vm1410_vm1, %v11846_v50  ;;  %v16753_v50 = vld [vmem:[#allocation67_spill] sm:$0xff] }
 0x567   : > { %v12032_v39 = vpop.f32.mrb[24].mxu1 }
 0x568   : > { %v12034_v11 = vpop.f32.mrb[25].mxu1 }
 0x569   : > { %v12036_v22 = vpop.f32.mrb[26].mxu1  ;;  %v1736_v41 = vmax.f32 %v12032_v39, %v12034_v11 }
 0x56a   : > { %v12040_v52 = vpop.f32.mrb[27].mxu1 }
 0x56b   : > { %1737 = vmax.xlane.f32.xlu1 %v1736_v41  ;;  %v1739_v47 = vmax.f32 %v12036_v22, %v12040_v52 }
 0x56c   : > { %8289 = vmatmul.mubr.msk.bf16.gmra.mrb[132].mxu1 %vm1410_vm1, %v16751_v34 }
 0x56d   : > { %8433 = vmatpush3.bf16.xpose.msra.mxu1 %v4879_v48  ;;  %1740 = vmax.xlane.f32.xlu0 %v1739_v47 }
 0x56e   : > { %8290 = vmatprep.mubr.msk.bf16.mxu1 %vm1410_vm1, %v16753_v50  ;;  %8804 = vmatprep.subr.msk.bf16.mxu1 %vm1410_vm1, %v16754_v59 }
 0x56f   : > { %v12052_v12 = vpop.f32.mrb[28].mxu1 }
 0x570   : > { %v12054_v20 = vpop.f32.mrb[29].mxu1 }
 0x571   : > { %v12056_v28 = vpop.f32.mrb[30].mxu1  ;;  %v1742_v60 = vmax.f32 %v12052_v12, %v12054_v20 }
 0x572   : > { %v12060_v21 = vpop.f32.mrb[31].mxu1 }
 0x573   : > { %1743 = vmax.xlane.f32.xlu1 %v1742_v60  ;;  %v1745_v30 = vmax.f32 %v12056_v28, %v12060_v21  ;;  %v16765_v60 = vld [vmem:[#allocation84_spill] sm:$0xff] }
 0x574   : > { %8291 = vmatmul.mubr.msk.bf16.gmra.mrb[136].mxu1 %vm1410_vm1, %v16753_v50  ;;  %v16764_v50 = vld [vmem:[#allocation82_spill] sm:$0xff] }
 0x575   : > { %8435 = vmatpush3.bf16.xpose.msra.mxu1 %v4882_v16  ;;  %1746 = vmax.xlane.f32.xlu0 %v1745_v30  ;;  %v4888_v59 = vsel %vm1410_vm1, %v16764_v50, 0 }
 0x576   : > { %8292 = vmatprep.mubr.msk.bf16.mxu1 %vm1410_vm1, %v16756_v2  ;;  %8805 = vmatprep.subr.msk.bf16.mxu1 %vm1410_vm1, %v11866_v23  ;;  %v16758_v23 = vld [vmem:[#allocation81_spill] sm:$0xff] }
 0x577   : > { %v12072_v36 = vpop.f32.mrb[32].mxu1 }
 0x578   : > { %v12074_v45 = vpop.f32.mrb[33].mxu1 }
 0x579   : > { %v12076_v51 = vpop.f32.mrb[34].mxu1  ;;  %v1748_v31 = vmax.f32 %v12072_v36, %v12074_v45 }
 0x57a   : > { %v12080_v19 = vpop.f32.mrb[35].mxu1 }
 0x57b   : > { %1749 = vmax.xlane.f32.xlu1 %v1748_v31  ;;  %v1751_v0 = vmax.f32 %v12076_v51, %v12080_v19 }
 0x57c   : > { %8293 = vmatmul.mubr.msk.bf16.gmra.mrb[140].mxu1 %vm1410_vm1, %v16756_v2 }
 0x57d   : > { %8437 = vmatpush3.bf16.xpose.msra.mxu1 %v4885_v40  ;;  %1752 = vmax.xlane.f32.xlu0 %v1751_v0  ;;  %v4891_v40 = vsel %vm1410_vm1, %v16766_v29, 0  ;;  %v16773_v29 = vld [vmem:[#allocation91_spill] sm:$0xff] }
 0x57e   : > { %8294 = vmatprep.mubr.msk.bf16.mxu1 %vm1410_vm1, %v16758_v23  ;;  %8806 = vmatprep.subr.msk.bf16.mxu1 %vm1410_vm1, %v16759_v1 }
 0x57f   : > { %v12092_v57 = vpop.f32.mrb[36].mxu1 }
 0x580   : > { %16760 = vst [vmem:[#allocation66_spill] sm:$0xff] %v12092_v57  ;;  %v12094_v34 = vpop.f32.mrb[37].mxu1 }
 0x581   : > { %16761 = vst [vmem:[#allocation74_spill] sm:$0xff] %v12094_v34  ;;  %v12096_v41 = vpop.f32.mrb[38].mxu1  ;;  %v1754_v47 = vmax.f32 %v12092_v57, %v12094_v34 }
 0x582   : > { %16762 = vst [vmem:[#allocation60_spill] sm:$0xff] %v12096_v41  ;;  %v12100_v42 = vpop.f32.mrb[39].mxu1 }
 0x583   : > { %16763 = vst [vmem:[#allocation67_spill] sm:$0xff] %v12100_v42  ;;  %1755 = vmax.xlane.f32.xlu1 %v1754_v47  ;;  %v1757_v48 = vmax.f32 %v12096_v41, %v12100_v42 }
 0x584   : > { %8295 = vmatmul.mubr.msk.bf16.gmra.mrb[144].mxu1 %vm1410_vm1, %v16758_v23  ;;  %v12132_v23 = vpop.permute.xlu0 %3622 }
 0x585   : > { %8439 = vmatpush3.bf16.xpose.msra.mxu1 %v4888_v59  ;;  %1758 = vmax.xlane.f32.xlu0 %v1757_v48 }
 0x586   : > { %8296 = vmatprep.mubr.msk.bf16.mxu1 %vm1410_vm1, %v16765_v60  ;;  %8807 = vmatprep.subr.msk.bf16.mxu1 %vm1410_vm1, %v11892_v56  ;;  %v16767_v56 = vld [vmem:[#allocation87_spill] sm:$0xff] }
 0x587   : > { %v12112_v30 = vpop.f32.mrb[40].mxu1 }
 0x588   : > { %v12114_v7 = vpop.f32.mrb[41].mxu1 }
 0x589   : > { %v12116_v16 = vpop.f32.mrb[42].mxu1  ;;  %v1760_v2 = vmax.f32 %v12112_v30, %v12114_v7 }
 0x58a   : > { %v12120_v31 = vpop.f32.mrb[43].mxu1 }
 0x58b   : > { %1761 = vmax.xlane.f32.xlu1 %v1760_v2  ;;  %v1763_v0 = vmax.f32 %v12116_v16, %v12120_v31  ;;  %v16772_v2 = vld [vmem:[#allocation88_spill] sm:$0xff] }
 0x58c   : > { %8297 = vmatmul.mubr.msk.bf16.gmra.mrb[148].mxu1 %vm1410_vm1, %v16765_v60 }
 0x58d   : > { %8441 = vmatpush3.bf16.xpose.msra.mxu1 %v4891_v40  ;;  %1764 = vmax.xlane.f32.xlu0 %v1763_v0  ;;  %v4826_v0 = vpop.permute.xlu0 %4825 }
 0x58e   : > { %8298 = vmatprep.mubr.msk.bf16.mxu1 %vm1410_vm1, %v16767_v56  ;;  %8808 = vmatprep.subr.msk.bf16.mxu1 %vm1410_vm1, %v11755_v5  ;;  %v4894_v5 = vsel %vm1410_vm1, %v16772_v2, 0 }
 0x58f   : > { %v12134_v1 = vpop.f32.mrb[44].mxu1 }
 0x590   : > { %16768 = vst [vmem:[#allocation96_spill] sm:$0xff] %v12134_v1  ;;  %v12136_v47 = vpop.f32.mrb[45].mxu1 }
 0x591   : > { %16769 = vst [vmem:[#allocation79_spill] sm:$0xff] %v12136_v47  ;;  %v12138_v48 = vpop.f32.mrb[46].mxu1  ;;  %v1766_v50 = vmax.f32 %v12134_v1, %v12136_v47 }
 0x592   : > { %16770 = vst [vmem:[#allocation71_spill] sm:$0xff] %v12138_v48  ;;  %v12142_v59 = vpop.f32.mrb[47].mxu1 }
 0x593   : > { %16771 = vst [vmem:[#allocation75_spill] sm:$0xff] %v12142_v59  ;;  %1767 = vmax.xlane.f32.xlu1 %v1766_v50  ;;  %v1769_v60 = vmax.f32 %v12138_v48, %v12142_v59 }
 0x594   : > { %8299 = vmatmul.mubr.msk.bf16.gmra.mrb[152].mxu1 %vm1410_vm1, %v16767_v56 }
 0x595   : > { %8443 = vmatpush3.bf16.xpose.msra.mxu1 %v4894_v5  ;;  %1770 = vmax.xlane.f32.xlu0 %v1769_v60  ;;  %v16774_v60 = vld [vmem:[#allocation92_spill] sm:$0xff] }
 0x596   : > { %8300 = vmatprep.mubr.msk.bf16.mxu1 %vm1410_vm1, %v16773_v29  ;;  %8809 = vmatprep.subr.msk.bf16.mxu1 %vm1410_vm1, %v4826_v0  ;;  %v4897_v5 = vsel %vm1410_vm1, %v16774_v60, 0  ;;  %v16775_v0 = vld [vmem:[#allocation90_spill] sm:$0xff] }
 0x597   : > { %v12153_v40 = vpop.f32.mrb[48].mxu1 }
 0x598   : > { %v12155_v50 = vpop.f32.mrb[49].mxu1 }
 0x599   : > { %v12157_v9 = vpop.f32.mrb[50].mxu1  ;;  %v1772_v2 = vmax.f32 %v12153_v40, %v12155_v50 }
 0x59a   : > { %v12161_v63 = vpop.f32.mrb[51].mxu1 }
 0x59b   : > { %1773 = vmax.xlane.f32.xlu0 %v1772_v2  ;;  %v1775_v56 = vmax.f32 %v12157_v9, %v12161_v63 }
 0x59c   : > { %8301 = vmatmul.mubr.msk.bf16.gmra.mrb[156].mxu1 %vm1410_vm1, %v16773_v29 }
 0x59d   : > { %8445 = vmatpush3.bf16.xpose.msra.mxu1 %v4897_v5  ;;  %1776 = vmax.xlane.f32.xlu1 %v1775_v56 }
 0x59e   : > { %8302 = vmatprep.mubr.msk.bf16.mxu1 %vm1410_vm1, %v16775_v0 }
 0x59f   : > { %v12171_v59 = vpop.f32.mrb[52].mxu1 }
 0x5a0   : > { %16776 = vst [vmem:[#allocation81_spill] sm:$0xff] %v12171_v59  ;;  %v12173_v48 = vpop.f32.mrb[53].mxu1 }
 0x5a1   : > { %16777 = vst [vmem:[#allocation98_spill] sm:$0xff] %v12173_v48  ;;  %v12175_v47 = vpop.f32.mrb[54].mxu1  ;;  %v1778_v2 = vmax.f32 %v12171_v59, %v12173_v48 }
 0x5a2   : > { %16778 = vst [vmem:[#allocation82_spill] sm:$0xff] %v12175_v47  ;;  %v12179_v1 = vpop.f32.mrb[55].mxu1 }
 0x5a3   : > { %16779 = vst [vmem:[#allocation84_spill] sm:$0xff] %v12179_v1  ;;  %1779 = vmax.xlane.f32.xlu1 %v1778_v2  ;;  %v1781_v29 = vmax.f32 %v12175_v47, %v12179_v1 }
 0x5a4   : > { %8303 = vmatmul.mubr.msk.bf16.gmra.mrb[160].mxu1 %vm1410_vm1, %v16775_v0  ;;  %v16784_v0 = vld [vmem:[#allocation95_spill] sm:$0xff] }
 0x5a5   : > { %1782 = vmax.xlane.f32.xlu0 %v1781_v29  ;;  %8304 = vmatprep.mubr.msk.bf16.mxu1 %vm1410_vm1, %v11840_v38 }
 0x5a7   : > { %v12187_v56 = vpop.f32.mrb[56].mxu1 }
 0x5a8   : > { %16780 = vst [vmem:[#allocation85_spill] sm:$0xff] %v12187_v56  ;;  %v12189_v60 = vpop.f32.mrb[57].mxu1 }
 0x5a9   : > { %16781 = vst [vmem:[#allocation87_spill] sm:$0xff] %v12189_v60  ;;  %v12191_v5 = vpop.f32.mrb[58].mxu1  ;;  %v1784_v48 = vmax.f32 %v12187_v56, %v12189_v60 }
 0x5aa   : > { %16782 = vst [vmem:[#allocation88_spill] sm:$0xff] %v12191_v5  ;;  %v12195_v2 = vpop.f32.mrb[59].mxu1 }
 0x5ab   : > { %16783 = vst [vmem:[#allocation91_spill] sm:$0xff] %v12195_v2  ;;  %1785 = vmax.xlane.f32.xlu1 %v1784_v48  ;;  %v1787_v1 = vmax.f32 %v12191_v5, %v12195_v2 }
 0x5ac   : > { %8305 = vmatmul.mubr.msk.bf16.gmra.mrb[164].mxu1 %vm1410_vm1, %v11840_v38 }
 0x5ad   : > { %1788 = vmax.xlane.f32.xlu0 %v1787_v1  ;;  %8306 = vmatprep.mubr.msk.bf16.mxu1 %vm1410_vm1, %v16784_v0 }
 0x5af   : > { %v12203_v29 = vpop.f32.mrb[60].mxu1 }
 0x5b0   : > { %16785 = vst [vmem:[#allocation92_spill] sm:$0xff] %v12203_v29  ;;  %v12205_v47 = vpop.f32.mrb[61].mxu1 }
 0x5b1   : > { %16786 = vst [vmem:[#allocation90_spill] sm:$0xff] %v12205_v47  ;;  %v12207_v59 = vpop.f32.mrb[62].mxu1  ;;  %v1790_v60 = vmax.f32 %v12203_v29, %v12205_v47  ;;  %v12239_v47 = vpop.permute.xlu0 %4781 }
 0x5b2   : > { %16787 = vst [vmem:[#allocation95_spill] sm:$0xff] %v12207_v59  ;;  %v12211_v48 = vpop.f32.mrb[63].mxu1 }
 0x5b3   : > { %16788 = vst [vmem:[#allocation99_spill] sm:$0xff] %v12211_v48  ;;  %1791 = vmax.xlane.f32.xlu1 %v1790_v60  ;;  %v1793_v2 = vmax.f32 %v12207_v59, %v12211_v48 }
 0x5b4   : > { %8307 = vmatmul.mubr.msk.bf16.gmra.mrb[168].mxu1 %vm1410_vm1, %v16784_v0  ;;  %v12235_v0 = vpop.permute.xlu1 %4783 }
 0x5b5   : > { %1794 = vmax.xlane.f32.xlu0 %v1793_v2  ;;  %8308 = vmatprep.mubr.msk.bf16.mxu1 %vm1410_vm1, %v11856_v26  ;;  %v16793_v2 = vld [vmem:[#allocation97_spill] sm:$0xff] }
 0x5b7   : > { %v12219_v38 = vpop.f32.mrb[64].mxu1 }
 0x5b8   : > { %16789 = vst [vmem:[#allocation100_spill] sm:$0xff] %v12219_v38  ;;  %v12221_v1 = vpop.f32.mrb[65].mxu1 }
 0x5b9   : > { %16790 = vst [vmem:[#allocation101_spill] sm:$0xff] %v12221_v1  ;;  %v12223_v5 = vpop.f32.mrb[66].mxu1  ;;  %v2758_v56 = vmax.f32 %v12219_v38, %v12221_v1 }
 0x5ba   : > { %16791 = vst [vmem:[#allocation102_spill] sm:$0xff] %v12223_v5  ;;  %v12227_v60 = vpop.f32.mrb[67].mxu1 }
 0x5bb   : > { %16792 = vst [vmem:[#allocation103_spill] sm:$0xff] %v12227_v60  ;;  %2759 = vmax.xlane.f32.xlu1 %v2758_v56  ;;  %v2761_v48 = vmax.f32 %v12223_v5, %v12227_v60  ;;  %v12257_v5 = vpop.permute.xlu0 %4785 }
 0x5bc   : > { %8309 = vmatmul.mubr.msk.bf16.gmra.mrb[172].mxu1 %vm1410_vm1, %v11856_v26  ;;  %16799 = vst [vmem:[#allocation108_spill] sm:$0xff] %v12257_v5 }
 0x5bd   : > { %2762 = vmax.xlane.f32.xlu0 %v2761_v48  ;;  %8310 = vmatprep.mubr.msk.bf16.mxu1 %vm1410_vm1, %v16793_v2  ;;  %v12251_v48 = vpop.permute.xlu1 %4787 }
 0x5be   : > { %16798 = vst [vmem:[#allocation107_spill] sm:$0xff] %v12251_v48 }
 0x5bf   : > { %v12237_v59 = vpop.f32.mrb[68].mxu1 }
 0x5c0   : > { %16794 = vst [vmem:[#allocation97_spill] sm:$0xff] %v12237_v59  ;;  %v12241_v1 = vpop.f32.mrb[69].mxu1 }
 0x5c1   : > { %16795 = vst [vmem:[#allocation104_spill] sm:$0xff] %v12241_v1  ;;  %v2764_v56 = vmax.f32 %v12237_v59, %v12241_v1  ;;  %v12245_v38 = vpop.f32.mrb[70].mxu1 }
 0x5c2   : > { %16796 = vst [vmem:[#allocation105_spill] sm:$0xff] %v12245_v38  ;;  %v12247_v60 = vpop.f32.mrb[71].mxu1 }
 0x5c3   : > { %16797 = vst [vmem:[#allocation106_spill] sm:$0xff] %v12247_v60  ;;  %v2767_v26 = vmax.f32 %v12245_v38, %v12247_v60  ;;  %2765 = vmax.xlane.f32.xlu1 %v2764_v56 }
 0x5c4   : > { %8311 = vmatmul.mubr.msk.bf16.gmra.mrb[176].mxu1 %vm1410_vm1, %v16793_v2 }
 0x5c5   : > { %2768 = vmax.xlane.f32.xlu0 %v2767_v26  ;;  %8312 = vmatprep.mubr.msk.bf16.mxu1 %vm1410_vm1, %v11883_v44 }
 0x5c7   : > { %v12259_v1 = vpop.f32.mrb[72].mxu1 }
 0x5c8   : > { %16800 = vst [vmem:[#allocation109_spill] sm:$0xff] %v12259_v1  ;;  %v12261_v59 = vpop.f32.mrb[73].mxu1  ;;  %v1702_v29 = vpop.xlane.xlu1 %1701 }
 0x5c9   : > { %16801 = vst [vmem:[#allocation110_spill] sm:$0xff] %v12261_v59  ;;  %v2770_v60 = vmax.f32 %v12259_v1, %v12261_v59  ;;  %v1796_v56 = vsub.f32 %v11936_v25, %v1702_v29  ;;  %v1797_v38 = vsub.f32 %v11938_v10, %v1702_v29  ;;  %v12267_v48 = vpop.f32.mrb[74].mxu1 }
 0x5ca   : > { %16802 = vst [vmem:[#allocation111_spill] sm:$0xff] %v12267_v48  ;;  %v1705_v2 = vpop.xlane.xlu0 %1704  ;;  %v12269_v26 = vpop.f32.mrb[75].mxu1 }
 0x5cb   : > { %16803 = vst [vmem:[#allocation112_spill] sm:$0xff] %v12269_v26  ;;  %v1860_v42 = vmul.f32 1.442695, %v1796_v56  ;;  %v1862_v41 = vmul.f32 1.442695, %v1797_v38  ;;  %v1798_v5 = vsub.f32 %v11940_v4, %v1705_v2  ;;  %2771 = vmax.xlane.f32.xlu1 %v2770_v60  ;;  %v1799_v34 = vsub.f32 %v11944_v32, %v1705_v2 }
 0x5cc   : > { %v2773_v57 = vmax.f32 %v12267_v48, %v12269_v26  ;;  %8313 = vmatmul.mubr.msk.bf16.gmra.mrb[180].mxu1 %vm1410_vm1, %v11883_v44 }
 0x5cd   : > { %9178 = vpow2.f32 %v1860_v42  ;;  %8314 = vmatprep.mubr.msk.bf16.mxu1 %vm1410_vm1, %v11753_v43  ;;  %v1864_v25 = vmul.f32 1.442695, %v1798_v5  ;;  %v1866_v29 = vmul.f32 1.442695, %v1799_v34 }
 0x5ce   : > { %9180 = vpow2.f32 %v1862_v41  ;;  %2774 = vmax.xlane.f32.xlu0 %v2773_v57 }
 0x5cf   : > { %v12279_v10 = vpop.f32.mrb[76].mxu1  ;;  %9182 = vpow2.f32 %v1864_v25 }
 0x5d0   : > { %16804 = vst [vmem:[#allocation113_spill] sm:$0xff] %v12279_v10  ;;  %v12281_v4 = vpop.f32.mrb[77].mxu1  ;;  %v1708_v38 = vpop.xlane.xlu1 %1707  ;;  %9184 = vpow2.f32 %v1866_v29 }
 0x5d1   : > { %16805 = vst [vmem:[#allocation114_spill] sm:$0xff] %v12281_v4  ;;  %v2776_v32 = vmax.f32 %v12279_v10, %v12281_v4  ;;  %v1800_v60 = vsub.f32 %v11951_v3, %v1708_v38  ;;  %v1801_v44 = vsub.f32 %v11953_v53, %v1708_v38  ;;  %v12287_v42 = vpop.f32.mrb[78].mxu1 }
 0x5d2   : > { %16806 = vst [vmem:[#allocation115_spill] sm:$0xff] %v12287_v42  ;;  %v12289_v56 = vpop.f32.mrb[79].mxu1 }
 0x5d3   : > { %16807 = vst [vmem:[#allocation116_spill] sm:$0xff] %v12289_v56  ;;  %v1868_v57 = vmul.f32 1.442695, %v1800_v60  ;;  %v1870_v41 = vmul.f32 1.442695, %v1801_v44  ;;  %v2779_v34 = vmax.f32 %v12287_v42, %v12289_v56  ;;  %2777 = vmax.xlane.f32.xlu1 %v2776_v32 }
 0x5d4   : > { %8315 = vmatmul.mubr.msk.bf16.gmra.mrb[184].mxu1 %vm1410_vm1, %v11753_v43  ;;  %v1711_v5 = vpop.xlane.xlu1 %1710 }
 0x5d5   : > { %9186 = vpow2.f32 %v1868_v57  ;;  %v1802_v3 = vsub.f32 %v11955_v6, %v1711_v5  ;;  %v1803_v53 = vsub.f32 %v11959_v58, %v1711_v5  ;;  %2780 = vmax.xlane.f32.xlu0 %v2779_v34  ;;  %8316 = vmatprep.mubr.msk.bf16.mxu1 %vm1410_vm1, %v12132_v23 }
 0x5d6   : > { %9188 = vpow2.f32 %v1870_v41 }
 0x5d7   : > { %v12299_v2 = vpop.eup %9178  ;;  %v1872_v25 = vmul.f32 1.442695, %v1802_v3  ;;  %v1874_v38 = vmul.f32 1.442695, %v1803_v53  ;;  %v12301_v32 = vpop.f32.mrb[80].mxu1 }
 0x5d8   : > { %16808 = vst [vmem:[#allocation117_spill] sm:$0xff] %v12301_v32  ;;  %v12303_v29 = vpop.eup %9180  ;;  %v1714_v43 = vpop.xlane.xlu0 %1713 }
 0x5d9   : > { %v12305_v60 = vpop.f32.mrb[81].mxu1  ;;  %9190 = vpow2.f32 %v1872_v25  ;;  %v1804_v6 = vsub.f32 %v11966_v35, %v1714_v43  ;;  %v1805_v58 = vsub.f32 %v11968_v62, %v1714_v43  ;;  %v1988_v34 = vadd.f32 %v12303_v29, %v12299_v2  ;;  %v16812_v43 = vld [vmem:[#allocation69_spill] sm:$0xff] }
 0x5da   : > { %16809 = vst [vmem:[#allocation118_spill] sm:$0xff] %v12305_v60  ;;  %v2782_v44 = vmax.f32 %v12301_v32, %v12305_v60  ;;  %v12311_v57 = vpop.f32.mrb[82].mxu1  ;;  %9192 = vpow2.f32 %v1874_v38  ;;  %v1717_v5 = vpop.xlane.xlu1 %1716 }
 0x5db   : > { %16810 = vst [vmem:[#allocation119_spill] sm:$0xff] %v12311_v57  ;;  %v12313_v41 = vpop.f32.mrb[83].mxu1  ;;  %v1876_v3 = vmul.f32 1.442695, %v1804_v6  ;;  %v1878_v53 = vmul.f32 1.442695, %v1805_v58  ;;  %v1806_v35 = vsub.f32 %v11970_v61, %v1717_v5  ;;  %1989 = vadd.xlane.f32.xlu1 %v1988_v34  ;;  %v1807_v62 = vsub.f32 %v11974_v15, %v1717_v5  ;;  %v12323_v38 = vpop.eup %9182 }
 0x5dc   : > { %16811 = vst [vmem:[#allocation120_spill] sm:$0xff] %v12313_v41  ;;  %v2785_v25 = vmax.f32 %v12311_v57, %v12313_v41  ;;  %8317 = vmatmul.mubr.msk.bf16.gmra.mrb[188].mxu1 %vm1410_vm1, %v12132_v23  ;;  %v12327_v6 = vpop.eup %9184 }
 0x5dd   : > { %9194 = vpow2.f32 %v1876_v3  ;;  %8446 = vmatprep.mubr.msk.bf16.mxu1 %vm1410_vm1, %v16812_v43  ;;  %v1880_v41 = vmul.f32 1.442695, %v1806_v35  ;;  %v1882_v15 = vmul.f32 1.442695, %v1807_v62 }
 0x5de   : > { %2786 = vmax.xlane.f32.xlu0 %v2785_v25  ;;  %9196 = vpow2.f32 %v1878_v53 }
 0x5df   : > { %v12329_v58 = vpop.eup %9186  ;;  %v12331_v61 = vpop.f32.mrb[84].mxu1  ;;  %2783 = vmax.xlane.f32.xlu1 %v2782_v44  ;;  %v1991_v44 = vadd.f32 %v12327_v6, %v12323_v38  ;;  %9198 = vpow2.f32 %v1880_v41  ;;  %v16817_v41 = vld [vmem:[#allocation62_spill] sm:$0xff] }
 0x5e0   : > { %16813 = vst [vmem:[#allocation69_spill] sm:$0xff] %v12331_v61  ;;  %v12333_v34 = vpop.eup %9188  ;;  %v12335_v23 = vpop.f32.mrb[85].mxu1  ;;  %9200 = vpow2.f32 %v1882_v15 }
 0x5e1   : > { %16814 = vst [vmem:[#allocation121_spill] sm:$0xff] %v12335_v23  ;;  %v1720_v5 = vpop.xlane.xlu1 %1719  ;;  %v2788_v3 = vmax.f32 %v12331_v61, %v12335_v23  ;;  %v12341_v53 = vpop.f32.mrb[86].mxu1  ;;  %v1994_v35 = vadd.f32 %v12333_v34, %v12329_v58 }
 0x5e2   : > { %v1808_v25 = vsub.f32 %v11981_v46, %v1720_v5  ;;  %v1809_v57 = vsub.f32 %v11983_v49, %v1720_v5  ;;  %16815 = vst [vmem:[#allocation122_spill] sm:$0xff] %v12341_v53  ;;  %v12345_v60 = vpop.f32.mrb[87].mxu1 }
 0x5e3   : > { %16816 = vst [vmem:[#allocation123_spill] sm:$0xff] %v12345_v60  ;;  %v12349_v62 = vpop.eup %9190  ;;  %v2791_v46 = vmax.f32 %v12341_v53, %v12345_v60  ;;  %1995 = vadd.xlane.f32.xlu0 %v1994_v35  ;;  %1992 = vadd.xlane.f32.xlu1 %v1991_v44 }
 0x5e4   : > { %v1884_v32 = vmul.f32 1.442695, %v1808_v25  ;;  %v1886_v56 = vmul.f32 1.442695, %v1809_v57  ;;  %v12353_v49 = vpop.eup %9192  ;;  %8447 = vmatmul.mubr.msk.bf16.vlgmr.msra.gmra.mrb[192].mxu1 %vm1410_vm1, %v16812_v43 }
 0x5e5   : > { %v1723_v5 = vpop.xlane.xlu1 %1722  ;;  %8448 = vmatprep.mubr.msk.bf16.mxu1 %vm1410_vm1, %v16817_v41  ;;  %v1997_v57 = vadd.f32 %v12353_v49, %v12349_v62 }
 0x5e6   : > { %9202 = vpow2.f32 %v1884_v32  ;;  %v1810_v23 = vsub.f32 %v11985_v55, %v1723_v5  ;;  %v1811_v61 = vsub.f32 %v11989_v54, %v1723_v5 }
 0x5e7   : > { %9204 = vpow2.f32 %v1886_v56  ;;  %v12363_v25 = vpop.eup %9194  ;;  %1998 = vadd.xlane.f32.xlu0 %v1997_v57  ;;  %v12365_v44 = vpop.f32.mrb[88].mxu1  ;;  %2789 = vmax.xlane.f32.xlu1 %v2788_v3 }
 0x5e8   : > { %v1888_v15 = vmul.f32 1.442695, %v1810_v23  ;;  %v1890_v35 = vmul.f32 1.442695, %v1811_v61  ;;  %16818 = vst [vmem:[#allocation62_spill] sm:$0xff] %v12365_v44  ;;  %v12367_v43 = vpop.eup %9196  ;;  %v1726_v55 = vpop.xlane.xlu0 %1725 }
 0x5e9   : > { %v12369_v32 = vpop.f32.mrb[89].mxu1  ;;  %v1812_v54 = vsub.f32 %v11996_v37, %v1726_v55  ;;  %v1813_v5 = vsub.f32 %v11998_v18, %v1726_v55  ;;  %v2000_v23 = vadd.f32 %v12367_v43, %v12363_v25  ;;  %v16822_v55 = vld [vmem:[#allocation80_spill] sm:$0xff] }
 0x5ea   : > { %16819 = vst [vmem:[#allocation124_spill] sm:$0xff] %v12369_v32  ;;  %9206 = vpow2.f32 %v1888_v15  ;;  %v2794_v56 = vmax.f32 %v12365_v44, %v12369_v32  ;;  %v12375_v60 = vpop.f32.mrb[90].mxu1  ;;  %v1729_v3 = vpop.xlane.xlu1 %1728 }
 0x5eb   : > { %16820 = vst [vmem:[#allocation125_spill] sm:$0xff] %v12375_v60  ;;  %9208 = vpow2.f32 %v1890_v35  ;;  %v12377_v61 = vpop.f32.mrb[91].mxu1  ;;  %v1892_v57 = vmul.f32 1.442695, %v1812_v54  ;;  %v1894_v53 = vmul.f32 1.442695, %v1813_v5  ;;  %2792 = vmax.xlane.f32.xlu0 %v2791_v46  ;;  %v1814_v37 = vsub.f32 %v12000_v14, %v1729_v3  ;;  %2001 = vadd.xlane.f32.xlu1 %v2000_v23  ;;  %v12387_v35 = vpop.eup %9198 }
 0x5ec   : > { %16821 = vst [vmem:[#allocation126_spill] sm:$0xff] %v12377_v61  ;;  %v2797_v15 = vmax.f32 %v12375_v60, %v12377_v61  ;;  %v1815_v18 = vsub.f32 %v12004_v33, %v1729_v3  ;;  %8449 = vmatmul.mubr.msk.bf16.gmra.mrb[196].mxu1 %vm1410_vm1, %v16817_v41  ;;  %v12391_v54 = vpop.eup %9200 }
 0x5ed   : > { %9210 = vpow2.f32 %v1892_v57  ;;  %8450 = vmatprep.mubr.msk.bf16.mxu1 %vm1410_vm1, %v16822_v55  ;;  %v1896_v5 = vmul.f32 1.442695, %v1814_v37 }
 0x5ee   : > { %9212 = vpow2.f32 %v1894_v53  ;;  %v1898_v33 = vmul.f32 1.442695, %v1815_v18 }
 0x5ef   : > { %2798 = vmax.xlane.f32.xlu0 %v2797_v15  ;;  %v12395_v14 = vpop.f32.mrb[92].mxu1  ;;  %2795 = vmax.xlane.f32.xlu1 %v2794_v56  ;;  %9214 = vpow2.f32 %v1896_v5  ;;  %v2003_v56 = vadd.f32 %v12391_v54, %v12387_v35 }
 0x5f0   : > { %v12393_v32 = vpop.eup %9202  ;;  %16823 = vst [vmem:[#allocation80_spill] sm:$0xff] %v12395_v14  ;;  %v12399_v41 = vpop.f32.mrb[93].mxu1  ;;  %9216 = vpow2.f32 %v1898_v33 }
 0x5f1   : > { %v12397_v46 = vpop.eup %9204  ;;  %16824 = vst [vmem:[#allocation127_spill] sm:$0xff] %v12399_v41  ;;  %v1732_v23 = vpop.xlane.xlu1 %1731  ;;  %v2800_v3 = vmax.f32 %v12395_v14, %v12399_v41 }
 0x5f2   : > { %v1816_v57 = vsub.f32 %v12012_v8, %v1732_v23  ;;  %v1817_v53 = vsub.f32 %v12014_v27, %v1732_v23  ;;  %v12405_v37 = vpop.f32.mrb[94].mxu1  ;;  %v2006_v15 = vadd.f32 %v12397_v46, %v12393_v32  ;;  %v1735_v44 = vpop.xlane.xlu0 %1734 }
 0x5f3   : > { %16825 = vst [vmem:[#allocation128_spill] sm:$0xff] %v12405_v37  ;;  %v12409_v61 = vpop.f32.mrb[95].mxu1  ;;  %v1818_v8 = vsub.f32 %v12016_v13, %v1735_v44  ;;  %v1819_v27 = vsub.f32 %v12020_v17, %v1735_v44  ;;  %2004 = vadd.xlane.f32.xlu1 %v2003_v56 }
 0x5f4   : > { %16826 = vst [vmem:[#allocation129_spill] sm:$0xff] %v12409_v61  ;;  %v12413_v18 = vpop.eup %9206  ;;  %v1900_v60 = vmul.f32 1.442695, %v1816_v57  ;;  %v1902_v41 = vmul.f32 1.442695, %v1817_v53  ;;  %2007 = vadd.xlane.f32.xlu0 %v2006_v15  ;;  %v2803_v5 = vmax.f32 %v12405_v37, %v12409_v61  ;;  %8451 = vmatmul.mubr.msk.bf16.gmra.mrb[200].mxu1 %vm1410_vm1, %v16822_v55  ;;  %v16827_v57 = vld [vmem:[#allocation78_spill] sm:$0xff] }
 0x5f5   : > { %v12417_v23 = vpop.eup %9208  ;;  %v1904_v14 = vmul.f32 1.442695, %v1818_v8  ;;  %v1906_v42 = vmul.f32 1.442695, %v1819_v27  ;;  %8452 = vmatprep.mubr.msk.bf16.mxu1 %vm1410_vm1, %v16827_v57  ;;  %v16837_v37 = vld [vmem:[#allocation86_spill] sm:$0xff] }
 0x5f6   : > { %9218 = vpow2.f32 %v1900_v60  ;;  %v2009_v13 = vadd.f32 %v12417_v23, %v12413_v18 }
 0x5f7   : > { %9220 = vpow2.f32 %v1902_v41  ;;  %v12427_v17 = vpop.eup %9210  ;;  %v12429_v44 = vpop.f32.mrb[96].mxu1  ;;  %2801 = vmax.xlane.f32.xlu1 %v2800_v3 }
 0x5f8   : > { %9222 = vpow2.f32 %v1904_v14  ;;  %2010 = vadd.xlane.f32.xlu0 %v2009_v13  ;;  %16828 = vst [vmem:[#allocation78_spill] sm:$0xff] %v12429_v44  ;;  %v12431_v33 = vpop.eup %9212  ;;  %v12433_v60 = vpop.f32.mrb[97].mxu1 }
 0x5f9   : > { %9224 = vpow2.f32 %v1906_v42  ;;  %16829 = vst [vmem:[#allocation130_spill] sm:$0xff] %v12433_v60  ;;  %v1738_v55 = vpop.xlane.xlu1 %1737  ;;  %v2806_v53 = vmax.f32 %v12429_v44, %v12433_v60  ;;  %v12439_v56 = vpop.f32.mrb[98].mxu1  ;;  %v2012_v14 = vadd.f32 %v12431_v33, %v12427_v17  ;;  %v16832_v44 = vld [vmem:[#allocation83_spill] sm:$0xff] }
 0x5fa   : > { %v1820_v15 = vsub.f32 %v12032_v39, %v1738_v55  ;;  %v1821_v41 = vsub.f32 %v12034_v11, %v1738_v55  ;;  %16830 = vst [vmem:[#allocation131_spill] sm:$0xff] %v12439_v56  ;;  %v1741_v8 = vpop.xlane.xlu0 %1740  ;;  %v12443_v27 = vpop.f32.mrb[99].mxu1 }
 0x5fb   : > { %16831 = vst [vmem:[#allocation132_spill] sm:$0xff] %v12443_v27  ;;  %v1822_v13 = vsub.f32 %v12036_v22, %v1741_v8  ;;  %v1823_v61 = vsub.f32 %v12040_v52, %v1741_v8  ;;  %v12447_v60 = vpop.eup %9214  ;;  %v2809_v39 = vmax.f32 %v12439_v56, %v12443_v27  ;;  %2013 = vadd.xlane.f32.xlu1 %v2012_v14 }
 0x5fc   : > { %v1908_v42 = vmul.f32 1.442695, %v1820_v15  ;;  %v1910_v3 = vmul.f32 1.442695, %v1821_v41  ;;  %2804 = vmax.xlane.f32.xlu0 %v2803_v5  ;;  %8453 = vmatmul.mubr.msk.bf16.gmra.mrb[204].mxu1 %vm1410_vm1, %v16827_v57  ;;  %v12455_v15 = vpop.eup %9216 }
 0x5fd   : > { %v1912_v11 = vmul.f32 1.442695, %v1822_v13  ;;  %v1914_v55 = vmul.f32 1.442695, %v1823_v61  ;;  %8454 = vmatprep.mubr.msk.bf16.mxu1 %vm1410_vm1, %v16832_v44 }
 0x5fe   : > { %9226 = vpow2.f32 %v1908_v42 }
 0x5ff   : > { %9228 = vpow2.f32 %v1910_v3  ;;  %v12459_v52 = vpop.f32.mrb[100].mxu1  ;;  %2807 = vmax.xlane.f32.xlu1 %v2806_v53 }
 0x600   : > { %v12457_v22 = vpop.eup %9218  ;;  %9230 = vpow2.f32 %v1912_v11  ;;  %2810 = vmax.xlane.f32.xlu0 %v2809_v39  ;;  %16833 = vst [vmem:[#allocation83_spill] sm:$0xff] %v12459_v52  ;;  %v12463_v57 = vpop.f32.mrb[101].mxu1 }
 0x601   : > { %v12461_v5 = vpop.eup %9220  ;;  %9232 = vpow2.f32 %v1914_v55  ;;  %16834 = vst [vmem:[#allocation133_spill] sm:$0xff] %v12463_v57  ;;  %v1744_v41 = vpop.xlane.xlu1 %1743  ;;  %v2812_v14 = vmax.f32 %v12459_v52, %v12463_v57  ;;  %v2015_v55 = vadd.f32 %v12455_v15, %v12447_v60 }
 0x602   : > { %v12465_v61 = vpop.eup %9222  ;;  %v1824_v8 = vsub.f32 %v12052_v12, %v1744_v41  ;;  %v1825_v42 = vsub.f32 %v12054_v20, %v1744_v41  ;;  %v12471_v3 = vpop.f32.mrb[102].mxu1  ;;  %v2018_v13 = vadd.f32 %v12461_v5, %v12457_v22 }
 0x603   : > { %16835 = vst [vmem:[#allocation134_spill] sm:$0xff] %v12471_v3  ;;  %v12475_v39 = vpop.eup %9224  ;;  %v1747_v53 = vpop.xlane.xlu0 %1746  ;;  %2016 = vadd.xlane.f32.xlu1 %v2015_v55 }
 0x604   : > { %v12477_v11 = vpop.f32.mrb[103].mxu1  ;;  %v1916_v27 = vmul.f32 1.442695, %v1824_v8  ;;  %v1918_v56 = vmul.f32 1.442695, %v1825_v42  ;;  %v1826_v57 = vsub.f32 %v12056_v28, %v1747_v53  ;;  %v1827_v12 = vsub.f32 %v12060_v21, %v1747_v53  ;;  %2019 = vadd.xlane.f32.xlu0 %v2018_v13  ;;  %8455 = vmatmul.mubr.msk.bf16.gmra.mrb[208].mxu1 %vm1410_vm1, %v16832_v44 }
 0x605   : > { %16836 = vst [vmem:[#allocation135_spill] sm:$0xff] %v12477_v11  ;;  %v2815_v20 = vmax.f32 %v12471_v3, %v12477_v11  ;;  %8456 = vmatprep.mubr.msk.bf16.mxu1 %vm1410_vm1, %v16837_v37  ;;  %v2021_v8 = vadd.f32 %v12475_v39, %v12465_v61 }
 0x606   : > { %9234 = vpow2.f32 %v1916_v27  ;;  %v1920_v41 = vmul.f32 1.442695, %v1826_v57  ;;  %v1922_v52 = vmul.f32 1.442695, %v1827_v12 }
 0x607   : > { %9236 = vpow2.f32 %v1918_v56  ;;  %v12493_v21 = vpop.f32.mrb[104].mxu1  ;;  %2813 = vmax.xlane.f32.xlu1 %v2812_v14 }
 0x608   : > { %v12491_v28 = vpop.eup %9226  ;;  %9238 = vpow2.f32 %v1920_v41  ;;  %2022 = vadd.xlane.f32.xlu0 %v2021_v8  ;;  %16839 = vst [vmem:[#allocation136_spill] sm:$0xff] %v12493_v21  ;;  %v12497_v44 = vpop.f32.mrb[105].mxu1 }
 0x609   : > { %16838 = vst [vmem:[#allocation86_spill] sm:$0xff] %v12491_v28  ;;  %v12495_v42 = vpop.eup %9228  ;;  %9240 = vpow2.f32 %v1922_v52  ;;  %16840 = vst [vmem:[#allocation137_spill] sm:$0xff] %v12497_v44  ;;  %v1750_v27 = vpop.xlane.xlu1 %1749  ;;  %v2818_v13 = vmax.f32 %v12493_v21, %v12497_v44  ;;  %v16843_v21 = vld [vmem:[#allocation89_spill] sm:$0xff] }
 0x60a   : > { %v12499_v57 = vpop.eup %9230  ;;  %v1828_v56 = vsub.f32 %v12072_v36, %v1750_v27  ;;  %v1829_v53 = vsub.f32 %v12074_v45, %v1750_v27  ;;  %v12505_v55 = vpop.f32.mrb[106].mxu1  ;;  %v2024_v12 = vadd.f32 %v12495_v42, %v12491_v28 }
 0x60b   : > { %16841 = vst [vmem:[#allocation138_spill] sm:$0xff] %v12505_v55  ;;  %v12509_v41 = vpop.eup %9232  ;;  %v1753_v52 = vpop.xlane.xlu0 %1752 }
 0x60c   : > { %v12511_v14 = vpop.f32.mrb[107].mxu1  ;;  %v1924_v8 = vmul.f32 1.442695, %v1828_v56  ;;  %v1926_v11 = vmul.f32 1.442695, %v1829_v53  ;;  %v1830_v3 = vsub.f32 %v12076_v51, %v1753_v52  ;;  %v1831_v44 = vsub.f32 %v12080_v19, %v1753_v52  ;;  %2816 = vmax.xlane.f32.xlu0 %v2815_v20  ;;  %2025 = vadd.xlane.f32.xlu1 %v2024_v12 }
 0x60d   : > { %16842 = vst [vmem:[#allocation139_spill] sm:$0xff] %v12511_v14  ;;  %v2821_v36 = vmax.f32 %v12505_v55, %v12511_v14  ;;  %8457 = vmatmul.mubr.msk.bf16.gmra.mrb[212].mxu1 %vm1410_vm1, %v16837_v37  ;;  %v2027_v51 = vadd.f32 %v12509_v41, %v12499_v57 }
 0x60e   : > { %9242 = vpow2.f32 %v1924_v8  ;;  %v1928_v45 = vmul.f32 1.442695, %v1830_v3  ;;  %v1930_v27 = vmul.f32 1.442695, %v1831_v44  ;;  %8458 = vmatprep.mubr.msk.bf16.mxu1 %vm1410_vm1, %v16843_v21 }
 0x60f   : > { %9244 = vpow2.f32 %v1926_v11  ;;  %v12525_v19 = vpop.f32.mrb[108].mxu1 }
 0x610   : > { %v12523_v56 = vpop.eup %9234  ;;  %9246 = vpow2.f32 %v1928_v45  ;;  %2822 = vmax.xlane.f32.xlu0 %v2821_v36  ;;  %16845 = vst [vmem:[#allocation140_spill] sm:$0xff] %v12525_v19  ;;  %2028 = vadd.xlane.f32.xlu1 %v2027_v51  ;;  %v12529_v37 = vpop.f32.mrb[109].mxu1  ;;  %v16850_v45 = vld [vmem:[#allocation94_spill] sm:$0xff] }
 0x611   : > { %16844 = vst [vmem:[#allocation89_spill] sm:$0xff] %v12523_v56  ;;  %v12527_v20 = vpop.eup %9236  ;;  %9248 = vpow2.f32 %v1930_v27  ;;  %16846 = vst [vmem:[#allocation141_spill] sm:$0xff] %v12529_v37  ;;  %v12535_v44 = vpop.f32.mrb[110].mxu1 }
 0x612   : > { %v12531_v3 = vpop.eup %9238  ;;  %16848 = vst [vmem:[#allocation143_spill] sm:$0xff] %v12535_v44  ;;  %v2030_v53 = vadd.f32 %v12527_v20, %v12523_v56  ;;  %v12541_v52 = vpop.f32.mrb[111].mxu1 }
 0x613   : > { %16847 = vst [vmem:[#allocation142_spill] sm:$0xff] %v12531_v3  ;;  %v12539_v12 = vpop.eup %9240  ;;  %16849 = vst [vmem:[#allocation144_spill] sm:$0xff] %v12541_v52  ;;  %v12543_v8 = vpop.xlane.xlu1 %1755 }
 0x614   : > { %2031 = vadd.xlane.f32.xlu0 %v2030_v53  ;;  %2819 = vmax.xlane.f32.xlu1 %v2818_v13  ;;  %v2033_v27 = vadd.f32 %v12539_v12, %v12531_v3  ;;  %v12553_v51 = vpop.xlane.xlu0 %1758 }
 0x615   : > { %8459 = vmatmul.mubr.msk.bf16.gmra.mrb[216].mxu1 %vm1410_vm1, %v16843_v21 }
 0x616   : > { %8460 = vmatprep.mubr.msk.bf16.mxu1 %vm1410_vm1, %v16850_v45 }
 0x617   : > { %v12557_v53 = vpop.f32.mrb[112].mxu1 }
 0x618   : > { %v12555_v11 = vpop.eup %9242  ;;  %2034 = vadd.xlane.f32.xlu0 %v2033_v27  ;;  %16852 = vst [vmem:[#allocation145_spill] sm:$0xff] %v12557_v53  ;;  %v12561_v36 = vpop.f32.mrb[113].mxu1 }
 0x619   : > { %16851 = vst [vmem:[#allocation94_spill] sm:$0xff] %v12555_v11  ;;  %v12559_v14 = vpop.eup %9244  ;;  %16853 = vst [vmem:[#allocation146_spill] sm:$0xff] %v12561_v36  ;;  %v1762_v13 = vpop.xlane.xlu1 %1761 }
 0x61a   : > { %v12563_v55 = vpop.eup %9246  ;;  %v1836_v4 = vsub.f32 %v12112_v30, %v1762_v13  ;;  %v1837_v10 = vsub.f32 %v12114_v7, %v1762_v13  ;;  %v12569_v26 = vpop.f32.mrb[114].mxu1  ;;  %v2036_v27 = vadd.f32 %v12559_v14, %v12555_v11  ;;  %v16855_v11 = vld [vmem:[#allocation93_spill] sm:$0xff] }
 0x61b   : > { %16854 = vst [vmem:[#allocation147_spill] sm:$0xff] %v12563_v55  ;;  %v12573_v48 = vpop.eup %9248  ;;  %v1765_v59 = vpop.xlane.xlu0 %1764 }
 0x61c   : > { %v12575_v1 = vpop.f32.mrb[115].mxu1  ;;  %v1940_v56 = vmul.f32 1.442695, %v1836_v4  ;;  %v1942_v3 = vmul.f32 1.442695, %v1837_v10  ;;  %v1838_v28 = vsub.f32 %v12116_v16, %v1765_v59  ;;  %v1839_v21 = vsub.f32 %v12120_v31, %v1765_v59  ;;  %2037 = vadd.xlane.f32.xlu1 %v2036_v27 }
 0x61d   : > { %8461 = vmatmul.mubr.msk.bf16.gmra.mrb[220].mxu1 %vm1410_vm1, %v16850_v45  ;;  %v2039_v10 = vadd.f32 %v12573_v48, %v12563_v55 }
 0x61e   : > { %9250 = vpow2.f32 %v1940_v56  ;;  %v1944_v7 = vmul.f32 1.442695, %v1838_v28  ;;  %v1946_v13 = vmul.f32 1.442695, %v1839_v21  ;;  %8462 = vmatprep.mubr.msk.bf16.mxu1 %vm1410_vm1, %v16855_v11 }
 0x61f   : > { %9252 = vpow2.f32 %v1942_v3  ;;  %v12587_v16 = vpop.f32.mrb[116].mxu1 }
 0x620   : > { %9254 = vpow2.f32 %v1944_v7  ;;  %2040 = vadd.xlane.f32.xlu1 %v2039_v10  ;;  %16856 = vst [vmem:[#allocation93_spill] sm:$0xff] %v12587_v16  ;;  %v12589_v31 = vpop.f32.mrb[117].mxu1  ;;  %v12605_v3 = vpop.xlane.xlu1 %1767 }
 0x621   : > { %9256 = vpow2.f32 %v1946_v13  ;;  %16857 = vst [vmem:[#allocation148_spill] sm:$0xff] %v12589_v31  ;;  %v12593_v4 = vpop.f32.mrb[118].mxu1 }
 0x622   : > { %16858 = vst [vmem:[#allocation149_spill] sm:$0xff] %v12593_v4  ;;  %v12595_v28 = vpop.f32.mrb[119].mxu1  ;;  %v12597_v56 = vpop.xlane.xlu0 %1770 }
 0x623   : > { %16859 = vst [vmem:[#allocation150_spill] sm:$0xff] %v12595_v28 }
 0x625   : > { %8463 = vmatmul.mubr.msk.bf16.gmra.mrb[224].mxu1 %vm1410_vm1, %v16855_v11 }
 0x626   : > { %8464 = vmatprep.mubr.msk.bf16.mxu1 %vm1410_vm1, %v12239_v47 }
 0x627   : > { %v12609_v27 = vpop.f32.mrb[120].mxu1 }
 0x628   : > { %v12607_v21 = vpop.eup %9250  ;;  %16861 = vst [vmem:[#allocation152_spill] sm:$0xff] %v12609_v27  ;;  %v1774_v13 = vpop.xlane.xlu0 %1773 }
 0x629   : > { %16860 = vst [vmem:[#allocation151_spill] sm:$0xff] %v12607_v21  ;;  %v12611_v7 = vpop.eup %9252  ;;  %v12613_v10 = vpop.f32.mrb[121].mxu1  ;;  %v1844_v45 = vsub.f32 %v12153_v40, %v1774_v13  ;;  %v1845_v11 = vsub.f32 %v12155_v50, %v1774_v13 }
 0x62a   : > { %16862 = vst [vmem:[#allocation153_spill] sm:$0xff] %v12611_v7  ;;  %16863 = vst [vmem:[#allocation154_spill] sm:$0xff] %v12613_v10  ;;  %v12615_v59 = vpop.eup %9254  ;;  %v12621_v28 = vpop.f32.mrb[122].mxu1  ;;  %v2048_v4 = vadd.f32 %v12611_v7, %v12607_v21 }
 0x62b   : > { %16864 = vst [vmem:[#allocation155_spill] sm:$0xff] %v12615_v59  ;;  %16865 = vst [vmem:[#allocation156_spill] sm:$0xff] %v12621_v28  ;;  %v12625_v31 = vpop.eup %9256  ;;  %v12627_v16 = vpop.f32.mrb[123].mxu1  ;;  %v1956_v53 = vmul.f32 1.442695, %v1844_v45 }
 0x62c   : > { %16866 = vst [vmem:[#allocation157_spill] sm:$0xff] %v12627_v16  ;;  %v1777_v36 = vpop.xlane.xlu1 %1776  ;;  %v1958_v55 = vmul.f32 1.442695, %v1845_v11  ;;  %2049 = vadd.xlane.f32.xlu1 %v2048_v4  ;;  %v2051_v45 = vadd.f32 %v12625_v31, %v12615_v59 }
 0x62d   : > { %v1846_v50 = vsub.f32 %v12157_v9, %v1777_v36  ;;  %v1847_v13 = vsub.f32 %v12161_v63, %v1777_v36  ;;  %8465 = vmatmul.mubr.msk.bf16.gmra.mrb[228].mxu1 %vm1410_vm1, %v12239_v47  ;;  %9258 = vpow2.f32 %v1956_v53  ;;  %v16871_v53 = vld [vmem:[#allocation66_spill] sm:$0xff] }
 0x62e   : > { %4789 = vrot.lane.b32.xlu0 %v11522_v24, %s10341_s15  ;;  %8466 = vmatprep.mubr.msk.bf16.mxu1 %vm1410_vm1, %v12235_v0  ;;  %9260 = vpow2.f32 %v1958_v55  ;;  %v1832_v11 = vsub.f32 %v16871_v53, %v12543_v8  ;;  %v16877_v53 = vld [vmem:[#allocation60_spill] sm:$0xff] }
 0x62f   : > { %v1960_v30 = vmul.f32 1.442695, %v1846_v50  ;;  %v1962_v4 = vmul.f32 1.442695, %v1847_v13  ;;  %v12641_v9 = vpop.f32.mrb[124].mxu1  ;;  %v16873_v13 = vld [vmem:[#allocation108_spill] sm:$0xff] }
 0x630   : > { %2052 = vadd.xlane.f32.xlu1 %v2051_v45  ;;  %16867 = vst [vmem:[#allocation158_spill] sm:$0xff] %v12641_v9  ;;  %v12643_v63 = vpop.f32.mrb[125].mxu1  ;;  %v1932_v40 = vmul.f32 1.442695, %v1832_v11 }
 0x631   : > { %9262 = vpow2.f32 %v1960_v30  ;;  %16868 = vst [vmem:[#allocation159_spill] sm:$0xff] %v12643_v63  ;;  %v12647_v36 = vpop.f32.mrb[126].mxu1  ;;  %v16872_v30 = vld [vmem:[#allocation74_spill] sm:$0xff]  ;;  %v1834_v63 = vsub.f32 %v16877_v53, %v12553_v51 }
 0x632   : > { %9264 = vpow2.f32 %v1962_v4  ;;  %16869 = vst [vmem:[#allocation160_spill] sm:$0xff] %v12647_v36  ;;  %v12649_v24 = vpop.f32.mrb[127].mxu1  ;;  %v1833_v50 = vsub.f32 %v16872_v30, %v12543_v8  ;;  %v16880_v8 = vld [vmem:[#allocation67_spill] sm:$0xff] }
 0x633   : > { %16870 = vst [vmem:[#allocation161_spill] sm:$0xff] %v12649_v24  ;;  %v1835_v30 = vsub.f32 %v16880_v8, %v12553_v51  ;;  %9266 = vpow2.f32 %v1932_v40  ;;  %v1936_v53 = vmul.f32 1.442695, %v1834_v63  ;;  %v16885_v36 = vld [vmem:[#allocation79_spill] sm:$0xff] }
 0x635   : > { %8467 = vmatmul.mubr.msk.bf16.gmra.mrb[232].mxu1 %vm1410_vm1, %v12235_v0  ;;  %v1934_v0 = vmul.f32 1.442695, %v1833_v50  ;;  %v16884_v50 = vld [vmem:[#allocation96_spill] sm:$0xff]  ;;  %v1938_v8 = vmul.f32 1.442695, %v1835_v30  ;;  %v1780_v30 = vpop.xlane.xlu1 %1779 }
 0x636   : > { %8468 = vmatprep.mubr.msk.bf16.mxu1 %vm1410_vm1, %v16873_v13  ;;  %v1840_v10 = vsub.f32 %v16884_v50, %v12605_v3  ;;  %v16888_v50 = vld [vmem:[#allocation71_spill] sm:$0xff] }
 0x637   : > { %v12661_v45 = vpop.eup %9258  ;;  %v12663_v4 = vpop.f32.mrb[128].mxu1  ;;  %9268 = vpow2.f32 %v1934_v0  ;;  %v1842_v51 = vsub.f32 %v16888_v50, %v12597_v56 }
 0x638   : > { %16874 = vst [vmem:[#allocation66_spill] sm:$0xff] %v12661_v45  ;;  %16875 = vst [vmem:[#allocation74_spill] sm:$0xff] %v12663_v4  ;;  %v12665_v47 = vpop.eup %9260  ;;  %v12669_v55 = vpop.f32.mrb[129].mxu1  ;;  %v16886_v4 = vld [vmem:[#allocation107_spill] sm:$0xff]  ;;  %9270 = vpow2.f32 %v1936_v53  ;;  %v1948_v63 = vmul.f32 1.442695, %v1840_v10 }
 0x639   : > { %16876 = vst [vmem:[#allocation108_spill] sm:$0xff] %v12665_v47  ;;  %16878 = vst [vmem:[#allocation60_spill] sm:$0xff] %v12669_v55  ;;  %v12677_v9 = vpop.f32.mrb[130].mxu1  ;;  %v2060_v16 = vadd.f32 %v12665_v47, %v12661_v45  ;;  %v1841_v55 = vsub.f32 %v16885_v36, %v12605_v3  ;;  %9272 = vpow2.f32 %v1938_v8  ;;  %v16890_v3 = vld [vmem:[#allocation75_spill] sm:$0xff]  ;;  %v1952_v10 = vmul.f32 1.442695, %v1842_v51  ;;  %v1783_v50 = vpop.xlane.xlu0 %1782 }
 0x63a   : > { %16881 = vst [vmem:[#allocation67_spill] sm:$0xff] %v12677_v9  ;;  %v12683_v28 = vpop.f32.mrb[131].mxu1  ;;  %v1843_v36 = vsub.f32 %v16890_v3, %v12597_v56  ;;  %9274 = vpow2.f32 %v1948_v63  ;;  %v16893_v53 = vld [vmem:[#allocation81_spill] sm:$0xff] }
 0x63b   : > { %v12671_v24 = vpop.eup %9262  ;;  %16883 = vst [vmem:[#allocation164_spill] sm:$0xff] %v12683_v28  ;;  %2061 = vadd.xlane.f32.xlu1 %v2060_v16  ;;  %v1950_v0 = vmul.f32 1.442695, %v1841_v55  ;;  %v1848_v27 = vsub.f32 %v16893_v53, %v1780_v30  ;;  %v16894_v55 = vld [vmem:[#allocation98_spill] sm:$0xff]  ;;  %v12717_v28 = vpop.xlane.xlu1 %1785 }
 0x63c   : > { %16879 = vst [vmem:[#allocation162_spill] sm:$0xff] %v12671_v24  ;;  %v12681_v11 = vpop.eup %9264  ;;  %v1954_v56 = vmul.f32 1.442695, %v1843_v36  ;;  %v1849_v3 = vsub.f32 %v16894_v55, %v1780_v30  ;;  %v16896_v53 = vld [vmem:[#allocation82_spill] sm:$0xff] }
 0x63d   : > { %16882 = vst [vmem:[#allocation163_spill] sm:$0xff] %v12681_v11  ;;  %8469 = vmatmul.mubr.msk.bf16.gmra.mrb[236].mxu1 %vm1410_vm1, %v16873_v13  ;;  %v2063_v16 = vadd.f32 %v12681_v11, %v12671_v24  ;;  %9276 = vpow2.f32 %v1950_v0  ;;  %v1964_v63 = vmul.f32 1.442695, %v1848_v27  ;;  %v1850_v45 = vsub.f32 %v16896_v53, %v1783_v50  ;;  %v12726_v8 = vpop.xlane.xlu0 %1788  ;;  %v16898_v0 = vld [vmem:[#allocation84_spill] sm:$0xff]  ;;  %v16903_v55 = vld [vmem:[#allocation90_spill] sm:$0xff] }
 0x63e   : > { %8470 = vmatprep.mubr.msk.bf16.mxu1 %vm1410_vm1, %v16886_v4  ;;  %9278 = vpow2.f32 %v1952_v10  ;;  %v1851_v36 = vsub.f32 %v16898_v0, %v1783_v50 }
 0x63f   : > { %2064 = vadd.xlane.f32.xlu1 %v2063_v16  ;;  %v12697_v40 = vpop.f32.mrb[132].mxu1  ;;  %9280 = vpow2.f32 %v1954_v56  ;;  %v1968_v56 = vmul.f32 1.442695, %v1850_v45 }
 0x640   : > { %16887 = vst [vmem:[#allocation96_spill] sm:$0xff] %v12697_v40  ;;  %v12701_v13 = vpop.f32.mrb[133].mxu1  ;;  %v1792_v30 = vpop.xlane.xlu1 %1791  ;;  %9282 = vpow2.f32 %v1964_v63  ;;  %v1970_v0 = vmul.f32 1.442695, %v1851_v36 }
 0x641   : > { %16889 = vst [vmem:[#allocation79_spill] sm:$0xff] %v12701_v13  ;;  %v12707_v9 = vpop.f32.mrb[134].mxu1  ;;  %v12719_v13 = vpop.eup %9266 }
 0x642   : > { %16891 = vst [vmem:[#allocation107_spill] sm:$0xff] %v12707_v9  ;;  %v12709_v16 = vpop.f32.mrb[135].mxu1  ;;  %v12721_v40 = vpop.eup %9268 }
 0x643   : > { %16892 = vst [vmem:[#allocation71_spill] sm:$0xff] %v12709_v16  ;;  %v12735_v24 = vpop.eup %9270  ;;  %v2042_v27 = vadd.f32 %v12721_v40, %v12719_v13 }
 0x644   : > { %16900 = vst [vmem:[#allocation82_spill] sm:$0xff] %v12735_v24  ;;  %v12741_v53 = vpop.eup %9272 }
 0x645   : > { %8471 = vmatmul.mubr.msk.bf16.gmra.mrb[240].mxu1 %vm1410_vm1, %v16886_v4  ;;  %v1966_v4 = vmul.f32 1.442695, %v1849_v3  ;;  %v16902_v3 = vld [vmem:[#allocation92_spill] sm:$0xff]  ;;  %v12747_v11 = vpop.eup %9274  ;;  %v2045_v21 = vadd.f32 %v12741_v53, %v12735_v24 }
 0x646   : > { %v1856_v47 = vsub.f32 %v16902_v3, %v1792_v30  ;;  %16904 = vst [vmem:[#allocation92_spill] sm:$0xff] %v12747_v11  ;;  %v16907_v3 = vld [vmem:[#allocation95_spill] sm:$0xff] }
 0x647   : > { %v12723_v51 = vpop.f32.mrb[136].mxu1  ;;  %9284 = vpow2.f32 %v1966_v4  ;;  %v12751_v59 = vpop.eup %9276  ;;  %v16908_v4 = vld [vmem:[#allocation61_spill] sm:$0xff] }
 0x648   : > { %16895 = vst [vmem:[#allocation75_spill] sm:$0xff] %v12723_v51  ;;  %v12728_v16 = vpop.f32.mrb[137].mxu1  ;;  %v1795_v51 = vpop.xlane.xlu0 %1794  ;;  %16905 = vst [vmem:[#allocation90_spill] sm:$0xff] %v12751_v59  ;;  %9286 = vpow2.f32 %v1968_v56  ;;  %v1980_v45 = vmul.f32 1.442695, %v1856_v47 }
 0x649   : > { %16897 = vst [vmem:[#allocation81_spill] sm:$0xff] %v12728_v16  ;;  %v12733_v9 = vpop.f32.mrb[138].mxu1  ;;  %v1857_v16 = vsub.f32 %v16903_v55, %v1792_v30  ;;  %v1858_v7 = vsub.f32 %v16907_v3, %v1795_v51  ;;  %9288 = vpow2.f32 %v1970_v0  ;;  %v16910_v55 = vld [vmem:[#allocation99_spill] sm:$0xff] }
 0x64a   : > { %16899 = vst [vmem:[#allocation98_spill] sm:$0xff] %v12733_v9  ;;  %v12737_v10 = vpop.f32.mrb[139].mxu1  ;;  %v12765_v9 = vpop.eup %9278  ;;  %9290 = vpow2.f32 %v1980_v45  ;;  %v16924_v45 = vld [vmem:[#allocation87_spill] sm:$0xff] }
 0x64b   : > { %16901 = vst [vmem:[#allocation84_spill] sm:$0xff] %v12737_v10  ;;  %v1982_v30 = vmul.f32 1.442695, %v1857_v16  ;;  %16912 = vst [vmem:[#allocation166_spill] sm:$0xff] %v12765_v9  ;;  %v12771_v56 = vpop.eup %9280  ;;  %v1984_v3 = vmul.f32 1.442695, %v1858_v7  ;;  %v2760_v7 = vpop.xlane.xlu1 %2759 }
 0x64c   : > { %16914 = vst [vmem:[#allocation168_spill] sm:$0xff] %v12771_v56  ;;  %v12775_v0 = vpop.eup %9282 }
 0x64d   : > { %2043 = vadd.xlane.f32.xlu0 %v2042_v27  ;;  %v1859_v27 = vsub.f32 %v16910_v55, %v1795_v51  ;;  %9292 = vpow2.f32 %v1982_v30  ;;  %16915 = vst [vmem:[#allocation169_spill] sm:$0xff] %v12775_v0  ;;  %v2057_v55 = vadd.f32 %v12771_v56, %v12765_v9 }
 0x64e   : > { %9294 = vpow2.f32 %v1984_v3 }
 0x64f   : > { %v12753_v63 = vpop.f32.mrb[140].mxu1  ;;  %v1986_v51 = vmul.f32 1.442695, %v1859_v27 }
 0x650   : > { %16906 = vst [vmem:[#allocation165_spill] sm:$0xff] %v12753_v63  ;;  %3302 = vrot.lane.b32.xlu1 %v16908_v4, %s10337_s13  ;;  %v12758_v36 = vpop.f32.mrb[141].mxu1 }
 0x651   : > { %2046 = vadd.xlane.f32.xlu0 %v2045_v21  ;;  %16909 = vst [vmem:[#allocation95_spill] sm:$0xff] %v12758_v36  ;;  %v12763_v10 = vpop.f32.mrb[142].mxu1  ;;  %v2054_v21 = vadd.f32 %v12751_v59, %v12747_v11  ;;  %v12779_v50 = vpop.eup %9284  ;;  %9296 = vpow2.f32 %v1986_v51 }
 0x652   : > { %16911 = vst [vmem:[#allocation99_spill] sm:$0xff] %v12763_v10  ;;  %v12767_v47 = vpop.f32.mrb[143].mxu1  ;;  %16916 = vst [vmem:[#allocation170_spill] sm:$0xff] %v12779_v50  ;;  %v12789_v27 = vpop.eup %9286  ;;  %v2066_v63 = vadd.f32 %v12779_v50, %v12775_v0 }
 0x653   : > { %16913 = vst [vmem:[#allocation167_spill] sm:$0xff] %v12767_v47  ;;  %16920 = vst [vmem:[#allocation174_spill] sm:$0xff] %v12789_v27  ;;  %v12797_v3 = vpop.eup %9288 }
 0x654   : > { %16922 = vst [vmem:[#allocation176_spill] sm:$0xff] %v12797_v3  ;;  %v12807_v10 = vpop.eup %9290  ;;  %v2069_v0 = vadd.f32 %v12797_v3, %v12789_v27 }
 0x655   : > { %2055 = vadd.xlane.f32.xlu0 %v2054_v21  ;;  %v12791_v21 = vpop.xlane.xlu0 %2762 }
 0x657   : > { %v12781_v4 = vpop.f32.mrb[144].mxu1  ;;  %v12813_v50 = vpop.eup %9292 }
 0x658   : > { %16917 = vst [vmem:[#allocation171_spill] sm:$0xff] %v12781_v4  ;;  %v12783_v36 = vpop.f32.mrb[145].mxu1  ;;  %v12805_v4 = vpop.xlane.xlu1 %2765  ;;  %16926 = vst [vmem:[#allocation87_spill] sm:$0xff] %v12813_v50 }
 0x659   : > { %2058 = vadd.xlane.f32.xlu0 %v2057_v55  ;;  %16918 = vst [vmem:[#allocation172_spill] sm:$0xff] %v12783_v36  ;;  %v12787_v30 = vpop.f32.mrb[146].mxu1  ;;  %v16923_v55 = vld [vmem:[#allocation85_spill] sm:$0xff]  ;;  %v1853_v36 = vsub.f32 %v16924_v45, %v12717_v28  ;;  %v12809_v11 = vpop.xlane.xlu0 %2768  ;;  %v16930_v45 = vld [vmem:[#allocation91_spill] sm:$0xff] }
 0x65a   : > { %16919 = vst [vmem:[#allocation173_spill] sm:$0xff] %v12787_v30  ;;  %v12793_v16 = vpop.f32.mrb[147].mxu1  ;;  %v1852_v47 = vsub.f32 %v16923_v55, %v12717_v28  ;;  %16925 = vst [vmem:[#allocation85_spill] sm:$0xff] %v12807_v10  ;;  %v16928_v55 = vld [vmem:[#allocation88_spill] sm:$0xff]  ;;  %v1855_v30 = vsub.f32 %v16930_v45, %v12726_v8  ;;  %v12829_v56 = vpop.eup %9294 }
 0x65b   : > { %16921 = vst [vmem:[#allocation175_spill] sm:$0xff] %v12793_v16  ;;  %v1974_v28 = vmul.f32 1.442695, %v1853_v36  ;;  %16932 = vst [vmem:[#allocation178_spill] sm:$0xff] %v12829_v56  ;;  %v12837_v36 = vpop.eup %9296 }
 0x65c   : > { %v1972_v51 = vmul.f32 1.442695, %v1852_v47  ;;  %v12823_v59 = vpop.xlane.xlu1 %2771  ;;  %v1978_v45 = vmul.f32 1.442695, %v1855_v30 }
 0x65d   : > { %2067 = vadd.xlane.f32.xlu0 %v2066_v63  ;;  %v1854_v63 = vsub.f32 %v16928_v55, %v12726_v8  ;;  %v12831_v47 = vpop.xlane.xlu0 %2774 }
 0x65e   : > { %16933 = vst [vmem:[#allocation179_spill] sm:$0xff] %v12831_v47  ;;  %9298 = vpow2.f32 %v1972_v51 }
 0x65f   : > { %v12815_v9 = vpop.f32.mrb[148].mxu1  ;;  %v1976_v8 = vmul.f32 1.442695, %v1854_v63  ;;  %9300 = vpow2.f32 %v1974_v28  ;;  %v16940_v63 = vld [vmem:[#allocation101_spill] sm:$0xff] }
 0x660   : > { %16927 = vst [vmem:[#allocation177_spill] sm:$0xff] %v12815_v9  ;;  %v12819_v16 = vpop.f32.mrb[149].mxu1  ;;  %v12841_v27 = vpop.xlane.xlu1 %2777  ;;  %v2081_v9 = vadd.f32 %v12837_v36, %v12829_v56 }
 0x661   : > { %2070 = vadd.xlane.f32.xlu0 %v2069_v0  ;;  %16929 = vst [vmem:[#allocation88_spill] sm:$0xff] %v12819_v16  ;;  %v12827_v3 = vpop.f32.mrb[150].mxu1  ;;  %v2078_v0 = vadd.f32 %v12813_v50, %v12807_v10  ;;  %16935 = vst [vmem:[#allocation181_spill] sm:$0xff] %v12841_v27  ;;  %9302 = vpow2.f32 %v1976_v8  ;;  %v16938_v10 = vld [vmem:[#allocation100_spill] sm:$0xff] }
 0x662   : > { %16931 = vst [vmem:[#allocation91_spill] sm:$0xff] %v12827_v3  ;;  %v12833_v24 = vpop.f32.mrb[151].mxu1  ;;  %v12843_v16 = vpop.xlane.xlu0 %2780  ;;  %v2854_v50 = vsub.f32 %v16938_v10, %v2760_v7  ;;  %9304 = vpow2.f32 %v1978_v45 }
 0x663   : > { %16934 = vst [vmem:[#allocation180_spill] sm:$0xff] %v12833_v24  ;;  %16936 = vst [vmem:[#allocation182_spill] sm:$0xff] %v12843_v16 }
 0x664   : > { %v2918_v10 = vmul.f32 1.442695, %v2854_v50 }
 0x665   : > { %2079 = vadd.xlane.f32.xlu0 %v2078_v0  ;;  %v2855_v0 = vsub.f32 %v16940_v63, %v2760_v7 }
 0x666   : > { %9306 = vpow2.f32 %v2918_v10 }
 0x667   : > { %v12847_v47 = vpop.f32.mrb[152].mxu1  ;;  %v2920_v45 = vmul.f32 1.442695, %v2855_v0 }
 0x668   : > { %16937 = vst [vmem:[#allocation183_spill] sm:$0xff] %v12847_v47  ;;  %v12850_v51 = vpop.f32.mrb[153].mxu1  ;;  %v1990_v28 = vpop.xlane.xlu1 %1989 }
 0x669   : > { %2082 = vadd.xlane.f32.xlu0 %v2081_v9  ;;  %16939 = vst [vmem:[#allocation100_spill] sm:$0xff] %v12850_v51  ;;  %v12855_v55 = vpop.f32.mrb[154].mxu1  ;;  %v16944_v9 = vmax.f32 %v12525_v19, %v12529_v37  ;;  %v12868_v63 = vpop.eup %9298  ;;  %9308 = vpow2.f32 %v2920_v45 }
 0x66a   : > { %16941 = vst [vmem:[#allocation101_spill] sm:$0xff] %v12855_v55  ;;  %v12859_v3 = vpop.f32.mrb[155].mxu1  ;;  %v12870_v30 = vpop.eup %9300  ;;  %9310 = vrcp.f32 %v1990_v28 }
 0x66b   : > { %v12857_v24 = vpop.xlane.xlu0 %2786  ;;  %16943 = vst [vmem:[#allocation185_spill] sm:$0xff] %v12859_v3  ;;  %v12880_v0 = vpop.eup %9302  ;;  %v2072_v55 = vadd.f32 %v12870_v30, %v12868_v63 }
 0x66c   : > { %16942 = vst [vmem:[#allocation184_spill] sm:$0xff] %v12857_v24  ;;  %v12866_v7 = vpop.xlane.xlu1 %2783  ;;  %v12886_v37 = vpop.eup %9304 }
 0x66d   : > { %2825 = vmax.xlane.f32.xlu0 %v16944_v9  ;;  %16945 = vst [vmem:[#allocation186_spill] sm:$0xff] %v12866_v7  ;;  %v2075_v28 = vadd.f32 %v12886_v37, %v12880_v0 }
 0x66f   : > { %v12872_v51 = vpop.f32.mrb[156].mxu1 }
 0x670   : > { %16946 = vst [vmem:[#allocation187_spill] sm:$0xff] %v12872_v51  ;;  %v1996_v47 = vpop.xlane.xlu0 %1995  ;;  %v12874_v24 = vpop.f32.mrb[157].mxu1 }
 0x671   : > { %16947 = vst [vmem:[#allocation188_spill] sm:$0xff] %v12874_v24  ;;  %v1993_v8 = vpop.xlane.xlu1 %1992  ;;  %v12878_v3 = vpop.f32.mrb[158].mxu1  ;;  %9312 = vrcp.f32 %v1996_v47 }
 0x672   : > { %16948 = vst [vmem:[#allocation189_spill] sm:$0xff] %v12878_v3  ;;  %v12882_v9 = vpop.f32.mrb[159].mxu1  ;;  %9314 = vrcp.f32 %v1993_v8 }
 0x673   : > { %16949 = vst [vmem:[#allocation190_spill] sm:$0xff] %v12882_v9 }
 0x674   : > { %v1999_v45 = vpop.xlane.xlu0 %1998  ;;  %2073 = vadd.xlane.f32.xlu1 %v2072_v55  ;;  %v12904_v55 = vpop.eup %9306 }
 0x675   : > { %9316 = vrcp.f32 %v1999_v45  ;;  %v12890_v50 = vpop.xlane.xlu1 %2789  ;;  %16955 = vst [vmem:[#allocation196_spill] sm:$0xff] %v12904_v55  ;;  %v12908_v9 = vpop.eup %9308 }
 0x676   : > { %16950 = vst [vmem:[#allocation191_spill] sm:$0xff] %v12890_v50  ;;  %16957 = vst [vmem:[#allocation198_spill] sm:$0xff] %v12908_v9  ;;  %v9311_v50 = vpop.eup %9310 }
 0x677   : > { %v12894_v24 = vpop.f32.mrb[160].mxu1  ;;  %v2116_v27 = vmul.f32 %v9311_v50, %v12299_v2 }
 0x678   : > { %16951 = vst [vmem:[#allocation192_spill] sm:$0xff] %v12894_v24  ;;  %v12896_v51 = vpop.xlane.xlu0 %2792  ;;  %2076 = vadd.xlane.f32.xlu1 %v2075_v28  ;;  %v12898_v19 = vpop.f32.mrb[161].mxu1  ;;  %v16959_v28 = vmax.f32 %v12535_v44, %v12541_v52  ;;  %v3046_v24 = vadd.f32 %v12908_v9, %v12904_v55 }
 0x679   : > { %16952 = vst [vmem:[#allocation193_spill] sm:$0xff] %v12896_v51  ;;  %16953 = vst [vmem:[#allocation194_spill] sm:$0xff] %v12898_v19  ;;  %v2002_v47 = vpop.xlane.xlu1 %2001  ;;  %v12902_v8 = vpop.f32.mrb[162].mxu1 }
 0x67a   : > { %16954 = vst [vmem:[#allocation195_spill] sm:$0xff] %v12902_v8  ;;  %v12906_v45 = vpop.f32.mrb[163].mxu1  ;;  %9318 = vrcp.f32 %v2002_v47 }
 0x67b   : > { %16956 = vst [vmem:[#allocation197_spill] sm:$0xff] %v12906_v45  ;;  %v9313_v7 = vpop.eup %9312  ;;  %v2117_v45 = vmul.f32 %v9311_v50, %v12303_v29  ;;  %v16963_v29 = vld [vmem:[#allocation55_spill] sm:$0xff]  ;;  %v16966_v50 = vld [vmem:[#allocation102_spill] sm:$0xff] }
 0x67c   : > { %v12912_v51 = vpop.xlane.xlu0 %2798  ;;  %2828 = vmax.xlane.f32.xlu1 %v16959_v28  ;;  %v9315_v19 = vpop.eup %9314  ;;  %v2121_v44 = vmul.f32 %v9313_v7, %v12333_v34 }
 0x67d   : > { %16958 = vst [vmem:[#allocation199_spill] sm:$0xff] %v12912_v51  ;;  %v12917_v10 = vpop.xlane.xlu1 %2795  ;;  %v2118_v56 = vmul.f32 %v9315_v19, %v12323_v38  ;;  %v2119_v8 = vmul.f32 %v9315_v19, %v12327_v6 }
 0x67e   : > { %16960 = vst [vmem:[#allocation200_spill] sm:$0xff] %v12917_v10 }
 0x67f   : > { %v9317_v16 = vpop.eup %9316  ;;  %v12923_v3 = vpop.f32.mrb[164].mxu1  ;;  %v2181_v51 = vpack.c.bf16 %v2119_v8, %v2117_v45  ;;  %v2180_v55 = vpack.c.bf16 %v2118_v56, %v2116_v27 }
 0x680   : > { %3047 = vadd.xlane.f32.xlu1 %v3046_v24  ;;  %v12927_v28 = vpop.f32.mrb[165].mxu1  ;;  %v2123_v10 = vmul.f32 %v9317_v16, %v12353_v49  ;;  %v2122_v56 = vmul.f32 %v9317_v16, %v12349_v62  ;;  %v16969_v62 = vld [vmem:[#allocation103_spill] sm:$0xff] }
 0x681   : > { %v2008_v52 = vpop.xlane.xlu0 %2007  ;;  %16961 = vst [vmem:[#allocation201_spill] sm:$0xff] %v12927_v28  ;;  %v2005_v9 = vpop.xlane.xlu1 %2004  ;;  %2244 = vmatprep.mubr.bf16.mxu0 %v2181_v51  ;;  %v2120_v51 = vmul.f32 %v9313_v7, %v12329_v58  ;;  %v2857_v16 = vsub.f32 %v16969_v62, %v12791_v21 }
 0x682   : > { %v12933_v38 = vpop.f32.mrb[166].mxu1  ;;  %v2183_v19 = vpack.c.bf16 %v2123_v10, %v2121_v44  ;;  %2245 = vmatmul.mubr.bf16.vlgmr.msra.gmra.mrb[64].mxu0 %v2180_v55  ;;  %9320 = vrcp.f32 %v2008_v52  ;;  %v2856_v44 = vsub.f32 %v16966_v50, %v12791_v21 }
 0x683   : > { %16962 = vst [vmem:[#allocation202_spill] sm:$0xff] %v12933_v38  ;;  %3286 = vrot.lane.b32.xlu0 %v16963_v29, %s10337_s13  ;;  %v12937_v6 = vpop.f32.mrb[167].mxu1  ;;  %9322 = vrcp.f32 %v2005_v9  ;;  %v2182_v9 = vpack.c.bf16 %v2122_v56, %v2120_v51  ;;  %v2924_v2 = vmul.f32 1.442695, %v2857_v16 }
 0x684   : > { %16964 = vst [vmem:[#allocation203_spill] sm:$0xff] %v12937_v6  ;;  %2252 = vmatprep.mubr.bf16.mxu0 %v2183_v19  ;;  %v9319_v7 = vpop.eup %9318 }
 0x685   : > { %v2011_v49 = vpop.xlane.xlu0 %2010  ;;  %v12941_v24 = vpop.xlane.xlu1 %2801  ;;  %v2125_v56 = vmul.f32 %v9319_v7, %v12367_v43  ;;  %v2124_v16 = vmul.f32 %v9319_v7, %v12363_v25 }
 0x686   : > { %9324 = vrcp.f32 %v2011_v49  ;;  %v2922_v49 = vmul.f32 1.442695, %v2856_v44 }
 0x687   : > { %v12944_v27 = vpop.f32.mrb[168].mxu1 }
 0x688   : > { %16965 = vst [vmem:[#allocation204_spill] sm:$0xff] %v12944_v27  ;;  %v12951_v47 = vpop.f32.mrb[169].mxu1  ;;  %9326 = vpow2.f32 %v2922_v49 }
 0x689   : > { %v12948_v10 = vpop.xlane.xlu0 %2804  ;;  %16967 = vst [vmem:[#allocation102_spill] sm:$0xff] %v12951_v47  ;;  %v2014_v8 = vpop.xlane.xlu1 %2013  ;;  %9328 = vpow2.f32 %v2924_v2 }
 0x68a   : > { %v12955_v55 = vpop.f32.mrb[170].mxu1  ;;  %2253 = vmatmul.mubr.bf16.gmra.mrb[68].mxu0 %v2182_v9  ;;  %9330 = vrcp.f32 %v2014_v8  ;;  %v16979_v8 = vld [vmem:[#allocation72_spill] sm:$0xff] }
 0x68b   : > { %16968 = vst [vmem:[#allocation205_spill] sm:$0xff] %v12955_v55  ;;  %v12959_v45 = vpop.f32.mrb[171].mxu1 }
 0x68c   : > { %16970 = vst [vmem:[#allocation103_spill] sm:$0xff] %v12959_v45  ;;  %v9321_v52 = vpop.eup %9320  ;;  %v16973_v45 = vld [vmem:[#allocation63_spill] sm:$0xff] }
 0x68d   : > { %v12963_v58 = vpop.xlane.xlu0 %2810  ;;  %v12965_v50 = vpop.xlane.xlu1 %2807  ;;  %v2129_v47 = vmul.f32 %v9321_v52, %v12397_v46 }
 0x68e   : > { %v9323_v29 = vpop.eup %9322 }
 0x68f   : > { %v12967_v34 = vpop.f32.mrb[172].mxu1  ;;  %v2127_v44 = vmul.f32 %v9323_v29, %v12391_v54  ;;  %v2126_v55 = vmul.f32 %v9323_v29, %v12387_v35  ;;  %v16976_v35 = vld [vmem:[#allocation52_spill] sm:$0xff] }
 0x690   : > { %16971 = vst [vmem:[#allocation206_spill] sm:$0xff] %v12967_v34  ;;  %v12970_v51 = vpop.f32.mrb[173].mxu1  ;;  %v9325_v62 = vpop.eup %9324 }
 0x691   : > { %v2020_v21 = vpop.xlane.xlu0 %2019  ;;  %16972 = vst [vmem:[#allocation207_spill] sm:$0xff] %v12970_v51  ;;  %v2017_v9 = vpop.xlane.xlu1 %2016  ;;  %3304 = vrot.lane.b32.xlu1 %v16973_v45, %s10337_s13  ;;  %v2131_v54 = vmul.f32 %v9325_v62, %v12417_v23  ;;  %v2185_v27 = vpack.c.bf16 %v2127_v44, %v2125_v56  ;;  %v2184_v28 = vpack.c.bf16 %v2126_v55, %v2124_v16 }
 0x692   : > { %v12979_v49 = vpop.f32.mrb[174].mxu1  ;;  %9332 = vrcp.f32 %v2020_v21  ;;  %v2130_v29 = vmul.f32 %v9325_v62, %v12413_v18 }
 0x693   : > { %16974 = vst [vmem:[#allocation208_spill] sm:$0xff] %v12979_v49  ;;  %v12981_v43 = vpop.f32.mrb[175].mxu1  ;;  %v2187_v51 = vpack.c.bf16 %v2131_v54, %v2129_v47  ;;  %2260 = vmatprep.mubr.bf16.mxu0 %v2185_v27  ;;  %9334 = vrcp.f32 %v2017_v9  ;;  %v16982_v9 = vld [vmem:[#allocation64_spill] sm:$0xff]  ;;  %v17133_v49 = vld [vmem:[#allocation159_spill] sm:$0xff] }
 0x694   : > { %16975 = vst [vmem:[#allocation209_spill] sm:$0xff] %v12981_v43  ;;  %2261 = vmatmul.mubr.bf16.gmra.mrb[72].mxu0 %v2184_v28  ;;  %v13004_v28 = vpop.eup %9326  ;;  %v17123_v43 = vld [vmem:[#allocation59_spill] sm:$0xff] }
 0x695   : > { %v2023_v45 = vpop.xlane.xlu0 %2022  ;;  %v12987_v25 = vpop.xlane.xlu1 %2813  ;;  %3288 = vrot.lane.b32.xlu1 %v16976_v35, %s10337_s13  ;;  %2268 = vmatprep.mubr.bf16.mxu0 %v2187_v51 }
 0x696   : > { %9336 = vrcp.f32 %v2023_v45  ;;  %v2128_v45 = vmul.f32 %v9321_v52, %v12393_v32  ;;  %v13011_v56 = vpop.eup %9328 }
 0x697   : > { %v12991_v46 = vpop.f32.mrb[176].mxu1  ;;  %v9331_v62 = vpop.eup %9330  ;;  %v3049_v52 = vadd.f32 %v13011_v56, %v13004_v28 }
 0x698   : > { %16977 = vst [vmem:[#allocation210_spill] sm:$0xff] %v12991_v46  ;;  %v12995_v2 = vpop.f32.mrb[177].mxu1  ;;  %v2186_v18 = vpack.c.bf16 %v2130_v29, %v2128_v45  ;;  %v2133_v29 = vmul.f32 %v9331_v62, %v12431_v33 }
 0x699   : > { %v12993_v23 = vpop.xlane.xlu0 %2816  ;;  %16978 = vst [vmem:[#allocation211_spill] sm:$0xff] %v12995_v2  ;;  %v2026_v47 = vpop.xlane.xlu1 %2025  ;;  %4791 = vrot.lane.b32.xlu1 %v16979_v8, %s10341_s15 }
 0x69a   : > { %v13002_v55 = vpop.f32.mrb[178].mxu1  ;;  %9338 = vrcp.f32 %v2026_v47 }
 0x69b   : > { %16980 = vst [vmem:[#allocation72_spill] sm:$0xff] %v13002_v55  ;;  %v13007_v7 = vpop.f32.mrb[179].mxu1 }
 0x69c   : > { %16981 = vst [vmem:[#allocation212_spill] sm:$0xff] %v13007_v7  ;;  %2269 = vmatmul.mubr.bf16.gmra.mrb[76].mxu0 %v2186_v18  ;;  %v9333_v16 = vpop.eup %9332  ;;  %v2132_v18 = vmul.f32 %v9331_v62, %v12427_v17 }
 0x69d   : > { %v13013_v51 = vpop.xlane.xlu0 %2822  ;;  %v2029_v44 = vpop.xlane.xlu1 %2028  ;;  %3306 = vrot.lane.b32.xlu1 %v16982_v9, %s10337_s13  ;;  %v2137_v55 = vmul.f32 %v9333_v16, %v12461_v5 }
 0x69e   : > { %9340 = vrcp.f32 %v2029_v44  ;;  %v9335_v54 = vpop.eup %9334 }
 0x69f   : > { %v13017_v32 = vpop.f32.mrb[180].mxu1  ;;  %v2135_v47 = vmul.f32 %v9335_v54, %v12455_v15  ;;  %v2134_v44 = vmul.f32 %v9335_v54, %v12447_v60  ;;  %v16987_v60 = vmax.f32 %v12569_v26, %v12575_v1  ;;  %v17000_v15 = vld [vmem:[#allocation142_spill] sm:$0xff] }
 0x6a0   : > { %16983 = vst [vmem:[#allocation213_spill] sm:$0xff] %v13017_v32  ;;  %v13022_v45 = vpop.f32.mrb[181].mxu1  ;;  %v9337_v21 = vpop.eup %9336 }
 0x6a1   : > { %v2032_v8 = vpop.xlane.xlu0 %2031  ;;  %16984 = vst [vmem:[#allocation214_spill] sm:$0xff] %v13022_v45  ;;  %v13029_v19 = vpop.f32.mrb[182].mxu1  ;;  %v2139_v33 = vmul.f32 %v9337_v21, %v12475_v39  ;;  %v2189_v2 = vpack.c.bf16 %v2135_v47, %v2133_v29  ;;  %v2188_v46 = vpack.c.bf16 %v2134_v44, %v2132_v18  ;;  %v2138_v29 = vmul.f32 %v9337_v21, %v12465_v61 }
 0x6a2   : > { %3050 = vadd.xlane.f32.xlu0 %v3049_v52  ;;  %16985 = vst [vmem:[#allocation215_spill] sm:$0xff] %v13029_v19  ;;  %v13031_v7 = vpop.f32.mrb[183].mxu1  ;;  %9342 = vrcp.f32 %v2032_v8  ;;  %v13037_v27 = vpop.xlane.xlu1 %2819  ;;  %v17063_v19 = vld [vmem:[#allocation111_spill] sm:$0xff] }
 0x6a3   : > { %16986 = vst [vmem:[#allocation216_spill] sm:$0xff] %v13031_v7  ;;  %v2191_v17 = vpack.c.bf16 %v2139_v33, %v2137_v55  ;;  %2276 = vmatprep.mubr.bf16.mxu0 %v2189_v2  ;;  %v2136_v2 = vmul.f32 %v9333_v16, %v12457_v22  ;;  %v16992_v16 = vld [vmem:[#allocation105_spill] sm:$0xff] }
 0x6a4   : > { %2277 = vmatmul.mubr.bf16.gmra.mrb[80].mxu0 %v2188_v46  ;;  %v9339_v5 = vpop.eup %9338 }
 0x6a5   : > { %v2035_v52 = vpop.xlane.xlu0 %2034  ;;  %2284 = vmatprep.mubr.bf16.mxu0 %v2191_v17  ;;  %v2141_v46 = vmul.f32 %v9339_v5, %v12495_v42  ;;  %v2190_v61 = vpack.c.bf16 %v2138_v29, %v2136_v2  ;;  %v2860_v17 = vsub.f32 %v16992_v16, %v12809_v11 }
 0x6a6   : > { %9344 = vrcp.f32 %v2035_v52  ;;  %2834 = vmax.xlane.f32.xlu0 %v16987_v60 }
 0x6a7   : > { %v13042_v39 = vpop.f32.mrb[184].mxu1 }
 0x6a8   : > { %16988 = vst [vmem:[#allocation217_spill] sm:$0xff] %v13042_v39  ;;  %v9341_v8 = vpop.eup %9340  ;;  %v13045_v47 = vpop.f32.mrb[185].mxu1 }
 0x6a9   : > { %v4790_v62 = vpop.permute.xlu0 %4789  ;;  %v2038_v54 = vpop.xlane.xlu1 %2037  ;;  %16989 = vst [vmem:[#allocation218_spill] sm:$0xff] %v13045_v47  ;;  %v2143_v44 = vmul.f32 %v9341_v8, %v12509_v41 }
 0x6aa   : > { %8472 = vmatprep.mubr.msk.bf16.mxu1 %vm1410_vm1, %v4790_v62  ;;  %v13051_v18 = vpop.f32.mrb[186].mxu1  ;;  %9346 = vrcp.f32 %v2038_v54  ;;  %v2142_v54 = vmul.f32 %v9341_v8, %v12499_v57 }
 0x6ab   : > { %16990 = vst [vmem:[#allocation219_spill] sm:$0xff] %v13051_v18  ;;  %8473 = vmatmul.mubr.msk.bf16.gmra.mrb[244].mxu1 %vm1410_vm1, %v4790_v62  ;;  %v13056_v33 = vpop.f32.mrb[187].mxu1  ;;  %v2193_v52 = vpack.c.bf16 %v2143_v44, %v2141_v46  ;;  %v16993_v62 = vld [vmem:[#allocation106_spill] sm:$0xff]  ;;  %v2930_v46 = vmul.f32 1.442695, %v2860_v17 }
 0x6ac   : > { %16991 = vst [vmem:[#allocation220_spill] sm:$0xff] %v13056_v33  ;;  %v9343_v60 = vpop.eup %9342  ;;  %v2861_v55 = vsub.f32 %v16993_v62, %v12809_v11  ;;  %2285 = vmatmul.mubr.bf16.gmra.mrb[84].mxu0 %v2190_v61  ;;  %v16997_v61 = vld [vmem:[#allocation86_spill] sm:$0xff] }
 0x6ad   : > { %v2041_v22 = vpop.xlane.xlu1 %2040  ;;  %2292 = vmatprep.mubr.bf16.mxu0 %v2193_v52  ;;  %v2145_v16 = vmul.f32 %v9343_v60, %v12527_v20  ;;  %v2140_v62 = vmul.f32 %v9339_v5, %v16997_v61 }
 0x6ae   : > { %9348 = vrcp.f32 %v2041_v22  ;;  %v2932_v11 = vmul.f32 1.442695, %v2861_v55 }
 0x6af   : > { %v13064_v41 = vpop.f32.mrb[188].mxu1  ;;  %v2192_v21 = vpack.c.bf16 %v2142_v54, %v2140_v62  ;;  %9350 = vpow2.f32 %v2930_v46 }
 0x6b0   : > { %v9345_v42 = vpop.eup %9344  ;;  %16994 = vst [vmem:[#allocation105_spill] sm:$0xff] %v13064_v41  ;;  %v13067_v29 = vpop.f32.mrb[189].mxu1  ;;  %9352 = vpow2.f32 %v2932_v11 }
 0x6b1   : > { %16995 = vst [vmem:[#allocation106_spill] sm:$0xff] %v13067_v29  ;;  %v2147_v2 = vmul.f32 %v9345_v42, %v12539_v12  ;;  %v13072_v22 = vpop.f32.mrb[190].mxu1  ;;  %v2146_v20 = vmul.f32 %v9345_v42, %v17000_v15  ;;  %v17005_v15 = vld [vmem:[#allocation53_spill] sm:$0xff] }
 0x6b2   : > { %16996 = vst [vmem:[#allocation221_spill] sm:$0xff] %v13072_v22  ;;  %v13076_v52 = vpop.f32.mrb[191].mxu1  ;;  %v17016_v22 = vld [vmem:[#allocation104_spill] sm:$0xff] }
 0x6b3   : > { %16998 = vst [vmem:[#allocation86_spill] sm:$0xff] %v13076_v52  ;;  %v2195_v8 = vpack.c.bf16 %v2147_v2, %v2145_v16  ;;  %v17003_v2 = vld [vmem:[#allocation89_spill] sm:$0xff] }
 0x6b4   : > { %v9347_v12 = vpop.eup %9346  ;;  %2293 = vmatmul.mubr.bf16.gmra.mrb[88].mxu0 %v2192_v21  ;;  %v2144_v46 = vmul.f32 %v9343_v60, %v17003_v2  ;;  %v17008_v2 = vld [vmem:[#allocation147_spill] sm:$0xff] }
 0x6b5   : > { %2300 = vmatprep.mubr.bf16.mxu0 %v2195_v8  ;;  %v2149_v54 = vmul.f32 %v9347_v12, %v12559_v14 }
 0x6b6   : > { %v2194_v11 = vpack.c.bf16 %v2146_v20, %v2144_v46 }
 0x6b7   : > { %v13080_v44 = vpop.f32.mrb[192].mxu1 }
 0x6b8   : > { %v9349_v17 = vpop.eup %9348  ;;  %16999 = vst [vmem:[#allocation222_spill] sm:$0xff] %v13080_v44  ;;  %v13083_v55 = vpop.f32.mrb[193].mxu1 }
 0x6b9   : > { %17001 = vst [vmem:[#allocation142_spill] sm:$0xff] %v13083_v55  ;;  %v2151_v5 = vmul.f32 %v9349_v17, %v12573_v48  ;;  %v13088_v57 = vpop.f32.mrb[194].mxu1  ;;  %v2050_v48 = vpop.xlane.xlu1 %2049  ;;  %v2150_v61 = vmul.f32 %v9349_v17, %v17008_v2  ;;  %v2859_v55 = vsub.f32 %v17016_v22, %v12805_v4 }
 0x6ba   : > { %17002 = vst [vmem:[#allocation223_spill] sm:$0xff] %v13088_v57  ;;  %v13092_v21 = vpop.f32.mrb[195].mxu1  ;;  %v13098_v62 = vpop.eup %9350  ;;  %v17010_v57 = vld [vmem:[#allocation146_spill] sm:$0xff] }
 0x6bb   : > { %17004 = vst [vmem:[#allocation89_spill] sm:$0xff] %v13092_v21  ;;  %v2197_v42 = vpack.c.bf16 %v2151_v5, %v2149_v54  ;;  %v13102_v14 = vpop.eup %9352  ;;  %v17009_v21 = vld [vmem:[#allocation145_spill] sm:$0xff] }
 0x6bc   : > { %3290 = vrot.lane.b32.xlu0 %v17005_v15, %s10337_s13  ;;  %2301 = vmatmul.mubr.bf16.gmra.mrb[92].mxu0 %v2194_v11  ;;  %v17011_v5 = vmax.f32 %v17009_v21, %v17010_v57  ;;  %v17013_v54 = vld [vmem:[#allocation97_spill] sm:$0xff]  ;;  %v3055_v2 = vadd.f32 %v13102_v14, %v13098_v62  ;;  %v17117_v15 = vld [vmem:[#allocation186_spill] sm:$0xff] }
 0x6bd   : > { %2308 = vmatprep.mubr.bf16.mxu0 %v2197_v42  ;;  %v2858_v46 = vsub.f32 %v17013_v54, %v12805_v4  ;;  %v17014_v42 = vld [vmem:[#allocation94_spill] sm:$0xff]  ;;  %v2053_v16 = vpop.xlane.xlu1 %2052 }
 0x6be   : > { %v2148_v11 = vmul.f32 %v9347_v12, %v17014_v42 }
 0x6bf   : > { %v13100_v8 = vpop.f32.mrb[196].mxu1 }
 0x6c0   : > { %17006 = vst [vmem:[#allocation224_spill] sm:$0xff] %v13100_v8  ;;  %v13104_v60 = vpop.f32.mrb[197].mxu1  ;;  %v2928_v8 = vmul.f32 1.442695, %v2859_v55 }
 0x6c1   : > { %17007 = vst [vmem:[#allocation225_spill] sm:$0xff] %v13104_v60  ;;  %2831 = vmax.xlane.f32.xlu1 %v17011_v5  ;;  %v13112_v20 = vpop.f32.mrb[198].mxu1  ;;  %v2196_v5 = vpack.c.bf16 %v2150_v61, %v2148_v11  ;;  %v2926_v60 = vmul.f32 1.442695, %v2858_v46 }
 0x6c2   : > { %17012 = vst [vmem:[#allocation147_spill] sm:$0xff] %v13112_v20  ;;  %v13117_v52 = vpop.f32.mrb[199].mxu1 }
 0x6c3   : > { %17015 = vst [vmem:[#allocation145_spill] sm:$0xff] %v13117_v52  ;;  %9354 = vpow2.f32 %v2926_v60 }
 0x6c4   : > { %2309 = vmatmul.mubr.bf16.gmra.mrb[96].mxu0 %v2196_v5  ;;  %9356 = vpow2.f32 %v2928_v8  ;;  %v17029_v8 = vld [vmem:[#allocation54_spill] sm:$0xff] }
 0x6c5   : > { %3056 = vadd.xlane.f32.xlu1 %v3055_v2  ;;  %9358 = vrcp.f32 %v2053_v16 }
 0x6c7   : > { %v13125_v54 = vpop.f32.mrb[200].mxu1 }
 0x6c8   : > { %17017 = vst [vmem:[#allocation146_spill] sm:$0xff] %v13125_v54  ;;  %v13127_v12 = vpop.xlane.xlu1 %2061  ;;  %v13129_v42 = vpop.f32.mrb[201].mxu1  ;;  %v17031_v54 = vld [vmem:[#allocation68_spill] sm:$0xff] }
 0x6c9   : > { %17018 = vst [vmem:[#allocation97_spill] sm:$0xff] %v13129_v42  ;;  %v13133_v22 = vpop.f32.mrb[202].mxu1 }
 0x6ca   : > { %17019 = vst [vmem:[#allocation94_spill] sm:$0xff] %v13133_v22  ;;  %v13135_v17 = vpop.f32.mrb[203].mxu1 }
 0x6cb   : > { %17020 = vst [vmem:[#allocation104_spill] sm:$0xff] %v13135_v17  ;;  %v17025_v17 = vld [vmem:[#allocation65_spill] sm:$0xff] }
 0x6cc   : > { %v2065_v46 = vpop.xlane.xlu1 %2064 }
 0x6cd   : > { %v13151_v60 = vpop.eup %9354 }
 0x6ce   : > { %v13153_v61 = vpop.eup %9356 }
 0x6cf   : > { %v13139_v55 = vpop.f32.mrb[204].mxu1  ;;  %v3052_v5 = vadd.f32 %v13153_v61, %v13151_v60 }
 0x6d0   : > { %17021 = vst [vmem:[#allocation226_spill] sm:$0xff] %v13139_v55  ;;  %v3303_v11 = vpop.permute.xlu1 %3302  ;;  %v13141_v2 = vpop.f32.mrb[205].mxu1 }
 0x6d1   : > { %17022 = vst [vmem:[#allocation227_spill] sm:$0xff] %v13141_v2  ;;  %8158 = vmatprep.subr.bf16.mxu0 %v3303_v11  ;;  %v13145_v4 = vpop.f32.mrb[206].mxu1 }
 0x6d2   : > { %17023 = vst [vmem:[#allocation228_spill] sm:$0xff] %v13145_v4  ;;  %v13147_v52 = vpop.f32.mrb[207].mxu1  ;;  %v9359_v4 = vpop.eup %9358 }
 0x6d3   : > { %17024 = vst [vmem:[#allocation229_spill] sm:$0xff] %v13147_v52 }
 0x6d6   : > { %3308 = vrot.lane.b32.xlu1 %v17025_v17, %s10337_s13 }
 0x6d7   : > { %v13157_v22 = vpop.f32.mrb[208].mxu1 }
 0x6d8   : > { %17026 = vst [vmem:[#allocation230_spill] sm:$0xff] %v13157_v22  ;;  %v13159_v11 = vpop.f32.mrb[209].mxu1 }
 0x6d9   : > { %17027 = vst [vmem:[#allocation231_spill] sm:$0xff] %v13159_v11  ;;  %v13165_v55 = vpop.f32.mrb[210].mxu1 }
 0x6da   : > { %v2044_v2 = vpop.xlane.xlu0 %2043  ;;  %17028 = vst [vmem:[#allocation232_spill] sm:$0xff] %v13165_v55  ;;  %3292 = vrot.lane.b32.xlu1 %v17029_v8, %s10337_s13  ;;  %v13169_v52 = vpop.f32.mrb[211].mxu1 }
 0x6db   : > { %3053 = vadd.xlane.f32.xlu0 %v3052_v5  ;;  %17030 = vst [vmem:[#allocation233_spill] sm:$0xff] %v13169_v52  ;;  %9360 = vrcp.f32 %v2044_v2 }
 0x6dc   : > { %9362 = vrcp.f32 %v2050_v48 }
 0x6de   : > { %v2047_v42 = vpop.xlane.xlu0 %2046  ;;  %3310 = vrot.lane.b32.xlu1 %v17031_v54, %s10337_s13 }
 0x6df   : > { %9364 = vrcp.f32 %v2047_v42 }
 0x6e0   : > { %v13175_v20 = vpop.f32.mrb[212].mxu1 }
 0x6e1   : > { %17032 = vst [vmem:[#allocation234_spill] sm:$0xff] %v13175_v20  ;;  %v13177_v11 = vpop.f32.mrb[213].mxu1 }
 0x6e2   : > { %17033 = vst [vmem:[#allocation235_spill] sm:$0xff] %v13177_v11  ;;  %v2056_v5 = vpop.xlane.xlu0 %2055  ;;  %v13181_v22 = vpop.f32.mrb[214].mxu1  ;;  %v2159_v11 = vmul.f32 %v9359_v4, %v12625_v31  ;;  %v17041_v31 = vld [vmem:[#allocation153_spill] sm:$0xff] }
 0x6e3   : > { %17034 = vst [vmem:[#allocation236_spill] sm:$0xff] %v13181_v22  ;;  %v13183_v2 = vpop.f32.mrb[215].mxu1  ;;  %9366 = vrcp.f32 %v2056_v5 }
 0x6e4   : > { %17035 = vst [vmem:[#allocation237_spill] sm:$0xff] %v13183_v2  ;;  %v17039_v2 = vld [vmem:[#allocation82_spill] sm:$0xff] }
 0x6e5   : > { %v9361_v42 = vpop.eup %9360 }
 0x6e6   : > { %v2059_v52 = vpop.xlane.xlu0 %2058  ;;  %v9363_v55 = vpop.eup %9362  ;;  %v2153_v16 = vmul.f32 %v9361_v42, %v12721_v40 }
 0x6e7   : > { %9368 = vrcp.f32 %v2059_v52  ;;  %v2152_v52 = vmul.f32 %v9361_v42, %v12719_v13  ;;  %v2157_v7 = vmul.f32 %v9363_v55, %v17041_v31  ;;  %v17050_v31 = vld [vmem:[#allocation90_spill] sm:$0xff] }
 0x6e8   : > { %v13187_v44 = vpop.f32.mrb[216].mxu1  ;;  %9370 = vrcp.f32 %v2065_v46 }
 0x6e9   : > { %17036 = vst [vmem:[#allocation238_spill] sm:$0xff] %v13187_v44  ;;  %v9365_v29 = vpop.eup %9364  ;;  %v13189_v41 = vpop.f32.mrb[217].mxu1  ;;  %9372 = vrcp.f32 %v13127_v12 }
 0x6ea   : > { %17037 = vst [vmem:[#allocation239_spill] sm:$0xff] %v13189_v41  ;;  %v2068_v33 = vpop.xlane.xlu0 %2067  ;;  %v13195_v48 = vpop.f32.mrb[218].mxu1  ;;  %v2155_v5 = vmul.f32 %v9365_v29, %v12741_v53  ;;  %v2154_v22 = vmul.f32 %v9365_v29, %v17039_v2  ;;  %v2201_v41 = vpack.c.bf16 %v2159_v11, %v2157_v7  ;;  %v17043_v2 = vld [vmem:[#allocation76_spill] sm:$0xff]  ;;  %v17049_v11 = vld [vmem:[#allocation151_spill] sm:$0xff] }
 0x6eb   : > { %17038 = vst [vmem:[#allocation240_spill] sm:$0xff] %v13195_v48  ;;  %v13200_v18 = vpop.f32.mrb[219].mxu1 }
 0x6ec   : > { %17040 = vst [vmem:[#allocation82_spill] sm:$0xff] %v13200_v18  ;;  %v2199_v40 = vpack.c.bf16 %v2155_v5, %v2153_v16  ;;  %v2198_v39 = vpack.c.bf16 %v2154_v22, %v2152_v52  ;;  %v17045_v22 = vld [vmem:[#allocation155_spill] sm:$0xff]  ;;  %v2156_v52 = vmul.f32 %v9363_v55, %v17049_v11  ;;  %v17054_v11 = vld [vmem:[#allocation109_spill] sm:$0xff] }
 0x6ed   : > { %v9367_v53 = vpop.eup %9366  ;;  %v2158_v16 = vmul.f32 %v9359_v4, %v17045_v22 }
 0x6ee   : > { %v2071_v20 = vpop.xlane.xlu0 %2070  ;;  %2316 = vmatprep.mubr.bf16.mxu0 %v2199_v40  ;;  %v2862_v40 = vsub.f32 %v17054_v11, %v12823_v59 }
 0x6ef   : > { %2317 = vmatmul.mubr.bf16.gmra.mrb[100].mxu0 %v2198_v39  ;;  %v17047_v39 = vld [vmem:[#allocation168_spill] sm:$0xff]  ;;  %9374 = vrcp.f32 %v2071_v20  ;;  %v2200_v4 = vpack.c.bf16 %v2158_v16, %v2156_v52 }
 0x6f0   : > { %2324 = vmatprep.mubr.bf16.mxu0 %v2201_v41  ;;  %v13206_v13 = vpop.f32.mrb[220].mxu1  ;;  %9376 = vrcp.f32 %v2068_v33  ;;  %v17056_v33 = vld [vmem:[#allocation163_spill] sm:$0xff]  ;;  %v2934_v20 = vmul.f32 1.442695, %v2862_v40 }
 0x6f1   : > { %17042 = vst [vmem:[#allocation153_spill] sm:$0xff] %v13206_v13  ;;  %v9369_v29 = vpop.eup %9368  ;;  %4793 = vrot.lane.b32.xlu0 %v17043_v2, %s10341_s15  ;;  %v13210_v42 = vpop.f32.mrb[221].mxu1  ;;  %v2161_v2 = vmul.f32 %v9367_v53, %v17050_v31 }
 0x6f2   : > { %17044 = vst [vmem:[#allocation76_spill] sm:$0xff] %v13210_v42  ;;  %v13215_v5 = vpop.xlane.xlu0 %2079  ;;  %v13217_v7 = vpop.f32.mrb[222].mxu1  ;;  %v2163_v12 = vmul.f32 %v9369_v29, %v17047_v39  ;;  %v17053_v42 = vld [vmem:[#allocation166_spill] sm:$0xff]  ;;  %9378 = vpow2.f32 %v2934_v20 }
 0x6f3   : > { %17046 = vst [vmem:[#allocation155_spill] sm:$0xff] %v13217_v7  ;;  %v13220_v41 = vpop.f32.mrb[223].mxu1  ;;  %v9371_v46 = vpop.eup %9370  ;;  %v2162_v55 = vmul.f32 %v9369_v29, %v17053_v42  ;;  %v17060_v42 = vld [vmem:[#allocation108_spill] sm:$0xff]  ;;  %v17065_v29 = vld [vmem:[#allocation162_spill] sm:$0xff] }
 0x6f4   : > { %17048 = vst [vmem:[#allocation168_spill] sm:$0xff] %v13220_v41  ;;  %v2203_v47 = vpack.c.bf16 %v2163_v12, %v2161_v2  ;;  %v9373_v39 = vpop.eup %9372  ;;  %v2167_v52 = vmul.f32 %v9371_v46, %v17056_v33 }
 0x6f5   : > { %v2165_v11 = vmul.f32 %v9373_v39, %v17060_v42  ;;  %v17070_v42 = vld [vmem:[#allocation148_spill] sm:$0xff] }
 0x6f6   : > { %v2083_v22 = vpop.xlane.xlu0 %2082 }
 0x6f7   : > { %2325 = vmatmul.mubr.bf16.gmra.mrb[104].mxu0 %v2200_v4  ;;  %v17059_v4 = vld [vmem:[#allocation92_spill] sm:$0xff] }
 0x6f8   : > { %2332 = vmatprep.mubr.bf16.mxu0 %v2203_v47  ;;  %v13226_v18 = vpop.f32.mrb[224].mxu1  ;;  %v17057_v47 = vld [vmem:[#allocation110_spill] sm:$0xff]  ;;  %v2160_v41 = vmul.f32 %v9367_v53, %v17059_v4 }
 0x6f9   : > { %17051 = vst [vmem:[#allocation151_spill] sm:$0xff] %v13226_v18  ;;  %v13228_v48 = vpop.f32.mrb[225].mxu1  ;;  %v2863_v31 = vsub.f32 %v17057_v47, %v12823_v59  ;;  %v2205_v18 = vpack.c.bf16 %v2167_v52, %v2165_v11  ;;  %v9375_v13 = vpop.eup %9374  ;;  %v17062_v47 = vld [vmem:[#allocation179_spill] sm:$0xff] }
 0x6fa   : > { %17052 = vst [vmem:[#allocation90_spill] sm:$0xff] %v13228_v48  ;;  %v13235_v16 = vpop.xlane.xlu0 %2825  ;;  %v13237_v12 = vpop.f32.mrb[226].mxu1  ;;  %v2202_v7 = vpack.c.bf16 %v2162_v55, %v2160_v41  ;;  %v2864_v53 = vsub.f32 %v17063_v19, %v17062_v47  ;;  %v17066_v41 = vld [vmem:[#allocation112_spill] sm:$0xff] }
 0x6fb   : > { %17055 = vst [vmem:[#allocation166_spill] sm:$0xff] %v13237_v12  ;;  %v13242_v2 = vpop.f32.mrb[227].mxu1  ;;  %v2936_v44 = vmul.f32 1.442695, %v2863_v31  ;;  %v9377_v59 = vpop.eup %9376  ;;  %v2865_v40 = vsub.f32 %v17066_v41, %v17062_v47  ;;  %v17069_v31 = vld [vmem:[#allocation93_spill] sm:$0xff]  ;;  %v17074_v47 = vld [vmem:[#allocation170_spill] sm:$0xff] }
 0x6fc   : > { %17058 = vst [vmem:[#allocation109_spill] sm:$0xff] %v13242_v2  ;;  %v2166_v2 = vmul.f32 %v9371_v46, %v17065_v29  ;;  %v17071_v19 = vmax.f32 %v17069_v31, %v17070_v42  ;;  %v17073_v46 = vld [vmem:[#allocation66_spill] sm:$0xff]  ;;  %v2169_v41 = vmul.f32 %v9377_v59, %v17074_v47  ;;  %v2938_v55 = vmul.f32 1.442695, %v2864_v53 }
 0x6fd   : > { %9380 = vpow2.f32 %v2936_v44  ;;  %v2164_v20 = vmul.f32 %v9373_v39, %v17073_v46 }
 0x6fe   : > { %v3287_v48 = vpop.permute.xlu0 %3286 }
 0x6ff   : > { %2333 = vmatmul.mubr.bf16.gmra.mrb[108].mxu0 %v2202_v7  ;;  %v2204_v12 = vpack.c.bf16 %v2166_v2, %v2164_v20 }
 0x700   : > { %8159 = vmatpush3.bf16.msra.mxu0 %v3287_v48  ;;  %2340 = vmatprep.mubr.bf16.mxu0 %v2205_v18  ;;  %v13248_v33 = vpop.f32.mrb[228].mxu1  ;;  %v17068_v18 = vld [vmem:[#allocation176_spill] sm:$0xff] }
 0x701   : > { %17061 = vst [vmem:[#allocation163_spill] sm:$0xff] %v13248_v33  ;;  %v13252_v4 = vpop.f32.mrb[229].mxu1  ;;  %v2074_v7 = vpop.xlane.xlu1 %2073  ;;  %v2171_v52 = vmul.f32 %v9375_v13, %v17068_v18  ;;  %v17104_v33 = vld [vmem:[#allocation182_spill] sm:$0xff] }
 0x702   : > { %17064 = vst [vmem:[#allocation110_spill] sm:$0xff] %v13252_v4  ;;  %v13259_v48 = vpop.f32.mrb[230].mxu1  ;;  %2837 = vmax.xlane.f32.xlu1 %v17071_v19  ;;  %9382 = vrcp.f32 %v2074_v7  ;;  %v2940_v4 = vmul.f32 1.442695, %v2865_v40  ;;  %v17077_v7 = vld [vmem:[#allocation174_spill] sm:$0xff] }
 0x703   : > { %17067 = vst [vmem:[#allocation92_spill] sm:$0xff] %v13259_v48  ;;  %v13265_v11 = vpop.f32.mrb[231].mxu1  ;;  %9384 = vrcp.f32 %v2083_v22  ;;  %v2207_v44 = vpack.c.bf16 %v2171_v52, %v2169_v41  ;;  %v2170_v46 = vmul.f32 %v9375_v13, %v17077_v7  ;;  %v13286_v52 = vpop.eup %9378 }
 0x704   : > { %17072 = vst [vmem:[#allocation108_spill] sm:$0xff] %v13265_v11 }
 0x705   : > { %v2077_v18 = vpop.xlane.xlu1 %2076 }
 0x706   : > { %9386 = vrcp.f32 %v2077_v18  ;;  %v17081_v18 = vld [vmem:[#allocation149_spill] sm:$0xff] }
 0x707   : > { %2341 = vmatmul.mubr.bf16.gmra.mrb[112].mxu0 %v2204_v12  ;;  %9388 = vrcp.f32 %v13215_v5  ;;  %v17080_v12 = vld [vmem:[#allocation169_spill] sm:$0xff]  ;;  %v13290_v20 = vpop.eup %9380 }
 0x708   : > { %2348 = vmatprep.mubr.bf16.mxu0 %v2207_v44  ;;  %v13272_v19 = vpop.f32.mrb[232].mxu1  ;;  %9390 = vpow2.f32 %v2938_v55  ;;  %v2168_v5 = vmul.f32 %v9377_v59, %v17080_v12  ;;  %v17082_v44 = vld [vmem:[#allocation150_spill] sm:$0xff]  ;;  %v3058_v12 = vadd.f32 %v13290_v20, %v13286_v52 }
 0x709   : > { %17075 = vst [vmem:[#allocation179_spill] sm:$0xff] %v13272_v19  ;;  %v13274_v39 = vpop.f32.mrb[233].mxu1  ;;  %9392 = vpow2.f32 %v2940_v4  ;;  %v13279_v53 = vpop.xlane.xlu1 %2828  ;;  %v17083_v7 = vmax.f32 %v17081_v18, %v17082_v44 }
 0x70a   : > { %17076 = vst [vmem:[#allocation111_spill] sm:$0xff] %v13274_v39  ;;  %v13281_v22 = vpop.f32.mrb[234].mxu1  ;;  %v2206_v13 = vpack.c.bf16 %v2170_v46, %v2168_v5 }
 0x70b   : > { %17078 = vst [vmem:[#allocation162_spill] sm:$0xff] %v13281_v22  ;;  %v13283_v40 = vpop.f32.mrb[235].mxu1 }
 0x70c   : > { %17079 = vst [vmem:[#allocation112_spill] sm:$0xff] %v13283_v40  ;;  %v9383_v4 = vpop.eup %9382 }
 0x70d   : > { %v3048_v47 = vpop.xlane.xlu1 %3047  ;;  %v9385_v41 = vpop.eup %9384  ;;  %v2173_v55 = vmul.f32 %v9383_v4, %v12870_v30 }
 0x70e   : > { %v2179_v30 = vmul.f32 %v9385_v41, %v12837_v36  ;;  %9394 = vrcp.f32 %v3048_v47 }
 0x70f   : > { %2349 = vmatmul.mubr.bf16.gmra.mrb[116].mxu0 %v2206_v13 }
 0x710   : > { %2840 = vmax.xlane.f32.xlu0 %v17083_v7  ;;  %v13295_v2 = vpop.f32.mrb[236].mxu1  ;;  %v9387_v29 = vpop.eup %9386  ;;  %v2172_v7 = vmul.f32 %v9383_v4, %v12868_v63  ;;  %v17089_v4 = vld [vmem:[#allocation87_spill] sm:$0xff] }
 0x711   : > { %17084 = vst [vmem:[#allocation176_spill] sm:$0xff] %v13295_v2  ;;  %v13297_v59 = vpop.f32.mrb[237].mxu1  ;;  %v9389_v40 = vpop.eup %9388  ;;  %v2175_v22 = vmul.f32 %v9387_v29, %v12886_v37  ;;  %v2174_v39 = vmul.f32 %v9387_v29, %v12880_v0  ;;  %v17090_v2 = vld [vmem:[#allocation70_spill] sm:$0xff] }
 0x712   : > { %17085 = vst [vmem:[#allocation93_spill] sm:$0xff] %v13297_v59  ;;  %v3305_v5 = vpop.permute.xlu1 %3304  ;;  %v13304_v13 = vpop.f32.mrb[238].mxu1  ;;  %v17088_v59 = vld [vmem:[#allocation56_spill] sm:$0xff]  ;;  %v2177_v0 = vmul.f32 %v9389_v40, %v17089_v4 }
 0x713   : > { %17086 = vst [vmem:[#allocation148_spill] sm:$0xff] %v13304_v13  ;;  %v13309_v19 = vpop.eup %9390  ;;  %8160 = vmatprep.subr.bf16.mxu0 %v3305_v5  ;;  %v13311_v11 = vpop.f32.mrb[239].mxu1  ;;  %3294 = vrot.lane.b32.xlu1 %v17088_v59, %s10337_s13  ;;  %v2209_v37 = vpack.c.bf16 %v2175_v22, %v2173_v55  ;;  %v2208_v63 = vpack.c.bf16 %v2174_v39, %v2172_v7  ;;  %v17093_v39 = vld [vmem:[#allocation178_spill] sm:$0xff] }
 0x714   : > { %17087 = vst [vmem:[#allocation66_spill] sm:$0xff] %v13311_v11  ;;  %v13314_v48 = vpop.eup %9392  ;;  %3059 = vadd.xlane.f32.xlu0 %v3058_v12  ;;  %v2211_v36 = vpack.c.bf16 %v2179_v30, %v2177_v0  ;;  %v2178_v22 = vmul.f32 %v9385_v41, %v17093_v39 }
 0x715   : > { %2356 = vmatprep.mubr.bf16.mxu0 %v2209_v37  ;;  %v3061_v5 = vadd.f32 %v13314_v48, %v13309_v19 }
 0x716   : > { %v3289_v29 = vpop.permute.xlu1 %3288 }
 0x717   : > { %2357 = vmatmul.mubr.bf16.gmra.mrb[120].mxu0 %v2208_v63  ;;  %3312 = vrot.lane.b32.xlu1 %v17090_v2, %s10337_s13  ;;  %v17096_v63 = vld [vmem:[#allocation85_spill] sm:$0xff] }
 0x718   : > { %8161 = vmatpush3.bf16.msra.mxu0 %v3289_v29  ;;  %v13325_v46 = vpop.f32.mrb[240].mxu1  ;;  %3062 = vadd.xlane.f32.xlu0 %v3061_v5  ;;  %v2176_v4 = vmul.f32 %v9389_v40, %v17096_v63  ;;  %v17097_v29 = vld [vmem:[#allocation73_spill] sm:$0xff]  ;;  %v9395_v63 = vpop.eup %9394 }
 0x719   : > { %17091 = vst [vmem:[#allocation170_spill] sm:$0xff] %v13325_v46  ;;  %2364 = vmatprep.mubr.bf16.mxu0 %v2211_v36  ;;  %v13327_v12 = vpop.f32.mrb[241].mxu1  ;;  %v17098_v36 = vld [vmem:[#allocation57_spill] sm:$0xff] }
 0x71a   : > { %17092 = vst [vmem:[#allocation174_spill] sm:$0xff] %v13327_v12  ;;  %v4792_v7 = vpop.permute.xlu1 %4791  ;;  %v13332_v37 = vpop.f32.mrb[242].mxu1  ;;  %v2210_v41 = vpack.c.bf16 %v2178_v22, %v2176_v4  ;;  %v17101_v22 = vld [vmem:[#allocation114_spill] sm:$0xff]  ;;  %v17102_v4 = vld [vmem:[#allocation196_spill] sm:$0xff] }
 0x71b   : > { %17094 = vst [vmem:[#allocation169_spill] sm:$0xff] %v13332_v37  ;;  %8474 = vmatprep.mubr.msk.bf16.mxu1 %vm1410_vm1, %v4792_v7  ;;  %v13335_v30 = vpop.f32.mrb[243].mxu1  ;;  %3314 = vrot.lane.b32.xlu1 %v17097_v29, %s10337_s13  ;;  %v17100_v37 = vld [vmem:[#allocation113_spill] sm:$0xff] }
 0x71c   : > { %17095 = vst [vmem:[#allocation149_spill] sm:$0xff] %v13335_v30  ;;  %8475 = vmatmul.mubr.msk.bf16.gmra.mrb[248].mxu1 %vm1410_vm1, %v4792_v7  ;;  %v17099_v30 = vld [vmem:[#allocation181_spill] sm:$0xff] }
 0x71d   : > { %v2866_v12 = vsub.f32 %v17100_v37, %v17099_v30  ;;  %v2867_v7 = vsub.f32 %v17101_v22, %v17099_v30  ;;  %v17105_v37 = vld [vmem:[#allocation115_spill] sm:$0xff]  ;;  %v17106_v30 = vld [vmem:[#allocation116_spill] sm:$0xff] }
 0x71e   : > { %v3307_v5 = vpop.permute.xlu1 %3306  ;;  %v2868_v2 = vsub.f32 %v17105_v37, %v17104_v33  ;;  %v2869_v22 = vsub.f32 %v17106_v30, %v17104_v33  ;;  %v17116_v37 = vld [vmem:[#allocation77_spill] sm:$0xff] }
 0x71f   : > { %2365 = vmatmul.mubr.bf16.gmra.mrb[124].mxu0 %v2210_v41  ;;  %8162 = vmatprep.subr.bf16.mxu0 %v3307_v5  ;;  %v13352_v41 = vmul.f32 %v9395_v63, %v17102_v4  ;;  %v17103_v5 = vld [vmem:[#allocation198_spill] sm:$0xff]  ;;  %v2942_v13 = vmul.f32 1.442695, %v2866_v12  ;;  %v2944_v29 = vmul.f32 1.442695, %v2867_v7  ;;  %v17107_v4 = vld [vmem:[#allocation152_spill] sm:$0xff] }
 0x720   : > { %v17112_v7 = vld [vmem:[#allocation157_spill] sm:$0xff] }
 0x72e   : > { %3296 = vrot.lane.b32.xlu0 %v17098_v36, %s10337_s13 }
 0x72f   : > { %v3051_v39 = vpop.xlane.xlu0 %3050 }
 0x730   : > { %9396 = vrcp.f32 %v3051_v39  ;;  %v3175_v39 = vmul.f32 %v9395_v63, %v17103_v5  ;;  %v2946_v63 = vmul.f32 1.442695, %v2868_v2 }
 0x731   : > { %9398 = vpow2.f32 %v2942_v13 }
 0x732   : > { %9400 = vpow2.f32 %v2944_v29  ;;  %v17115_v29 = vld [vmem:[#allocation58_spill] sm:$0xff] }
 0x733   : > { %v13345_v55 = vpop.xlane.xlu0 %2834  ;;  %9402 = vpow2.f32 %v2946_v63 }
 0x737   : > { %v3291_v40 = vpop.permute.xlu0 %3290 }
 0x738   : > { %8163 = vmatpush3.bf16.msra.mxu0 %v3291_v40 }
 0x73a   : > { %v9397_v0 = vpop.eup %9396 }
 0x73b   : > { %v13355_v47 = vmul.f32 %v9397_v0, %v13004_v28  ;;  %v3177_v46 = vmul.f32 %v9397_v0, %v13011_v56  ;;  %v17108_v28 = vld [vmem:[#allocation154_spill] sm:$0xff]  ;;  %v2948_v56 = vmul.f32 1.442695, %v2869_v22  ;;  %v17111_v0 = vld [vmem:[#allocation156_spill] sm:$0xff] }
 0x73c   : > { %v17109_v36 = vmax.f32 %v17107_v4, %v17108_v28  ;;  %v17113_v5 = vmax.f32 %v17111_v0, %v17112_v7 }
 0x73d   : > { %v3239_v11 = vpack.c.bf16 %v3177_v46, %v3175_v39  ;;  %9404 = vpow2.f32 %v2948_v56  ;;  %v13368_v46 = vpop.eup %9398 }
 0x73e   : > { %17110 = vst [vmem:[#allocation150_spill] sm:$0xff] %v13368_v46  ;;  %v13370_v12 = vpop.eup %9400 }
 0x73f   : > { %3366 = vmatprep.mubr.bf16.mxu0 %v3239_v11  ;;  %2843 = vmax.xlane.f32.xlu1 %v17109_v36  ;;  %v13377_v11 = vpop.eup %9402  ;;  %v3064_v13 = vadd.f32 %v13370_v12, %v13368_v46 }
 0x740   : > { %17114 = vst [vmem:[#allocation87_spill] sm:$0xff] %v13377_v11 }
 0x747   : > { %v13381_v2 = vpop.eup %9404 }
 0x748   : > { %v3067_v39 = vadd.f32 %v13381_v2, %v13377_v11 }
 0x74d   : > { %2846 = vmax.xlane.f32.xlu0 %v17113_v5 }
 0x74e   : > { %v13375_v33 = vpop.xlane.xlu1 %2831 }
 0x750   : > { %3298 = vrot.lane.b32.xlu1 %v17115_v29, %s10337_s13 }
 0x751   : > { %3065 = vadd.xlane.f32.xlu0 %v3064_v13 }
 0x752   : > { %v13385_v36 = vpop.xlane.xlu1 %3056 }
 0x754   : > { %3316 = vrot.lane.b32.xlu1 %v17116_v37, %s10337_s13 }
 0x755   : > { %3068 = vadd.xlane.f32.xlu0 %v3067_v39  ;;  %v8014_v22 = vpop.f32.mrb[64].mxu0 }
 0x756   : > { %v3309_v30 = vpop.permute.xlu1 %3308  ;;  %v8015_v63 = vpop.f32.mrb[65].mxu0 }
 0x757   : > { %8164 = vmatprep.subr.bf16.mxu0 %v3309_v30  ;;  %v8016_v56 = vadd.f32 %v8015_v63, %v8014_v22  ;;  %v8017_v5 = vpop.f32.mrb[66].mxu0  ;;  %v17118_v30 = vld [vmem:[#allocation117_spill] sm:$0xff]  ;;  %v17119_v22 = vld [vmem:[#allocation118_spill] sm:$0xff] }
 0x758   : > { %v8018_v40 = vpop.f32.mrb[67].mxu0  ;;  %v2870_v35 = vsub.f32 %v17118_v30, %v17117_v15  ;;  %v2871_v63 = vsub.f32 %v17119_v22, %v17117_v15 }
 0x759   : > { %v8019_v45 = vadd.f32 %v8018_v40, %v8017_v5  ;;  %v17121_v40 = vld [vmem:[#allocation119_spill] sm:$0xff] }
 0x75a   : > { %v3293_v59 = vpop.permute.xlu1 %3292  ;;  %v2952_v5 = vmul.f32 1.442695, %v2871_v63 }
 0x75b   : > { %8165 = vmatpush3.bf16.msra.mxu0 %v3293_v59  ;;  %v2373_v13 = vpack.c.bf16 %v8019_v45, %v8016_v56  ;;  %v17120_v59 = vld [vmem:[#allocation184_spill] sm:$0xff] }
 0x75c   : > { %v2872_v56 = vsub.f32 %v17121_v40, %v17120_v59 }
 0x75d   : > { %2389 = vst.msk [vmem:[#allocation2] sm:$0xff] %vm1410_vm1, %v2373_v13  ;;  %v8020_v32 = vpop.f32.mrb[68].mxu0 }
 0x75e   : > { %v3311_v29 = vpop.permute.xlu1 %3310  ;;  %v8021_v17 = vpop.f32.mrb[69].mxu0 }
 0x75f   : > { %8166 = vmatprep.subr.bf16.mxu0 %v3311_v29  ;;  %v8022_v54 = vadd.f32 %v8021_v17, %v8020_v32  ;;  %v8023_v37 = vpop.f32.mrb[70].mxu0  ;;  %v2950_v29 = vmul.f32 1.442695, %v2870_v35  ;;  %v17122_v32 = vld [vmem:[#allocation120_spill] sm:$0xff] }
 0x760   : > { %v8024_v39 = vpop.f32.mrb[71].mxu0  ;;  %v2873_v17 = vsub.f32 %v17122_v32, %v17120_v59 }
 0x761   : > { %v8025_v8 = vadd.f32 %v8024_v39, %v8023_v37  ;;  %9406 = vpow2.f32 %v2950_v29 }
 0x762   : > { %9408 = vpow2.f32 %v2952_v5 }
 0x763   : > { %v2374_v9 = vpack.c.bf16 %v8025_v8, %v8022_v54  ;;  %v2954_v54 = vmul.f32 1.442695, %v2872_v56  ;;  %v2956_v8 = vmul.f32 1.442695, %v2873_v17  ;;  %v17125_v56 = vld [vmem:[#allocation122_spill] sm:$0xff] }
 0x765   : > { %2390 = vst.msk [vmem:[#allocation2 + $0x8] sm:$0xff] %vm1410_vm1, %v2374_v9  ;;  %9410 = vpow2.f32 %v2954_v54 }
 0x766   : > { %9412 = vpow2.f32 %v2956_v8  ;;  %v17131_v8 = vld [vmem:[#allocation121_spill] sm:$0xff] }
 0x767   : > { %v8026_v37 = vpop.f32.mrb[72].mxu0 }
 0x768   : > { %v13397_v45 = vpop.xlane.xlu0 %3053  ;;  %v8027_v13 = vpop.f32.mrb[73].mxu0 }
 0x769   : > { %v8028_v39 = vadd.f32 %v8027_v13, %v8026_v37  ;;  %v8029_v30 = vpop.f32.mrb[74].mxu0  ;;  %v17124_v37 = vld [vmem:[#allocation193_spill] sm:$0xff] }
 0x76a   : > { %v8030_v9 = vpop.f32.mrb[75].mxu0  ;;  %v2876_v29 = vsub.f32 %v17125_v56, %v17124_v37 }
 0x76b   : > { %3300 = vrot.lane.b32.xlu0 %v17123_v43, %s10337_s13  ;;  %v8031_v35 = vadd.f32 %v8030_v9, %v8029_v30  ;;  %v17126_v43 = vld [vmem:[#allocation123_spill] sm:$0xff]  ;;  %v13412_v30 = vpop.eup %9406  ;;  %s10250_s13 = scalar_lea.vmem %s10249_s12, 2048 }
 0x76c   : > { %v4794_v15 = vpop.permute.xlu0 %4793  ;;  %v2877_v17 = vsub.f32 %v17126_v43, %v17124_v37  ;;  %17127 = vst [vmem:[#allocation178_spill] sm:$0xff] %v13412_v30  ;;  %v13416_v9 = vpop.eup %9408 }
 0x76d   : > { %8476 = vmatprep.mubr.msk.bf16.mxu1 %vm1410_vm1, %v4794_v15  ;;  %v2375_v22 = vpack.c.bf16 %v8031_v35, %v8028_v39  ;;  %v17129_v39 = vld [vmem:[#allocation69_spill] sm:$0xff]  ;;  %17130 = vst [vmem:[#allocation85_spill] sm:$0xff] %v13416_v9 }
 0x76e   : > { %8477 = vmatmul.mubr.msk.bf16.gmra.mrb[252].mxu1 %vm1410_vm1, %v4794_v15  ;;  %v17128_v15 = vld [vmem:[#allocation191_spill] sm:$0xff]  ;;  %v2964_v34 = vmul.f32 1.442695, %v2877_v17 }
 0x76f   : > { %2391 = vst.msk [vmem:[#allocation2 + $0x10] sm:$0xff] %vm1410_vm1, %v2375_v22  ;;  %v8032_v63 = vpop.f32.mrb[76].mxu0  ;;  %v2874_v54 = vsub.f32 %v17129_v39, %v17128_v15  ;;  %v2875_v35 = vsub.f32 %v17131_v8, %v17128_v15  ;;  %v3070_v39 = vadd.f32 %v13416_v9, %v13412_v30  ;;  %v17137_v8 = vld [vmem:[#allocation125_spill] sm:$0xff]  ;;  %v17140_v30 = vld [vmem:[#allocation200_spill] sm:$0xff]  ;;  %v17141_v9 = vld [vmem:[#allocation62_spill] sm:$0xff] }
 0x770   : > { %v8033_v59 = vpop.f32.mrb[77].mxu0  ;;  %v2878_v11 = vsub.f32 %v17141_v9, %v17140_v30 }
 0x771   : > { %v8034_v40 = vadd.f32 %v8033_v59, %v8032_v63  ;;  %v8035_v32 = vpop.f32.mrb[78].mxu0  ;;  %v2962_v63 = vmul.f32 1.442695, %v2876_v29  ;;  %v17132_v59 = vld [vmem:[#allocation158_spill] sm:$0xff]  ;;  %v2958_v37 = vmul.f32 1.442695, %v2874_v54 }
 0x772   : > { %v8036_v13 = vpop.f32.mrb[79].mxu0  ;;  %v17134_v56 = vmax.f32 %v17132_v59, %v17133_v49  ;;  %v2960_v15 = vmul.f32 1.442695, %v2875_v35 }
 0x773   : > { %v8037_v5 = vadd.f32 %v8036_v13, %v8035_v32  ;;  %v13424_v32 = vpop.eup %9410  ;;  %9414 = vpow2.f32 %v2962_v63 }
 0x774   : > { %17135 = vst [vmem:[#allocation181_spill] sm:$0xff] %v13424_v32  ;;  %v13428_v46 = vpop.eup %9412  ;;  %9416 = vpow2.f32 %v2964_v34 }
 0x775   : > { %v2376_v22 = vpack.c.bf16 %v8037_v5, %v8034_v40  ;;  %v17136_v5 = vld [vmem:[#allocation199_spill] sm:$0xff]  ;;  %9418 = vpow2.f32 %v2958_v37  ;;  %v3073_v63 = vadd.f32 %v13428_v46, %v13424_v32 }
 0x776   : > { %9420 = vpow2.f32 %v2960_v15 }
 0x777   : > { %2392 = vst.msk [vmem:[#allocation2 + $0x18] sm:$0xff] %vm1410_vm1, %v2376_v22  ;;  %v8038_v43 = vpop.f32.mrb[80].mxu0  ;;  %v17138_v22 = vld [vmem:[#allocation126_spill] sm:$0xff] }
 0x778   : > { %2849 = vmax.xlane.f32.xlu1 %v17134_v56  ;;  %v8039_v13 = vpop.f32.mrb[81].mxu0  ;;  %v2880_v56 = vsub.f32 %v17137_v8, %v17136_v5  ;;  %v2881_v49 = vsub.f32 %v17138_v22, %v17136_v5 }
 0x779   : > { %v8040_v40 = vadd.f32 %v8039_v13, %v8038_v43  ;;  %v8041_v29 = vpop.f32.mrb[82].mxu0  ;;  %v17143_v43 = vld [vmem:[#allocation124_spill] sm:$0xff] }
 0x77a   : > { %v8042_v17 = vpop.f32.mrb[83].mxu0  ;;  %v2879_v13 = vsub.f32 %v17143_v43, %v17140_v30  ;;  %v2970_v5 = vmul.f32 1.442695, %v2880_v56  ;;  %v2972_v9 = vmul.f32 1.442695, %v2881_v49  ;;  %v17146_v43 = vld [vmem:[#allocation128_spill] sm:$0xff] }
 0x77b   : > { %v8043_v54 = vadd.f32 %v8042_v17, %v8041_v29  ;;  %v2966_v17 = vmul.f32 1.442695, %v2878_v11  ;;  %v17150_v49 = vld [vmem:[#allocation129_spill] sm:$0xff]  ;;  %v17152_v11 = vld [vmem:[#allocation80_spill] sm:$0xff] }
 0x77c   : > { %3071 = vadd.xlane.f32.xlu1 %v3070_v39  ;;  %v2968_v30 = vmul.f32 1.442695, %v2879_v13  ;;  %9422 = vpow2.f32 %v2970_v5  ;;  %v2884_v39 = vsub.f32 %v17146_v43, %v12948_v10  ;;  %v2882_v13 = vsub.f32 %v17152_v11, %v12941_v24 }
 0x77d   : > { %v2377_v34 = vpack.c.bf16 %v8043_v54, %v8040_v40  ;;  %9424 = vpow2.f32 %v2972_v9  ;;  %v13460_v15 = vpop.eup %9414 }
 0x77e   : > { %v13434_v59 = vpop.f32.mrb[244].mxu1  ;;  %17151 = vst [vmem:[#allocation182_spill] sm:$0xff] %v13460_v15  ;;  %9426 = vpow2.f32 %v2966_v17  ;;  %v13464_v5 = vpop.eup %9416  ;;  %v2978_v9 = vmul.f32 1.442695, %v2884_v39 }
 0x77f   : > { %17139 = vst [vmem:[#allocation113_spill] sm:$0xff] %v13434_v59  ;;  %v13438_v35 = vpop.f32.mrb[245].mxu1  ;;  %2393 = vst.msk [vmem:[#allocation2 + $0x20] sm:$0xff] %vm1410_vm1, %v2377_v34  ;;  %v8044_v8 = vpop.f32.mrb[84].mxu0  ;;  %v17148_v59 = vld [vmem:[#allocation60_spill] sm:$0xff]  ;;  %v2885_v34 = vsub.f32 %v17150_v49, %v12948_v10  ;;  %9428 = vpow2.f32 %v2968_v30 }
 0x780   : > { %17142 = vst [vmem:[#allocation114_spill] sm:$0xff] %v13438_v35  ;;  %v13446_v29 = vpop.f32.mrb[246].mxu1  ;;  %3074 = vadd.xlane.f32.xlu1 %v3073_v63  ;;  %v8045_v22 = vpop.f32.mrb[85].mxu0  ;;  %v17147_v35 = vld [vmem:[#allocation74_spill] sm:$0xff]  ;;  %17153 = vst [vmem:[#allocation115_spill] sm:$0xff] %v13464_v5  ;;  %v17160_v30 = vld [vmem:[#allocation160_spill] sm:$0xff]  ;;  %9430 = vpow2.f32 %v2978_v9 }
 0x781   : > { %17144 = vst [vmem:[#allocation196_spill] sm:$0xff] %v13446_v29  ;;  %v13448_v37 = vpop.f32.mrb[247].mxu1  ;;  %v8046_v40 = vadd.f32 %v8045_v22, %v8044_v8  ;;  %v8047_v54 = vpop.f32.mrb[86].mxu0  ;;  %v17149_v63 = vmax.f32 %v17147_v35, %v17148_v59  ;;  %v17154_v8 = vld [vmem:[#allocation127_spill] sm:$0xff]  ;;  %v17157_v29 = vld [vmem:[#allocation164_spill] sm:$0xff]  ;;  %v17161_v59 = vld [vmem:[#allocation161_spill] sm:$0xff] }
 0x782   : > { %17145 = vst [vmem:[#allocation198_spill] sm:$0xff] %v13448_v37  ;;  %v8048_v56 = vpop.f32.mrb[87].mxu0  ;;  %v2883_v22 = vsub.f32 %v17154_v8, %v12941_v24  ;;  %v13468_v37 = vpop.eup %9418  ;;  %v2980_v17 = vmul.f32 1.442695, %v2885_v34  ;;  %v2974_v49 = vmul.f32 1.442695, %v2882_v13  ;;  %v17162_v35 = vmax.f32 %v17160_v30, %v17161_v59 }
 0x783   : > { %v8049_v32 = vadd.f32 %v8048_v56, %v8047_v54  ;;  %17155 = vst [vmem:[#allocation116_spill] sm:$0xff] %v13468_v37  ;;  %v13473_v54 = vpop.eup %9420  ;;  %v3079_v24 = vadd.f32 %v13464_v5, %v13460_v15  ;;  %v17163_v8 = vld [vmem:[#allocation131_spill] sm:$0xff]  ;;  %v17172_v15 = vld [vmem:[#allocation96_spill] sm:$0xff] }
 0x784   : > { %3946 = vmax.xlane.f32.xlu1 %v17149_v63  ;;  %v17156_v63 = vld [vmem:[#allocation67_spill] sm:$0xff]  ;;  %17159 = vst [vmem:[#allocation152_spill] sm:$0xff] %v13473_v54  ;;  %v3076_v13 = vadd.f32 %v13473_v54, %v13468_v37  ;;  %9432 = vpow2.f32 %v2980_v17 }
 0x785   : > { %v2378_v43 = vpack.c.bf16 %v8049_v32, %v8046_v40  ;;  %v17158_v10 = vmax.f32 %v17156_v63, %v17157_v29  ;;  %v2976_v32 = vmul.f32 1.442695, %v2883_v22  ;;  %9434 = vpow2.f32 %v2974_v49  ;;  %v17165_v22 = vld [vmem:[#allocation78_spill] sm:$0xff] }
 0x786   : > { %v13487_v63 = vpop.eup %9422 }
 0x787   : > { %2394 = vst.msk [vmem:[#allocation2 + $0x28] sm:$0xff] %vm1410_vm1, %v2378_v43  ;;  %v8050_v56 = vpop.f32.mrb[88].mxu0  ;;  %v17164_v43 = vld [vmem:[#allocation132_spill] sm:$0xff]  ;;  %v13491_v9 = vpop.eup %9424  ;;  %9436 = vpow2.f32 %v2976_v32 }
 0x788   : > { %3949 = vmax.xlane.f32.xlu1 %v17158_v10  ;;  %v8051_v11 = vpop.f32.mrb[89].mxu0  ;;  %v2888_v10 = vsub.f32 %v17163_v8, %v12963_v58  ;;  %v2889_v29 = vsub.f32 %v17164_v43, %v12963_v58  ;;  %v13497_v17 = vpop.eup %9426 }
 0x789   : > { %v8052_v39 = vadd.f32 %v8051_v11, %v8050_v56  ;;  %v8053_v40 = vpop.f32.mrb[90].mxu0  ;;  %v2886_v56 = vsub.f32 %v17165_v22, %v12965_v50  ;;  %v17166_v11 = vld [vmem:[#allocation130_spill] sm:$0xff]  ;;  %17167 = vst [vmem:[#allocation154_spill] sm:$0xff] %v13497_v17  ;;  %v13502_v49 = vpop.eup %9428 }
 0x78a   : > { %2852 = vmax.xlane.f32.xlu0 %v17162_v35  ;;  %v8054_v34 = vpop.f32.mrb[91].mxu0  ;;  %v2986_v58 = vmul.f32 1.442695, %v2888_v10  ;;  %17171 = vst [vmem:[#allocation156_spill] sm:$0xff] %v13502_v49  ;;  %v2988_v22 = vmul.f32 1.442695, %v2889_v29 }
 0x78b   : > { %v8055_v35 = vadd.f32 %v8054_v34, %v8053_v40  ;;  %v17168_v40 = vld [vmem:[#allocation107_spill] sm:$0xff]  ;;  %v2982_v32 = vmul.f32 1.442695, %v2886_v56  ;;  %v3082_v56 = vadd.f32 %v13502_v49, %v13497_v17 }
 0x78c   : > { %3080 = vadd.xlane.f32.xlu1 %v3079_v24  ;;  %v2887_v24 = vsub.f32 %v17166_v11, %v12965_v50  ;;  %v17169_v34 = vld [vmem:[#allocation71_spill] sm:$0xff]  ;;  %9438 = vpow2.f32 %v2986_v58 }
 0x78d   : > { %v2379_v8 = vpack.c.bf16 %v8055_v35, %v8052_v39  ;;  %v17170_v43 = vmax.f32 %v17168_v40, %v17169_v34  ;;  %v17173_v50 = vld [vmem:[#allocation79_spill] sm:$0xff]  ;;  %v3085_v35 = vadd.f32 %v13491_v9, %v13487_v63  ;;  %9440 = vpow2.f32 %v2988_v22 }
 0x78e   : > { %3077 = vadd.xlane.f32.xlu0 %v3076_v13  ;;  %v17174_v39 = vmax.f32 %v17172_v15, %v17173_v50  ;;  %v2984_v10 = vmul.f32 1.442695, %v2887_v24  ;;  %v13516_v15 = vpop.eup %9430  ;;  %9442 = vpow2.f32 %v2982_v32  ;;  %v17185_v49 = vld [vmem:[#allocation75_spill] sm:$0xff] }
 0x78f   : > { %v13495_v37 = vpop.xlane.xlu1 %2837  ;;  %2395 = vst.msk [vmem:[#allocation2 + $0x30] sm:$0xff] %vm1410_vm1, %v2379_v8  ;;  %v8056_v13 = vpop.f32.mrb[92].mxu0  ;;  %v17176_v8 = vld [vmem:[#allocation135_spill] sm:$0xff]  ;;  %17177 = vst [vmem:[#allocation157_spill] sm:$0xff] %v13516_v15 }
 0x790   : > { %3955 = vmax.xlane.f32.xlu1 %v17170_v43  ;;  %v8057_v54 = vpop.f32.mrb[93].mxu0  ;;  %v17175_v43 = vld [vmem:[#allocation134_spill] sm:$0xff]  ;;  %v13520_v58 = vpop.eup %9432  ;;  %9444 = vpow2.f32 %v2984_v10 }
 0x791   : > { %v8058_v11 = vadd.f32 %v8057_v54, %v8056_v13  ;;  %v8059_v5 = vpop.f32.mrb[94].mxu0  ;;  %v2892_v29 = vsub.f32 %v17175_v43, %v12993_v23  ;;  %v17178_v54 = vld [vmem:[#allocation83_spill] sm:$0xff]  ;;  %v13524_v22 = vpop.eup %9434 }
 0x792   : > { %3952 = vmax.xlane.f32.xlu0 %v17174_v39  ;;  %v8060_v40 = vpop.f32.mrb[95].mxu0  ;;  %v2893_v39 = vsub.f32 %v17176_v8, %v12993_v23  ;;  %v2890_v24 = vsub.f32 %v17178_v54, %v12987_v25  ;;  %17180 = vst [vmem:[#allocation186_spill] sm:$0xff] %v13524_v22  ;;  %v17181_v23 = vld [vmem:[#allocation98_spill] sm:$0xff]  ;;  %v13529_v32 = vpop.eup %9436 }
 0x793   : > { %v3295_v34 = vpop.permute.xlu1 %3294  ;;  %v8061_v50 = vadd.f32 %v8060_v40, %v8059_v5  ;;  %v2994_v17 = vmul.f32 1.442695, %v2892_v29  ;;  %v17182_v5 = vld [vmem:[#allocation84_spill] sm:$0xff]  ;;  %17184 = vst [vmem:[#allocation117_spill] sm:$0xff] %v13529_v32 }
 0x794   : > { %3086 = vadd.xlane.f32.xlu1 %v3085_v35  ;;  %8167 = vmatpush3.bf16.msra.mxu0 %v3295_v34  ;;  %v17179_v34 = vld [vmem:[#allocation133_spill] sm:$0xff]  ;;  %v17183_v40 = vmax.f32 %v17181_v23, %v17182_v5  ;;  %v2996_v8 = vmul.f32 1.442695, %v2893_v39  ;;  %v2990_v10 = vmul.f32 1.442695, %v2890_v24  ;;  %v3088_v24 = vadd.f32 %v13529_v32, %v13524_v22 }
 0x795   : > { %v2891_v13 = vsub.f32 %v17179_v34, %v12987_v25  ;;  %v2380_v35 = vpack.c.bf16 %v8061_v50, %v8058_v11  ;;  %v17186_v25 = vld [vmem:[#allocation81_spill] sm:$0xff]  ;;  %v3091_v11 = vadd.f32 %v13520_v58, %v13516_v15  ;;  %9446 = vpow2.f32 %v2994_v17  ;;  %v17191_v17 = vld [vmem:[#allocation136_spill] sm:$0xff] }
 0x796   : > { %3083 = vadd.xlane.f32.xlu0 %v3082_v56  ;;  %v17187_v50 = vmax.f32 %v17185_v49, %v17186_v25  ;;  %9448 = vpow2.f32 %v2996_v8  ;;  %v13545_v49 = vpop.eup %9438 }
 0x797   : > { %v3313_v43 = vpop.permute.xlu1 %3312  ;;  %2396 = vst.msk [vmem:[#allocation2 + $0x38] sm:$0xff] %vm1410_vm1, %v2380_v35  ;;  %v8062_v56 = vpop.f32.mrb[96].mxu0  ;;  %v2992_v29 = vmul.f32 1.442695, %v2891_v13  ;;  %v17189_v35 = vld [vmem:[#allocation139_spill] sm:$0xff]  ;;  %17190 = vst [vmem:[#allocation118_spill] sm:$0xff] %v13545_v49  ;;  %9450 = vpow2.f32 %v2990_v10  ;;  %v2894_v13 = vsub.f32 %v17191_v17, %v13037_v27 }
 0x798   : > { %3961 = vmax.xlane.f32.xlu1 %v17183_v40  ;;  %8168 = vmatprep.subr.bf16.mxu0 %v3313_v43  ;;  %v8063_v54 = vpop.f32.mrb[97].mxu0  ;;  %v17188_v43 = vld [vmem:[#allocation138_spill] sm:$0xff]  ;;  %v17199_v17 = vld [vmem:[#allocation95_spill] sm:$0xff] }
 0x799   : > { %v8064_v34 = vadd.f32 %v8063_v54, %v8062_v56  ;;  %v8065_v5 = vpop.f32.mrb[98].mxu0  ;;  %v2896_v40 = vsub.f32 %v17188_v43, %v13013_v51  ;;  %v13549_v56 = vpop.eup %9440  ;;  %9452 = vpow2.f32 %v2992_v29  ;;  %v17192_v54 = vld [vmem:[#allocation137_spill] sm:$0xff] }
 0x79a   : > { %3958 = vmax.xlane.f32.xlu0 %v17187_v50  ;;  %v8066_v39 = vpop.f32.mrb[99].mxu0  ;;  %v2897_v50 = vsub.f32 %v17189_v35, %v13013_v51  ;;  %v13553_v22 = vpop.eup %9442  ;;  %v17194_v51 = vld [vmem:[#allocation99_spill] sm:$0xff]  ;;  %v17198_v29 = vld [vmem:[#allocation165_spill] sm:$0xff] }
 0x79b   : > { %v8067_v25 = vadd.f32 %v8066_v39, %v8065_v5  ;;  %17193 = vst [vmem:[#allocation184_spill] sm:$0xff] %v13553_v22  ;;  %v3002_v8 = vmul.f32 1.442695, %v2896_v40  ;;  %v17195_v5 = vld [vmem:[#allocation167_spill] sm:$0xff]  ;;  %v13560_v10 = vpop.eup %9444  ;;  %v17200_v15 = vmax.f32 %v17198_v29, %v17199_v17 }
 0x79c   : > { %3092 = vadd.xlane.f32.xlu1 %v3091_v11  ;;  %v2895_v11 = vsub.f32 %v17192_v54, %v13037_v27  ;;  %v17196_v39 = vmax.f32 %v17194_v51, %v17195_v5  ;;  %17197 = vst [vmem:[#allocation119_spill] sm:$0xff] %v13560_v10  ;;  %v3004_v35 = vmul.f32 1.442695, %v2897_v50  ;;  %v3097_v27 = vadd.f32 %v13549_v56, %v13545_v49  ;;  %v17202_v50 = vld [vmem:[#allocation144_spill] sm:$0xff]  ;;  %v17205_v51 = vld [vmem:[#allocation173_spill] sm:$0xff] }
 0x79d   : > { %v13539_v23 = vpop.xlane.xlu0 %2840  ;;  %v2381_v43 = vpack.c.bf16 %v8067_v25, %v8064_v34  ;;  %9454 = vpow2.f32 %v3002_v8  ;;  %v17201_v34 = vld [vmem:[#allocation143_spill] sm:$0xff]  ;;  %v3094_v54 = vadd.f32 %v13560_v10, %v13553_v22  ;;  %v17209_v10 = vld [vmem:[#allocation172_spill] sm:$0xff] }
 0x79e   : > { %3089 = vadd.xlane.f32.xlu0 %v3088_v24  ;;  %v2998_v24 = vmul.f32 1.442695, %v2894_v13  ;;  %v3000_v25 = vmul.f32 1.442695, %v2895_v11  ;;  %v2900_v40 = vsub.f32 %v17201_v34, %v13279_v53  ;;  %9456 = vpow2.f32 %v3004_v35 }
 0x79f   : > { %2397 = vst.msk [vmem:[#allocation2 + $0x40] sm:$0xff] %vm1410_vm1, %v2381_v43  ;;  %v2901_v13 = vsub.f32 %v17202_v50, %v13279_v53  ;;  %v17206_v53 = vld [vmem:[#allocation175_spill] sm:$0xff] }
 0x7a0   : > { %3967 = vmax.xlane.f32.xlu1 %v17196_v39  ;;  %v13576_v39 = vpop.eup %9446  ;;  %9458 = vpow2.f32 %v2998_v24  ;;  %v3010_v35 = vmul.f32 1.442695, %v2900_v40  ;;  %v17207_v50 = vmax.f32 %v17205_v51, %v17206_v53  ;;  %v2904_v40 = vsub.f32 %v12569_v26, %v13345_v55  ;;  %v17234_v51 = vld [vmem:[#allocation194_spill] sm:$0xff] }
 0x7a1   : > { %v13555_v32 = vpop.xlane.xlu0 %3059  ;;  %v13580_v8 = vpop.eup %9448  ;;  %9460 = vpow2.f32 %v3000_v25  ;;  %v3012_v24 = vmul.f32 1.442695, %v2901_v13  ;;  %v2903_v26 = vsub.f32 %v17010_v57, %v13375_v33  ;;  %v2908_v57 = vsub.f32 %v17081_v18, %v13539_v23 }
 0x7a2   : > { %3964 = vmax.xlane.f32.xlu0 %v17200_v15  ;;  %v17203_v15 = vld [vmem:[#allocation140_spill] sm:$0xff]  ;;  %v13584_v5 = vpop.eup %9450  ;;  %9462 = vpow2.f32 %v3010_v35  ;;  %v3018_v35 = vmul.f32 1.442695, %v2904_v40  ;;  %v2909_v40 = vsub.f32 %v17082_v44, %v13539_v23  ;;  %v2907_v18 = vsub.f32 %v17070_v42, %v13495_v37 }
 0x7a3   : > { %v2898_v11 = vsub.f32 %v17203_v15, %v13235_v16  ;;  %v13589_v17 = vpop.eup %9452  ;;  %v3315_v15 = vpop.permute.xlu1 %3314  ;;  %9464 = vpow2.f32 %v3012_v24  ;;  %v17212_v24 = vld [vmem:[#allocation180_spill] sm:$0xff]  ;;  %v3016_v53 = vmul.f32 1.442695, %v2903_v26 }
 0x7a4   : > { %3098 = vadd.xlane.f32.xlu1 %v3097_v27  ;;  %v17204_v27 = vld [vmem:[#allocation141_spill] sm:$0xff]  ;;  %v3100_v13 = vadd.f32 %v13589_v17, %v13584_v5  ;;  %v3028_v23 = vmul.f32 1.442695, %v2909_v40 }
 0x7a5   : > { %v13574_v43 = vpop.xlane.xlu0 %3062  ;;  %v2899_v34 = vsub.f32 %v17204_v27, %v13235_v16  ;;  %v3006_v22 = vmul.f32 1.442695, %v2898_v11  ;;  %v3103_v16 = vadd.f32 %v13580_v8, %v13576_v39  ;;  %v2905_v11 = vsub.f32 %v12575_v1, %v13345_v55 }
 0x7a6   : > { %3095 = vadd.xlane.f32.xlu0 %v3094_v54  ;;  %v17208_v54 = vld [vmem:[#allocation171_spill] sm:$0xff] }
 0x7a7   : > { %v17210_v49 = vmax.f32 %v17208_v54, %v17209_v10  ;;  %v3008_v25 = vmul.f32 1.442695, %v2899_v34  ;;  %v13602_v27 = vpop.eup %9454  ;;  %9466 = vpow2.f32 %v3006_v22  ;;  %v3020_v55 = vmul.f32 1.442695, %v2905_v11 }
 0x7a8   : > { %3973 = vmax.xlane.f32.xlu1 %v17207_v50  ;;  %v17211_v50 = vld [vmem:[#allocation91_spill] sm:$0xff] }
 0x7a9   : > { %v3297_v29 = vpop.permute.xlu0 %3296  ;;  %9468 = vpow2.f32 %v3008_v25 }
 0x7aa   : > { %3970 = vmax.xlane.f32.xlu0 %v17210_v49  ;;  %8169 = vmatpush3.bf16.msra.mxu0 %v3297_v29  ;;  %v2902_v49 = vsub.f32 %v17009_v21, %v13375_v33  ;;  %v13606_v29 = vpop.eup %9456  ;;  %v17215_v21 = vld [vmem:[#allocation88_spill] sm:$0xff]  ;;  %9470 = vpow2.f32 %v3018_v35 }
 0x7ab   : > { %8170 = vmatprep.subr.bf16.mxu0 %v3315_v15  ;;  %v13610_v34 = vpop.eup %9458  ;;  %v17213_v15 = vmax.f32 %v17211_v50, %v17212_v24  ;;  %v3109_v25 = vadd.f32 %v13606_v29, %v13602_v27  ;;  %9472 = vpow2.f32 %v3020_v55  ;;  %v17217_v55 = vld [vmem:[#allocation101_spill] sm:$0xff]  ;;  %v17220_v24 = vld [vmem:[#allocation183_spill] sm:$0xff]  ;;  %v3024_v50 = vmul.f32 1.442695, %v2907_v18 }
 0x7ac   : > { %3104 = vadd.xlane.f32.xlu1 %v3103_v16  ;;  %v13615_v1 = vpop.eup %9460  ;;  %v3014_v22 = vmul.f32 1.442695, %v2902_v49  ;;  %v17214_v16 = vld [vmem:[#allocation177_spill] sm:$0xff]  ;;  %v2906_v49 = vsub.f32 %v17069_v31, %v13495_v37  ;;  %v17221_v31 = vld [vmem:[#allocation100_spill] sm:$0xff] }
 0x7ad   : > { %v3106_v33 = vadd.f32 %v13615_v1, %v13610_v34  ;;  %v13628_v11 = vpop.eup %9462 }
 0x7ae   : > { %3101 = vadd.xlane.f32.xlu0 %v3100_v13  ;;  %v17216_v13 = vmax.f32 %v17214_v16, %v17215_v21  ;;  %9474 = vpow2.f32 %v3014_v22  ;;  %v13632_v26 = vpop.eup %9464  ;;  %v3022_v22 = vmul.f32 1.442695, %v2906_v49  ;;  %v17223_v49 = vld [vmem:[#allocation189_spill] sm:$0xff] }
 0x7af   : > { %9476 = vpow2.f32 %v3016_v53  ;;  %v3115_v53 = vadd.f32 %v13632_v26, %v13628_v11 }
 0x7b0   : > { %3979 = vmax.xlane.f32.xlu1 %v17213_v15  ;;  %v3026_v15 = vmul.f32 1.442695, %v2908_v57 }
 0x7b1   : > { %v13636_v35 = vpop.eup %9466 }
 0x7b2   : > { %3976 = vmax.xlane.f32.xlu0 %v17216_v13  ;;  %v17218_v13 = vld [vmem:[#allocation185_spill] sm:$0xff]  ;;  %9478 = vpow2.f32 %v3026_v15 }
 0x7b3   : > { %v13641_v44 = vpop.eup %9468  ;;  %9480 = vpow2.f32 %v3028_v23 }
 0x7b4   : > { %3110 = vadd.xlane.f32.xlu1 %v3109_v25  ;;  %v17219_v25 = vmax.f32 %v17217_v55, %v17218_v13  ;;  %v3112_v42 = vadd.f32 %v13641_v44, %v13636_v35  ;;  %v13650_v37 = vpop.eup %9470  ;;  %9482 = vpow2.f32 %v3022_v22  ;;  %v17227_v13 = vld [vmem:[#allocation188_spill] sm:$0xff] }
 0x7b5   : > { %v13652_v57 = vpop.eup %9472  ;;  %9484 = vpow2.f32 %v3024_v50 }
 0x7b6   : > { %3107 = vadd.xlane.f32.xlu0 %v3106_v33  ;;  %v17222_v33 = vmax.f32 %v17220_v24, %v17221_v31  ;;  %v3121_v22 = vadd.f32 %v13652_v57, %v13650_v37 }
 0x7b8   : > { %3985 = vmax.xlane.f32.xlu1 %v17219_v25  ;;  %v13654_v40 = vpop.eup %9474  ;;  %v17224_v25 = vld [vmem:[#allocation190_spill] sm:$0xff] }
 0x7b9   : > { %v13659_v18 = vpop.eup %9476 }
 0x7ba   : > { %3982 = vmax.xlane.f32.xlu0 %v17222_v33  ;;  %v17225_v33 = vmax.f32 %v17223_v49, %v17224_v25  ;;  %v3118_v24 = vadd.f32 %v13659_v18, %v13654_v40 }
 0x7bc   : > { %3116 = vadd.xlane.f32.xlu1 %v3115_v53  ;;  %v17226_v53 = vld [vmem:[#allocation187_spill] sm:$0xff] }
 0x7bd   : > { %v17228_v55 = vmax.f32 %v17226_v53, %v17227_v13  ;;  %v17231_v53 = vld [vmem:[#allocation197_spill] sm:$0xff] }
 0x7be   : > { %3113 = vadd.xlane.f32.xlu0 %v3112_v42 }
 0x7c0   : > { %3991 = vmax.xlane.f32.xlu1 %v17225_v33  ;;  %v13668_v33 = vpop.eup %9478 }
 0x7c1   : > { %17229 = vst [vmem:[#allocation120_spill] sm:$0xff] %v13668_v33  ;;  %v13670_v49 = vpop.eup %9480 }
 0x7c2   : > { %v8068_v15 = vpop.f32.mrb[100].mxu0  ;;  %3988 = vmax.xlane.f32.xlu0 %v17228_v55  ;;  %v13672_v13 = vpop.eup %9482  ;;  %v17230_v55 = vld [vmem:[#allocation195_spill] sm:$0xff] }
 0x7c3   : > { %v8069_v23 = vpop.f32.mrb[101].mxu0  ;;  %v17232_v16 = vmax.f32 %v17230_v55, %v17231_v53 }
 0x7c4   : > { %v8070_v42 = vadd.f32 %v8069_v23, %v8068_v15  ;;  %v8071_v31 = vpop.f32.mrb[102].mxu0  ;;  %3122 = vadd.xlane.f32.xlu1 %v3121_v22  ;;  %v13677_v15 = vpop.eup %9484  ;;  %v17233_v22 = vld [vmem:[#allocation192_spill] sm:$0xff] }
 0x7c5   : > { %v8072_v50 = vpop.f32.mrb[103].mxu0 }
 0x7c6   : > { %v8073_v25 = vadd.f32 %v8072_v50, %v8071_v31  ;;  %3119 = vadd.xlane.f32.xlu0 %v3118_v24  ;;  %v17235_v31 = vmax.f32 %v17233_v22, %v17234_v51  ;;  %v3127_v24 = vadd.f32 %v13670_v49, %v13668_v33  ;;  %v17236_v33 = vmax.f32 %v12933_v38, %v12937_v6 }
 0x7c8   : > { %v2382_v21 = vpack.c.bf16 %v8073_v25, %v8070_v42  ;;  %3997 = vmax.xlane.f32.xlu1 %v17232_v16  ;;  %v3124_v16 = vadd.f32 %v13677_v15, %v13672_v13 }
 0x7ca   : > { %2398 = vst.msk [vmem:[#allocation2 + $0x48] sm:$0xff] %vm1410_vm1, %v2382_v21  ;;  %v8074_v23 = vpop.f32.mrb[104].mxu0  ;;  %3994 = vmax.xlane.f32.xlu0 %v17235_v31 }
 0x7cb   : > { %v8075_v50 = vpop.f32.mrb[105].mxu0 }
 0x7cc   : > { %v8076_v25 = vadd.f32 %v8075_v50, %v8074_v23  ;;  %v8077_v42 = vpop.f32.mrb[106].mxu0  ;;  %3128 = vadd.xlane.f32.xlu1 %v3127_v24  ;;  %v2844_v54 = vpop.xlane.xlu1 %2843 }
 0x7cd   : > { %v8078_v10 = vpop.f32.mrb[107].mxu0  ;;  %v2910_v21 = vsub.f32 %v17107_v4, %v2844_v54  ;;  %v2911_v55 = vsub.f32 %v17108_v28, %v2844_v54 }
 0x7ce   : > { %v8079_v53 = vadd.f32 %v8078_v10, %v8077_v42  ;;  %3125 = vadd.xlane.f32.xlu0 %v3124_v16  ;;  %v17237_v10 = vld [vmem:[#allocation201_spill] sm:$0xff] }
 0x7cf   : > { %v3030_v31 = vmul.f32 1.442695, %v2910_v21  ;;  %v3032_v22 = vmul.f32 1.442695, %v2911_v55  ;;  %v17238_v4 = vmax.f32 %v12923_v3, %v17237_v10 }
 0x7d0   : > { %v2383_v51 = vpack.c.bf16 %v8079_v53, %v8076_v25  ;;  %4003 = vmax.xlane.f32.xlu1 %v17236_v33  ;;  %v3299_v23 = vpop.permute.xlu1 %3298 }
 0x7d1   : > { %9486 = vpow2.f32 %v3030_v31  ;;  %8171 = vmatpush3.bf16.msra.mxu0 %v3299_v23 }
 0x7d2   : > { %2399 = vst.msk [vmem:[#allocation2 + $0x50] sm:$0xff] %vm1410_vm1, %v2383_v51  ;;  %v8080_v50 = vpop.f32.mrb[108].mxu0  ;;  %9488 = vpow2.f32 %v3032_v22  ;;  %4000 = vmax.xlane.f32.xlu0 %v17238_v4 }
 0x7d3   : > { %v8081_v28 = vpop.f32.mrb[109].mxu0  ;;  %9490 = vrcp.f32 %v13397_v45 }
 0x7d4   : > { %v8082_v54 = vadd.f32 %v8081_v28, %v8080_v50  ;;  %v8083_v53 = vpop.f32.mrb[110].mxu0  ;;  %v3317_v55 = vpop.permute.xlu1 %3316  ;;  %9492 = vrcp.f32 %v13385_v36 }
 0x7d5   : > { %v8084_v24 = vpop.f32.mrb[111].mxu0  ;;  %8172 = vmatprep.subr.bf16.mxu0 %v3317_v55  ;;  %9494 = vrcp.f32 %v13574_v43 }
 0x7d6   : > { %v8085_v25 = vadd.f32 %v8084_v24, %v8083_v53 }
 0x7d8   : > { %v2384_v42 = vpack.c.bf16 %v8085_v25, %v8082_v54 }
 0x7da   : > { %2400 = vst.msk [vmem:[#allocation2 + $0x58] sm:$0xff] %vm1410_vm1, %v2384_v42  ;;  %v8086_v51 = vpop.f32.mrb[112].mxu0  ;;  %v2847_v33 = vpop.xlane.xlu0 %2846 }
 0x7db   : > { %v8087_v22 = vpop.f32.mrb[113].mxu0  ;;  %v13699_v16 = vpop.eup %9486  ;;  %v2912_v21 = vsub.f32 %v17111_v0, %v2847_v33  ;;  %v2913_v31 = vsub.f32 %v17112_v7, %v2847_v33  ;;  %v17239_v33 = vld [vmem:[#allocation204_spill] sm:$0xff] }
 0x7dc   : > { %v8088_v23 = vadd.f32 %v8087_v22, %v8086_v51  ;;  %v8089_v50 = vpop.f32.mrb[114].mxu0  ;;  %v13703_v4 = vpop.eup %9488  ;;  %v17240_v22 = vld [vmem:[#allocation102_spill] sm:$0xff] }
 0x7dd   : > { %v8090_v28 = vpop.f32.mrb[115].mxu0  ;;  %v3034_v54 = vmul.f32 1.442695, %v2912_v21  ;;  %v3036_v45 = vmul.f32 1.442695, %v2913_v31  ;;  %v3130_v24 = vadd.f32 %v13703_v4, %v13699_v16  ;;  %v9491_v7 = vpop.eup %9490  ;;  %v17241_v21 = vmax.f32 %v17239_v33, %v17240_v22 }
 0x7de   : > { %v8091_v53 = vadd.f32 %v8090_v28, %v8089_v50  ;;  %v3066_v36 = vpop.xlane.xlu0 %3065  ;;  %v9493_v43 = vpop.eup %9492 }
 0x7df   : > { %9496 = vpow2.f32 %v3034_v54  ;;  %3131 = vadd.xlane.f32.xlu0 %v3130_v24  ;;  %v9495_v24 = vpop.eup %9494 }
 0x7e0   : > { %v2385_v55 = vpack.c.bf16 %v8091_v53, %v8088_v23  ;;  %9498 = vpow2.f32 %v3036_v45  ;;  %v3179_v23 = vmul.f32 %v9491_v7, %v13153_v61  ;;  %v3181_v53 = vmul.f32 %v9493_v43, %v13102_v14 }
 0x7e1   : > { %9500 = vrcp.f32 %v13555_v32 }
 0x7e2   : > { %2401 = vst.msk [vmem:[#allocation2 + $0x60] sm:$0xff] %vm1410_vm1, %v2385_v55  ;;  %v8092_v0 = vpop.f32.mrb[116].mxu0  ;;  %v3069_v25 = vpop.xlane.xlu0 %3068 }
 0x7e3   : > { %v8093_v42 = vpop.f32.mrb[117].mxu0  ;;  %4006 = vmax.xlane.f32.xlu0 %v17241_v21  ;;  %9502 = vrcp.f32 %v3069_v25  ;;  %v17242_v21 = vpack.c.bf16 %v13355_v47, %v13352_v41  ;;  %v3180_v41 = vmul.f32 %v9493_v43, %v13098_v62 }
 0x7e4   : > { %v8094_v51 = vadd.f32 %v8093_v42, %v8092_v0  ;;  %v8095_v31 = vpop.f32.mrb[118].mxu0  ;;  %v3241_v0 = vpack.c.bf16 %v3181_v53, %v3179_v23  ;;  %9504 = vrcp.f32 %v3066_v36 }
 0x7e5   : > { %v8096_v50 = vpop.f32.mrb[119].mxu0 }
 0x7e6   : > { %v8097_v28 = vadd.f32 %v8096_v50, %v8095_v31  ;;  %v3301_v54 = vpop.permute.xlu0 %3300 }
 0x7e7   : > { %8173 = vmatpush3.bf16.msra.mxu0 %v3301_v54  ;;  %v3185_v54 = vmul.f32 %v9495_v24, %v13314_v48 }
 0x7e8   : > { %v2386_v45 = vpack.c.bf16 %v8097_v28, %v8094_v51  ;;  %v3178_v28 = vmul.f32 %v9491_v7, %v13151_v60  ;;  %v17246_v60 = vld [vmem:[#allocation205_spill] sm:$0xff]  ;;  %v17247_v7 = vld [vmem:[#allocation103_spill] sm:$0xff] }
 0x7e9   : > { %v13715_v32 = vpop.eup %9496  ;;  %v17248_v48 = vmax.f32 %v17246_v60, %v17247_v7  ;;  %v17271_v60 = vld [vmem:[#allocation60_spill] sm:$0xff] }
 0x7ea   : > { %2402 = vst.msk [vmem:[#allocation2 + $0x68] sm:$0xff] %vm1410_vm1, %v2386_v45  ;;  %v8098_v55 = vpop.f32.mrb[120].mxu0  ;;  %v13718_v42 = vpop.eup %9498  ;;  %3367 = vmatmul.mubr.bf16.vlgmr.msra.gmra.mrb[128].mxu0 %v17242_v21  ;;  %v3240_v21 = vpack.c.bf16 %v3180_v41, %v3178_v28  ;;  %v3184_v41 = vmul.f32 %v9495_v24, %v13309_v19  ;;  %v17252_v24 = vld [vmem:[#allocation158_spill] sm:$0xff] }
 0x7eb   : > { %v8099_v61 = vpop.f32.mrb[121].mxu0  ;;  %3374 = vmatprep.mubr.bf16.mxu0 %v3241_v0  ;;  %v3133_v14 = vadd.f32 %v13718_v42, %v13715_v32  ;;  %v9501_v25 = vpop.eup %9500 }
 0x7ec   : > { %v8100_v51 = vadd.f32 %v8099_v61, %v8098_v55  ;;  %v8101_v31 = vpop.f32.mrb[122].mxu0  ;;  %v3183_v53 = vmul.f32 %v9501_v25, %v13290_v20  ;;  %v3182_v55 = vmul.f32 %v9501_v25, %v13286_v52 }
 0x7ed   : > { %v8102_v50 = vpop.f32.mrb[123].mxu0  ;;  %3134 = vadd.xlane.f32.xlu1 %v3133_v14  ;;  %v9503_v43 = vpop.eup %9502 }
 0x7ee   : > { %v8103_v23 = vadd.f32 %v8102_v50, %v8101_v31  ;;  %v3243_v62 = vpack.c.bf16 %v3185_v54, %v3183_v53  ;;  %v9505_v28 = vpop.eup %9504  ;;  %v3242_v53 = vpack.c.bf16 %v3184_v41, %v3182_v55 }
 0x7ef   : > { %v13727_v36 = vpop.f32.mrb[248].mxu1  ;;  %v3187_v54 = vmul.f32 %v9505_v28, %v13370_v12 }
 0x7f0   : > { %17243 = vst [vmem:[#allocation193_spill] sm:$0xff] %v13727_v36  ;;  %v2387_v47 = vpack.c.bf16 %v8103_v23, %v8100_v51  ;;  %v13730_v45 = vpop.f32.mrb[249].mxu1 }
 0x7f1   : > { %17244 = vst [vmem:[#allocation122_spill] sm:$0xff] %v13730_v45  ;;  %v13735_v0 = vpop.f32.mrb[250].mxu1  ;;  %4009 = vmax.xlane.f32.xlu1 %v17248_v48  ;;  %v3189_v48 = vmul.f32 %v9503_v43, %v13381_v2 }
 0x7f2   : > { %17245 = vst [vmem:[#allocation123_spill] sm:$0xff] %v13735_v0  ;;  %2403 = vst.msk [vmem:[#allocation2 + $0x70] sm:$0xff] %vm1410_vm1, %v2387_v47  ;;  %v8104_v61 = vpop.f32.mrb[124].mxu0  ;;  %v13741_v31 = vpop.f32.mrb[251].mxu1  ;;  %3375 = vmatmul.mubr.bf16.gmra.mrb[132].mxu0 %v3240_v21  ;;  %v17263_v0 = vld [vmem:[#allocation207_spill] sm:$0xff] }
 0x7f3   : > { %17249 = vst [vmem:[#allocation191_spill] sm:$0xff] %v13741_v31  ;;  %v8105_v51 = vpop.f32.mrb[125].mxu0  ;;  %3382 = vmatprep.mubr.bf16.mxu0 %v3243_v62  ;;  %v3245_v21 = vpack.c.bf16 %v3189_v48, %v3187_v54 }
 0x7f4   : > { %v8106_v14 = vadd.f32 %v8105_v51, %v8104_v61  ;;  %v8107_v50 = vpop.f32.mrb[126].mxu0  ;;  %v17250_v61 = vld [vmem:[#allocation87_spill] sm:$0xff]  ;;  %v17251_v51 = vld [vmem:[#allocation150_spill] sm:$0xff] }
 0x7f5   : > { %v8108_v23 = vpop.f32.mrb[127].mxu0  ;;  %v3188_v62 = vmul.f32 %v9503_v43, %v17250_v61  ;;  %v3186_v20 = vmul.f32 %v9505_v28, %v17251_v51  ;;  %v17255_v51 = vld [vmem:[#allocation178_spill] sm:$0xff] }
 0x7f6   : > { %v8109_v47 = vadd.f32 %v8108_v23, %v8107_v50  ;;  %v17253_v50 = vld [vmem:[#allocation159_spill] sm:$0xff] }
 0x7f7   : > { %v3244_v31 = vpack.c.bf16 %v3188_v62, %v3186_v20 }
 0x7f8   : > { %v2388_v45 = vpack.c.bf16 %v8109_v47, %v8106_v14 }
 0x7fa   : > { %2404 = vst.msk [vmem:[#allocation2 + $0x78] sm:$0xff] %vm1410_vm1, %v2388_v45  ;;  %3383 = vmatmul.mubr.bf16.gmra.mrb[136].mxu0 %v3242_v53 }
 0x7fb   : > { %3390 = vmatprep.mubr.bf16.mxu0 %v3245_v21  ;;  %v17254_v21 = vld [vmem:[#allocation85_spill] sm:$0xff] }
 0x802   : > { %3391 = vmatmul.mubr.bf16.gmra.mrb[140].mxu0 %v3244_v31 }
 0x805   : > { %v2850_v19 = vpop.xlane.xlu1 %2849 }
 0x806   : > { %v2914_v2 = vsub.f32 %v17252_v24, %v2850_v19  ;;  %v2915_v52 = vsub.f32 %v17253_v50, %v2850_v19  ;;  %v17256_v24 = vld [vmem:[#allocation181_spill] sm:$0xff] }
 0x808   : > { %v3038_v25 = vmul.f32 1.442695, %v2914_v2  ;;  %v3040_v14 = vmul.f32 1.442695, %v2915_v52 }
 0x809   : > { %v3072_v12 = vpop.xlane.xlu1 %3071 }
 0x80a   : > { %9506 = vpow2.f32 %v3038_v25 }
 0x80b   : > { %9508 = vpow2.f32 %v3040_v14 }
 0x80c   : > { %9510 = vrcp.f32 %v3072_v12 }
 0x80d   : > { %v3075_v45 = vpop.xlane.xlu1 %3074 }
 0x80e   : > { %9512 = vrcp.f32 %v3075_v45 }
 0x811   : > { %v13754_v55 = vpop.xlane.xlu1 %3946 }
 0x812   : > { %v4042_v6 = vsub.f32 %v17271_v60, %v13754_v55 }
 0x814   : > { %v13756_v43 = vpop.eup %9506 }
 0x815   : > { %v13758_v28 = vpop.eup %9508  ;;  %v13760_v31 = vpop.xlane.xlu1 %3949 }
 0x816   : > { %v9511_v20 = vpop.eup %9510  ;;  %v3136_v23 = vadd.f32 %v13758_v28, %v13756_v43 }
 0x817   : > { %v2853_v41 = vpop.xlane.xlu0 %2852  ;;  %v3191_v61 = vmul.f32 %v9511_v20, %v17254_v21  ;;  %v3190_v19 = vmul.f32 %v9511_v20, %v17255_v51  ;;  %v17258_v51 = vld [vmem:[#allocation182_spill] sm:$0xff] }
 0x818   : > { %v9513_v47 = vpop.eup %9512  ;;  %v2916_v48 = vsub.f32 %v17160_v30, %v2853_v41  ;;  %v2917_v54 = vsub.f32 %v17161_v59, %v2853_v41  ;;  %3137 = vadd.xlane.f32.xlu0 %v3136_v23 }
 0x819   : > { %v3081_v53 = vpop.xlane.xlu1 %3080  ;;  %v3193_v62 = vmul.f32 %v9513_v47, %v13428_v46  ;;  %v3192_v2 = vmul.f32 %v9513_v47, %v17256_v24  ;;  %v17259_v24 = vld [vmem:[#allocation152_spill] sm:$0xff] }
 0x81a   : > { %v3042_v50 = vmul.f32 1.442695, %v2916_v48  ;;  %v3044_v52 = vmul.f32 1.442695, %v2917_v54 }
 0x81b   : > { %v3078_v25 = vpop.xlane.xlu0 %3077  ;;  %v3247_v14 = vpack.c.bf16 %v3193_v62, %v3191_v61  ;;  %v3246_v12 = vpack.c.bf16 %v3192_v2, %v3190_v19  ;;  %v17257_v61 = vld [vmem:[#allocation115_spill] sm:$0xff] }
 0x81c   : > { %9514 = vpow2.f32 %v3042_v50 }
 0x81d   : > { %9516 = vpow2.f32 %v3044_v52  ;;  %3398 = vmatprep.mubr.bf16.mxu0 %v3247_v14  ;;  %v13770_v30 = vpop.xlane.xlu1 %3955  ;;  %v17260_v52 = vld [vmem:[#allocation116_spill] sm:$0xff] }
 0x81e   : > { %9518 = vrcp.f32 %v3081_v53  ;;  %3399 = vmatmul.mubr.bf16.gmra.mrb[144].mxu0 %v3246_v12 }
 0x81f   : > { %9520 = vrcp.f32 %v3078_v25  ;;  %v13772_v59 = vpop.xlane.xlu0 %3952 }
 0x821   : > { %v3087_v46 = vpop.xlane.xlu1 %3086 }
 0x822   : > { %9522 = vrcp.f32 %v3087_v46 }
 0x823   : > { %v3084_v45 = vpop.xlane.xlu0 %3083 }
 0x824   : > { %9524 = vrcp.f32 %v3084_v45  ;;  %v17261_v45 = vld [vmem:[#allocation61_spill] sm:$0xff] }
 0x825   : > { %v13774_v20 = vpop.xlane.xlu1 %3961 }
 0x826   : > { %v13776_v23 = vpop.eup %9514 }
 0x827   : > { %v13778_v41 = vpop.eup %9516  ;;  %v13780_v47 = vpop.xlane.xlu0 %3958 }
 0x828   : > { %v9519_v48 = vpop.eup %9518  ;;  %v3139_v53 = vadd.f32 %v13778_v41, %v13776_v23 }
 0x829   : > { %v9521_v54 = vpop.eup %9520  ;;  %v3093_v21 = vpop.xlane.xlu1 %3092  ;;  %v3197_v62 = vmul.f32 %v9519_v48, %v17257_v61  ;;  %v3196_v19 = vmul.f32 %v9519_v48, %v17258_v51  ;;  %v17262_v61 = vld [vmem:[#allocation206_spill] sm:$0xff] }
 0x82a   : > { %v3195_v2 = vmul.f32 %v9521_v54, %v17259_v24  ;;  %3140 = vadd.xlane.f32.xlu1 %v3139_v53  ;;  %v3194_v25 = vmul.f32 %v9521_v54, %v17260_v52  ;;  %9526 = vrcp.f32 %v3093_v21  ;;  %v17264_v48 = vmax.f32 %v17262_v61, %v17263_v0  ;;  %v17265_v21 = vld [vmem:[#allocation156_spill] sm:$0xff] }
 0x82b   : > { %v3090_v50 = vpop.xlane.xlu0 %3089  ;;  %v17266_v52 = vld [vmem:[#allocation208_spill] sm:$0xff] }
 0x82c   : > { %v3249_v14 = vpack.c.bf16 %v3197_v62, %v3195_v2  ;;  %v3248_v12 = vpack.c.bf16 %v3196_v19, %v3194_v25  ;;  %9528 = vrcp.f32 %v3090_v50  ;;  %v9523_v53 = vpop.eup %9522  ;;  %v17267_v25 = vld [vmem:[#allocation209_spill] sm:$0xff] }
 0x82d   : > { %v13788_v46 = vpop.xlane.xlu1 %3967  ;;  %v3201_v62 = vmul.f32 %v9523_v53, %v13491_v9  ;;  %v3200_v19 = vmul.f32 %v9523_v53, %v13487_v63 }
 0x82e   : > { %3406 = vmatprep.mubr.bf16.mxu0 %v3249_v14  ;;  %4473 = vrot.lane.b32.xlu0 %v17261_v45, %s10339_s21  ;;  %v9525_v24 = vpop.eup %9524  ;;  %v17268_v14 = vmax.f32 %v17266_v52, %v17267_v25  ;;  %v17273_v25 = vld [vmem:[#allocation117_spill] sm:$0xff] }
 0x82f   : > { %3407 = vmatmul.mubr.bf16.gmra.mrb[148].mxu0 %v3248_v12  ;;  %4012 = vmax.xlane.f32.xlu1 %v17264_v48  ;;  %v13795_v51 = vpop.xlane.xlu0 %3964  ;;  %v3199_v2 = vmul.f32 %v9525_v24, %v17265_v21  ;;  %v17269_v12 = vld [vmem:[#allocation154_spill] sm:$0xff] }
 0x830   : > { %v3198_v36 = vmul.f32 %v9525_v24, %v17269_v12  ;;  %v17270_v48 = vld [vmem:[#allocation74_spill] sm:$0xff]  ;;  %v4107_v24 = vmul.f32 1.442695, %v4042_v6 }
 0x831   : > { %v3099_v54 = vpop.xlane.xlu1 %3098  ;;  %v4041_v45 = vsub.f32 %v17270_v48, %v13754_v55  ;;  %v3251_v7 = vpack.c.bf16 %v3201_v62, %v3199_v2  ;;  %v17272_v62 = vld [vmem:[#allocation157_spill] sm:$0xff]  ;;  %v17274_v55 = vld [vmem:[#allocation186_spill] sm:$0xff] }
 0x832   : > { %v3250_v38 = vpack.c.bf16 %v3200_v19, %v3198_v36  ;;  %9530 = vrcp.f32 %v3099_v54 }
 0x833   : > { %4015 = vmax.xlane.f32.xlu1 %v17268_v14  ;;  %v3096_v50 = vpop.xlane.xlu0 %3095  ;;  %3414 = vmatprep.mubr.bf16.mxu0 %v3251_v7  ;;  %v4105_v21 = vmul.f32 1.442695, %v4041_v45 }
 0x834   : > { %9532 = vrcp.f32 %v3096_v50  ;;  %v9527_v53 = vpop.eup %9526 }
 0x835   : > { %v13808_v9 = vpop.xlane.xlu1 %3973  ;;  %v3205_v48 = vmul.f32 %v9527_v53, %v13520_v58  ;;  %v3204_v2 = vmul.f32 %v9527_v53, %v17272_v62  ;;  %9534 = vpow2.f32 %v4105_v21 }
 0x836   : > { %v9529_v14 = vpop.eup %9528  ;;  %9536 = vpow2.f32 %v4107_v24 }
 0x837   : > { %3415 = vmatmul.mubr.bf16.gmra.mrb[152].mxu0 %v3250_v38  ;;  %v13810_v63 = vpop.xlane.xlu0 %3970  ;;  %v3203_v60 = vmul.f32 %v9529_v14, %v17273_v25  ;;  %v3202_v19 = vmul.f32 %v9529_v14, %v17274_v55  ;;  %v17277_v14 = vld [vmem:[#allocation118_spill] sm:$0xff] }
 0x839   : > { %v3105_v12 = vpop.xlane.xlu1 %3104  ;;  %v3253_v7 = vpack.c.bf16 %v3205_v48, %v3203_v60  ;;  %v3252_v38 = vpack.c.bf16 %v3204_v2, %v3202_v19  ;;  %v17279_v2 = vld [vmem:[#allocation119_spill] sm:$0xff] }
 0x83a   : > { %9538 = vrcp.f32 %v3105_v12 }
 0x83b   : > { %v3102_v36 = vpop.xlane.xlu0 %3101  ;;  %3422 = vmatprep.mubr.bf16.mxu0 %v3253_v7  ;;  %v17282_v7 = vld [vmem:[#allocation55_spill] sm:$0xff] }
 0x83c   : > { %9540 = vrcp.f32 %v3102_v36  ;;  %v9531_v58 = vpop.eup %9530  ;;  %v17280_v36 = vld [vmem:[#allocation184_spill] sm:$0xff] }
 0x83d   : > { %v13816_v54 = vpop.xlane.xlu1 %3979  ;;  %v3209_v21 = vmul.f32 %v9531_v58, %v13549_v56  ;;  %v3208_v24 = vmul.f32 %v9531_v58, %v17277_v14 }
 0x83e   : > { %v9533_v50 = vpop.eup %9532 }
 0x83f   : > { %3423 = vmatmul.mubr.bf16.gmra.mrb[156].mxu0 %v3252_v38  ;;  %v13818_v6 = vpop.xlane.xlu0 %3976  ;;  %v3207_v60 = vmul.f32 %v9533_v50, %v17279_v2  ;;  %v3206_v55 = vmul.f32 %v9533_v50, %v17280_v36  ;;  %v13840_v48 = vpop.eup %9534 }
 0x841   : > { %v13820_v45 = vpop.f32.mrb[252].mxu1  ;;  %v3111_v53 = vpop.xlane.xlu1 %3110  ;;  %v3255_v38 = vpack.c.bf16 %v3209_v21, %v3207_v60  ;;  %v3254_v58 = vpack.c.bf16 %v3208_v24, %v3206_v55 }
 0x842   : > { %17275 = vst [vmem:[#allocation69_spill] sm:$0xff] %v13820_v45  ;;  %v13822_v25 = vpop.f32.mrb[253].mxu1  ;;  %9542 = vrcp.f32 %v3111_v53 }
 0x843   : > { %17276 = vst [vmem:[#allocation121_spill] sm:$0xff] %v13822_v25  ;;  %v13828_v12 = vpop.f32.mrb[254].mxu1  ;;  %v3108_v62 = vpop.xlane.xlu0 %3107  ;;  %3430 = vmatprep.mubr.bf16.mxu0 %v3255_v38 }
 0x844   : > { %17278 = vst [vmem:[#allocation199_spill] sm:$0xff] %v13828_v12  ;;  %v13832_v19 = vpop.f32.mrb[255].mxu1  ;;  %4457 = vrot.lane.b32.xlu1 %v17282_v7, %s10339_s21  ;;  %v13842_v25 = vpop.eup %9536  ;;  %9544 = vrcp.f32 %v3108_v62 }
 0x845   : > { %17281 = vst [vmem:[#allocation125_spill] sm:$0xff] %v13832_v19  ;;  %v13838_v14 = vpop.xlane.xlu1 %3985  ;;  %v9539_v2 = vpop.eup %9538  ;;  %v4233_v53 = vadd.f32 %v13842_v25, %v13840_v48 }
 0x846   : > { %v9541_v36 = vpop.eup %9540  ;;  %v3213_v7 = vmul.f32 %v9539_v2, %v13580_v8  ;;  %v3212_v21 = vmul.f32 %v9539_v2, %v13576_v39  ;;  %v17283_v39 = vld [vmem:[#allocation67_spill] sm:$0xff] }
 0x847   : > { %v13844_v50 = vpop.xlane.xlu0 %3982  ;;  %3431 = vmatmul.mubr.bf16.gmra.mrb[160].mxu0 %v3254_v58  ;;  %v3211_v24 = vmul.f32 %v9541_v36, %v13589_v17  ;;  %v3210_v55 = vmul.f32 %v9541_v36, %v13584_v5  ;;  %v4043_v17 = vsub.f32 %v17283_v39, %v13760_v31  ;;  %v17284_v5 = vld [vmem:[#allocation164_spill] sm:$0xff] }
 0x848   : > { %v4044_v36 = vsub.f32 %v17284_v5, %v13760_v31 }
 0x849   : > { %v3117_v45 = vpop.xlane.xlu1 %3116  ;;  %v3257_v62 = vpack.c.bf16 %v3213_v7, %v3211_v24  ;;  %v3256_v38 = vpack.c.bf16 %v3212_v21, %v3210_v55  ;;  %v4109_v55 = vmul.f32 1.442695, %v4043_v17 }
 0x84a   : > { %9546 = vrcp.f32 %v3117_v45 }
 0x84b   : > { %v3114_v60 = vpop.xlane.xlu0 %3113  ;;  %3438 = vmatprep.mubr.bf16.mxu0 %v3257_v62  ;;  %v4111_v62 = vmul.f32 1.442695, %v4044_v36 }
 0x84c   : > { %9548 = vrcp.f32 %v3114_v60  ;;  %v9543_v8 = vpop.eup %9542 }
 0x84d   : > { %4234 = vadd.xlane.f32.xlu0 %v4233_v53  ;;  %v13852_v56 = vpop.xlane.xlu1 %3991  ;;  %v3217_v7 = vmul.f32 %v9543_v8, %v13606_v29  ;;  %v3216_v21 = vmul.f32 %v9543_v8, %v13602_v27 }
 0x84e   : > { %v9545_v2 = vpop.eup %9544 }
 0x84f   : > { %v13854_v58 = vpop.xlane.xlu0 %3988  ;;  %3439 = vmatmul.mubr.bf16.gmra.mrb[164].mxu0 %v3256_v38  ;;  %v3215_v45 = vmul.f32 %v9545_v2, %v13615_v1  ;;  %v3214_v60 = vmul.f32 %v9545_v2, %v13610_v34 }
 0x851   : > { %v3123_v19 = vpop.xlane.xlu1 %3122  ;;  %v3259_v53 = vpack.c.bf16 %v3217_v7, %v3215_v45  ;;  %v3258_v12 = vpack.c.bf16 %v3216_v21, %v3214_v60 }
 0x852   : > { %9550 = vrcp.f32 %v3123_v19 }
 0x853   : > { %v3120_v24 = vpop.xlane.xlu0 %3119  ;;  %3446 = vmatprep.mubr.bf16.mxu0 %v3259_v53 }
 0x854   : > { %9552 = vrcp.f32 %v3120_v24  ;;  %v9547_v38 = vpop.eup %9546 }
 0x855   : > { %v13864_v39 = vpop.xlane.xlu1 %3997  ;;  %9554 = vpow2.f32 %v4109_v55  ;;  %v3221_v29 = vmul.f32 %v9547_v38, %v13632_v26  ;;  %v3220_v34 = vmul.f32 %v9547_v38, %v13628_v11 }
 0x856   : > { %v9549_v27 = vpop.eup %9548  ;;  %9556 = vpow2.f32 %v4111_v62  ;;  %v17287_v62 = vld [vmem:[#allocation120_spill] sm:$0xff] }
 0x857   : > { %v13866_v31 = vpop.xlane.xlu0 %3994  ;;  %3447 = vmatmul.mubr.bf16.gmra.mrb[168].mxu0 %v3258_v12  ;;  %v3219_v1 = vmul.f32 %v9549_v27, %v13641_v44  ;;  %v3218_v17 = vmul.f32 %v9549_v27, %v13636_v35  ;;  %v17285_v35 = vld [vmem:[#allocation63_spill] sm:$0xff] }
 0x859   : > { %v3129_v8 = vpop.xlane.xlu1 %3128  ;;  %v3261_v19 = vpack.c.bf16 %v3221_v29, %v3219_v1  ;;  %v3260_v5 = vpack.c.bf16 %v3220_v34, %v3218_v17 }
 0x85a   : > { %9558 = vrcp.f32 %v3129_v8 }
 0x85b   : > { %v3126_v2 = vpop.xlane.xlu0 %3125  ;;  %3454 = vmatprep.mubr.bf16.mxu0 %v3261_v19 }
 0x85c   : > { %9560 = vrcp.f32 %v3126_v2  ;;  %v9551_v36 = vpop.eup %9550  ;;  %v17288_v2 = vld [vmem:[#allocation52_spill] sm:$0xff] }
 0x85d   : > { %v3225_v7 = vmul.f32 %v9551_v36, %v13652_v57  ;;  %v3224_v26 = vmul.f32 %v9551_v36, %v13650_v37  ;;  %v17286_v57 = vld [vmem:[#allocation64_spill] sm:$0xff]  ;;  %v13892_v8 = vpop.xlane.xlu1 %4003  ;;  %v17290_v36 = vld [vmem:[#allocation211_spill] sm:$0xff] }
 0x85e   : > { %v9553_v12 = vpop.eup %9552 }
 0x85f   : > { %3455 = vmatmul.mubr.bf16.gmra.mrb[172].mxu0 %v3260_v5  ;;  %v13874_v21 = vpop.eup %9554  ;;  %v3223_v11 = vmul.f32 %v9553_v12, %v13659_v18  ;;  %v3222_v45 = vmul.f32 %v9553_v12, %v13654_v40  ;;  %v13890_v1 = vpop.xlane.xlu0 %4000 }
 0x860   : > { %v13877_v44 = vpop.eup %9556 }
 0x861   : > { %v3263_v24 = vpack.c.bf16 %v3225_v7, %v3223_v11  ;;  %v3262_v60 = vpack.c.bf16 %v3224_v26, %v3222_v45  ;;  %v4236_v55 = vadd.f32 %v13877_v44, %v13874_v21 }
 0x863   : > { %4475 = vrot.lane.b32.xlu0 %v17285_v35, %s10339_s21  ;;  %3462 = vmatprep.mubr.bf16.mxu0 %v3263_v24 }
 0x864   : > { %v9559_v37 = vpop.eup %9558 }
 0x865   : > { %v3229_v53 = vmul.f32 %v9559_v37, %v13670_v49  ;;  %v3228_v38 = vmul.f32 %v9559_v37, %v17287_v62  ;;  %v17293_v37 = vld [vmem:[#allocation79_spill] sm:$0xff] }
 0x866   : > { %v9561_v18 = vpop.eup %9560 }
 0x867   : > { %4477 = vrot.lane.b32.xlu0 %v17286_v57, %s10339_s21  ;;  %3463 = vmatmul.mubr.bf16.gmra.mrb[176].mxu0 %v3262_v60  ;;  %v3227_v27 = vmul.f32 %v9561_v18, %v13677_v15  ;;  %v3226_v40 = vmul.f32 %v9561_v18, %v13672_v13  ;;  %v17289_v15 = vld [vmem:[#allocation210_spill] sm:$0xff]  ;;  %v17292_v60 = vld [vmem:[#allocation96_spill] sm:$0xff]  ;;  %v4046_v18 = vsub.f32 %v17293_v37, %v13772_v59 }
 0x868   : > { %4237 = vadd.xlane.f32.xlu1 %v4236_v55  ;;  %v17291_v13 = vmax.f32 %v17289_v15, %v17290_v36  ;;  %v4045_v55 = vsub.f32 %v17292_v60, %v13772_v59  ;;  %v17296_v59 = vld [vmem:[#allocation53_spill] sm:$0xff] }
 0x869   : > { %v3265_v29 = vpack.c.bf16 %v3229_v53, %v3227_v27  ;;  %v3264_v34 = vpack.c.bf16 %v3228_v38, %v3226_v40  ;;  %v17294_v53 = vld [vmem:[#allocation107_spill] sm:$0xff]  ;;  %v17302_v60 = vld [vmem:[#allocation65_spill] sm:$0xff] }
 0x86a   : > { %v4047_v62 = vsub.f32 %v17294_v53, %v13770_v30 }
 0x86b   : > { %3470 = vmatprep.mubr.bf16.mxu0 %v3265_v29 }
 0x86c   : > { %v3132_v17 = vpop.xlane.xlu0 %3131  ;;  %v4117_v27 = vmul.f32 1.442695, %v4047_v62 }
 0x86d   : > { %9562 = vrcp.f32 %v3132_v17  ;;  %v17298_v17 = vld [vmem:[#allocation212_spill] sm:$0xff] }
 0x86f   : > { %3471 = vmatmul.mubr.bf16.gmra.mrb[180].mxu0 %v3264_v34  ;;  %v17297_v34 = vld [vmem:[#allocation72_spill] sm:$0xff] }
 0x877   : > { %v9563_v19 = vpop.eup %9562 }
 0x878   : > { %v3231_v12 = vmul.f32 %v9563_v19, %v13703_v4  ;;  %v3230_v26 = vmul.f32 %v9563_v19, %v13699_v16  ;;  %v4113_v4 = vmul.f32 1.442695, %v4045_v55  ;;  %v4115_v16 = vmul.f32 1.442695, %v4046_v18 }
 0x879   : > { %4459 = vrot.lane.b32.xlu1 %v17288_v2, %s10339_s21 }
 0x87a   : > { %v3135_v49 = vpop.xlane.xlu1 %3134 }
 0x87b   : > { %9564 = vrcp.f32 %v3135_v49  ;;  %v17299_v49 = vmax.f32 %v17297_v34, %v17298_v17 }
 0x87c   : > { %9566 = vpow2.f32 %v4113_v4 }
 0x87d   : > { %9568 = vpow2.f32 %v4115_v16 }
 0x87e   : > { %9570 = vpow2.f32 %v4117_v27 }
 0x885   : > { %v9565_v5 = vpop.eup %9564 }
 0x886   : > { %4018 = vmax.xlane.f32.xlu0 %v17291_v13  ;;  %v3233_v7 = vmul.f32 %v9565_v5, %v13718_v42  ;;  %v3232_v11 = vmul.f32 %v9565_v5, %v13715_v32  ;;  %v17295_v42 = vld [vmem:[#allocation71_spill] sm:$0xff]  ;;  %v13911_v40 = vpop.eup %9566  ;;  %v17300_v13 = vld [vmem:[#allocation54_spill] sm:$0xff] }
 0x887   : > { %v4048_v38 = vsub.f32 %v17295_v42, %v13770_v30  ;;  %v13913_v29 = vpop.eup %9568 }
 0x888   : > { %v3267_v45 = vpack.c.bf16 %v3233_v7, %v3231_v12  ;;  %v3266_v24 = vpack.c.bf16 %v3232_v11, %v3230_v26  ;;  %v13920_v19 = vpop.eup %9570  ;;  %v4239_v30 = vadd.f32 %v13913_v29, %v13911_v40  ;;  %v13928_v12 = vpop.xlane.xlu0 %4006  ;;  %v17301_v26 = vld [vmem:[#allocation68_spill] sm:$0xff] }
 0x889   : > { %v4119_v32 = vmul.f32 1.442695, %v4048_v38 }
 0x88a   : > { %3478 = vmatprep.mubr.bf16.mxu0 %v3267_v45 }
 0x88b   : > { %3479 = vmatmul.mubr.bf16.gmra.mrb[184].mxu0 %v3266_v24  ;;  %9572 = vpow2.f32 %v4119_v32  ;;  %v13934_v24 = vpop.xlane.xlu1 %4009 }
 0x895   : > { %v13924_v5 = vpop.eup %9572 }
 0x896   : > { %v4242_v7 = vadd.f32 %v13924_v5, %v13920_v19 }
 0x89c   : > { %4461 = vrot.lane.b32.xlu0 %v17296_v59, %s10339_s21 }
 0x89d   : > { %4021 = vmax.xlane.f32.xlu1 %v17299_v49 }
 0x8a0   : > { %4463 = vrot.lane.b32.xlu0 %v17300_v13, %s10339_s21 }
 0x8a1   : > { %4240 = vadd.xlane.f32.xlu1 %v4239_v30  ;;  %v17305_v30 = vld [vmem:[#allocation213_spill] sm:$0xff] }
 0x8a4   : > { %4481 = vrot.lane.b32.xlu0 %v17301_v26, %s10339_s21 }
 0x8a5   : > { %4243 = vadd.xlane.f32.xlu1 %v4242_v7  ;;  %v3138_v11 = vpop.xlane.xlu0 %3137  ;;  %v17306_v7 = vld [vmem:[#allocation214_spill] sm:$0xff] }
 0x8a6   : > { %9574 = vrcp.f32 %v3138_v11  ;;  %v17307_v11 = vmax.f32 %v17305_v30, %v17306_v7 }
 0x8a9   : > { %v4474_v45 = vpop.permute.xlu0 %4473 }
 0x8aa   : > { %8318 = vmatprep.subr.bf16.mxu0 %v4474_v45 }
 0x8b0   : > { %v9575_v16 = vpop.eup %9574 }
 0x8b6   : > { %4479 = vrot.lane.b32.xlu1 %v17302_v60, %s10339_s21 }
 0x8b7   : > { %v3141_v55 = vpop.xlane.xlu1 %3140 }
 0x8b8   : > { %9576 = vrcp.f32 %v3141_v55  ;;  %v3235_v55 = vmul.f32 %v9575_v16, %v13758_v28 }
 0x8bc   : > { %v13938_v37 = vpop.xlane.xlu1 %4012 }
 0x8bd   : > { %v8174_v18 = vpop.f32.mrb[128].mxu0 }
 0x8be   : > { %v8175_v53 = vpop.f32.mrb[129].mxu0 }
 0x8bf   : > { %v13940_v62 = vadd.f32 %v8175_v53, %v8174_v18  ;;  %v8177_v4 = vpop.f32.mrb[130].mxu0  ;;  %v3234_v53 = vmul.f32 %v9575_v16, %v13756_v43 }
 0x8c0   : > { %v13942_v42 = vpop.xlane.xlu1 %4015  ;;  %v8178_v38 = vpop.f32.mrb[131].mxu0 }
 0x8c1   : > { %17303 = vst [vmem:[#allocation126_spill] sm:$0xff] %v13940_v62  ;;  %v13944_v27 = vadd.f32 %v8178_v38, %v8177_v4  ;;  %v17308_v38 = vld [vmem:[#allocation75_spill] sm:$0xff] }
 0x8c2   : > { %v9577_v32 = vpop.eup %9576  ;;  %v4049_v26 = vsub.f32 %v17308_v38, %v13780_v47 }
 0x8c3   : > { %17304 = vst [vmem:[#allocation200_spill] sm:$0xff] %v13944_v27  ;;  %4024 = vmax.xlane.f32.xlu0 %v17307_v11  ;;  %v3237_v18 = vmul.f32 %v9577_v32, %v13778_v41  ;;  %v3236_v60 = vmul.f32 %v9577_v32, %v13776_v23  ;;  %v17309_v27 = vld [vmem:[#allocation81_spill] sm:$0xff]  ;;  %v17312_v23 = vld [vmem:[#allocation98_spill] sm:$0xff] }
 0x8c4   : > { %v4458_v45 = vpop.permute.xlu1 %4457  ;;  %v4050_v11 = vsub.f32 %v17309_v27, %v13780_v47  ;;  %v4051_v16 = vsub.f32 %v17312_v23, %v13774_v20  ;;  %v4121_v32 = vmul.f32 1.442695, %v4049_v26 }
 0x8c5   : > { %8319 = vmatpush3.bf16.msra.mxu0 %v4458_v45  ;;  %v8180_v4 = vpop.f32.mrb[132].mxu0  ;;  %v3269_v49 = vpack.c.bf16 %v3237_v18, %v3235_v55  ;;  %v3268_v62 = vpack.c.bf16 %v3236_v60, %v3234_v53  ;;  %v17313_v45 = vld [vmem:[#allocation84_spill] sm:$0xff]  ;;  %v17325_v60 = vld [vmem:[#allocation70_spill] sm:$0xff] }
 0x8c6   : > { %v8181_v13 = vpop.f32.mrb[133].mxu0  ;;  %v4052_v38 = vsub.f32 %v17313_v45, %v13774_v20  ;;  %v4123_v55 = vmul.f32 1.442695, %v4050_v11  ;;  %9578 = vpow2.f32 %v4121_v32 }
 0x8c7   : > { %v13959_v59 = vadd.f32 %v8181_v13, %v8180_v4  ;;  %v8183_v28 = vpop.f32.mrb[134].mxu0  ;;  %3486 = vmatprep.mubr.bf16.mxu0 %v3269_v49  ;;  %v4125_v13 = vmul.f32 1.442695, %v4051_v16 }
 0x8c8   : > { %v8184_v41 = vpop.f32.mrb[135].mxu0  ;;  %3487 = vmatmul.mubr.bf16.gmra.mrb[188].mxu0 %v3268_v62  ;;  %v4127_v49 = vmul.f32 1.442695, %v4052_v38  ;;  %9580 = vpow2.f32 %v4123_v55  ;;  %v17319_v38 = vld [vmem:[#allocation56_spill] sm:$0xff]  ;;  %v17320_v55 = vld [vmem:[#allocation215_spill] sm:$0xff] }
 0x8c9   : > { %17310 = vst [vmem:[#allocation62_spill] sm:$0xff] %v13959_v59  ;;  %v13961_v43 = vadd.f32 %v8184_v41, %v8183_v28  ;;  %9582 = vpow2.f32 %v4125_v13 }
 0x8ca   : > { %9584 = vpow2.f32 %v4127_v49 }
 0x8cb   : > { %17311 = vst [vmem:[#allocation124_spill] sm:$0xff] %v13961_v43 }
 0x8cd   : > { %v8186_v47 = vpop.f32.mrb[136].mxu0 }
 0x8ce   : > { %v8187_v27 = vpop.f32.mrb[137].mxu0 }
 0x8cf   : > { %v13969_v62 = vadd.f32 %v8187_v27, %v8186_v47  ;;  %v8189_v18 = vpop.f32.mrb[138].mxu0  ;;  %v17321_v47 = vld [vmem:[#allocation216_spill] sm:$0xff] }
 0x8d0   : > { %v8190_v53 = vpop.f32.mrb[139].mxu0  ;;  %v13977_v23 = vpop.eup %9578  ;;  %v17322_v13 = vmax.f32 %v17320_v55, %v17321_v47 }
 0x8d1   : > { %17314 = vst [vmem:[#allocation128_spill] sm:$0xff] %v13969_v62  ;;  %v13971_v4 = vadd.f32 %v8190_v53, %v8189_v18  ;;  %17317 = vst [vmem:[#allocation127_spill] sm:$0xff] %v13977_v23 }
 0x8d2   : > { %v13979_v32 = vpop.eup %9580 }
 0x8d3   : > { %17315 = vst [vmem:[#allocation129_spill] sm:$0xff] %v13971_v4  ;;  %v13990_v18 = vpop.eup %9582  ;;  %v4245_v53 = vadd.f32 %v13979_v32, %v13977_v23 }
 0x8d5   : > { %v8192_v26 = vpop.f32.mrb[140].mxu0 }
 0x8d6   : > { %v8193_v11 = vpop.f32.mrb[141].mxu0 }
 0x8d7   : > { %v13975_v28 = vadd.f32 %v8193_v11, %v8192_v26  ;;  %v8195_v41 = vpop.f32.mrb[142].mxu0  ;;  %v13994_v26 = vpop.eup %9584  ;;  %v17323_v11 = vld [vmem:[#allocation57_spill] sm:$0xff] }
 0x8d8   : > { %v8196_v16 = vpop.f32.mrb[143].mxu0 }
 0x8d9   : > { %17316 = vst [vmem:[#allocation80_spill] sm:$0xff] %v13975_v28  ;;  %v13981_v45 = vadd.f32 %v8196_v16, %v8195_v41  ;;  %4465 = vrot.lane.b32.xlu0 %v17319_v38, %s10339_s21  ;;  %v4248_v16 = vadd.f32 %v13994_v26, %v13990_v18 }
 0x8da   : > { %4027 = vmax.xlane.f32.xlu1 %v17322_v13  ;;  %v4235_v27 = vpop.xlane.xlu0 %4234  ;;  %v17324_v13 = vld [vmem:[#allocation73_spill] sm:$0xff] }
 0x8db   : > { %17318 = vst [vmem:[#allocation160_spill] sm:$0xff] %v13981_v45  ;;  %9586 = vrcp.f32 %v4235_v27 }
 0x8dd   : > { %4467 = vrot.lane.b32.xlu0 %v17323_v11, %s10339_s21  ;;  %v17328_v11 = vld [vmem:[#allocation217_spill] sm:$0xff] }
 0x8de   : > { %4246 = vadd.xlane.f32.xlu1 %v4245_v53  ;;  %v4476_v41 = vpop.permute.xlu0 %4475 }
 0x8df   : > { %8320 = vmatprep.subr.bf16.mxu0 %v4476_v41 }
 0x8e1   : > { %4485 = vrot.lane.b32.xlu0 %v17324_v13, %s10339_s21 }
 0x8e2   : > { %4249 = vadd.xlane.f32.xlu1 %v4248_v16  ;;  %v4478_v43 = vpop.permute.xlu0 %4477 }
 0x8e5   : > { %v9587_v16 = vpop.eup %9586 }
 0x8e6   : > { %v14014_v27 = vmul.f32 %v9587_v16, %v13840_v48 }
 0x8f1   : > { %v8198_v49 = vpop.f32.mrb[144].mxu0 }
 0x8f2   : > { %v8199_v20 = vpop.f32.mrb[145].mxu0 }
 0x8f3   : > { %4483 = vrot.lane.b32.xlu1 %v17325_v60, %s10339_s21  ;;  %v14004_v28 = vadd.f32 %v8199_v20, %v8198_v49  ;;  %v8201_v45 = vpop.f32.mrb[146].mxu0  ;;  %v17329_v60 = vld [vmem:[#allocation218_spill] sm:$0xff] }
 0x8f4   : > { %v8202_v62 = vpop.f32.mrb[147].mxu0  ;;  %v17330_v20 = vmax.f32 %v17328_v11, %v17329_v60 }
 0x8f5   : > { %17326 = vst [vmem:[#allocation161_spill] sm:$0xff] %v14004_v28  ;;  %v4238_v53 = vpop.xlane.xlu1 %4237  ;;  %v14006_v4 = vadd.f32 %v8202_v62, %v8201_v45  ;;  %v4362_v45 = vmul.f32 %v9587_v16, %v13842_v25 }
 0x8f6   : > { %9588 = vrcp.f32 %v4238_v53 }
 0x8f7   : > { %17327 = vst [vmem:[#allocation131_spill] sm:$0xff] %v14006_v4 }
 0x8f9   : > { %v4460_v59 = vpop.permute.xlu1 %4459 }
 0x8fa   : > { %8321 = vmatpush3.bf16.msra.mxu0 %v4460_v59  ;;  %v17331_v59 = vld [vmem:[#allocation165_spill] sm:$0xff] }
 0x8fb   : > { %8322 = vmatprep.subr.bf16.mxu0 %v4478_v43  ;;  %v4053_v43 = vsub.f32 %v17331_v59, %v13795_v51  ;;  %v17336_v59 = vld [vmem:[#allocation167_spill] sm:$0xff] }
 0x8fd   : > { %v4129_v16 = vmul.f32 1.442695, %v4053_v43 }
 0x8ff   : > { %9590 = vpow2.f32 %v4129_v16 }
 0x900   : > { %v9589_v13 = vpop.eup %9588  ;;  %4030 = vmax.xlane.f32.xlu0 %v17330_v20  ;;  %v17332_v20 = vld [vmem:[#allocation95_spill] sm:$0xff] }
 0x901   : > { %v14017_v62 = vmul.f32 %v9589_v13, %v13874_v21  ;;  %v4364_v49 = vmul.f32 %v9589_v13, %v13877_v44  ;;  %v4054_v48 = vsub.f32 %v17332_v20, %v13795_v51  ;;  %v17335_v44 = vld [vmem:[#allocation99_spill] sm:$0xff] }
 0x902   : > { %v8204_v53 = vpop.f32.mrb[148].mxu0  ;;  %v4055_v13 = vsub.f32 %v17335_v44, %v13788_v46 }
 0x903   : > { %v8205_v41 = vpop.f32.mrb[149].mxu0  ;;  %v4426_v28 = vpack.c.bf16 %v4364_v49, %v4362_v45  ;;  %v4056_v45 = vsub.f32 %v17336_v59, %v13788_v46  ;;  %v4131_v49 = vmul.f32 1.442695, %v4054_v48 }
 0x904   : > { %v14027_v38 = vadd.f32 %v8205_v41, %v8204_v53  ;;  %v8207_v21 = vpop.f32.mrb[150].mxu0  ;;  %v4133_v51 = vmul.f32 1.442695, %v4055_v13 }
 0x905   : > { %v8208_v2 = vpop.f32.mrb[151].mxu0  ;;  %4537 = vmatprep.mubr.bf16.mxu0 %v4426_v28  ;;  %v4135_v53 = vmul.f32 1.442695, %v4056_v45  ;;  %9592 = vpow2.f32 %v4131_v49 }
 0x906   : > { %17333 = vst [vmem:[#allocation132_spill] sm:$0xff] %v14027_v38  ;;  %v14029_v25 = vadd.f32 %v8208_v2, %v8207_v21  ;;  %9594 = vpow2.f32 %v4133_v51  ;;  %v17343_v51 = vld [vmem:[#allocation58_spill] sm:$0xff] }
 0x907   : > { %9596 = vpow2.f32 %v4135_v53  ;;  %v17345_v53 = vld [vmem:[#allocation220_spill] sm:$0xff] }
 0x908   : > { %17334 = vst [vmem:[#allocation78_spill] sm:$0xff] %v14029_v25 }
 0x909   : > { %v14047_v59 = vpop.eup %9590 }
 0x90a   : > { %v8210_v57 = vpop.f32.mrb[152].mxu0  ;;  %17340 = vst [vmem:[#allocation83_spill] sm:$0xff] %v14047_v59 }
 0x90b   : > { %v8211_v41 = vpop.f32.mrb[153].mxu0 }
 0x90c   : > { %v14037_v28 = vadd.f32 %v8211_v41, %v8210_v57  ;;  %v8213_v2 = vpop.f32.mrb[154].mxu0  ;;  %v17344_v41 = vld [vmem:[#allocation219_spill] sm:$0xff] }
 0x90d   : > { %v8214_v20 = vpop.f32.mrb[155].mxu0 }
 0x90e   : > { %17337 = vst [vmem:[#allocation130_spill] sm:$0xff] %v14037_v28  ;;  %v14039_v21 = vadd.f32 %v8214_v20, %v8213_v2  ;;  %v17346_v2 = vmax.f32 %v17344_v41, %v17345_v53 }
 0x90f   : > { %v14049_v45 = vpop.eup %9592 }
 0x910   : > { %17338 = vst [vmem:[#allocation134_spill] sm:$0xff] %v14039_v21  ;;  %17341 = vst [vmem:[#allocation133_spill] sm:$0xff] %v14049_v45  ;;  %v4251_v46 = vadd.f32 %v14049_v45, %v14047_v59 }
 0x912   : > { %v8216_v43 = vpop.f32.mrb[156].mxu0 }
 0x913   : > { %v8217_v48 = vpop.f32.mrb[157].mxu0  ;;  %v14043_v44 = vpop.xlane.xlu0 %4018 }
 0x914   : > { %v14045_v13 = vadd.f32 %v8217_v48, %v8216_v43  ;;  %v8219_v16 = vpop.f32.mrb[158].mxu0  ;;  %v14060_v48 = vpop.eup %9594 }
 0x915   : > { %v8220_v57 = vpop.f32.mrb[159].mxu0  ;;  %17347 = vst [vmem:[#allocation139_spill] sm:$0xff] %v14060_v48  ;;  %v14064_v4 = vpop.eup %9596 }
 0x916   : > { %17339 = vst [vmem:[#allocation135_spill] sm:$0xff] %v14045_v13  ;;  %v14051_v49 = vadd.f32 %v8220_v57, %v8219_v16  ;;  %4469 = vrot.lane.b32.xlu0 %v17343_v51, %s10339_s21  ;;  %17348 = vst [vmem:[#allocation136_spill] sm:$0xff] %v14064_v4  ;;  %v17349_v16 = vld [vmem:[#allocation59_spill] sm:$0xff]  ;;  %v4254_v43 = vadd.f32 %v14064_v4, %v14060_v48 }
 0x917   : > { %4033 = vmax.xlane.f32.xlu1 %v17346_v2  ;;  %v4462_v20 = vpop.permute.xlu0 %4461 }
 0x918   : > { %17342 = vst [vmem:[#allocation138_spill] sm:$0xff] %v14051_v49  ;;  %8323 = vmatpush3.bf16.msra.mxu0 %v4462_v20  ;;  %v17360_v49 = vld [vmem:[#allocation77_spill] sm:$0xff] }
 0x91a   : > { %4471 = vrot.lane.b32.xlu0 %v17349_v16, %s10339_s21  ;;  %v8222_v57 = vpop.f32.mrb[160].mxu0  ;;  %v17352_v16 = vld [vmem:[#allocation171_spill] sm:$0xff] }
 0x91b   : > { %4252 = vadd.xlane.f32.xlu1 %v4251_v46  ;;  %v8223_v28 = vpop.f32.mrb[161].mxu0  ;;  %v4057_v51 = vsub.f32 %v17352_v16, %v13810_v63 }
 0x91c   : > { %v14068_v21 = vadd.f32 %v8223_v28, %v8222_v57  ;;  %v8225_v2 = vpop.f32.mrb[162].mxu0  ;;  %v17354_v57 = vld [vmem:[#allocation172_spill] sm:$0xff] }
 0x91d   : > { %v8226_v20 = vpop.f32.mrb[163].mxu0  ;;  %v4058_v35 = vsub.f32 %v17354_v57, %v13810_v63 }
 0x91e   : > { %17350 = vst [vmem:[#allocation137_spill] sm:$0xff] %v14068_v21  ;;  %v14072_v13 = vadd.f32 %v8226_v20, %v8225_v2  ;;  %v17356_v2 = vld [vmem:[#allocation173_spill] sm:$0xff]  ;;  %v4137_v20 = vmul.f32 1.442695, %v4057_v51  ;;  %v17357_v21 = vld [vmem:[#allocation175_spill] sm:$0xff] }
 0x91f   : > { %4255 = vadd.xlane.f32.xlu1 %v4254_v43  ;;  %v4059_v43 = vsub.f32 %v17356_v2, %v13808_v9  ;;  %v4139_v16 = vmul.f32 1.442695, %v4058_v35 }
 0x920   : > { %17351 = vst [vmem:[#allocation143_spill] sm:$0xff] %v14072_v13  ;;  %v4060_v13 = vsub.f32 %v17357_v21, %v13808_v9  ;;  %9598 = vpow2.f32 %v4137_v20  ;;  %v17361_v9 = vld [vmem:[#allocation177_spill] sm:$0xff] }
 0x921   : > { %v4141_v23 = vmul.f32 1.442695, %v4059_v43  ;;  %9600 = vpow2.f32 %v4139_v16  ;;  %v4061_v35 = vsub.f32 %v17361_v9, %v13818_v6  ;;  %v4464_v43 = vpop.permute.xlu0 %4463 }
 0x922   : > { %v8228_v38 = vpop.f32.mrb[164].mxu0 }
 0x923   : > { %v8229_v25 = vpop.f32.mrb[165].mxu0  ;;  %9602 = vpow2.f32 %v4141_v23 }
 0x924   : > { %v14078_v46 = vadd.f32 %v8229_v25, %v8228_v38  ;;  %v8231_v28 = vpop.f32.mrb[166].mxu0 }
 0x925   : > { %v8232_v59 = vpop.f32.mrb[167].mxu0 }
 0x926   : > { %17353 = vst [vmem:[#allocation144_spill] sm:$0xff] %v14078_v46  ;;  %v14082_v48 = vadd.f32 %v8232_v59, %v8231_v28  ;;  %v4143_v28 = vmul.f32 1.442695, %v4060_v13 }
 0x928   : > { %17355 = vst [vmem:[#allocation140_spill] sm:$0xff] %v14082_v48  ;;  %9604 = vpow2.f32 %v4143_v28 }
 0x92a   : > { %v14090_v38 = vpop.xlane.xlu1 %4021  ;;  %v8234_v25 = vpop.f32.mrb[168].mxu0 }
 0x92b   : > { %v8235_v45 = vpop.f32.mrb[169].mxu0  ;;  %v14110_v9 = vpop.eup %9598 }
 0x92c   : > { %v14092_v63 = vadd.f32 %v8235_v45, %v8234_v25  ;;  %v8237_v59 = vpop.f32.mrb[170].mxu0  ;;  %v17362_v45 = vld [vmem:[#allocation88_spill] sm:$0xff]  ;;  %17364 = vst [vmem:[#allocation102_spill] sm:$0xff] %v14110_v9  ;;  %v14114_v28 = vpop.eup %9600 }
 0x92d   : > { %v8238_v57 = vpop.f32.mrb[171].mxu0  ;;  %v4062_v13 = vsub.f32 %v17362_v45, %v13818_v6  ;;  %17366 = vst [vmem:[#allocation150_spill] sm:$0xff] %v14114_v28  ;;  %v4482_v6 = vpop.permute.xlu0 %4481  ;;  %v17367_v45 = vld [vmem:[#allocation183_spill] sm:$0xff] }
 0x92e   : > { %17358 = vst [vmem:[#allocation141_spill] sm:$0xff] %v14092_v63  ;;  %v14094_v51 = vpop.xlane.xlu1 %4240  ;;  %v14096_v2 = vadd.f32 %v8238_v57, %v8237_v59  ;;  %v4145_v59 = vmul.f32 1.442695, %v4061_v35  ;;  %v4065_v21 = vsub.f32 %v17367_v45, %v13844_v50 }
 0x92f   : > { %v4147_v23 = vmul.f32 1.442695, %v4062_v13  ;;  %v17368_v13 = vld [vmem:[#allocation105_spill] sm:$0xff] }
 0x930   : > { %17359 = vst [vmem:[#allocation201_spill] sm:$0xff] %v14096_v2  ;;  %4487 = vrot.lane.b32.xlu1 %v17360_v49, %s10339_s21  ;;  %9606 = vpow2.f32 %v4145_v59  ;;  %v4153_v2 = vmul.f32 1.442695, %v4065_v21 }
 0x931   : > { %9608 = vpow2.f32 %v4147_v23 }
 0x932   : > { %v14106_v20 = vpop.xlane.xlu1 %4243  ;;  %v8240_v16 = vpop.f32.mrb[172].mxu0  ;;  %9610 = vpow2.f32 %v4153_v2 }
 0x933   : > { %v8241_v25 = vpop.f32.mrb[173].mxu0 }
 0x934   : > { %v14108_v57 = vadd.f32 %v8241_v25, %v8240_v16  ;;  %v8243_v46 = vpop.f32.mrb[174].mxu0  ;;  %v17369_v16 = vld [vmem:[#allocation106_spill] sm:$0xff] }
 0x935   : > { %v8244_v48 = vpop.f32.mrb[175].mxu0  ;;  %v17370_v25 = vmax.f32 %v17368_v13, %v17369_v16 }
 0x936   : > { %17363 = vst [vmem:[#allocation204_spill] sm:$0xff] %v14108_v57  ;;  %v4480_v49 = vpop.permute.xlu1 %4479  ;;  %v14112_v4 = vadd.f32 %v8244_v48, %v8243_v46  ;;  %v17371_v48 = vld [vmem:[#allocation100_spill] sm:$0xff]  ;;  %v14125_v46 = vpop.eup %9602 }
 0x937   : > { %8324 = vmatprep.subr.bf16.mxu0 %v4480_v49  ;;  %v4066_v49 = vsub.f32 %v17371_v48, %v13844_v50  ;;  %17372 = vst [vmem:[#allocation158_spill] sm:$0xff] %v14125_v46  ;;  %v14129_v59 = vpop.eup %9604  ;;  %v17376_v48 = vld [vmem:[#allocation187_spill] sm:$0xff] }
 0x938   : > { %17365 = vst [vmem:[#allocation87_spill] sm:$0xff] %v14112_v4  ;;  %8325 = vmatpush3.bf16.msra.mxu0 %v4464_v43  ;;  %v4257_v43 = vadd.f32 %v14114_v28, %v14110_v9  ;;  %17373 = vst [vmem:[#allocation159_spill] sm:$0xff] %v14129_v59  ;;  %v4260_v50 = vadd.f32 %v14129_v59, %v14125_v46  ;;  %v4069_v4 = vsub.f32 %v17376_v48, %v13854_v58  ;;  %v17379_v46 = vld [vmem:[#allocation180_spill] sm:$0xff]  ;;  %v17382_v9 = vld [vmem:[#allocation142_spill] sm:$0xff] }
 0x939   : > { %8326 = vmatprep.subr.bf16.mxu0 %v4482_v6  ;;  %4036 = vmax.xlane.f32.xlu0 %v17370_v25  ;;  %v4155_v57 = vmul.f32 1.442695, %v4066_v49  ;;  %v4064_v48 = vsub.f32 %v17379_v46, %v13816_v54  ;;  %v17392_v46 = vld [vmem:[#allocation225_spill] sm:$0xff] }
 0x93a   : > { %v8246_v63 = vpop.f32.mrb[176].mxu0  ;;  %v4161_v59 = vmul.f32 1.442695, %v4069_v4 }
 0x93b   : > { %v8247_v45 = vpop.f32.mrb[177].mxu0  ;;  %9612 = vpow2.f32 %v4155_v57  ;;  %v17381_v57 = vld [vmem:[#allocation222_spill] sm:$0xff]  ;;  %v4151_v13 = vmul.f32 1.442695, %v4064_v48 }
 0x93c   : > { %v14131_v35 = vadd.f32 %v8247_v45, %v8246_v63  ;;  %v8249_v6 = vpop.f32.mrb[178].mxu0  ;;  %v17377_v63 = vld [vmem:[#allocation188_spill] sm:$0xff]  ;;  %9614 = vpow2.f32 %v4161_v59  ;;  %v17390_v59 = vld [vmem:[#allocation185_spill] sm:$0xff] }
 0x93d   : > { %4258 = vadd.xlane.f32.xlu0 %v4257_v43  ;;  %v8250_v25 = vpop.f32.mrb[179].mxu0  ;;  %v4070_v21 = vsub.f32 %v17377_v63, %v13854_v58  ;;  %v14143_v43 = vpop.eup %9606 }
 0x93e   : > { %17374 = vst [vmem:[#allocation85_spill] sm:$0xff] %v14131_v35  ;;  %v14133_v23 = vadd.f32 %v8250_v25, %v8249_v6  ;;  %v14145_v45 = vpop.eup %9608  ;;  %v17378_v6 = vld [vmem:[#allocation91_spill] sm:$0xff]  ;;  %v17383_v35 = vmax.f32 %v17381_v57, %v17382_v9 }
 0x93f   : > { %v4063_v25 = vsub.f32 %v17378_v6, %v13816_v54  ;;  %v4163_v58 = vmul.f32 1.442695, %v4070_v21  ;;  %v4263_v16 = vadd.f32 %v14145_v45, %v14143_v43  ;;  %v17385_v54 = vld [vmem:[#allocation192_spill] sm:$0xff] }
 0x940   : > { %17375 = vst [vmem:[#allocation178_spill] sm:$0xff] %v14133_v23  ;;  %v4073_v4 = vsub.f32 %v17385_v54, %v13866_v31  ;;  %v17391_v54 = vld [vmem:[#allocation224_spill] sm:$0xff] }
 0x941   : > { %4261 = vadd.xlane.f32.xlu0 %v4260_v50  ;;  %v4149_v6 = vmul.f32 1.442695, %v4063_v25  ;;  %9616 = vpow2.f32 %v4163_v58  ;;  %v17389_v25 = vld [vmem:[#allocation101_spill] sm:$0xff] }
 0x942   : > { %v8252_v49 = vpop.f32.mrb[180].mxu0  ;;  %v4067_v48 = vsub.f32 %v17389_v25, %v13838_v14 }
 0x943   : > { %v8253_v2 = vpop.f32.mrb[181].mxu0  ;;  %9618 = vpow2.f32 %v4149_v6 }
 0x944   : > { %v14151_v28 = vadd.f32 %v8253_v2, %v8252_v49  ;;  %v8255_v50 = vpop.f32.mrb[182].mxu0  ;;  %v14166_v49 = vpop.eup %9610  ;;  %9620 = vpow2.f32 %v4151_v13  ;;  %v4077_v13 = vsub.f32 %v12923_v3, %v13890_v1  ;;  %v17399_v3 = vld [vmem:[#allocation190_spill] sm:$0xff] }
 0x945   : > { %5117 = vmax.xlane.f32.xlu0 %v17383_v35  ;;  %v8256_v63 = vpop.f32.mrb[183].mxu0  ;;  %v17386_v35 = vld [vmem:[#allocation194_spill] sm:$0xff]  ;;  %17387 = vst [vmem:[#allocation182_spill] sm:$0xff] %v14166_v49  ;;  %v14168_v2 = vpop.eup %9612 }
 0x946   : > { %17380 = vst [vmem:[#allocation181_spill] sm:$0xff] %v14151_v28  ;;  %v14156_v23 = vadd.f32 %v8256_v63, %v8255_v50  ;;  %v4074_v21 = vsub.f32 %v17386_v35, %v13866_v31  ;;  %17388 = vst [vmem:[#allocation152_spill] sm:$0xff] %v14168_v2  ;;  %v4068_v50 = vsub.f32 %v17390_v59, %v13838_v14  ;;  %v4169_v63 = vmul.f32 1.442695, %v4073_v4  ;;  %v14185_v4 = vpop.eup %9614  ;;  %v17396_v59 = vld [vmem:[#allocation221_spill] sm:$0xff] }
 0x947   : > { %v4269_v31 = vadd.f32 %v14168_v2, %v14166_v49  ;;  %v4157_v35 = vmul.f32 1.442695, %v4067_v48  ;;  %v4078_v14 = vsub.f32 %v17237_v10, %v13890_v1  ;;  %17394 = vst [vmem:[#allocation116_spill] sm:$0xff] %v14185_v4  ;;  %v17401_v10 = vld [vmem:[#allocation97_spill] sm:$0xff]  ;;  %v17403_v49 = vld [vmem:[#allocation223_spill] sm:$0xff] }
 0x948   : > { %17384 = vst [vmem:[#allocation115_spill] sm:$0xff] %v14156_v23  ;;  %v4171_v58 = vmul.f32 1.442695, %v4074_v21  ;;  %v4159_v6 = vmul.f32 1.442695, %v4068_v50  ;;  %9622 = vpow2.f32 %v4169_v63  ;;  %v17395_v21 = vld [vmem:[#allocation189_spill] sm:$0xff] }
 0x949   : > { %4264 = vadd.xlane.f32.xlu0 %v4263_v16  ;;  %v17393_v16 = vmax.f32 %v17391_v54, %v17392_v46  ;;  %v4071_v48 = vsub.f32 %v17395_v21, %v13852_v56  ;;  %v17400_v23 = vld [vmem:[#allocation146_spill] sm:$0xff] }
 0x94a   : > { %9624 = vpow2.f32 %v4171_v58  ;;  %v4072_v58 = vsub.f32 %v17399_v3, %v13852_v56  ;;  %v17402_v1 = vmax.f32 %v17400_v23, %v17401_v10 }
 0x94b   : > { %v14187_v25 = vpop.eup %9616  ;;  %9626 = vpow2.f32 %v4157_v35  ;;  %v4179_v35 = vmul.f32 1.442695, %v4078_v14  ;;  %v4082_v14 = vsub.f32 %v17240_v22, %v13928_v12 }
 0x94c   : > { %9628 = vpow2.f32 %v4159_v6  ;;  %v4275_v21 = vadd.f32 %v14187_v25, %v14185_v4  ;;  %v17404_v6 = vld [vmem:[#allocation89_spill] sm:$0xff]  ;;  %v4167_v56 = vmul.f32 1.442695, %v4072_v58 }
 0x94d   : > { %5123 = vmax.xlane.f32.xlu0 %v17393_v16  ;;  %v17397_v16 = vld [vmem:[#allocation86_spill] sm:$0xff]  ;;  %v14199_v46 = vpop.eup %9618  ;;  %v17405_v2 = vmax.f32 %v17403_v49, %v17404_v6  ;;  %v4187_v10 = vmul.f32 1.442695, %v4082_v14  ;;  %v17412_v49 = vld [vmem:[#allocation145_spill] sm:$0xff]  ;;  %v4085_v14 = vsub.f32 %v17262_v61, %v13938_v37  ;;  %v17423_v61 = vld [vmem:[#allocation104_spill] sm:$0xff] }
 0x94e   : > { %v17398_v50 = vmax.f32 %v17396_v59, %v17397_v16  ;;  %v14201_v54 = vpop.eup %9620 }
 0x950   : > { %v14179_v28 = vpop.xlane.xlu0 %4024 }
 0x951   : > { %4270 = vadd.xlane.f32.xlu0 %v4269_v31  ;;  %v4177_v31 = vmul.f32 1.442695, %v4077_v13  ;;  %v4081_v13 = vsub.f32 %v17239_v33, %v13928_v12  ;;  %v17407_v33 = vld [vmem:[#allocation197_spill] sm:$0xff] }
 0x952   : > { %v14214_v3 = vpop.eup %9622 }
 0x953   : > { %9630 = vpow2.f32 %v4177_v31  ;;  %v4076_v31 = vsub.f32 %v17407_v33, %v13864_v39 }
 0x954   : > { %4039 = vmax.xlane.f32.xlu1 %v17398_v50  ;;  %v4466_v63 = vpop.permute.xlu0 %4465  ;;  %v4165_v50 = vmul.f32 1.442695, %v4071_v48  ;;  %9632 = vpow2.f32 %v4179_v35  ;;  %v14216_v48 = vpop.eup %9624  ;;  %v17408_v35 = vld [vmem:[#allocation226_spill] sm:$0xff] }
 0x955   : > { %5129 = vmax.xlane.f32.xlu0 %v17402_v1  ;;  %8327 = vmatpush3.bf16.msra.mxu0 %v4466_v63  ;;  %v4266_v63 = vadd.f32 %v14201_v54, %v14199_v46  ;;  %v4185_v1 = vmul.f32 1.442695, %v4081_v13  ;;  %v14225_v12 = vpop.eup %9626  ;;  %v4175_v33 = vmul.f32 1.442695, %v4076_v31  ;;  %v17417_v31 = vld [vmem:[#allocation202_spill] sm:$0xff] }
 0x956   : > { %9634 = vpow2.f32 %v4165_v50  ;;  %v14227_v6 = vpop.eup %9628 }
 0x957   : > { %9636 = vpow2.f32 %v4167_v56  ;;  %v17411_v56 = vld [vmem:[#allocation147_spill] sm:$0xff] }
 0x958   : > { %5120 = vmax.xlane.f32.xlu1 %v17405_v2  ;;  %v17406_v2 = vld [vmem:[#allocation195_spill] sm:$0xff]  ;;  %v17413_v4 = vmax.f32 %v17411_v56, %v17412_v49  ;;  %9638 = vpow2.f32 %v4185_v1  ;;  %v4079_v1 = vsub.f32 %v17417_v31, %v13892_v8 }
 0x959   : > { %4276 = vadd.xlane.f32.xlu0 %v4275_v21  ;;  %v4075_v58 = vsub.f32 %v17406_v2, %v13864_v39  ;;  %v17409_v21 = vld [vmem:[#allocation227_spill] sm:$0xff]  ;;  %v4281_v2 = vadd.f32 %v14216_v48, %v14214_v3  ;;  %9640 = vpow2.f32 %v4187_v10  ;;  %v4193_v10 = vmul.f32 1.442695, %v4085_v14 }
 0x95a   : > { %v17410_v22 = vmax.f32 %v17408_v35, %v17409_v21  ;;  %v4086_v21 = vsub.f32 %v17263_v0, %v13938_v37  ;;  %v17418_v0 = vld [vmem:[#allocation203_spill] sm:$0xff]  ;;  %v4089_v14 = vsub.f32 %v17289_v15, %v14043_v44 }
 0x95b   : > { %v4080_v37 = vsub.f32 %v17418_v0, %v13892_v8  ;;  %v17426_v15 = vld [vmem:[#allocation103_spill] sm:$0xff] }
 0x95c   : > { %4267 = vadd.xlane.f32.xlu1 %v4266_v63  ;;  %v4173_v63 = vmul.f32 1.442695, %v4075_v58  ;;  %v4272_v58 = vadd.f32 %v14227_v6, %v14225_v12  ;;  %v4195_v49 = vmul.f32 1.442695, %v4086_v21  ;;  %v4090_v21 = vsub.f32 %v17290_v36, %v14043_v44  ;;  %v17427_v36 = vld [vmem:[#allocation234_spill] sm:$0xff]  ;;  %v17428_v44 = vld [vmem:[#allocation235_spill] sm:$0xff] }
 0x95d   : > { %5135 = vmax.xlane.f32.xlu0 %v17410_v22  ;;  %v4183_v8 = vmul.f32 1.442695, %v4080_v37 }
 0x95e   : > { %v8258_v23 = vpop.f32.mrb[184].mxu0  ;;  %9642 = vpow2.f32 %v4173_v63 }
 0x95f   : > { %v8259_v50 = vpop.f32.mrb[185].mxu0  ;;  %9644 = vpow2.f32 %v4175_v33  ;;  %v17422_v33 = vld [vmem:[#allocation94_spill] sm:$0xff] }
 0x960   : > { %5126 = vmax.xlane.f32.xlu1 %v17413_v4  ;;  %v14234_v39 = vadd.f32 %v8259_v50, %v8258_v23  ;;  %v8261_v13 = vpop.f32.mrb[186].mxu0  ;;  %v14244_v4 = vpop.eup %9630  ;;  %v17419_v50 = vld [vmem:[#allocation230_spill] sm:$0xff]  ;;  %9646 = vpow2.f32 %v4193_v10  ;;  %v4201_v10 = vmul.f32 1.442695, %v4089_v14 }
 0x961   : > { %v8262_v22 = vpop.f32.mrb[187].mxu0  ;;  %4282 = vadd.xlane.f32.xlu0 %v4281_v2  ;;  %17416 = vst [vmem:[#allocation156_spill] sm:$0xff] %v14244_v4  ;;  %v14246_v23 = vpop.eup %9632  ;;  %v17420_v2 = vld [vmem:[#allocation231_spill] sm:$0xff]  ;;  %9648 = vpow2.f32 %v4195_v49  ;;  %v4084_v49 = vsub.f32 %v17426_v15, %v13934_v24  ;;  %v4093_v15 = vsub.f32 %v17305_v30, %v14179_v28  ;;  %v17433_v30 = vld [vmem:[#allocation209_spill] sm:$0xff] }
 0x962   : > { %17414 = vst [vmem:[#allocation206_spill] sm:$0xff] %v14234_v39  ;;  %v14240_v35 = vadd.f32 %v8262_v22, %v8261_v13  ;;  %v17421_v13 = vmax.f32 %v17419_v50, %v17420_v2  ;;  %v14257_v22 = vpop.eup %9634  ;;  %v4287_v31 = vadd.f32 %v14246_v23, %v14244_v4  ;;  %v17424_v39 = vmax.f32 %v17422_v33, %v17423_v61  ;;  %v4468_v33 = vpop.permute.xlu0 %4467  ;;  %v17431_v4 = vld [vmem:[#allocation229_spill] sm:$0xff] }
 0x963   : > { %v14259_v63 = vpop.eup %9636  ;;  %v4203_v50 = vmul.f32 1.442695, %v4090_v21  ;;  %v4191_v14 = vmul.f32 1.442695, %v4084_v49  ;;  %v4094_v21 = vsub.f32 %v17306_v7, %v14179_v28  ;;  %v4087_v49 = vsub.f32 %v17266_v52, %v13942_v42  ;;  %v17434_v28 = vld [vmem:[#allocation238_spill] sm:$0xff] }
 0x964   : > { %17415 = vst [vmem:[#allocation207_spill] sm:$0xff] %v14240_v35  ;;  %4273 = vadd.xlane.f32.xlu1 %v4272_v58  ;;  %v4181_v58 = vmul.f32 1.442695, %v4079_v1  ;;  %v4278_v0 = vadd.f32 %v14259_v63, %v14257_v22 }
 0x965   : > { %5141 = vmax.xlane.f32.xlu0 %v17421_v13  ;;  %v14274_v13 = vpop.eup %9638 }
 0x966   : > { %v14278_v35 = vpop.eup %9640  ;;  %9650 = vpow2.f32 %v4181_v58  ;;  %v4486_v7 = vpop.permute.xlu0 %4485 }
 0x967   : > { %v14261_v56 = vpop.xlane.xlu1 %4027  ;;  %9652 = vpow2.f32 %v4183_v8 }
 0x968   : > { %5132 = vmax.xlane.f32.xlu1 %v17424_v39  ;;  %v17425_v39 = vld [vmem:[#allocation205_spill] sm:$0xff]  ;;  %v14287_v2 = vpop.eup %9642  ;;  %9654 = vpow2.f32 %v4201_v10  ;;  %v4209_v10 = vmul.f32 1.442695, %v4093_v15 }
 0x969   : > { %4288 = vadd.xlane.f32.xlu0 %v4287_v31  ;;  %v4083_v37 = vsub.f32 %v17425_v39, %v13934_v24  ;;  %v17429_v31 = vmax.f32 %v17427_v36, %v17428_v44  ;;  %v14289_v61 = vpop.eup %9644  ;;  %v17430_v39 = vld [vmem:[#allocation228_spill] sm:$0xff]  ;;  %9656 = vpow2.f32 %v4203_v50  ;;  %v4088_v50 = vsub.f32 %v17433_v30, %v13942_v42 }
 0x96a   : > { %v17432_v24 = vmax.f32 %v17430_v39, %v17431_v4  ;;  %v14304_v44 = vpop.eup %9646  ;;  %v4211_v39 = vmul.f32 1.442695, %v4094_v21 }
 0x96b   : > { %v14276_v1 = vpop.xlane.xlu1 %4246  ;;  %v4189_v8 = vmul.f32 1.442695, %v4083_v37  ;;  %v14306_v36 = vpop.eup %9648  ;;  %v4199_v15 = vmul.f32 1.442695, %v4088_v50  ;;  %v17440_v50 = vld [vmem:[#allocation153_spill] sm:$0xff] }
 0x96c   : > { %4279 = vadd.xlane.f32.xlu1 %v4278_v0  ;;  %v4293_v0 = vadd.f32 %v14278_v35, %v14274_v13  ;;  %v4299_v52 = vadd.f32 %v14306_v36, %v14304_v44 }
 0x96d   : > { %5147 = vmax.xlane.f32.xlu0 %v17429_v31  ;;  %v4284_v31 = vadd.f32 %v14289_v61, %v14287_v2  ;;  %9658 = vpow2.f32 %v4189_v8 }
 0x96e   : > { %9660 = vpow2.f32 %v4191_v14  ;;  %v4197_v14 = vmul.f32 1.442695, %v4087_v49  ;;  %v4092_v49 = vsub.f32 %v17298_v17, %v14090_v38 }
 0x96f   : > { %v14291_v58 = vpop.xlane.xlu1 %4249  ;;  %9662 = vpow2.f32 %v4209_v10  ;;  %v17441_v10 = vld [vmem:[#allocation76_spill] sm:$0xff] }
 0x970   : > { %5138 = vmax.xlane.f32.xlu1 %v17432_v24  ;;  %v14315_v4 = vpop.eup %9650  ;;  %9664 = vpow2.f32 %v4211_v39 }
 0x971   : > { %4294 = vadd.xlane.f32.xlu0 %v4293_v0  ;;  %v17435_v0 = vld [vmem:[#allocation239_spill] sm:$0xff]  ;;  %v14317_v8 = vpop.eup %9652  ;;  %9666 = vpow2.f32 %v4197_v14 }
 0x972   : > { %v17436_v24 = vmax.f32 %v17434_v28, %v17435_v0  ;;  %v14326_v30 = vpop.eup %9654  ;;  %9668 = vpow2.f32 %v4199_v15  ;;  %v17443_v0 = vld [vmem:[#allocation236_spill] sm:$0xff]  ;;  %v17444_v28 = vld [vmem:[#allocation237_spill] sm:$0xff]  ;;  %v4207_v15 = vmul.f32 1.442695, %v4092_v49 }
 0x973   : > { %v4484_v37 = vpop.permute.xlu1 %4483  ;;  %v14328_v21 = vpop.eup %9656 }
 0x974   : > { %4285 = vadd.xlane.f32.xlu1 %v4284_v31  ;;  %8328 = vmatprep.subr.bf16.mxu0 %v4484_v37  ;;  %v17437_v31 = vld [vmem:[#allocation232_spill] sm:$0xff]  ;;  %v17438_v37 = vld [vmem:[#allocation233_spill] sm:$0xff] }
 0x975   : > { %8329 = vmatpush3.bf16.msra.mxu0 %v4468_v33  ;;  %5153 = vmax.xlane.f32.xlu0 %v17436_v24  ;;  %v17439_v42 = vmax.f32 %v17437_v31, %v17438_v37  ;;  %v4290_v33 = vadd.f32 %v14317_v8, %v14315_v4  ;;  %v17442_v24 = vmax.f32 %v17440_v50, %v17441_v10  ;;  %v17450_v50 = vld [vmem:[#allocation240_spill] sm:$0xff]  ;;  %v17451_v37 = vld [vmem:[#allocation82_spill] sm:$0xff] }
 0x976   : > { %8330 = vmatprep.subr.bf16.mxu0 %v4486_v7  ;;  %v4091_v7 = vsub.f32 %v17297_v34, %v14090_v38  ;;  %v17445_v34 = vmax.f32 %v17443_v0, %v17444_v28  ;;  %v17447_v28 = vld [vmem:[#allocation151_spill] sm:$0xff]  ;;  %v17457_v31 = vld [vmem:[#allocation168_spill] sm:$0xff] }
 0x977   : > { %v14337_v39 = vpop.eup %9658 }
 0x978   : > { %5144 = vmax.xlane.f32.xlu1 %v17439_v42  ;;  %v4305_v42 = vadd.f32 %v14328_v21, %v14326_v30  ;;  %v4205_v14 = vmul.f32 1.442695, %v4091_v7  ;;  %v4096_v7 = vsub.f32 %v17321_v47, %v14261_v56 }
 0x979   : > { %4300 = vadd.xlane.f32.xlu0 %v4299_v52  ;;  %v14339_v52 = vpop.eup %9660 }
 0x97a   : > { %v4296_v17 = vadd.f32 %v14339_v52, %v14337_v39  ;;  %v14348_v38 = vpop.eup %9662  ;;  %9670 = vpow2.f32 %v4205_v14 }
 0x97b   : > { %17446 = vst [vmem:[#allocation208_spill] sm:$0xff] %v14348_v38  ;;  %9672 = vpow2.f32 %v4207_v15  ;;  %v4215_v15 = vmul.f32 1.442695, %v4096_v7 }
 0x97c   : > { %4291 = vadd.xlane.f32.xlu1 %v4290_v33  ;;  %v14350_v33 = vpop.eup %9664 }
 0x97d   : > { %5159 = vmax.xlane.f32.xlu0 %v17442_v24  ;;  %v4095_v24 = vsub.f32 %v17320_v55, %v14261_v56  ;;  %v4311_v10 = vadd.f32 %v14350_v33, %v14348_v38  ;;  %v17452_v55 = vmax.f32 %v17450_v50, %v17451_v37  ;;  %v17456_v50 = vld [vmem:[#allocation155_spill] sm:$0xff] }
 0x97f   : > { %v4213_v14 = vmul.f32 1.442695, %v4095_v24 }
 0x980   : > { %5150 = vmax.xlane.f32.xlu1 %v17445_v34  ;;  %v17448_v34 = vld [vmem:[#allocation90_spill] sm:$0xff] }
 0x981   : > { %4306 = vadd.xlane.f32.xlu0 %v4305_v42  ;;  %v17449_v49 = vmax.f32 %v17447_v28, %v17448_v34  ;;  %v14359_v42 = vpop.eup %9666  ;;  %9674 = vpow2.f32 %v4213_v14  ;;  %v17458_v14 = vmax.f32 %v17456_v50, %v17457_v31 }
 0x982   : > { %v14361_v0 = vpop.eup %9668  ;;  %9676 = vpow2.f32 %v4215_v15 }
 0x983   : > { %v4302_v47 = vadd.f32 %v14361_v0, %v14359_v42 }
 0x984   : > { %4297 = vadd.xlane.f32.xlu1 %v4296_v17  ;;  %v17453_v17 = vld [vmem:[#allocation163_spill] sm:$0xff]  ;;  %v14373_v28 = vpop.eup %9670 }
 0x985   : > { %5165 = vmax.xlane.f32.xlu0 %v17449_v49  ;;  %v17454_v49 = vld [vmem:[#allocation110_spill] sm:$0xff] }
 0x986   : > { %v17455_v34 = vmax.f32 %v17453_v17, %v17454_v49 }
 0x988   : > { %5156 = vmax.xlane.f32.xlu1 %v17452_v55  ;;  %v14377_v55 = vpop.eup %9672 }
 0x989   : > { %4312 = vadd.xlane.f32.xlu0 %v4311_v10 }
 0x98c   : > { %4303 = vadd.xlane.f32.xlu1 %v4302_v47  ;;  %v4308_v47 = vadd.f32 %v14377_v55, %v14373_v28 }
 0x98d   : > { %v4031_v56 = vpop.xlane.xlu0 %4030  ;;  %5171 = vmax.xlane.f32.xlu0 %v17455_v34  ;;  %v14384_v34 = vpop.eup %9674 }
 0x98e   : > { %v4097_v24 = vsub.f32 %v17328_v11, %v4031_v56  ;;  %v4098_v37 = vsub.f32 %v17329_v60, %v4031_v56  ;;  %17459 = vst [vmem:[#allocation154_spill] sm:$0xff] %v14384_v34  ;;  %v14386_v11 = vpop.eup %9676  ;;  %v17460_v60 = vld [vmem:[#allocation166_spill] sm:$0xff]  ;;  %v17461_v56 = vld [vmem:[#allocation109_spill] sm:$0xff] }
 0x990   : > { %v4217_v10 = vmul.f32 1.442695, %v4097_v24  ;;  %v4219_v7 = vmul.f32 1.442695, %v4098_v37  ;;  %5162 = vmax.xlane.f32.xlu1 %v17458_v14  ;;  %v17462_v24 = vmax.f32 %v17460_v60, %v17461_v56  ;;  %v4314_v37 = vadd.f32 %v14386_v11, %v14384_v34  ;;  %v17467_v56 = vld [vmem:[#allocation108_spill] sm:$0xff] }
 0x991   : > { %v4470_v15 = vpop.permute.xlu0 %4469 }
 0x992   : > { %9678 = vpow2.f32 %v4217_v10  ;;  %8331 = vmatpush3.bf16.msra.mxu0 %v4470_v15 }
 0x993   : > { %9680 = vpow2.f32 %v4219_v7 }
 0x994   : > { %4309 = vadd.xlane.f32.xlu1 %v4308_v47  ;;  %9682 = vrcp.f32 %v14106_v20 }
 0x995   : > { %9684 = vrcp.f32 %v14094_v51  ;;  %v4472_v51 = vpop.permute.xlu0 %4471 }
 0x998   : > { %5168 = vmax.xlane.f32.xlu1 %v17462_v24  ;;  %v17466_v24 = vld [vmem:[#allocation92_spill] sm:$0xff] }
 0x999   : > { %v17468_v60 = vmax.f32 %v17466_v24, %v17467_v56 }
 0x99b   : > { %v8264_v10 = vpop.f32.mrb[188].mxu0 }
 0x99c   : > { %v14393_v14 = vpop.eup %9678  ;;  %4315 = vadd.xlane.f32.xlu1 %v4314_v37  ;;  %v8265_v15 = vpop.f32.mrb[189].mxu0 }
 0x99d   : > { %17463 = vst [vmem:[#allocation74_spill] sm:$0xff] %v14393_v14  ;;  %v14395_v31 = vpop.eup %9680  ;;  %v14397_v7 = vadd.f32 %v8265_v15, %v8264_v10  ;;  %v8267_v47 = vpop.f32.mrb[190].mxu0  ;;  %v17469_v10 = vld [vmem:[#allocation179_spill] sm:$0xff] }
 0x99e   : > { %v4317_v50 = vadd.f32 %v14395_v31, %v14393_v14  ;;  %v8268_v49 = vpop.f32.mrb[191].mxu0  ;;  %v17470_v15 = vld [vmem:[#allocation111_spill] sm:$0xff]  ;;  %v9683_v20 = vpop.eup %9682 }
 0x99f   : > { %17464 = vst [vmem:[#allocation60_spill] sm:$0xff] %v14397_v7  ;;  %v14401_v17 = vadd.f32 %v8268_v49, %v8267_v47  ;;  %v17471_v38 = vmax.f32 %v17469_v10, %v17470_v15  ;;  %v9685_v37 = vpop.eup %9684 }
 0x9a0   : > { %5174 = vmax.xlane.f32.xlu1 %v17468_v60  ;;  %4318 = vadd.xlane.f32.xlu0 %v4317_v50 }
 0x9a1   : > { %17465 = vst [vmem:[#allocation157_spill] sm:$0xff] %v14401_v17 }
 0x9a4   : > { %v4034_v34 = vpop.xlane.xlu1 %4033  ;;  %5177 = vmax.xlane.f32.xlu0 %v17471_v38  ;;  %v4368_v38 = vmul.f32 %v9683_v20, %v13924_v5 }
 0x9a5   : > { %v4099_v49 = vsub.f32 %v17344_v41, %v4034_v34  ;;  %v4100_v47 = vsub.f32 %v17345_v53, %v4034_v34  ;;  %v4366_v41 = vmul.f32 %v9685_v37, %v13913_v29  ;;  %v4367_v29 = vmul.f32 %v9683_v20, %v13920_v19  ;;  %v17477_v20 = vld [vmem:[#allocation127_spill] sm:$0xff] }
 0x9a7   : > { %v4221_v14 = vmul.f32 1.442695, %v4099_v49  ;;  %v4223_v56 = vmul.f32 1.442695, %v4100_v47  ;;  %v4365_v49 = vmul.f32 %v9685_v37, %v13911_v40 }
 0x9a8   : > { %v4253_v60 = vpop.xlane.xlu1 %4252 }
 0x9a9   : > { %9686 = vpow2.f32 %v4221_v14 }
 0x9aa   : > { %9688 = vpow2.f32 %v4223_v56  ;;  %v4428_v56 = vpack.c.bf16 %v4368_v38, %v4366_v41 }
 0x9ab   : > { %9690 = vrcp.f32 %v14291_v58 }
 0x9ac   : > { %v4256_v50 = vpop.xlane.xlu1 %4255  ;;  %9692 = vrcp.f32 %v14276_v1  ;;  %v17472_v1 = vpack.c.bf16 %v14017_v62, %v14014_v27  ;;  %v4427_v27 = vpack.c.bf16 %v4367_v29, %v4365_v49 }
 0x9ad   : > { %9694 = vrcp.f32 %v4256_v50  ;;  %v17473_v50 = vld [vmem:[#allocation162_spill] sm:$0xff] }
 0x9ae   : > { %9696 = vrcp.f32 %v4253_v60  ;;  %v17474_v60 = vld [vmem:[#allocation112_spill] sm:$0xff] }
 0x9af   : > { %v17475_v38 = vmax.f32 %v17473_v50, %v17474_v60 }
 0x9b0   : > { %v4488_v7 = vpop.permute.xlu1 %4487 }
 0x9b1   : > { %8332 = vmatprep.subr.bf16.mxu0 %v4488_v7 }
 0x9b2   : > { %8333 = vmatpush3.bf16.msra.mxu0 %v4472_v51 }
 0x9b3   : > { %v14419_v53 = vpop.eup %9686 }
 0x9b4   : > { %v14421_v34 = vpop.eup %9688 }
 0x9b5   : > { %v9691_v58 = vpop.eup %9690  ;;  %4538 = vmatmul.mubr.bf16.vlgmr.msra.gmra.mrb[192].mxu0 %v17472_v1  ;;  %v4320_v5 = vadd.f32 %v14421_v34, %v14419_v53  ;;  %v17476_v1 = vld [vmem:[#allocation136_spill] sm:$0xff] }
 0x9b6   : > { %4545 = vmatprep.mubr.bf16.mxu0 %v4428_v56  ;;  %v9693_v14 = vpop.eup %9692  ;;  %v4372_v7 = vmul.f32 %v9691_v58, %v13994_v26  ;;  %v4371_v56 = vmul.f32 %v9691_v58, %v13990_v18  ;;  %v17482_v18 = vld [vmem:[#allocation83_spill] sm:$0xff] }
 0x9b7   : > { %4321 = vadd.xlane.f32.xlu1 %v4320_v5  ;;  %v4370_v47 = vmul.f32 %v9693_v14, %v13979_v32  ;;  %v9695_v51 = vpop.eup %9694  ;;  %v4369_v26 = vmul.f32 %v9693_v14, %v17477_v20  ;;  %v17478_v5 = vld [vmem:[#allocation133_spill] sm:$0xff] }
 0x9b8   : > { %v9697_v41 = vpop.eup %9696  ;;  %v4376_v19 = vmul.f32 %v9695_v51, %v17476_v1 }
 0x9b9   : > { %v4430_v62 = vpack.c.bf16 %v4372_v7, %v4370_v47  ;;  %v4374_v40 = vmul.f32 %v9697_v41, %v17478_v5  ;;  %v4429_v37 = vpack.c.bf16 %v4371_v56, %v4369_v26  ;;  %v17480_v7 = vld [vmem:[#allocation106_spill] sm:$0xff]  ;;  %v17481_v47 = vld [vmem:[#allocation139_spill] sm:$0xff]  ;;  %v4373_v58 = vmul.f32 %v9697_v41, %v17482_v18 }
 0x9bb   : > { %5180 = vmax.xlane.f32.xlu1 %v17475_v38  ;;  %v4432_v32 = vpack.c.bf16 %v4376_v19, %v4374_v40  ;;  %v17479_v38 = vld [vmem:[#allocation105_spill] sm:$0xff] }
 0x9bd   : > { %4546 = vmatmul.mubr.bf16.gmra.mrb[196].mxu0 %v4427_v27  ;;  %v4375_v27 = vmul.f32 %v9695_v51, %v17481_v47 }
 0x9be   : > { %4553 = vmatprep.mubr.bf16.mxu0 %v4430_v62 }
 0x9bf   : > { %v4431_v14 = vpack.c.bf16 %v4375_v27, %v4373_v58 }
 0x9c5   : > { %4554 = vmatmul.mubr.bf16.gmra.mrb[200].mxu0 %v4429_v37  ;;  %v17483_v37 = vld [vmem:[#allocation150_spill] sm:$0xff] }
 0x9c6   : > { %4561 = vmatprep.mubr.bf16.mxu0 %v4432_v32  ;;  %v4037_v17 = vpop.xlane.xlu0 %4036  ;;  %v17484_v32 = vld [vmem:[#allocation159_spill] sm:$0xff] }
 0x9c7   : > { %v4101_v29 = vsub.f32 %v17479_v38, %v4037_v17  ;;  %v4102_v49 = vsub.f32 %v17480_v7, %v4037_v17 }
 0x9c9   : > { %v4225_v62 = vmul.f32 1.442695, %v4101_v29  ;;  %v4227_v60 = vmul.f32 1.442695, %v4102_v49  ;;  %v17485_v29 = vld [vmem:[#allocation102_spill] sm:$0xff] }
 0x9ca   : > { %v4259_v1 = vpop.xlane.xlu0 %4258  ;;  %v17486_v49 = vld [vmem:[#allocation158_spill] sm:$0xff] }
 0x9cb   : > { %9698 = vpow2.f32 %v4225_v62 }
 0x9cc   : > { %9700 = vpow2.f32 %v4227_v60 }
 0x9cd   : > { %9702 = vrcp.f32 %v4259_v1  ;;  %4562 = vmatmul.mubr.bf16.gmra.mrb[204].mxu0 %v4431_v14 }
 0x9ce   : > { %v4262_v56 = vpop.xlane.xlu0 %4261 }
 0x9cf   : > { %9704 = vrcp.f32 %v4262_v56 }
 0x9d2   : > { %v5118_v19 = vpop.xlane.xlu0 %5117 }
 0x9d5   : > { %v14443_v20 = vpop.eup %9698 }
 0x9d6   : > { %v14445_v26 = vpop.eup %9700  ;;  %v4265_v17 = vpop.xlane.xlu0 %4264 }
 0x9d7   : > { %v9703_v5 = vpop.eup %9702  ;;  %v4323_v51 = vadd.f32 %v14445_v26, %v14443_v20 }
 0x9d8   : > { %v4378_v60 = vmul.f32 %v9703_v5, %v17483_v37  ;;  %v4377_v7 = vmul.f32 %v9703_v5, %v17485_v29 }
 0x9d9   : > { %v9705_v40 = vpop.eup %9704  ;;  %4324 = vadd.xlane.f32.xlu0 %v4323_v51 }
 0x9da   : > { %v14449_v41 = vpop.xlane.xlu0 %5123  ;;  %v4380_v38 = vmul.f32 %v9705_v40, %v17484_v32  ;;  %v4379_v47 = vmul.f32 %v9705_v40, %v17486_v49 }
 0x9dc   : > { %v4434_v27 = vpack.c.bf16 %v4380_v38, %v4378_v60  ;;  %v4433_v62 = vpack.c.bf16 %v4379_v47, %v4377_v7 }
 0x9de   : > { %v4271_v18 = vpop.xlane.xlu0 %4270  ;;  %4569 = vmatprep.mubr.bf16.mxu0 %v4434_v27  ;;  %v5212_v27 = vsub.f32 %v17381_v57, %v5118_v19 }
 0x9df   : > { %4570 = vmatmul.mubr.bf16.gmra.mrb[208].mxu0 %v4433_v62 }
 0x9e0   : > { %v5276_v24 = vmul.f32 1.442695, %v5212_v27  ;;  %v17496_v27 = vld [vmem:[#allocation182_spill] sm:$0xff] }
 0x9e1   : > { %v4040_v58 = vpop.xlane.xlu1 %4039 }
 0x9e2   : > { %v4103_v1 = vsub.f32 %v17396_v59, %v4040_v58  ;;  %v4104_v14 = vsub.f32 %v17397_v16, %v4040_v58  ;;  %v14457_v56 = vpop.xlane.xlu0 %5129  ;;  %v17487_v59 = vld [vmem:[#allocation61_spill] sm:$0xff]  ;;  %v5213_v58 = vsub.f32 %v17382_v9, %v5118_v19 }
 0x9e4   : > { %v4229_v51 = vmul.f32 1.442695, %v4103_v1  ;;  %v4231_v37 = vmul.f32 1.442695, %v4104_v14  ;;  %v5278_v15 = vmul.f32 1.442695, %v5213_v58 }
 0x9e5   : > { %v14459_v50 = vpop.xlane.xlu1 %5120 }
 0x9e6   : > { %9706 = vpow2.f32 %v4229_v51  ;;  %v4277_v5 = vpop.xlane.xlu0 %4276  ;;  %v17489_v51 = vld [vmem:[#allocation176_spill] sm:$0xff] }
 0x9e7   : > { %9708 = vpow2.f32 %v4231_v37  ;;  %v17490_v37 = vld [vmem:[#allocation93_spill] sm:$0xff] }
 0x9e8   : > { %9710 = vrcp.f32 %v4265_v17 }
 0x9e9   : > { %v4268_v40 = vpop.xlane.xlu1 %4267 }
 0x9ea   : > { %v14461_v60 = vpop.xlane.xlu0 %5135  ;;  %9712 = vrcp.f32 %v4268_v40  ;;  %v17491_v40 = vmax.f32 %v17489_v51, %v17490_v37  ;;  %v17493_v37 = vld [vmem:[#allocation66_spill] sm:$0xff] }
 0x9eb   : > { %9714 = vrcp.f32 %v4271_v18 }
 0x9ed   : > { %v14463_v32 = vpop.xlane.xlu1 %5126 }
 0x9ee   : > { %v4283_v38 = vpop.xlane.xlu0 %4282 }
 0x9ef   : > { %5644 = vrot.lane.b32.xlu0 %v17487_v59, %s10341_s15 }
 0x9f0   : > { %v14467_v16 = vpop.eup %9706 }
 0x9f1   : > { %v14469_v29 = vpop.eup %9708  ;;  %v4274_v7 = vpop.xlane.xlu1 %4273 }
 0x9f2   : > { %v4326_v49 = vadd.f32 %v14469_v29, %v14467_v16  ;;  %v14473_v47 = vpop.xlane.xlu0 %5141  ;;  %9716 = vrcp.f32 %v4274_v7  ;;  %v9711_v17 = vpop.eup %9710 }
 0x9f3   : > { %17488 = vst [vmem:[#allocation117_spill] sm:$0xff] %v14473_v47  ;;  %v4382_v18 = vmul.f32 %v9711_v17, %v14145_v45  ;;  %9718 = vrcp.f32 %v4277_v5  ;;  %v17492_v47 = vld [vmem:[#allocation148_spill] sm:$0xff] }
 0x9f4   : > { %4327 = vadd.xlane.f32.xlu1 %v4326_v49  ;;  %v9713_v1 = vpop.eup %9712  ;;  %v4381_v49 = vmul.f32 %v9711_v17, %v14143_v43 }
 0x9f5   : > { %v14476_v62 = vpop.xlane.xlu1 %5132  ;;  %v4384_v59 = vmul.f32 %v9713_v1, %v14201_v54  ;;  %v4383_v57 = vmul.f32 %v9713_v1, %v14199_v46  ;;  %v9715_v19 = vpop.eup %9714  ;;  %v17495_v46 = vld [vmem:[#allocation152_spill] sm:$0xff] }
 0x9f6   : > { %v4289_v14 = vpop.xlane.xlu0 %4288  ;;  %v4386_v17 = vmul.f32 %v9715_v19, %v17495_v46  ;;  %v4385_v58 = vmul.f32 %v9715_v19, %v17496_v27  ;;  %v17497_v19 = vld [vmem:[#allocation116_spill] sm:$0xff] }
 0x9f7   : > { %v4436_v10 = vpack.c.bf16 %v4384_v59, %v4382_v18  ;;  %v4435_v9 = vpack.c.bf16 %v4383_v57, %v4381_v49 }
 0x9f8   : > { %5183 = vmax.xlane.f32.xlu1 %v17491_v40  ;;  %v17494_v40 = vmax.f32 %v17492_v47, %v17493_v37 }
 0x9f9   : > { %v4280_v7 = vpop.xlane.xlu1 %4279  ;;  %4577 = vmatprep.mubr.bf16.mxu0 %v4436_v10 }
 0x9fa   : > { %9720 = vrcp.f32 %v4280_v7  ;;  %4578 = vmatmul.mubr.bf16.gmra.mrb[212].mxu0 %v4435_v9  ;;  %v14489_v45 = vpop.xlane.xlu0 %5147 }
 0x9fb   : > { %9722 = vpow2.f32 %v5276_v24 }
 0x9fc   : > { %5186 = vmax.xlane.f32.xlu1 %v17494_v40  ;;  %v9717_v43 = vpop.eup %9716  ;;  %9724 = vpow2.f32 %v5278_v15 }
 0x9fd   : > { %v14491_v54 = vpop.xlane.xlu1 %5138  ;;  %v4388_v5 = vmul.f32 %v9717_v43, %v14227_v6  ;;  %v4387_v10 = vmul.f32 %v9717_v43, %v14225_v12  ;;  %9726 = vrcp.f32 %v4283_v38  ;;  %v9719_v7 = vpop.eup %9718 }
 0x9fe   : > { %v4295_v24 = vpop.xlane.xlu0 %4294  ;;  %v4390_v6 = vmul.f32 %v9719_v7, %v14187_v25  ;;  %v4389_v12 = vmul.f32 %v9719_v7, %v17497_v19 }
 0x9ff   : > { %v4438_v1 = vpack.c.bf16 %v4388_v5, %v4386_v17  ;;  %v4437_v59 = vpack.c.bf16 %v4387_v10, %v4385_v58 }
 0xa01   : > { %v4286_v18 = vpop.xlane.xlu1 %4285  ;;  %4585 = vmatprep.mubr.bf16.mxu0 %v4438_v1 }
 0xa02   : > { %9728 = vrcp.f32 %v4286_v18  ;;  %4586 = vmatmul.mubr.bf16.gmra.mrb[216].mxu0 %v4437_v59  ;;  %v14507_v38 = vpop.xlane.xlu0 %5153 }
 0xa03   : > { %9730 = vrcp.f32 %v4289_v14 }
 0xa04   : > { %v9721_v15 = vpop.eup %9720 }
 0xa05   : > { %v14497_v49 = vpop.xlane.xlu1 %5144  ;;  %v14499_v57 = vpop.eup %9722  ;;  %v4392_v9 = vmul.f32 %v9721_v15, %v14259_v63  ;;  %v4391_v40 = vmul.f32 %v9721_v15, %v14257_v22  ;;  %v17498_v63 = vld [vmem:[#allocation55_spill] sm:$0xff] }
 0xa06   : > { %v14505_v43 = vpop.eup %9724  ;;  %v4301_v10 = vpop.xlane.xlu0 %4300 }
 0xa07   : > { %v4440_v46 = vpack.c.bf16 %v4392_v9, %v4390_v6  ;;  %v4439_v5 = vpack.c.bf16 %v4391_v40, %v4389_v12  ;;  %v9727_v27 = vpop.eup %9726  ;;  %v5404_v25 = vadd.f32 %v14505_v43, %v14499_v57 }
 0xa08   : > { %v4394_v1 = vmul.f32 %v9727_v27, %v14216_v48  ;;  %v4393_v14 = vmul.f32 %v9727_v27, %v14214_v3  ;;  %v17499_v3 = vld [vmem:[#allocation156_spill] sm:$0xff] }
 0xa09   : > { %v4292_v17 = vpop.xlane.xlu1 %4291  ;;  %4593 = vmatprep.mubr.bf16.mxu0 %v4440_v46 }
 0xa0a   : > { %9732 = vrcp.f32 %v4292_v17  ;;  %4594 = vmatmul.mubr.bf16.gmra.mrb[220].mxu0 %v4439_v5  ;;  %v14519_v19 = vpop.xlane.xlu0 %5159  ;;  %v17500_v17 = vld [vmem:[#allocation223_spill] sm:$0xff]  ;;  %v17501_v5 = vld [vmem:[#allocation89_spill] sm:$0xff] }
 0xa0b   : > { %9734 = vrcp.f32 %v4295_v24  ;;  %v5214_v24 = vsub.f32 %v17500_v17, %v14459_v50  ;;  %v5215_v27 = vsub.f32 %v17501_v5, %v14459_v50  ;;  %v17503_v17 = vld [vmem:[#allocation64_spill] sm:$0xff] }
 0xa0c   : > { %v9729_v22 = vpop.eup %9728 }
 0xa0d   : > { %5628 = vrot.lane.b32.xlu1 %v17498_v63, %s10341_s15  ;;  %v14513_v58 = vpop.xlane.xlu1 %5150  ;;  %v4396_v18 = vmul.f32 %v9729_v22, %v14289_v61  ;;  %v4395_v59 = vmul.f32 %v9729_v22, %v14287_v2  ;;  %v9731_v9 = vpop.eup %9730 }
 0xa0e   : > { %5405 = vadd.xlane.f32.xlu0 %v5404_v25  ;;  %v4398_v48 = vmul.f32 %v9731_v9, %v14246_v23  ;;  %v4397_v46 = vmul.f32 %v9731_v9, %v17499_v3  ;;  %v5280_v23 = vmul.f32 1.442695, %v5214_v24 }
 0xa0f   : > { %v4442_v7 = vpack.c.bf16 %v4396_v18, %v4394_v1  ;;  %v4441_v6 = vpack.c.bf16 %v4395_v59, %v4393_v14  ;;  %v4307_v1 = vpop.xlane.xlu0 %4306 }
 0xa11   : > { %v4298_v15 = vpop.xlane.xlu1 %4297  ;;  %4601 = vmatprep.mubr.bf16.mxu0 %v4442_v7 }
 0xa12   : > { %9736 = vrcp.f32 %v4298_v15  ;;  %4602 = vmatmul.mubr.bf16.gmra.mrb[224].mxu0 %v4441_v6 }
 0xa13   : > { %9738 = vrcp.f32 %v4301_v10  ;;  %v14537_v10 = vpop.xlane.xlu0 %5165 }
 0xa14   : > { %v9733_v40 = vpop.eup %9732 }
 0xa15   : > { %v14521_v12 = vpop.xlane.xlu1 %5156  ;;  %v4400_v61 = vmul.f32 %v9733_v40, %v14317_v8  ;;  %v4399_v2 = vmul.f32 %v9733_v40, %v14315_v4  ;;  %v9735_v18 = vpop.eup %9734  ;;  %v5282_v8 = vmul.f32 1.442695, %v5215_v27 }
 0xa16   : > { %v4402_v59 = vmul.f32 %v9735_v18, %v14278_v35  ;;  %v4401_v50 = vmul.f32 %v9735_v18, %v14274_v13 }
 0xa17   : > { %v4444_v25 = vpack.c.bf16 %v4400_v61, %v4398_v48  ;;  %v4443_v22 = vpack.c.bf16 %v4399_v2, %v4397_v46  ;;  %v17502_v61 = vld [vmem:[#allocation63_spill] sm:$0xff] }
 0xa19   : > { %v4304_v63 = vpop.xlane.xlu1 %4303  ;;  %4609 = vmatprep.mubr.bf16.mxu0 %v4444_v25 }
 0xa1a   : > { %9740 = vrcp.f32 %v4304_v63  ;;  %4610 = vmatmul.mubr.bf16.gmra.mrb[228].mxu0 %v4443_v22 }
 0xa1b   : > { %9742 = vpow2.f32 %v5280_v23 }
 0xa1c   : > { %v9737_v4 = vpop.eup %9736  ;;  %9744 = vpow2.f32 %v5282_v8 }
 0xa1d   : > { %v14531_v14 = vpop.xlane.xlu1 %5162  ;;  %v4404_v7 = vmul.f32 %v9737_v4, %v14339_v52  ;;  %v4403_v15 = vmul.f32 %v9737_v4, %v14337_v39  ;;  %9746 = vrcp.f32 %v4307_v1  ;;  %v9739_v48 = vpop.eup %9738 }
 0xa1e   : > { %v4313_v52 = vpop.xlane.xlu0 %4312  ;;  %v4406_v39 = vmul.f32 %v9739_v48, %v14306_v36  ;;  %v4405_v46 = vmul.f32 %v9739_v48, %v14304_v44 }
 0xa1f   : > { %v4446_v6 = vpack.c.bf16 %v4404_v7, %v4402_v59  ;;  %v4445_v40 = vpack.c.bf16 %v4403_v15, %v4401_v50  ;;  %v17504_v15 = vld [vmem:[#allocation208_spill] sm:$0xff] }
 0xa21   : > { %v4310_v9 = vpop.xlane.xlu1 %4309  ;;  %4617 = vmatprep.mubr.bf16.mxu0 %v4446_v6 }
 0xa22   : > { %9748 = vrcp.f32 %v4310_v9  ;;  %4618 = vmatmul.mubr.bf16.gmra.mrb[232].mxu0 %v4445_v40 }
 0xa23   : > { %9750 = vrcp.f32 %v4313_v52 }
 0xa24   : > { %5646 = vrot.lane.b32.xlu0 %v17502_v61, %s10341_s15  ;;  %v9741_v13 = vpop.eup %9740  ;;  %v17506_v61 = vld [vmem:[#allocation52_spill] sm:$0xff] }
 0xa25   : > { %v14541_v35 = vpop.xlane.xlu1 %5168  ;;  %v4408_v3 = vmul.f32 %v9741_v13, %v14361_v0  ;;  %v4407_v2 = vmul.f32 %v9741_v13, %v14359_v42  ;;  %v14549_v25 = vpop.eup %9742  ;;  %v17508_v13 = vld [vmem:[#allocation174_spill] sm:$0xff] }
 0xa26   : > { %v14551_v63 = vpop.eup %9744 }
 0xa27   : > { %v4448_v24 = vpack.c.bf16 %v4408_v3, %v4406_v39  ;;  %v4447_v27 = vpack.c.bf16 %v4407_v2, %v4405_v46  ;;  %v9747_v22 = vpop.eup %9746  ;;  %v5407_v44 = vadd.f32 %v14551_v63, %v14549_v25 }
 0xa28   : > { %5648 = vrot.lane.b32.xlu0 %v17503_v17, %s10341_s15  ;;  %v4410_v0 = vmul.f32 %v9747_v22, %v14328_v21  ;;  %v4409_v1 = vmul.f32 %v9747_v22, %v14326_v30  ;;  %v17505_v21 = vld [vmem:[#allocation154_spill] sm:$0xff]  ;;  %v14563_v30 = vpop.xlane.xlu0 %5171 }
 0xa29   : > { %v4316_v5 = vpop.xlane.xlu1 %4315  ;;  %4625 = vmatprep.mubr.bf16.mxu0 %v4448_v24  ;;  %v17510_v17 = vld [vmem:[#allocation74_spill] sm:$0xff] }
 0xa2a   : > { %9752 = vrcp.f32 %v4316_v5  ;;  %4626 = vmatmul.mubr.bf16.gmra.mrb[236].mxu0 %v4447_v27  ;;  %v17511_v27 = vld [vmem:[#allocation224_spill] sm:$0xff] }
 0xa2b   : > { %v5216_v22 = vsub.f32 %v17511_v27, %v14449_v41 }
 0xa2c   : > { %v9749_v36 = vpop.eup %9748 }
 0xa2d   : > { %v4412_v42 = vmul.f32 %v9749_v36, %v14377_v55  ;;  %v4411_v18 = vmul.f32 %v9749_v36, %v14373_v28  ;;  %v9751_v4 = vpop.eup %9750  ;;  %v14565_v28 = vpop.xlane.xlu1 %5174 }
 0xa2e   : > { %v4414_v7 = vmul.f32 %v9751_v4, %v14350_v33  ;;  %v4413_v6 = vmul.f32 %v9751_v4, %v17504_v15  ;;  %v4319_v48 = vpop.xlane.xlu0 %4318 }
 0xa2f   : > { %v4450_v23 = vpack.c.bf16 %v4412_v42, %v4410_v0  ;;  %v4449_v8 = vpack.c.bf16 %v4411_v18, %v4409_v1  ;;  %9754 = vrcp.f32 %v4319_v48  ;;  %v17512_v0 = vld [vmem:[#allocation225_spill] sm:$0xff]  ;;  %v5284_v1 = vmul.f32 1.442695, %v5216_v22  ;;  %v17513_v18 = vld [vmem:[#allocation147_spill] sm:$0xff] }
 0xa30   : > { %v5217_v42 = vsub.f32 %v17512_v0, %v14449_v41  ;;  %v17516_v41 = vld [vmem:[#allocation54_spill] sm:$0xff] }
 0xa31   : > { %5408 = vadd.xlane.f32.xlu1 %v5407_v44  ;;  %4633 = vmatprep.mubr.bf16.mxu0 %v4450_v23 }
 0xa32   : > { %4634 = vmatmul.mubr.bf16.gmra.mrb[240].mxu0 %v4449_v8  ;;  %v5286_v23 = vmul.f32 1.442695, %v5217_v42 }
 0xa34   : > { %v9753_v59 = vpop.eup %9752 }
 0xa35   : > { %v4416_v50 = vmul.f32 %v9753_v59, %v14386_v11  ;;  %v4415_v9 = vmul.f32 %v9753_v59, %v17505_v21  ;;  %v17507_v11 = vld [vmem:[#allocation170_spill] sm:$0xff]  ;;  %v17515_v59 = vld [vmem:[#allocation53_spill] sm:$0xff] }
 0xa36   : > { %v17509_v52 = vmax.f32 %v17507_v11, %v17508_v13  ;;  %v17519_v21 = vld [vmem:[#allocation149_spill] sm:$0xff] }
 0xa37   : > { %v4452_v55 = vpack.c.bf16 %v4416_v50, %v4414_v7  ;;  %v4451_v40 = vpack.c.bf16 %v4415_v9, %v4413_v6  ;;  %v14588_v7 = vpop.xlane.xlu0 %5177  ;;  %v17518_v6 = vld [vmem:[#allocation169_spill] sm:$0xff] }
 0xa38   : > { %v17520_v9 = vmax.f32 %v17518_v6, %v17519_v21 }
 0xa39   : > { %4641 = vmatprep.mubr.bf16.mxu0 %v4452_v55  ;;  %v9755_v39 = vpop.eup %9754 }
 0xa3a   : > { %4642 = vmatmul.mubr.bf16.gmra.mrb[244].mxu0 %v4451_v40  ;;  %v4418_v46 = vmul.f32 %v9755_v39, %v14395_v31  ;;  %v4417_v24 = vmul.f32 %v9755_v39, %v17510_v17  ;;  %v5218_v31 = vsub.f32 %v17513_v18, %v14463_v32  ;;  %v17523_v17 = vld [vmem:[#allocation114_spill] sm:$0xff] }
 0xa42   : > { %5630 = vrot.lane.b32.xlu1 %v17506_v61, %s10341_s15 }
 0xa44   : > { %v4322_v33 = vpop.xlane.xlu1 %4321 }
 0xa45   : > { %9756 = vrcp.f32 %v4322_v33 }
 0xa46   : > { %9758 = vpow2.f32 %v5284_v1 }
 0xa47   : > { %5189 = vmax.xlane.f32.xlu0 %v17509_v52  ;;  %9760 = vpow2.f32 %v5286_v23 }
 0xa48   : > { %v14607_v39 = vpop.xlane.xlu1 %5180 }
 0xa4f   : > { %v9757_v3 = vpop.eup %9756 }
 0xa50   : > { %v4420_v2 = vmul.f32 %v9757_v3, %v14421_v34  ;;  %v4419_v5 = vmul.f32 %v9757_v3, %v14419_v53  ;;  %v17514_v34 = vld [vmem:[#allocation145_spill] sm:$0xff]  ;;  %v5288_v53 = vmul.f32 1.442695, %v5218_v31  ;;  %v14590_v50 = vpop.eup %9758 }
 0xa51   : > { %v5219_v8 = vsub.f32 %v17514_v34, %v14463_v32  ;;  %v14592_v15 = vpop.eup %9760  ;;  %v17517_v32 = vld [vmem:[#allocation68_spill] sm:$0xff]  ;;  %v17521_v3 = vld [vmem:[#allocation65_spill] sm:$0xff] }
 0xa52   : > { %v4454_v36 = vpack.c.bf16 %v4420_v2, %v4418_v46  ;;  %v4453_v44 = vpack.c.bf16 %v4419_v5, %v4417_v24  ;;  %9762 = vpow2.f32 %v5288_v53  ;;  %v5410_v48 = vadd.f32 %v14592_v15, %v14590_v50  ;;  %v17522_v2 = vld [vmem:[#allocation113_spill] sm:$0xff] }
 0xa53   : > { %v5290_v4 = vmul.f32 1.442695, %v5219_v8  ;;  %v17524_v24 = vmax.f32 %v17522_v2, %v17523_v17 }
 0xa54   : > { %4649 = vmatprep.mubr.bf16.mxu0 %v4454_v36 }
 0xa55   : > { %4650 = vmatmul.mubr.bf16.gmra.mrb[248].mxu0 %v4453_v44  ;;  %9764 = vpow2.f32 %v5290_v4 }
 0xa5c   : > { %v14599_v40 = vpop.eup %9762 }
 0xa5d   : > { %5632 = vrot.lane.b32.xlu0 %v17515_v59, %s10341_s15 }
 0xa5f   : > { %v14603_v61 = vpop.eup %9764 }
 0xa60   : > { %v5413_v52 = vadd.f32 %v14603_v61, %v14599_v40 }
 0xa61   : > { %5634 = vrot.lane.b32.xlu0 %v17516_v41, %s10341_s15  ;;  %v17527_v41 = vld [vmem:[#allocation146_spill] sm:$0xff] }
 0xa65   : > { %5652 = vrot.lane.b32.xlu0 %v17517_v32, %s10341_s15  ;;  %v5220_v32 = vsub.f32 %v17527_v41, %v14457_v56 }
 0xa66   : > { %5192 = vmax.xlane.f32.xlu1 %v17520_v9  ;;  %v4325_v55 = vpop.xlane.xlu0 %4324 }
 0xa67   : > { %9766 = vrcp.f32 %v4325_v55 }
 0xa6a   : > { %5411 = vadd.xlane.f32.xlu1 %v5410_v48  ;;  %v5645_v33 = vpop.permute.xlu0 %5644  ;;  %v17528_v48 = vld [vmem:[#allocation97_spill] sm:$0xff] }
 0xa6b   : > { %8478 = vmatprep.subr.bf16.mxu0 %v5645_v33  ;;  %v5221_v33 = vsub.f32 %v17528_v48, %v14457_v56 }
 0xa6e   : > { %5414 = vadd.xlane.f32.xlu1 %v5413_v52 }
 0xa71   : > { %v9767_v44 = vpop.eup %9766 }
 0xa72   : > { %v4422_v34 = vmul.f32 %v9767_v44, %v14445_v26  ;;  %v4421_v53 = vmul.f32 %v9767_v44, %v14443_v20 }
 0xa7f   : > { %5650 = vrot.lane.b32.xlu1 %v17521_v3, %s10341_s15  ;;  %v17530_v3 = vld [vmem:[#allocation94_spill] sm:$0xff] }
 0xa81   : > { %v4328_v46 = vpop.xlane.xlu1 %4327 }
 0xa82   : > { %9768 = vrcp.f32 %v4328_v46  ;;  %v5222_v46 = vsub.f32 %v17530_v3, %v14476_v62 }
 0xa84   : > { %5195 = vmax.xlane.f32.xlu0 %v17524_v24 }
 0xa85   : > { %v14614_v5 = vpop.xlane.xlu1 %5183 }
 0xa88   : > { %v8334_v27 = vpop.f32.mrb[192].mxu0 }
 0xa89   : > { %v14616_v22 = vpop.xlane.xlu1 %5186  ;;  %v8335_v36 = vpop.f32.mrb[193].mxu0 }
 0xa8a   : > { %v14618_v0 = vadd.f32 %v8335_v36, %v8334_v27  ;;  %v8337_v42 = vpop.f32.mrb[194].mxu0  ;;  %v5294_v27 = vmul.f32 1.442695, %v5221_v33  ;;  %v17531_v36 = vld [vmem:[#allocation104_spill] sm:$0xff] }
 0xa8b   : > { %v8338_v1 = vpop.f32.mrb[195].mxu0  ;;  %v5223_v44 = vsub.f32 %v17531_v36, %v14476_v62 }
 0xa8c   : > { %17525 = vst [vmem:[#allocation186_spill] sm:$0xff] %v14618_v0  ;;  %v9769_v18 = vpop.eup %9768  ;;  %v14620_v31 = vadd.f32 %v8338_v1, %v8337_v42  ;;  %v5296_v1 = vmul.f32 1.442695, %v5222_v46  ;;  %v17538_v46 = vld [vmem:[#allocation73_spill] sm:$0xff] }
 0xa8d   : > { %v5629_v23 = vpop.permute.xlu1 %5628  ;;  %v4424_v8 = vmul.f32 %v9769_v18, %v14469_v29  ;;  %v4423_v4 = vmul.f32 %v9769_v18, %v14467_v16  ;;  %v5292_v16 = vmul.f32 1.442695, %v5220_v32  ;;  %v5298_v18 = vmul.f32 1.442695, %v5223_v44 }
 0xa8e   : > { %17526 = vst [vmem:[#allocation118_spill] sm:$0xff] %v14620_v31  ;;  %8479 = vmatpush3.bf16.msra.mxu0 %v5629_v23  ;;  %v17571_v31 = vld [vmem:[#allocation233_spill] sm:$0xff] }
 0xa8f   : > { %v4456_v9 = vpack.c.bf16 %v4424_v8, %v4422_v34  ;;  %v4455_v55 = vpack.c.bf16 %v4423_v4, %v4421_v53  ;;  %9770 = vpow2.f32 %v5292_v16  ;;  %v17534_v4 = vld [vmem:[#allocation56_spill] sm:$0xff] }
 0xa90   : > { %v8340_v52 = vpop.f32.mrb[196].mxu0  ;;  %9772 = vpow2.f32 %v5294_v27  ;;  %v17540_v27 = vld [vmem:[#allocation198_spill] sm:$0xff] }
 0xa91   : > { %4657 = vmatprep.mubr.bf16.mxu0 %v4456_v9  ;;  %v8341_v26 = vpop.f32.mrb[197].mxu0  ;;  %9774 = vpow2.f32 %v5296_v1 }
 0xa92   : > { %v14632_v29 = vadd.f32 %v8341_v26, %v8340_v52  ;;  %4658 = vmatmul.mubr.bf16.gmra.mrb[252].mxu0 %v4455_v55  ;;  %v8343_v20 = vpop.f32.mrb[198].mxu0  ;;  %9776 = vpow2.f32 %v5298_v18  ;;  %v17536_v55 = vld [vmem:[#allocation57_spill] sm:$0xff] }
 0xa93   : > { %v8344_v24 = vpop.f32.mrb[199].mxu0 }
 0xa94   : > { %17529 = vst [vmem:[#allocation119_spill] sm:$0xff] %v14632_v29  ;;  %v14638_v42 = vadd.f32 %v8344_v24, %v8343_v20  ;;  %v17539_v24 = vld [vmem:[#allocation196_spill] sm:$0xff] }
 0xa95   : > { %v17541_v36 = vmax.f32 %v17539_v24, %v17540_v27 }
 0xa96   : > { %17532 = vst [vmem:[#allocation184_spill] sm:$0xff] %v14638_v42 }
 0xa98   : > { %v8346_v23 = vpop.f32.mrb[200].mxu0 }
 0xa99   : > { %v8347_v34 = vpop.f32.mrb[201].mxu0  ;;  %v14652_v52 = vpop.eup %9770 }
 0xa9a   : > { %v14642_v8 = vadd.f32 %v8347_v34, %v8346_v23  ;;  %v8349_v53 = vpop.f32.mrb[202].mxu0  ;;  %5636 = vrot.lane.b32.xlu0 %v17534_v4, %s10341_s15  ;;  %v14654_v20 = vpop.eup %9772 }
 0xa9b   : > { %v8350_v41 = vpop.f32.mrb[203].mxu0  ;;  %v5406_v62 = vpop.xlane.xlu0 %5405  ;;  %v5416_v23 = vadd.f32 %v14654_v20, %v14652_v52 }
 0xa9c   : > { %17533 = vst [vmem:[#allocation67_spill] sm:$0xff] %v14642_v8  ;;  %v14646_v32 = vadd.f32 %v8350_v41, %v8349_v53  ;;  %v14665_v18 = vpop.eup %9774  ;;  %9778 = vrcp.f32 %v5406_v62  ;;  %v17547_v53 = vld [vmem:[#allocation122_spill] sm:$0xff] }
 0xa9d   : > { %v14669_v34 = vpop.eup %9776 }
 0xa9e   : > { %17535 = vst [vmem:[#allocation164_spill] sm:$0xff] %v14646_v32  ;;  %5638 = vrot.lane.b32.xlu0 %v17536_v55, %s10341_s15  ;;  %v5419_v4 = vadd.f32 %v14669_v34, %v14665_v18 }
 0xa9f   : > { %v5647_v48 = vpop.permute.xlu0 %5646 }
 0xaa0   : > { %v8352_v33 = vpop.f32.mrb[204].mxu0  ;;  %8480 = vmatprep.subr.bf16.mxu0 %v5647_v48 }
 0xaa1   : > { %v8353_v26 = vpop.f32.mrb[205].mxu0 }
 0xaa2   : > { %v14656_v16 = vadd.f32 %v8353_v26, %v8352_v33  ;;  %v8355_v3 = vpop.f32.mrb[206].mxu0  ;;  %5656 = vrot.lane.b32.xlu0 %v17538_v46, %s10341_s15 }
 0xaa3   : > { %5198 = vmax.xlane.f32.xlu1 %v17541_v36  ;;  %v8356_v44 = vpop.f32.mrb[207].mxu0  ;;  %v17545_v36 = vld [vmem:[#allocation70_spill] sm:$0xff] }
 0xaa4   : > { %17537 = vst [vmem:[#allocation120_spill] sm:$0xff] %v14656_v16  ;;  %v14663_v1 = vadd.f32 %v8356_v44, %v8355_v3 }
 0xaa6   : > { %17542 = vst [vmem:[#allocation210_spill] sm:$0xff] %v14663_v1 }
 0xaa7   : > { %5417 = vadd.xlane.f32.xlu1 %v5416_v23  ;;  %v17546_v23 = vld [vmem:[#allocation193_spill] sm:$0xff] }
 0xaab   : > { %5420 = vadd.xlane.f32.xlu1 %v5419_v4  ;;  %v17548_v4 = vmax.f32 %v17546_v23, %v17547_v53 }
 0xab2   : > { %v8358_v41 = vpop.f32.mrb[208].mxu0 }
 0xab3   : > { %v8359_v55 = vpop.f32.mrb[209].mxu0 }
 0xab4   : > { %v14675_v48 = vadd.f32 %v8359_v55, %v8358_v41  ;;  %v8361_v33 = vpop.f32.mrb[210].mxu0  ;;  %v5649_v41 = vpop.permute.xlu0 %5648 }
 0xab5   : > { %v8362_v26 = vpop.f32.mrb[211].mxu0  ;;  %v9779_v55 = vpop.eup %9778 }
 0xab6   : > { %17543 = vst [vmem:[#allocation211_spill] sm:$0xff] %v14675_v48  ;;  %v14677_v3 = vadd.f32 %v8362_v26, %v8361_v33  ;;  %v14687_v26 = vmul.f32 %v9779_v55, %v14499_v57  ;;  %v5533_v62 = vmul.f32 %v9779_v55, %v14505_v43  ;;  %v17551_v48 = vld [vmem:[#allocation228_spill] sm:$0xff]  ;;  %v17552_v43 = vld [vmem:[#allocation229_spill] sm:$0xff] }
 0xab8   : > { %17544 = vst [vmem:[#allocation96_spill] sm:$0xff] %v14677_v3 }
 0xabc   : > { %5654 = vrot.lane.b32.xlu1 %v17545_v36, %s10341_s15 }
 0xabe   : > { %v5409_v44 = vpop.xlane.xlu1 %5408 }
 0xabf   : > { %9780 = vrcp.f32 %v5409_v44  ;;  %v17549_v44 = vld [vmem:[#allocation226_spill] sm:$0xff] }
 0xac0   : > { %v5224_v59 = vsub.f32 %v17549_v44, %v14461_v60 }
 0xac1   : > { %5201 = vmax.xlane.f32.xlu0 %v17548_v4  ;;  %v17566_v4 = vld [vmem:[#allocation117_spill] sm:$0xff] }
 0xac2   : > { %v5631_v9 = vpop.permute.xlu1 %5630  ;;  %v5300_v57 = vmul.f32 1.442695, %v5224_v59 }
 0xac3   : > { %8481 = vmatpush3.bf16.msra.mxu0 %v5631_v9 }
 0xac4   : > { %8482 = vmatprep.subr.bf16.mxu0 %v5649_v41  ;;  %v17550_v41 = vld [vmem:[#allocation227_spill] sm:$0xff]  ;;  %9782 = vpow2.f32 %v5300_v57 }
 0xac5   : > { %v5225_v56 = vsub.f32 %v17550_v41, %v14461_v60 }
 0xac7   : > { %v5302_v16 = vmul.f32 1.442695, %v5225_v56  ;;  %v17555_v56 = vld [vmem:[#allocation58_spill] sm:$0xff] }
 0xac9   : > { %v9781_v33 = vpop.eup %9780  ;;  %9784 = vpow2.f32 %v5302_v16 }
 0xaca   : > { %v14690_v46 = vmul.f32 %v9781_v33, %v14549_v25  ;;  %v5535_v36 = vmul.f32 %v9781_v33, %v14551_v63  ;;  %v5226_v25 = vsub.f32 %v17551_v48, %v14491_v54  ;;  %v5227_v63 = vsub.f32 %v17552_v43, %v14491_v54 }
 0xacc   : > { %v5597_v9 = vpack.c.bf16 %v5535_v36, %v5533_v62  ;;  %v5304_v62 = vmul.f32 1.442695, %v5226_v25  ;;  %v5306_v59 = vmul.f32 1.442695, %v5227_v63  ;;  %v17557_v25 = vld [vmem:[#allocation59_spill] sm:$0xff] }
 0xacd   : > { %v8364_v3 = vpop.f32.mrb[212].mxu0 }
 0xace   : > { %5708 = vmatprep.mubr.bf16.mxu0 %v5597_v9  ;;  %v8365_v55 = vpop.f32.mrb[213].mxu0  ;;  %9786 = vpow2.f32 %v5304_v62  ;;  %v14720_v43 = vpop.eup %9782  ;;  %v17560_v62 = vld [vmem:[#allocation123_spill] sm:$0xff] }
 0xacf   : > { %v14704_v33 = vadd.f32 %v8365_v55, %v8364_v3  ;;  %v8367_v44 = vpop.f32.mrb[214].mxu0  ;;  %9788 = vpow2.f32 %v5306_v59  ;;  %17559 = vst [vmem:[#allocation212_spill] sm:$0xff] %v14720_v43  ;;  %v17561_v59 = vld [vmem:[#allocation191_spill] sm:$0xff] }
 0xad0   : > { %v8368_v1 = vpop.f32.mrb[215].mxu0 }
 0xad1   : > { %17553 = vst [vmem:[#allocation79_spill] sm:$0xff] %v14704_v33  ;;  %v14706_v36 = vadd.f32 %v8368_v1, %v8367_v44 }
 0xad3   : > { %17554 = vst [vmem:[#allocation107_spill] sm:$0xff] %v14706_v36  ;;  %v14724_v55 = vpop.eup %9784 }
 0xad4   : > { %v14708_v60 = vpop.xlane.xlu0 %5189 }
 0xad5   : > { %v8370_v54 = vpop.f32.mrb[216].mxu0 }
 0xad6   : > { %v8371_v9 = vpop.f32.mrb[217].mxu0 }
 0xad7   : > { %5640 = vrot.lane.b32.xlu0 %v17555_v56, %s10341_s15  ;;  %v14714_v41 = vadd.f32 %v8371_v9, %v8370_v54  ;;  %v8373_v1 = vpop.f32.mrb[218].mxu0  ;;  %v17562_v56 = vmax.f32 %v17560_v62, %v17561_v59 }
 0xad8   : > { %v5633_v3 = vpop.permute.xlu0 %5632  ;;  %v8374_v57 = vpop.f32.mrb[219].mxu0 }
 0xad9   : > { %8483 = vmatpush3.bf16.msra.mxu0 %v5633_v3  ;;  %17556 = vst [vmem:[#allocation71_spill] sm:$0xff] %v14714_v41  ;;  %v14718_v16 = vadd.f32 %v8374_v57, %v8373_v1  ;;  %v14729_v3 = vpop.eup %9786  ;;  %v5422_v1 = vadd.f32 %v14724_v55, %v14720_v43  ;;  %v17567_v41 = vld [vmem:[#allocation230_spill] sm:$0xff] }
 0xada   : > { %17563 = vst [vmem:[#allocation213_spill] sm:$0xff] %v14729_v3  ;;  %v14735_v57 = vpop.eup %9788 }
 0xadb   : > { %5642 = vrot.lane.b32.xlu0 %v17557_v25, %s10341_s15  ;;  %17558 = vst [vmem:[#allocation72_spill] sm:$0xff] %v14718_v16  ;;  %v5228_v16 = vsub.f32 %v17567_v41, %v17566_v4 }
 0xadd   : > { %v8376_v44 = vpop.f32.mrb[220].mxu0  ;;  %v5308_v32 = vmul.f32 1.442695, %v5228_v16 }
 0xade   : > { %v8377_v54 = vpop.f32.mrb[221].mxu0 }
 0xadf   : > { %v14731_v9 = vadd.f32 %v8377_v54, %v8376_v44  ;;  %v8379_v25 = vpop.f32.mrb[222].mxu0  ;;  %v5425_v44 = vadd.f32 %v14735_v57, %v14729_v3  ;;  %v17568_v54 = vld [vmem:[#allocation231_spill] sm:$0xff]  ;;  %9790 = vpow2.f32 %v5308_v32 }
 0xae0   : > { %5204 = vmax.xlane.f32.xlu1 %v17562_v56  ;;  %v8380_v48 = vpop.f32.mrb[223].mxu0  ;;  %v5229_v33 = vsub.f32 %v17568_v54, %v17566_v4  ;;  %v5231_v56 = vsub.f32 %v17571_v31, %v14497_v49  ;;  %v17573_v4 = vld [vmem:[#allocation234_spill] sm:$0xff] }
 0xae1   : > { %17564 = vst [vmem:[#allocation214_spill] sm:$0xff] %v14731_v9  ;;  %v14737_v63 = vadd.f32 %v8380_v48, %v8379_v25  ;;  %v17569_v48 = vld [vmem:[#allocation232_spill] sm:$0xff]  ;;  %v5232_v54 = vsub.f32 %v17573_v4, %v14489_v45 }
 0xae2   : > { %v5230_v25 = vsub.f32 %v17569_v48, %v14497_v49  ;;  %v5310_v41 = vmul.f32 1.442695, %v5229_v33  ;;  %v5314_v48 = vmul.f32 1.442695, %v5231_v56  ;;  %v17575_v49 = vld [vmem:[#allocation238_spill] sm:$0xff] }
 0xae3   : > { %17565 = vst [vmem:[#allocation75_spill] sm:$0xff] %v14737_v63  ;;  %v5316_v42 = vmul.f32 1.442695, %v5232_v54  ;;  %v17579_v54 = vld [vmem:[#allocation153_spill] sm:$0xff] }
 0xae4   : > { %5423 = vadd.xlane.f32.xlu1 %v5422_v1  ;;  %9792 = vpow2.f32 %v5310_v41 }
 0xae5   : > { %v8382_v36 = vpop.f32.mrb[224].mxu0 }
 0xae6   : > { %v8383_v8 = vpop.f32.mrb[225].mxu0 }
 0xae7   : > { %v14749_v1 = vadd.f32 %v8383_v8, %v8382_v36  ;;  %v8385_v0 = vpop.f32.mrb[226].mxu0  ;;  %v17574_v8 = vld [vmem:[#allocation235_spill] sm:$0xff] }
 0xae8   : > { %5426 = vadd.xlane.f32.xlu1 %v5425_v44  ;;  %v8386_v9 = vpop.f32.mrb[227].mxu0  ;;  %v5312_v44 = vmul.f32 1.442695, %v5230_v25  ;;  %v5233_v36 = vsub.f32 %v17574_v8, %v14489_v45  ;;  %v17577_v25 = vld [vmem:[#allocation239_spill] sm:$0xff]  ;;  %v5240_v8 = vsub.f32 %v17579_v54, %v14519_v19 }
 0xae9   : > { %17570 = vst [vmem:[#allocation81_spill] sm:$0xff] %v14749_v1  ;;  %v14753_v63 = vadd.f32 %v8386_v9, %v8385_v0  ;;  %v5236_v0 = vsub.f32 %v17575_v49, %v14507_v38  ;;  %v5237_v4 = vsub.f32 %v17577_v25, %v14507_v38  ;;  %v17589_v1 = vld [vmem:[#allocation90_spill] sm:$0xff] }
 0xaea   : > { %9794 = vpow2.f32 %v5312_v44  ;;  %v5318_v9 = vmul.f32 1.442695, %v5233_v36  ;;  %v17580_v36 = vld [vmem:[#allocation76_spill] sm:$0xff]  ;;  %v5332_v25 = vmul.f32 1.442695, %v5240_v8 }
 0xaeb   : > { %17572 = vst [vmem:[#allocation98_spill] sm:$0xff] %v14753_v63  ;;  %9796 = vpow2.f32 %v5314_v48  ;;  %v5324_v56 = vmul.f32 1.442695, %v5236_v0  ;;  %v5326_v44 = vmul.f32 1.442695, %v5237_v4  ;;  %v14779_v48 = vpop.eup %9790  ;;  %v17583_v0 = vld [vmem:[#allocation77_spill] sm:$0xff]  ;;  %v5635_v4 = vpop.permute.xlu0 %5634  ;;  %v5245_v63 = vsub.f32 %v17589_v1, %v14537_v10 }
 0xaec   : > { %9798 = vpow2.f32 %v5316_v42  ;;  %17581 = vst [vmem:[#allocation216_spill] sm:$0xff] %v14779_v48 }
 0xaed   : > { %v8388_v33 = vpop.f32.mrb[228].mxu0  ;;  %9800 = vpow2.f32 %v5318_v9  ;;  %v5342_v1 = vmul.f32 1.442695, %v5245_v63  ;;  %v17595_v63 = vld [vmem:[#allocation179_spill] sm:$0xff] }
 0xaee   : > { %v8389_v29 = vpop.f32.mrb[229].mxu0  ;;  %9802 = vpow2.f32 %v5324_v56 }
 0xaef   : > { %v14763_v31 = vadd.f32 %v8389_v29, %v8388_v33  ;;  %v8391_v32 = vpop.f32.mrb[230].mxu0  ;;  %v5241_v33 = vsub.f32 %v17580_v36, %v14519_v19  ;;  %v17586_v36 = vld [vmem:[#allocation69_spill] sm:$0xff]  ;;  %9804 = vpow2.f32 %v5326_v44 }
 0xaf0   : > { %v8392_v41 = vpop.f32.mrb[231].mxu0  ;;  %v17587_v29 = vld [vmem:[#allocation121_spill] sm:$0xff]  ;;  %9806 = vpow2.f32 %v5332_v25 }
 0xaf1   : > { %17576 = vst [vmem:[#allocation84_spill] sm:$0xff] %v14763_v31  ;;  %v14769_v45 = vadd.f32 %v8392_v41, %v8391_v32  ;;  %v14781_v32 = vpop.eup %9792  ;;  %v17584_v41 = vld [vmem:[#allocation151_spill] sm:$0xff]  ;;  %v17588_v31 = vmax.f32 %v17586_v36, %v17587_v29 }
 0xaf2   : > { %17582 = vst [vmem:[#allocation217_spill] sm:$0xff] %v14781_v32  ;;  %v5244_v9 = vsub.f32 %v17584_v41, %v14537_v10 }
 0xaf3   : > { %v14767_v16 = vpop.xlane.xlu1 %5192  ;;  %17578 = vst [vmem:[#allocation215_spill] sm:$0xff] %v14769_v45  ;;  %v5334_v45 = vmul.f32 1.442695, %v5241_v33  ;;  %v17594_v33 = vld [vmem:[#allocation110_spill] sm:$0xff] }
 0xaf4   : > { %v14796_v56 = vpop.eup %9794  ;;  %v5340_v41 = vmul.f32 1.442695, %v5244_v9 }
 0xaf5   : > { %v8394_v49 = vpop.f32.mrb[232].mxu0  ;;  %17590 = vst [vmem:[#allocation165_spill] sm:$0xff] %v14796_v56  ;;  %9808 = vpow2.f32 %v5334_v45  ;;  %v5252_v45 = vsub.f32 %v17595_v63, %v14588_v7  ;;  %v17601_v63 = vld [vmem:[#allocation237_spill] sm:$0xff] }
 0xaf6   : > { %v8395_v42 = vpop.f32.mrb[233].mxu0  ;;  %9810 = vpow2.f32 %v5340_v41 }
 0xaf7   : > { %v14777_v38 = vpop.xlane.xlu1 %5411  ;;  %v14787_v54 = vadd.f32 %v8395_v42, %v8394_v49  ;;  %v8397_v19 = vpop.f32.mrb[234].mxu0  ;;  %v5428_v49 = vadd.f32 %v14781_v32, %v14779_v48  ;;  %9812 = vpow2.f32 %v5342_v1  ;;  %v5256_v1 = vsub.f32 %v17489_v51, %v14614_v5 }
 0xaf8   : > { %v8398_v43 = vpop.f32.mrb[235].mxu0  ;;  %v14802_v42 = vpop.eup %9796 }
 0xaf9   : > { %5658 = vrot.lane.b32.xlu1 %v17583_v0, %s10341_s15  ;;  %17585 = vst [vmem:[#allocation218_spill] sm:$0xff] %v14787_v54  ;;  %v14798_v8 = vadd.f32 %v8398_v43, %v8397_v19  ;;  %17592 = vst [vmem:[#allocation99_spill] sm:$0xff] %v14802_v42  ;;  %v5249_v43 = vsub.f32 %v17594_v33, %v14563_v30  ;;  %v14810_v3 = vpop.eup %9798  ;;  %v5431_v25 = vadd.f32 %v14802_v42, %v14796_v56 }
 0xafa   : > { %5207 = vmax.xlane.f32.xlu0 %v17588_v31  ;;  %v17593_v31 = vld [vmem:[#allocation163_spill] sm:$0xff]  ;;  %v14814_v9 = vpop.eup %9800 }
 0xafb   : > { %v14794_v0 = vpop.xlane.xlu1 %5414  ;;  %17591 = vst [vmem:[#allocation95_spill] sm:$0xff] %v14798_v8  ;;  %v5248_v44 = vsub.f32 %v17593_v31, %v14563_v30  ;;  %v5653_v31 = vpop.permute.xlu0 %5652  ;;  %v5350_v33 = vmul.f32 1.442695, %v5249_v43  ;;  %v17600_v43 = vld [vmem:[#allocation93_spill] sm:$0xff] }
 0xafc   : > { %v14822_v42 = vpop.eup %9802 }
 0xafd   : > { %v8400_v32 = vpop.f32.mrb[236].mxu0  ;;  %v14828_v41 = vpop.eup %9804 }
 0xafe   : > { %5429 = vadd.xlane.f32.xlu0 %v5428_v49  ;;  %v8401_v48 = vpop.f32.mrb[237].mxu0  ;;  %v5348_v49 = vmul.f32 1.442695, %v5248_v44  ;;  %v5356_v44 = vmul.f32 1.442695, %v5252_v45 }
 0xaff   : > { %v5651_v19 = vpop.permute.xlu1 %5650  ;;  %v14818_v10 = vadd.f32 %v8401_v48, %v8400_v32  ;;  %v8403_v30 = vpop.f32.mrb[238].mxu0  ;;  %v17599_v48 = vld [vmem:[#allocation236_spill] sm:$0xff] }
 0xb00   : > { %8484 = vmatprep.subr.bf16.mxu0 %v5651_v19  ;;  %v17597_v19 = vld [vmem:[#allocation111_spill] sm:$0xff]  ;;  %v8404_v8 = vpop.f32.mrb[239].mxu0  ;;  %v5234_v32 = vsub.f32 %v17599_v48, %v14513_v58  ;;  %9814 = vpow2.f32 %v5348_v49  ;;  %v5440_v49 = vadd.f32 %v14828_v41, %v14822_v42  ;;  %v17602_v48 = vld [vmem:[#allocation240_spill] sm:$0xff] }
 0xb01   : > { %8485 = vmatpush3.bf16.msra.mxu0 %v5635_v4  ;;  %17596 = vst [vmem:[#allocation167_spill] sm:$0xff] %v14818_v10  ;;  %v5253_v54 = vsub.f32 %v17597_v19, %v14588_v7  ;;  %v14824_v56 = vadd.f32 %v8404_v8, %v8403_v30  ;;  %v5434_v4 = vadd.f32 %v14814_v9, %v14810_v3  ;;  %9816 = vpow2.f32 %v5350_v33 }
 0xb02   : > { %8486 = vmatprep.subr.bf16.mxu0 %v5653_v31  ;;  %5432 = vadd.xlane.f32.xlu0 %v5431_v25  ;;  %v5257_v25 = vsub.f32 %v17600_v43, %v14614_v5  ;;  %v14838_v31 = vpop.eup %9806  ;;  %v5235_v30 = vsub.f32 %v17601_v63, %v14513_v58  ;;  %v5320_v51 = vmul.f32 1.442695, %v5234_v32  ;;  %9818 = vpow2.f32 %v5356_v44 }
 0xb03   : > { %17598 = vst [vmem:[#allocation219_spill] sm:$0xff] %v14824_v56  ;;  %v5358_v8 = vmul.f32 1.442695, %v5253_v54  ;;  %v14844_v45 = vpop.eup %9808  ;;  %v5364_v54 = vmul.f32 1.442695, %v5256_v1  ;;  %v5260_v5 = vsub.f32 %v17507_v11, %v14708_v60  ;;  %v5261_v63 = vsub.f32 %v17508_v13, %v14708_v60  ;;  %v17605_v11 = vld [vmem:[#allocation82_spill] sm:$0xff] }
 0xb04   : > { %v5366_v58 = vmul.f32 1.442695, %v5257_v25  ;;  %v14854_v32 = vpop.eup %9810  ;;  %v5322_v56 = vmul.f32 1.442695, %v5235_v30  ;;  %v5446_v44 = vadd.f32 %v14844_v45, %v14838_v31 }
 0xb05   : > { %v8406_v19 = vpop.f32.mrb[240].mxu0  ;;  %9820 = vpow2.f32 %v5358_v8  ;;  %v14860_v1 = vpop.eup %9812  ;;  %v5372_v25 = vmul.f32 1.442695, %v5260_v5  ;;  %v5374_v60 = vmul.f32 1.442695, %v5261_v63 }
 0xb06   : > { %5435 = vadd.xlane.f32.xlu0 %v5434_v4  ;;  %v5238_v4 = vsub.f32 %v17602_v48, %v14521_v12  ;;  %v8407_v33 = vpop.f32.mrb[241].mxu0  ;;  %9822 = vpow2.f32 %v5320_v51  ;;  %v5452_v30 = vadd.f32 %v14860_v1, %v14854_v32  ;;  %v17606_v51 = vld [vmem:[#allocation155_spill] sm:$0xff] }
 0xb07   : > { %v14850_v43 = vadd.f32 %v8407_v33, %v8406_v19  ;;  %v8409_v7 = vpop.f32.mrb[242].mxu0  ;;  %v5239_v19 = vsub.f32 %v17605_v11, %v14521_v12  ;;  %9824 = vpow2.f32 %v5364_v54  ;;  %v17607_v33 = vld [vmem:[#allocation168_spill] sm:$0xff] }
 0xb08   : > { %v8410_v10 = vpop.f32.mrb[243].mxu0  ;;  %v5328_v8 = vmul.f32 1.442695, %v5238_v4  ;;  %9826 = vpow2.f32 %v5366_v58  ;;  %v5242_v4 = vsub.f32 %v17606_v51, %v14531_v14  ;;  %v5243_v54 = vsub.f32 %v17607_v33, %v14531_v14 }
 0xb09   : > { %17603 = vst [vmem:[#allocation220_spill] sm:$0xff] %v14850_v43  ;;  %v14856_v48 = vadd.f32 %v8410_v10, %v8409_v7  ;;  %9828 = vpow2.f32 %v5322_v56  ;;  %v5330_v12 = vmul.f32 1.442695, %v5239_v19 }
 0xb0a   : > { %5441 = vadd.xlane.f32.xlu0 %v5440_v49  ;;  %v14866_v10 = vpop.eup %9814  ;;  %9830 = vpow2.f32 %v5328_v8 }
 0xb0b   : > { %17604 = vst [vmem:[#allocation171_spill] sm:$0xff] %v14856_v48  ;;  %v14870_v49 = vpop.eup %9816  ;;  %9832 = vpow2.f32 %v5372_v25 }
 0xb0c   : > { %9834 = vpow2.f32 %v5374_v60  ;;  %v14880_v19 = vpop.eup %9818  ;;  %v5458_v14 = vadd.f32 %v14870_v49, %v14866_v10  ;;  %v17611_v60 = vld [vmem:[#allocation109_spill] sm:$0xff] }
 0xb0d   : > { %v8412_v7 = vpop.f32.mrb[244].mxu0  ;;  %9836 = vpow2.f32 %v5330_v12 }
 0xb0e   : > { %5447 = vadd.xlane.f32.xlu0 %v5446_v44  ;;  %v8413_v5 = vpop.f32.mrb[245].mxu0 }
 0xb0f   : > { %v14876_v63 = vadd.f32 %v8413_v5, %v8412_v7  ;;  %v8415_v56 = vpop.f32.mrb[246].mxu0  ;;  %v14886_v25 = vpop.eup %9820  ;;  %v5336_v7 = vmul.f32 1.442695, %v5242_v4  ;;  %v5247_v5 = vsub.f32 %v17611_v60, %v14541_v35 }
 0xb10   : > { %v8416_v8 = vpop.f32.mrb[247].mxu0  ;;  %v5464_v12 = vadd.f32 %v14886_v25, %v14880_v19 }
 0xb11   : > { %v5196_v58 = vpop.xlane.xlu0 %5195  ;;  %17608 = vst [vmem:[#allocation172_spill] sm:$0xff] %v14876_v63  ;;  %v14882_v13 = vadd.f32 %v8416_v8, %v8415_v56  ;;  %v14894_v56 = vpop.eup %9822 }
 0xb12   : > { %v5264_v44 = vsub.f32 %v17522_v2, %v5196_v58  ;;  %v5265_v11 = vsub.f32 %v17523_v17, %v5196_v58  ;;  %5453 = vadd.xlane.f32.xlu0 %v5452_v30  ;;  %v17610_v2 = vld [vmem:[#allocation166_spill] sm:$0xff]  ;;  %v5338_v30 = vmul.f32 1.442695, %v5243_v54 }
 0xb13   : > { %17609 = vst [vmem:[#allocation173_spill] sm:$0xff] %v14882_v13  ;;  %v5246_v33 = vsub.f32 %v17610_v2, %v14541_v35  ;;  %v17613_v35 = vld [vmem:[#allocation92_spill] sm:$0xff] }
 0xb14   : > { %v5380_v51 = vmul.f32 1.442695, %v5264_v44  ;;  %v5382_v43 = vmul.f32 1.442695, %v5265_v11  ;;  %v14896_v44 = vpop.eup %9824  ;;  %v5250_v11 = vsub.f32 %v17613_v35, %v14565_v28  ;;  %v17617_v35 = vld [vmem:[#allocation162_spill] sm:$0xff] }
 0xb15   : > { %v5637_v17 = vpop.permute.xlu0 %5636  ;;  %17612 = vst [vmem:[#allocation175_spill] sm:$0xff] %v14896_v44  ;;  %v14900_v4 = vpop.eup %9826  ;;  %v5344_v54 = vmul.f32 1.442695, %v5246_v33  ;;  %v5254_v58 = vsub.f32 %v17617_v35, %v14607_v39 }
 0xb16   : > { %9838 = vpow2.f32 %v5380_v51  ;;  %5459 = vadd.xlane.f32.xlu0 %v5458_v14  ;;  %8487 = vmatpush3.bf16.msra.mxu0 %v5637_v17  ;;  %v14904_v8 = vpop.eup %9828  ;;  %v5346_v51 = vmul.f32 1.442695, %v5247_v5  ;;  %v17614_v14 = vld [vmem:[#allocation108_spill] sm:$0xff]  ;;  %v5470_v60 = vadd.f32 %v14900_v4, %v14896_v44  ;;  %v5352_v33 = vmul.f32 1.442695, %v5250_v11  ;;  %v17619_v5 = vld [vmem:[#allocation125_spill] sm:$0xff] }
 0xb17   : > { %9840 = vpow2.f32 %v5382_v43  ;;  %v5251_v2 = vsub.f32 %v17614_v14, %v14565_v28  ;;  %v14908_v43 = vpop.eup %9830  ;;  %v5437_v48 = vadd.f32 %v14904_v8, %v14894_v56 }
 0xb18   : > { %9842 = vpow2.f32 %v5336_v7  ;;  %v14910_v17 = vpop.eup %9832 }
 0xb19   : > { %9844 = vpow2.f32 %v5338_v30  ;;  %17615 = vst [vmem:[#allocation177_spill] sm:$0xff] %v14910_v17  ;;  %v14914_v7 = vpop.eup %9834  ;;  %v17618_v30 = vld [vmem:[#allocation199_spill] sm:$0xff]  ;;  %v5354_v28 = vmul.f32 1.442695, %v5251_v2  ;;  %v5259_v2 = vsub.f32 %v17493_v37, %v14616_v22  ;;  %v5263_v37 = vsub.f32 %v17519_v21, %v14767_v16 }
 0xb1a   : > { %5465 = vadd.xlane.f32.xlu0 %v5464_v12  ;;  %17616 = vst [vmem:[#allocation88_spill] sm:$0xff] %v14914_v7  ;;  %9846 = vpow2.f32 %v5344_v54  ;;  %v17620_v63 = vmax.f32 %v17618_v30, %v17619_v5  ;;  %v17621_v12 = vld [vmem:[#allocation112_spill] sm:$0xff]  ;;  %v14923_v13 = vpop.eup %9836  ;;  %v5476_v11 = vadd.f32 %v14914_v7, %v14910_v17 }
 0xb1b   : > { %9848 = vpow2.f32 %v5346_v51  ;;  %v5255_v14 = vsub.f32 %v17621_v12, %v14607_v39  ;;  %v5258_v51 = vsub.f32 %v17492_v47, %v14616_v22  ;;  %v5443_v12 = vadd.f32 %v14923_v13, %v14908_v43 }
 0xb1c   : > { %9850 = vpow2.f32 %v5352_v33  ;;  %v5262_v47 = vsub.f32 %v17518_v6, %v14767_v16  ;;  %v5378_v6 = vmul.f32 1.442695, %v5263_v37 }
 0xb1d   : > { %5210 = vmax.xlane.f32.xlu1 %v17620_v63  ;;  %v5360_v63 = vmul.f32 1.442695, %v5254_v58  ;;  %9852 = vpow2.f32 %v5354_v28  ;;  %v5362_v39 = vmul.f32 1.442695, %v5255_v14  ;;  %v5368_v33 = vmul.f32 1.442695, %v5258_v51 }
 0xb1e   : > { %5471 = vadd.xlane.f32.xlu0 %v5470_v60 }
 0xb1f   : > { %9854 = vpow2.f32 %v5360_v63  ;;  %v5376_v63 = vmul.f32 1.442695, %v5262_v47 }
 0xb20   : > { %v14927_v54 = vpop.eup %9838  ;;  %9856 = vpow2.f32 %v5362_v39 }
 0xb21   : > { %17622 = vst [vmem:[#allocation183_spill] sm:$0xff] %v14927_v54  ;;  %v14931_v35 = vpop.eup %9840  ;;  %5438 = vadd.xlane.f32.xlu1 %v5437_v48  ;;  %v5370_v48 = vmul.f32 1.442695, %v5259_v2  ;;  %9858 = vpow2.f32 %v5368_v33 }
 0xb22   : > { %17623 = vst [vmem:[#allocation100_spill] sm:$0xff] %v14931_v35  ;;  %5477 = vadd.xlane.f32.xlu0 %v5476_v11  ;;  %v14937_v60 = vpop.eup %9842  ;;  %v5482_v58 = vadd.f32 %v14931_v35, %v14927_v54 }
 0xb23   : > { %v14941_v17 = vpop.eup %9844  ;;  %9860 = vpow2.f32 %v5370_v48 }
 0xb24   : > { %v14949_v22 = vpop.eup %9846  ;;  %v5449_v28 = vadd.f32 %v14941_v17, %v14937_v60  ;;  %9862 = vpow2.f32 %v5376_v63 }
 0xb25   : > { %5444 = vadd.xlane.f32.xlu1 %v5443_v12  ;;  %v14953_v14 = vpop.eup %9848  ;;  %9864 = vpow2.f32 %v5378_v6 }
 0xb26   : > { %5483 = vadd.xlane.f32.xlu0 %v5482_v58  ;;  %v14957_v12 = vpop.eup %9850  ;;  %v5455_v16 = vadd.f32 %v14953_v14, %v14949_v22 }
 0xb27   : > { %v14961_v58 = vpop.eup %9852 }
 0xb28   : > { %v8418_v11 = vpop.f32.mrb[248].mxu0  ;;  %v5461_v48 = vadd.f32 %v14961_v58, %v14957_v12 }
 0xb29   : > { %5450 = vadd.xlane.f32.xlu1 %v5449_v28  ;;  %v8419_v51 = vpop.f32.mrb[249].mxu0  ;;  %v14967_v47 = vpop.eup %9854 }
 0xb2a   : > { %v14955_v39 = vadd.f32 %v8419_v51, %v8418_v11  ;;  %v8421_v2 = vpop.f32.mrb[250].mxu0  ;;  %v14971_v37 = vpop.eup %9856 }
 0xb2b   : > { %v8422_v21 = vpop.f32.mrb[251].mxu0 }
 0xb2c   : > { %17624 = vst [vmem:[#allocation187_spill] sm:$0xff] %v14955_v39  ;;  %v14963_v54 = vadd.f32 %v8422_v21, %v8421_v2  ;;  %v14975_v2 = vpop.eup %9858  ;;  %v5467_v21 = vadd.f32 %v14971_v37, %v14967_v47 }
 0xb2d   : > { %5456 = vadd.xlane.f32.xlu1 %v5455_v16  ;;  %v14979_v16 = vpop.eup %9860 }
 0xb2e   : > { %17625 = vst [vmem:[#allocation188_spill] sm:$0xff] %v14963_v54  ;;  %v14981_v39 = vpop.eup %9862 }
 0xb2f   : > { %17626 = vst [vmem:[#allocation91_spill] sm:$0xff] %v14981_v39 }
 0xb30   : > { %v5199_v28 = vpop.xlane.xlu1 %5198 }
 0xb31   : > { %v5266_v11 = vsub.f32 %v17539_v24, %v5199_v28  ;;  %v5267_v51 = vsub.f32 %v17540_v27, %v5199_v28  ;;  %5462 = vadd.xlane.f32.xlu1 %v5461_v48  ;;  %v5473_v24 = vadd.f32 %v14979_v16, %v14975_v2  ;;  %v14985_v27 = vpop.eup %9864  ;;  %v5639_v48 = vpop.permute.xlu0 %5638 }
 0xb33   : > { %v5384_v63 = vmul.f32 1.442695, %v5266_v11  ;;  %v5386_v6 = vmul.f32 1.442695, %v5267_v51  ;;  %v5479_v11 = vadd.f32 %v14985_v27, %v14981_v39 }
 0xb34   : > { %v5418_v33 = vpop.xlane.xlu1 %5417 }
 0xb35   : > { %9866 = vpow2.f32 %v5384_v63  ;;  %5468 = vadd.xlane.f32.xlu1 %v5467_v21  ;;  %v5657_v54 = vpop.permute.xlu0 %5656 }
 0xb36   : > { %9868 = vpow2.f32 %v5386_v6 }
 0xb38   : > { %v5421_v28 = vpop.xlane.xlu1 %5420 }
 0xb39   : > { %5474 = vadd.xlane.f32.xlu1 %v5473_v24 }
 0xb3c   : > { %v5655_v51 = vpop.permute.xlu1 %5654 }
 0xb3d   : > { %5480 = vadd.xlane.f32.xlu1 %v5479_v11  ;;  %8488 = vmatprep.subr.bf16.mxu0 %v5655_v51 }
 0xb3e   : > { %8489 = vmatpush3.bf16.msra.mxu0 %v5639_v48 }
 0xb3f   : > { %v14989_v63 = vpop.eup %9866  ;;  %8490 = vmatprep.subr.bf16.mxu0 %v5657_v54 }
 0xb40   : > { %17627 = vst [vmem:[#allocation180_spill] sm:$0xff] %v14989_v63  ;;  %v14991_v6 = vpop.eup %9868 }
 0xb41   : > { %17628 = vst [vmem:[#allocation222_spill] sm:$0xff] %v14991_v6  ;;  %v5485_v21 = vadd.f32 %v14991_v6, %v14989_v63 }
 0xb43   : > { %5486 = vadd.xlane.f32.xlu1 %v5485_v21 }
 0xb4e   : > { %v5202_v35 = vpop.xlane.xlu0 %5201 }
 0xb4f   : > { %v5268_v24 = vsub.f32 %v17546_v23, %v5202_v35  ;;  %v5269_v7 = vsub.f32 %v17547_v53, %v5202_v35 }
 0xb51   : > { %v5388_v39 = vmul.f32 1.442695, %v5268_v24  ;;  %v5390_v44 = vmul.f32 1.442695, %v5269_v7 }
 0xb52   : > { %v5641_v11 = vpop.permute.xlu0 %5640 }
 0xb53   : > { %9870 = vpow2.f32 %v5388_v39  ;;  %8491 = vmatpush3.bf16.msra.mxu0 %v5641_v11 }
 0xb54   : > { %9872 = vpow2.f32 %v5390_v44 }
 0xb55   : > { %9874 = vrcp.f32 %v14794_v0 }
 0xb56   : > { %9876 = vrcp.f32 %v14777_v38 }
 0xb5d   : > { %v14997_v48 = vpop.eup %9870 }
 0xb5e   : > { %v14999_v54 = vpop.eup %9872 }
 0xb5f   : > { %v5488_v51 = vadd.f32 %v14999_v54, %v14997_v48 }
 0xb61   : > { %5489 = vadd.xlane.f32.xlu0 %v5488_v51 }
 0xb65   : > { %v8424_v21 = vpop.f32.mrb[252].mxu0 }
 0xb66   : > { %v8425_v63 = vpop.f32.mrb[253].mxu0 }
 0xb67   : > { %v15003_v6 = vadd.f32 %v8425_v63, %v8424_v21  ;;  %v8427_v23 = vpop.f32.mrb[254].mxu0 }
 0xb68   : > { %v8428_v53 = vpop.f32.mrb[255].mxu0 }
 0xb69   : > { %17629 = vst [vmem:[#allocation142_spill] sm:$0xff] %v15003_v6  ;;  %v15005_v35 = vadd.f32 %v8428_v53, %v8427_v23  ;;  %v9875_v23 = vpop.eup %9874  ;;  %v5643_v6 = vpop.permute.xlu0 %5642 }
 0xb6a   : > { %v9877_v53 = vpop.eup %9876  ;;  %v5539_v0 = vmul.f32 %v9875_v23, %v14603_v61 }
 0xb6d   : > { %v5205_v44 = vpop.xlane.xlu1 %5204 }
 0xb6e   : > { %v5270_v39 = vsub.f32 %v17560_v62, %v5205_v44  ;;  %v5271_v24 = vsub.f32 %v17561_v59, %v5205_v44  ;;  %v5537_v62 = vmul.f32 %v9877_v53, %v14592_v15 }
 0xb70   : > { %v5392_v11 = vmul.f32 1.442695, %v5270_v39  ;;  %v5394_v51 = vmul.f32 1.442695, %v5271_v24  ;;  %v5599_v44 = vpack.c.bf16 %v5539_v0, %v5537_v62 }
 0xb71   : > { %v5424_v63 = vpop.xlane.xlu1 %5423 }
 0xb72   : > { %9878 = vpow2.f32 %v5392_v11 }
 0xb73   : > { %9880 = vpow2.f32 %v5394_v51 }
 0xb74   : > { %9882 = vrcp.f32 %v5421_v28 }
 0xb75   : > { %v5427_v21 = vpop.xlane.xlu1 %5426  ;;  %9884 = vrcp.f32 %v5418_v33  ;;  %v17630_v33 = vpack.c.bf16 %v14690_v46, %v14687_v26 }
 0xb76   : > { %9886 = vrcp.f32 %v5427_v21 }
 0xb77   : > { %9888 = vrcp.f32 %v5424_v63 }
 0xb79   : > { %v5659_v7 = vpop.permute.xlu1 %5658 }
 0xb7a   : > { %8492 = vmatprep.subr.bf16.mxu0 %v5659_v7  ;;  %v5536_v7 = vmul.f32 %v9877_v53, %v14590_v50 }
 0xb7b   : > { %8493 = vmatpush3.bf16.msra.mxu0 %v5643_v6  ;;  %v5538_v6 = vmul.f32 %v9875_v23, %v14599_v40 }
 0xb7c   : > { %v15015_v38 = vpop.eup %9878 }
 0xb7d   : > { %v15017_v59 = vpop.eup %9880  ;;  %v5598_v11 = vpack.c.bf16 %v5538_v6, %v5536_v7  ;;  %v17633_v7 = vld [vmem:[#allocation216_spill] sm:$0xff] }
 0xb7e   : > { %v9883_v39 = vpop.eup %9882  ;;  %5709 = vmatmul.mubr.bf16.vlgmr.msra.gmra.mrb[0].mxu0 %v17630_v33  ;;  %v5491_v61 = vadd.f32 %v15017_v59, %v15015_v38 }
 0xb7f   : > { %5716 = vmatprep.mubr.bf16.mxu0 %v5599_v44  ;;  %v9885_v28 = vpop.eup %9884  ;;  %v5543_v15 = vmul.f32 %v9883_v39, %v14669_v34  ;;  %v5542_v21 = vmul.f32 %v9883_v39, %v14665_v18 }
 0xb80   : > { %5492 = vadd.xlane.f32.xlu1 %v5491_v61  ;;  %v5541_v24 = vmul.f32 %v9885_v28, %v14654_v20  ;;  %v9887_v63 = vpop.eup %9886  ;;  %v5540_v34 = vmul.f32 %v9885_v28, %v14652_v52 }
 0xb81   : > { %v9889_v26 = vpop.eup %9888  ;;  %v5547_v23 = vmul.f32 %v9887_v63, %v14735_v57 }
 0xb82   : > { %v5601_v51 = vpack.c.bf16 %v5543_v15, %v5541_v24  ;;  %v5545_v62 = vmul.f32 %v9889_v26, %v14724_v55  ;;  %v5600_v44 = vpack.c.bf16 %v5542_v21, %v5540_v34  ;;  %v17636_v21 = vld [vmem:[#allocation99_spill] sm:$0xff] }
 0xb84   : > { %v5603_v33 = vpack.c.bf16 %v5547_v23, %v5545_v62 }
 0xb86   : > { %5717 = vmatmul.mubr.bf16.gmra.mrb[4].mxu0 %v5598_v11  ;;  %v17634_v11 = vld [vmem:[#allocation165_spill] sm:$0xff] }
 0xb87   : > { %5724 = vmatprep.mubr.bf16.mxu0 %v5601_v51  ;;  %v5208_v46 = vpop.xlane.xlu0 %5207 }
 0xb88   : > { %v5272_v0 = vsub.f32 %v17586_v36, %v5208_v46  ;;  %v5273_v40 = vsub.f32 %v17587_v29, %v5208_v46  ;;  %v17631_v36 = vld [vmem:[#allocation213_spill] sm:$0xff]  ;;  %v17632_v29 = vld [vmem:[#allocation212_spill] sm:$0xff] }
 0xb89   : > { %v5546_v39 = vmul.f32 %v9887_v63, %v17631_v36  ;;  %v5544_v57 = vmul.f32 %v9889_v26, %v17632_v29  ;;  %v17635_v63 = vld [vmem:[#allocation217_spill] sm:$0xff]  ;;  %v17638_v36 = vld [vmem:[#allocation126_spill] sm:$0xff] }
 0xb8a   : > { %v5396_v50 = vmul.f32 1.442695, %v5272_v0  ;;  %v5398_v53 = vmul.f32 1.442695, %v5273_v40 }
 0xb8b   : > { %v5430_v20 = vpop.xlane.xlu0 %5429  ;;  %v5602_v61 = vpack.c.bf16 %v5546_v39, %v5544_v57  ;;  %v17640_v57 = vld [vmem:[#allocation184_spill] sm:$0xff] }
 0xb8c   : > { %9890 = vpow2.f32 %v5396_v50 }
 0xb8d   : > { %9892 = vpow2.f32 %v5398_v53 }
 0xb8e   : > { %9894 = vrcp.f32 %v5430_v20  ;;  %5725 = vmatmul.mubr.bf16.gmra.mrb[8].mxu0 %v5600_v44 }
 0xb8f   : > { %5732 = vmatprep.mubr.bf16.mxu0 %v5603_v33  ;;  %v5433_v18 = vpop.xlane.xlu0 %5432 }
 0xb90   : > { %9896 = vrcp.f32 %v5433_v18  ;;  %v17637_v18 = vld [vmem:[#allocation200_spill] sm:$0xff] }
 0xb91   : > { %v17639_v39 = vpack.c.bf16 %v17637_v18, %v17638_v36 }
 0xb93   : > { %v5436_v23 = vpop.xlane.xlu0 %5435 }
 0xb94   : > { %9898 = vrcp.f32 %v5436_v23 }
 0xb96   : > { %v15036_v52 = vpop.eup %9890  ;;  %5733 = vmatmul.mubr.bf16.gmra.mrb[12].mxu0 %v5602_v61 }
 0xb97   : > { %v15038_v28 = vpop.eup %9892  ;;  %v5442_v50 = vpop.xlane.xlu0 %5441 }
 0xb98   : > { %v9895_v55 = vpop.eup %9894  ;;  %v5494_v6 = vadd.f32 %v15038_v28, %v15036_v52  ;;  %9900 = vrcp.f32 %v5442_v50 }
 0xb99   : > { %v5548_v24 = vmul.f32 %v9895_v55, %v17633_v7  ;;  %v5549_v46 = vmul.f32 %v9895_v55, %v17635_v63 }
 0xb9a   : > { %v9897_v15 = vpop.eup %9896  ;;  %5495 = vadd.xlane.f32.xlu0 %v5494_v6 }
 0xb9b   : > { %v5550_v51 = vmul.f32 %v9897_v15, %v17634_v11  ;;  %v5551_v26 = vmul.f32 %v9897_v15, %v17636_v21 }
 0xb9d   : > { %v5604_v0 = vpack.c.bf16 %v5550_v51, %v5548_v24  ;;  %v5605_v40 = vpack.c.bf16 %v5551_v26, %v5549_v46 }
 0xb9e   : > { %v9899_v6 = vpop.eup %9898 }
 0xb9f   : > { %5740 = vmatprep.mubr.bf16.mxu0 %v5605_v40  ;;  %v5552_v63 = vmul.f32 %v9899_v6, %v14810_v3  ;;  %v5553_v26 = vmul.f32 %v9899_v6, %v14814_v9 }
 0xba0   : > { %5741 = vmatmul.mubr.bf16.gmra.mrb[16].mxu0 %v5604_v0 }
 0xba2   : > { %v9901_v15 = vpop.eup %9900 }
 0xbaa   : > { %v5211_v34 = vpop.xlane.xlu1 %5210 }
 0xbab   : > { %v5274_v53 = vsub.f32 %v17618_v30, %v5211_v34  ;;  %v5275_v20 = vsub.f32 %v17619_v5, %v5211_v34  ;;  %v17641_v30 = vld [vmem:[#allocation119_spill] sm:$0xff]  ;;  %v5448_v5 = vpop.xlane.xlu0 %5447 }
 0xbac   : > { %v17642_v61 = vpack.c.bf16 %v17640_v57, %v17641_v30 }
 0xbad   : > { %v5400_v62 = vmul.f32 1.442695, %v5274_v53  ;;  %v5402_v44 = vmul.f32 1.442695, %v5275_v20  ;;  %v5557_v53 = vmul.f32 %v9901_v15, %v14828_v41 }
 0xbae   : > { %v5439_v33 = vpop.xlane.xlu1 %5438 }
 0xbaf   : > { %9902 = vpow2.f32 %v5400_v62  ;;  %v5454_v23 = vpop.xlane.xlu0 %5453 }
 0xbb0   : > { %9904 = vpow2.f32 %v5402_v44  ;;  %3527 = vrot.lane.b32.xlu0 %v17639_v39, %s10340_s20 }
 0xbb1   : > { %9906 = vrcp.f32 %v5439_v33  ;;  %v5556_v33 = vmul.f32 %v9901_v15, %v14822_v42  ;;  %v17643_v42 = vld [vmem:[#allocation124_spill] sm:$0xff] }
 0xbb2   : > { %v5445_v29 = vpop.xlane.xlu1 %5444 }
 0xbb3   : > { %9908 = vrcp.f32 %v5445_v29  ;;  %v5460_v18 = vpop.xlane.xlu0 %5459 }
 0xbb4   : > { %4700 = vrot.lane.b32.xlu0 %v17642_v61, %s10338_s1 }
 0xbb6   : > { %v5451_v55 = vpop.xlane.xlu1 %5450 }
 0xbb7   : > { %9910 = vrcp.f32 %v5451_v55  ;;  %v5466_v61 = vpop.xlane.xlu0 %5465 }
 0xbb8   : > { %9912 = vrcp.f32 %v5448_v5  ;;  %v17644_v5 = vld [vmem:[#allocation62_spill] sm:$0xff] }
 0xbb9   : > { %v15056_v7 = vpop.eup %9902 }
 0xbba   : > { %v15058_v24 = vpop.eup %9904  ;;  %v5457_v21 = vpop.xlane.xlu1 %5456 }
 0xbbb   : > { %v9907_v11 = vpop.eup %9906  ;;  %v5497_v51 = vadd.f32 %v15058_v24, %v15056_v7  ;;  %9914 = vrcp.f32 %v5457_v21 }
 0xbbc   : > { %v5554_v46 = vmul.f32 %v9907_v11, %v14894_v56  ;;  %v5555_v0 = vmul.f32 %v9907_v11, %v14904_v8  ;;  %9916 = vrcp.f32 %v5454_v23 }
 0xbbd   : > { %v9909_v40 = vpop.eup %9908  ;;  %5498 = vadd.xlane.f32.xlu1 %v5497_v51 }
 0xbbe   : > { %v5606_v34 = vpack.c.bf16 %v5554_v46, %v5552_v63  ;;  %v5607_v50 = vpack.c.bf16 %v5555_v0, %v5553_v26  ;;  %v5559_v20 = vmul.f32 %v9909_v40, %v14923_v13  ;;  %v5558_v9 = vmul.f32 %v9909_v40, %v14908_v43  ;;  %v5463_v8 = vpop.xlane.xlu1 %5462  ;;  %v5472_v26 = vpop.xlane.xlu0 %5471 }
 0xbbf   : > { %9918 = vrcp.f32 %v5463_v8 }
 0xbc0   : > { %5748 = vmatprep.mubr.bf16.mxu0 %v5607_v50  ;;  %v5609_v62 = vpack.c.bf16 %v5559_v20, %v5557_v53  ;;  %v5608_v36 = vpack.c.bf16 %v5558_v9, %v5556_v33  ;;  %9920 = vrcp.f32 %v5460_v18 }
 0xbc1   : > { %v9911_v3 = vpop.eup %9910  ;;  %5749 = vmatmul.mubr.bf16.gmra.mrb[20].mxu0 %v5606_v34 }
 0xbc2   : > { %5756 = vmatprep.mubr.bf16.mxu0 %v5609_v62  ;;  %v9913_v56 = vpop.eup %9912  ;;  %v5563_v44 = vmul.f32 %v9911_v3, %v14941_v17  ;;  %v5562_v57 = vmul.f32 %v9911_v3, %v14937_v60  ;;  %v5469_v30 = vpop.xlane.xlu1 %5468  ;;  %v17646_v60 = vld [vmem:[#allocation118_spill] sm:$0xff] }
 0xbc3   : > { %v5561_v41 = vmul.f32 %v9913_v56, %v14844_v45  ;;  %v5560_v17 = vmul.f32 %v9913_v56, %v14838_v31  ;;  %v17645_v45 = vpack.c.bf16 %v17643_v42, %v17644_v5  ;;  %9922 = vrcp.f32 %v5469_v30  ;;  %v5478_v62 = vpop.xlane.xlu0 %5477  ;;  %v17652_v42 = vld [vmem:[#allocation222_spill] sm:$0xff] }
 0xbc4   : > { %9924 = vrcp.f32 %v5466_v61 }
 0xbc5   : > { %v5611_v13 = vpack.c.bf16 %v5563_v44, %v5561_v41  ;;  %v9915_v39 = vpop.eup %9914  ;;  %v5610_v6 = vpack.c.bf16 %v5562_v57, %v5560_v17  ;;  %v17651_v17 = vld [vmem:[#allocation91_spill] sm:$0xff] }
 0xbc6   : > { %v9917_v29 = vpop.eup %9916  ;;  %v5567_v43 = vmul.f32 %v9915_v39, %v14953_v14  ;;  %v17647_v14 = vld [vmem:[#allocation186_spill] sm:$0xff]  ;;  %v5566_v63 = vmul.f32 %v9915_v39, %v14949_v22  ;;  %v5475_v46 = vpop.xlane.xlu1 %5474  ;;  %v17649_v39 = vld [vmem:[#allocation175_spill] sm:$0xff] }
 0xbc7   : > { %v5565_v55 = vmul.f32 %v9917_v29, %v14860_v1  ;;  %v17648_v51 = vpack.c.bf16 %v17646_v60, %v17647_v14  ;;  %v5564_v1 = vmul.f32 %v9917_v29, %v14854_v32  ;;  %9926 = vrcp.f32 %v5475_v46  ;;  %v5484_v33 = vpop.xlane.xlu0 %5483  ;;  %v17656_v14 = vld [vmem:[#allocation183_spill] sm:$0xff] }
 0xbc8   : > { %9928 = vrcp.f32 %v5472_v26 }
 0xbc9   : > { %5757 = vmatmul.mubr.bf16.gmra.mrb[24].mxu0 %v5608_v36  ;;  %v5613_v15 = vpack.c.bf16 %v5567_v43, %v5565_v55  ;;  %v9919_v11 = vpop.eup %9918  ;;  %v5612_v40 = vpack.c.bf16 %v5566_v63, %v5564_v1 }
 0xbca   : > { %5764 = vmatprep.mubr.bf16.mxu0 %v5611_v13  ;;  %v9921_v31 = vpop.eup %9920  ;;  %v5571_v21 = vmul.f32 %v9919_v11, %v14961_v58  ;;  %v5570_v53 = vmul.f32 %v9919_v11, %v14957_v12  ;;  %v5481_v20 = vpop.xlane.xlu1 %5480  ;;  %v17655_v11 = vld [vmem:[#allocation180_spill] sm:$0xff] }
 0xbcb   : > { %v5569_v0 = vmul.f32 %v9921_v31, %v14870_v49  ;;  %v5568_v58 = vmul.f32 %v9921_v31, %v14866_v10  ;;  %9930 = vrcp.f32 %v5481_v20 }
 0xbcc   : > { %9932 = vrcp.f32 %v5478_v62 }
 0xbcd   : > { %v5615_v23 = vpack.c.bf16 %v5571_v21, %v5569_v0  ;;  %v9923_v34 = vpop.eup %9922  ;;  %v5614_v3 = vpack.c.bf16 %v5570_v53, %v5568_v58  ;;  %v9103_v58 = vld [vmem:[#allocation9 + $0x8] sm:$0xff]  }
 0xbce   : > { %3529 = vrot.lane.b32.xlu1 %v17645_v45, %s10340_s20  ;;  %v9925_v50 = vpop.eup %9924  ;;  %v5575_v22 = vmul.f32 %v9923_v34, %v14971_v37  ;;  %v5574_v8 = vmul.f32 %v9923_v34, %v14967_v47  ;;  %v17653_v45 = vld [vmem:[#allocation177_spill] sm:$0xff] }
 0xbcf   : > { %v5573_v32 = vmul.f32 %v9925_v50, %v14886_v25  ;;  %v5572_v37 = vmul.f32 %v9925_v50, %v14880_v19 }
 0xbd0   : > { %v5487_v44 = vpop.xlane.xlu1 %5486 }
 0xbd1   : > { %5765 = vmatmul.mubr.bf16.gmra.mrb[28].mxu0 %v5610_v6  ;;  %v5617_v49 = vpack.c.bf16 %v5575_v22, %v5573_v32  ;;  %v9927_v56 = vpop.eup %9926  ;;  %v5616_v18 = vpack.c.bf16 %v5574_v8, %v5572_v37  ;;  %9934 = vrcp.f32 %v5487_v44  ;;  %v17654_v6 = vld [vmem:[#allocation100_spill] sm:$0xff] }
 0xbd2   : > { %5772 = vmatprep.mubr.bf16.mxu0 %v5613_v15  ;;  %4698 = vrot.lane.b32.xlu1 %v17648_v51, %s10338_s1  ;;  %v9929_v9 = vpop.eup %9928  ;;  %v5579_v12 = vmul.f32 %v9927_v56, %v14979_v16  ;;  %9936 = vrcp.f32 %v5484_v33  ;;  %v5578_v13 = vmul.f32 %v9927_v56, %v14975_v2  ;;  %v17650_v16 = vld [vmem:[#allocation88_spill] sm:$0xff] }
 0xbd3   : > { %v5577_v10 = vmul.f32 %v9929_v9, %v14900_v4  ;;  %v5576_v29 = vmul.f32 %v9929_v9, %v17649_v39  ;;  %v9102_v22 = vld [vmem:[#allocation9] sm:$0xff]  }
 0xbd4   : > { %8650 = vmatprep.subr.bf16.mxu1 %v9102_v22 }
 0xbd5   : > { %v5619_v25 = vpack.c.bf16 %v5579_v12, %v5577_v10  ;;  %v9931_v41 = vpop.eup %9930  ;;  %v5618_v19 = vpack.c.bf16 %v5578_v13, %v5576_v29  ;;  %8651 = vmatpush3.bf16.msra.mxu1 %v9102_v22  ;;  %v9104_v12 = vld [vmem:[#allocation9 + $0x10] sm:$0xff]  }
 0xbd6   : > { %v9933_v36 = vpop.eup %9932  ;;  %v5583_v47 = vmul.f32 %v9931_v41, %v14985_v27  ;;  %v5582_v61 = vmul.f32 %v9931_v41, %v17651_v17  ;;  %8652 = vmatprep.subr.bf16.mxu1 %v9103_v58 }
 0xbd7   : > { %v5581_v57 = vmul.f32 %v9933_v36, %v17650_v16  ;;  %v5580_v55 = vmul.f32 %v9933_v36, %v17653_v45  ;;  %v17658_v16 = vld [vmem:[#allocation128_spill] sm:$0xff] }
 0xbd9   : > { %5773 = vmatmul.mubr.bf16.gmra.mrb[32].mxu0 %v5612_v40  ;;  %v5621_v30 = vpack.c.bf16 %v5583_v47, %v5581_v57  ;;  %v5620_v15 = vpack.c.bf16 %v5582_v61, %v5580_v55  ;;  %8653 = vmatpush3.bf16.msra.mxu1 %v9103_v58  ;;  %v9105_v47 = vld [vmem:[#allocation9 + $0x18] sm:$0xff]  }
 0xbda   : > { %5780 = vmatprep.mubr.bf16.mxu0 %v5615_v23  ;;  %8654 = vmatprep.subr.bf16.mxu1 %v9104_v12 }
 0xbdb   : > { %v9935_v43 = vpop.eup %9934 }
 0xbdc   : > { %v9937_v4 = vpop.eup %9936  ;;  %v5587_v5 = vmul.f32 %v9935_v43, %v17652_v42  ;;  %v5586_v60 = vmul.f32 %v9935_v43, %v17655_v11  ;;  %v17660_v43 = vld [vmem:[#allocation164_spill] sm:$0xff] }
 0xbdd   : > { %v5585_v2 = vmul.f32 %v9937_v4, %v17654_v6  ;;  %v5584_v51 = vmul.f32 %v9937_v4, %v17656_v14  ;;  %8655 = vmatpush3.bf16.msra.mxu1 %v9104_v12  ;;  %v17661_v4 = vld [vmem:[#allocation67_spill] sm:$0xff]  ;;  %v17663_v6 = vld [vmem:[#allocation160_spill] sm:$0xff] }
 0xbde   : > { %8656 = vmatprep.subr.bf16.mxu1 %v9105_v47  ;;  %v17662_v17 = vpack.c.bf16 %v17660_v43, %v17661_v4  ;;  %v17667_v14 = vld [vmem:[#allocation120_spill] sm:$0xff]  ;;  %v17690_v4 = vld [vmem:[#allocation75_spill] sm:$0xff] }
 0xbdf   : > { %v5623_v27 = vpack.c.bf16 %v5587_v5, %v5585_v2  ;;  %v5622_v31 = vpack.c.bf16 %v5586_v60, %v5584_v51  ;;  %v17664_v2 = vld [vmem:[#allocation80_spill] sm:$0xff]  ;;  %v17666_v60 = vld [vmem:[#allocation210_spill] sm:$0xff] }
 0xbe0   : > { %v17668_v51 = vpack.c.bf16 %v17666_v60, %v17667_v14  ;;  %v17696_v14 = vld [vmem:[#allocation98_spill] sm:$0xff] }
 0xbe1   : > { %5781 = vmatmul.mubr.bf16.gmra.mrb[36].mxu0 %v5614_v3  ;;  %8657 = vmatpush3.bf16.msra.mxu1 %v9105_v47 }
 0xbe2   : > { %5788 = vmatprep.mubr.bf16.mxu0 %v5617_v49 }
 0xbe9   : > { %5789 = vmatmul.mubr.bf16.gmra.mrb[40].mxu0 %v5616_v18 }
 0xbea   : > { %5796 = vmatprep.mubr.bf16.mxu0 %v5619_v25 }
 0xbee   : > { %v5490_v63 = vpop.xlane.xlu0 %5489 }
 0xbef   : > { %9938 = vrcp.f32 %v5490_v63 }
 0xbf1   : > { %5797 = vmatmul.mubr.bf16.gmra.mrb[44].mxu0 %v5618_v19 }
 0xbf2   : > { %5804 = vmatprep.mubr.bf16.mxu0 %v5621_v30 }
 0xbf9   : > { %5805 = vmatmul.mubr.bf16.gmra.mrb[48].mxu0 %v5620_v15  ;;  %v9939_v21 = vpop.eup %9938  ;;  %v17665_v15 = vpack.c.bf16 %v17663_v6, %v17664_v2 }
 0xbfa   : > { %5812 = vmatprep.mubr.bf16.mxu0 %v5623_v27  ;;  %v5588_v26 = vmul.f32 %v9939_v21, %v14997_v48  ;;  %v5589_v40 = vmul.f32 %v9939_v21, %v14999_v54 }
 0xc01   : > { %5813 = vmatmul.mubr.bf16.gmra.mrb[52].mxu0 %v5622_v31 }
 0xc0d   : > { %v5493_v46 = vpop.xlane.xlu1 %5492 }
 0xc0e   : > { %9940 = vrcp.f32 %v5493_v46 }
 0xc18   : > { %v9941_v1 = vpop.eup %9940 }
 0xc19   : > { %v5590_v0 = vmul.f32 %v9941_v1, %v15015_v38  ;;  %v5591_v23 = vmul.f32 %v9941_v1, %v15017_v59 }
 0xc1b   : > { %v5624_v34 = vpack.c.bf16 %v5590_v0, %v5588_v26  ;;  %v5625_v50 = vpack.c.bf16 %v5591_v23, %v5589_v40  ;;  %v17669_v26 = vld [vmem:[#allocation131_spill] sm:$0xff]  ;;  %v17670_v0 = vld [vmem:[#allocation161_spill] sm:$0xff] }
 0xc1c   : > { %v17671_v40 = vpack.c.bf16 %v17669_v26, %v17670_v0 }
 0xc1d   : > { %5820 = vmatprep.mubr.bf16.mxu0 %v5625_v50  ;;  %v17673_v50 = vld [vmem:[#allocation211_spill] sm:$0xff] }
 0xc1e   : > { %5821 = vmatmul.mubr.bf16.gmra.mrb[56].mxu0 %v5624_v34  ;;  %v17672_v34 = vld [vmem:[#allocation96_spill] sm:$0xff] }
 0xc27   : > { %v5496_v53 = vpop.xlane.xlu0 %5495 }
 0xc28   : > { %9942 = vrcp.f32 %v5496_v53  ;;  %v17674_v53 = vpack.c.bf16 %v17672_v34, %v17673_v50 }
 0xc2b   : > { %v3528_v20 = vpop.permute.xlu0 %3527 }
 0xc2c   : > { %3576 = vst.msk [vmem:[#allocation2] sm:$0xff] %vm3575_vm2, %v3528_v20 }
 0xc2f   : > { %v4701_v54 = vpop.permute.xlu0 %4700 }
 0xc32   : > { %v9943_v3 = vpop.eup %9942 }
 0xc33   : > { %v5592_v37 = vmul.f32 %v9943_v3, %v15036_v52  ;;  %v5593_v10 = vmul.f32 %v9943_v3, %v15038_v28 }
 0xc4a   : > { %v5499_v48 = vpop.xlane.xlu1 %5498 }
 0xc4b   : > { %9944 = vrcp.f32 %v5499_v48  ;;  %v17675_v48 = vld [vmem:[#allocation78_spill] sm:$0xff] }
 0xc4e   : > { %v3530_v38 = vpop.permute.xlu1 %3529 }
 0xc4f   : > { %3577 = vst.msk [vmem:[#allocation2 + $0x8] sm:$0xff] %vm3575_vm2, %v3530_v38  ;;  %v17676_v38 = vld [vmem:[#allocation132_spill] sm:$0xff] }
 0xc50   : > { %4748 = vst.msk [vmem:[#allocation2 + $0x8] sm:$0xff] %vm4746_vm3, %v4701_v54  ;;  %v17677_v54 = vpack.c.bf16 %v17675_v48, %v17676_v38 }
 0xc51   : > { %v8494_v59 = vpop.f32.mrb[0].mxu0 }
 0xc52   : > { %v4699_v62 = vpop.permute.xlu1 %4698  ;;  %v8495_v32 = vpop.f32.mrb[1].mxu0 }
 0xc53   : > { %4747 = vst.msk [vmem:[#allocation2] sm:$0xff] %vm4746_vm3, %v4699_v62  ;;  %v8496_v49 = vadd.f32 %v8495_v32, %v8494_v59  ;;  %v8497_v56 = vpop.f32.mrb[2].mxu0 }
 0xc54   : > { %v8498_v9 = vpop.f32.mrb[3].mxu0 }
 0xc55   : > { %v9945_v8 = vpop.eup %9944  ;;  %v8499_v44 = vadd.f32 %v8498_v9, %v8497_v56  ;;  %v17679_v56 = vld [vmem:[#allocation79_spill] sm:$0xff] }
 0xc56   : > { %v5594_v33 = vmul.f32 %v9945_v8, %v15056_v7  ;;  %v5595_v18 = vmul.f32 %v9945_v8, %v15058_v24  ;;  %v17657_v24 = vld [vmem:[#allocation129_spill] sm:$0xff]  ;;  %v17681_v8 = vld [vmem:[#allocation134_spill] sm:$0xff] }
 0xc57   : > { %v5837_v25 = vpack.c.bf16 %v8499_v44, %v8496_v49  ;;  %v17659_v57 = vpack.c.bf16 %v17657_v24, %v17658_v16  ;;  %v17678_v49 = vld [vmem:[#allocation107_spill] sm:$0xff]  ;;  %v17682_v44 = vld [vmem:[#allocation130_spill] sm:$0xff] }
 0xc58   : > { %v5626_v41 = vpack.c.bf16 %v5594_v33, %v5592_v37  ;;  %v5627_v36 = vpack.c.bf16 %v5595_v18, %v5593_v10  ;;  %v17680_v9 = vpack.c.bf16 %v17678_v49, %v17679_v56  ;;  %v17683_v12 = vpack.c.bf16 %v17681_v8, %v17682_v44  ;;  %v17684_v37 = vld [vmem:[#allocation72_spill] sm:$0xff]  ;;  %v17685_v33 = vld [vmem:[#allocation71_spill] sm:$0xff]  ;;  %v17709_v8 = vld [vmem:[#allocation218_spill] sm:$0xff] }
 0xc59   : > { %v8500_v13 = vpop.f32.mrb[4].mxu0  ;;  %5869 = vrot.lane.b32.xlu1 %v5837_v25, %s10335_s29  ;;  %v17686_v10 = vpack.c.bf16 %v17684_v37, %v17685_v33 }
 0xc5a   : > { %5828 = vmatprep.mubr.bf16.mxu0 %v5627_v36  ;;  %v8501_v39 = vpop.f32.mrb[5].mxu0 }
 0xc5b   : > { %v8502_v29 = vadd.f32 %v8501_v39, %v8500_v13  ;;  %5829 = vmatmul.mubr.bf16.gmra.mrb[60].mxu0 %v5626_v41  ;;  %v8503_v52 = vpop.f32.mrb[6].mxu0 }
 0xc5c   : > { %v8504_v7 = vpop.f32.mrb[7].mxu0 }
 0xc5d   : > { %v8505_v28 = vadd.f32 %v8504_v7, %v8503_v52  ;;  %3531 = vrot.lane.b32.xlu1 %v17659_v57, %s10340_s20  ;;  %v17687_v57 = vld [vmem:[#allocation138_spill] sm:$0xff] }
 0xc5f   : > { %v5838_v19 = vpack.c.bf16 %v8505_v28, %v8502_v29 }
 0xc61   : > { %v8506_v30 = vpop.f32.mrb[8].mxu0  ;;  %5871 = vrot.lane.b32.xlu0 %v5838_v19, %s10335_s29  ;;  %4702 = vrot.lane.b32.xlu1 %v17662_v17, %s10338_s1  ;;  %v17688_v19 = vld [vmem:[#allocation135_spill] sm:$0xff]  ;;  %v17691_v17 = vld [vmem:[#allocation214_spill] sm:$0xff] }
 0xc62   : > { %v8507_v61 = vpop.f32.mrb[9].mxu0 }
 0xc63   : > { %v8508_v42 = vadd.f32 %v8507_v61, %v8506_v30  ;;  %v8509_v5 = vpop.f32.mrb[10].mxu0  ;;  %v17689_v30 = vpack.c.bf16 %v17687_v57, %v17688_v19  ;;  %v17692_v61 = vpack.c.bf16 %v17690_v4, %v17691_v17 }
 0xc64   : > { %v8510_v45 = vpop.f32.mrb[11].mxu0 }
 0xc65   : > { %v8511_v55 = vadd.f32 %v8510_v45, %v8509_v5  ;;  %3533 = vrot.lane.b32.xlu0 %v17665_v15, %s10340_s20  ;;  %v17693_v15 = vld [vmem:[#allocation143_spill] sm:$0xff] }
 0xc67   : > { %v5839_v27 = vpack.c.bf16 %v8511_v55, %v8508_v42 }
 0xc69   : > { %v8512_v11 = vpop.f32.mrb[12].mxu0  ;;  %4704 = vrot.lane.b32.xlu0 %v17668_v51, %s10338_s1  ;;  %5873 = vrot.lane.b32.xlu1 %v5839_v27, %s10335_s29  ;;  %v17694_v27 = vld [vmem:[#allocation137_spill] sm:$0xff] }
 0xc6a   : > { %v8513_v31 = vpop.f32.mrb[13].mxu0  ;;  %v17697_v51 = vld [vmem:[#allocation81_spill] sm:$0xff] }
 0xc6b   : > { %v8514_v63 = vadd.f32 %v8513_v31, %v8512_v11  ;;  %v8515_v46 = vpop.f32.mrb[14].mxu0  ;;  %v17695_v11 = vpack.c.bf16 %v17693_v15, %v17694_v27  ;;  %v17698_v31 = vpack.c.bf16 %v17696_v14, %v17697_v51  ;;  %v17723_v14 = vld [vmem:[#allocation115_spill] sm:$0xff]  ;;  %v17724_v51 = vld [vmem:[#allocation181_spill] sm:$0xff] }
 0xc6c   : > { %v8516_v21 = vpop.f32.mrb[15].mxu0 }
 0xc6d   : > { %v8517_v1 = vadd.f32 %v8516_v21, %v8515_v46  ;;  %3535 = vrot.lane.b32.xlu1 %v17671_v40, %s10340_s20  ;;  %v17699_v40 = vld [vmem:[#allocation140_spill] sm:$0xff] }
 0xc6f   : > { %v5840_v23 = vpack.c.bf16 %v8517_v1, %v8514_v63 }
 0xc71   : > { %5875 = vrot.lane.b32.xlu0 %v5840_v23, %s10335_s29  ;;  %4706 = vrot.lane.b32.xlu1 %v17674_v53, %s10338_s1  ;;  %v17700_v23 = vld [vmem:[#allocation144_spill] sm:$0xff]  ;;  %v17702_v53 = vld [vmem:[#allocation215_spill] sm:$0xff] }
 0xc72   : > { %v17701_v34 = vpack.c.bf16 %v17699_v40, %v17700_v23 }
 0xc73   : > { %v8518_v20 = vpop.f32.mrb[16].mxu0 }
 0xc74   : > { %v8519_v22 = vpop.f32.mrb[17].mxu0 }
 0xc75   : > { %3537 = vrot.lane.b32.xlu0 %v17677_v54, %s10340_s20  ;;  %v8520_v59 = vadd.f32 %v8519_v22, %v8518_v20  ;;  %v8521_v58 = vpop.f32.mrb[18].mxu0  ;;  %v17703_v20 = vld [vmem:[#allocation84_spill] sm:$0xff] }
 0xc76   : > { %v8522_v62 = vpop.f32.mrb[19].mxu0  ;;  %v17704_v22 = vpack.c.bf16 %v17702_v53, %v17703_v20 }
 0xc77   : > { %v8523_v32 = vadd.f32 %v8522_v62, %v8521_v58 }
 0xc79   : > { %v5841_v3 = vpack.c.bf16 %v8523_v32, %v8520_v59  ;;  %4708 = vrot.lane.b32.xlu0 %v17680_v9, %s10338_s1  ;;  %v17705_v32 = vld [vmem:[#allocation201_spill] sm:$0xff]  ;;  %v17708_v9 = vld [vmem:[#allocation95_spill] sm:$0xff] }
 0xc7a   : > { %v17710_v44 = vpack.c.bf16 %v17708_v9, %v17709_v8 }
 0xc7b   : > { %5877 = vrot.lane.b32.xlu1 %v5841_v3, %s10335_s29  ;;  %v17706_v3 = vld [vmem:[#allocation141_spill] sm:$0xff] }
 0xc7c   : > { %v17707_v49 = vpack.c.bf16 %v17705_v32, %v17706_v3 }
 0xc7f   : > { %3539 = vrot.lane.b32.xlu1 %v17683_v12, %s10340_s20 }
 0xc83   : > { %4710 = vrot.lane.b32.xlu1 %v17686_v10, %s10338_s1 }
 0xc94   : > { %v8524_v18 = vpop.f32.mrb[20].mxu0 }
 0xc95   : > { %v8525_v25 = vpop.f32.mrb[21].mxu0 }
 0xc96   : > { %v8526_v41 = vadd.f32 %v8525_v25, %v8524_v18  ;;  %v8527_v36 = vpop.f32.mrb[22].mxu0 }
 0xc97   : > { %v8528_v13 = vpop.f32.mrb[23].mxu0 }
 0xc98   : > { %v8529_v47 = vadd.f32 %v8528_v13, %v8527_v36  ;;  %v17712_v36 = vld [vmem:[#allocation204_spill] sm:$0xff] }
 0xc9a   : > { %v5842_v39 = vpack.c.bf16 %v8529_v47, %v8526_v41  ;;  %v17711_v41 = vld [vmem:[#allocation87_spill] sm:$0xff] }
 0xc9b   : > { %v17713_v13 = vpack.c.bf16 %v17711_v41, %v17712_v36 }
 0xc9c   : > { %5879 = vrot.lane.b32.xlu0 %v5842_v39, %s10335_s29  ;;  %v8530_v29 = vpop.f32.mrb[24].mxu0  ;;  %v17714_v39 = vld [vmem:[#allocation219_spill] sm:$0xff] }
 0xc9d   : > { %v8531_v52 = vpop.f32.mrb[25].mxu0 }
 0xc9e   : > { %v8532_v7 = vadd.f32 %v8531_v52, %v8530_v29  ;;  %v8533_v28 = vpop.f32.mrb[26].mxu0  ;;  %v17715_v29 = vld [vmem:[#allocation167_spill] sm:$0xff] }
 0xc9f   : > { %v8534_v24 = vpop.f32.mrb[27].mxu0  ;;  %v17716_v52 = vpack.c.bf16 %v17714_v39, %v17715_v29 }
 0xca0   : > { %v8535_v16 = vadd.f32 %v8534_v24, %v8533_v28  ;;  %3541 = vrot.lane.b32.xlu0 %v17689_v30, %s10340_s20  ;;  %v17717_v30 = vld [vmem:[#allocation178_spill] sm:$0xff] }
 0xca2   : > { %v5843_v43 = vpack.c.bf16 %v8535_v16, %v8532_v7 }
 0xca4   : > { %4712 = vrot.lane.b32.xlu0 %v17692_v61, %s10338_s1  ;;  %5881 = vrot.lane.b32.xlu1 %v5843_v43, %s10335_s29  ;;  %v8536_v42 = vpop.f32.mrb[28].mxu0  ;;  %v17718_v43 = vld [vmem:[#allocation85_spill] sm:$0xff] }
 0xca5   : > { %v8537_v5 = vpop.f32.mrb[29].mxu0  ;;  %v17719_v4 = vpack.c.bf16 %v17717_v30, %v17718_v43 }
 0xca6   : > { %v8538_v45 = vadd.f32 %v8537_v5, %v8536_v42  ;;  %v8539_v55 = vpop.f32.mrb[30].mxu0  ;;  %v17720_v42 = vld [vmem:[#allocation171_spill] sm:$0xff]  ;;  %v17721_v5 = vld [vmem:[#allocation220_spill] sm:$0xff] }
 0xca7   : > { %v8540_v6 = vpop.f32.mrb[31].mxu0 }
 0xca8   : > { %v8541_v2 = vadd.f32 %v8540_v6, %v8539_v55  ;;  %3543 = vrot.lane.b32.xlu1 %v17695_v11, %s10340_s20 }
 0xcaa   : > { %v5844_v60 = vpack.c.bf16 %v8541_v2, %v8538_v45  ;;  %v17722_v45 = vpack.c.bf16 %v17720_v42, %v17721_v5 }
 0xcac   : > { %4714 = vrot.lane.b32.xlu1 %v17698_v31, %s10338_s1  ;;  %5883 = vrot.lane.b32.xlu0 %v5844_v60, %s10335_s29  ;;  %v8542_v63 = vpop.f32.mrb[32].mxu0  ;;  %v17725_v31 = vpack.c.bf16 %v17723_v14, %v17724_v51 }
 0xcad   : > { %v8543_v46 = vpop.f32.mrb[33].mxu0 }
 0xcae   : > { %v8544_v21 = vadd.f32 %v8543_v46, %v8542_v63  ;;  %v8545_v1 = vpop.f32.mrb[34].mxu0 }
 0xcaf   : > { %v8546_v26 = vpop.f32.mrb[35].mxu0 }
 0xcb0   : > { %v8547_v0 = vadd.f32 %v8546_v26, %v8545_v1  ;;  %3545 = vrot.lane.b32.xlu0 %v17701_v34, %s10340_s20  ;;  %v17726_v26 = vld [vmem:[#allocation173_spill] sm:$0xff] }
 0xcb2   : > { %v5845_v50 = vpack.c.bf16 %v8547_v0, %v8544_v21  ;;  %v17727_v0 = vld [vmem:[#allocation172_spill] sm:$0xff] }
 0xcb3   : > { %v17728_v40 = vpack.c.bf16 %v17726_v26, %v17727_v0 }
 0xcb4   : > { %4716 = vrot.lane.b32.xlu0 %v17704_v22, %s10338_s1  ;;  %5885 = vrot.lane.b32.xlu1 %v5845_v50, %s10335_s29  ;;  %v8548_v48 = vpop.f32.mrb[36].mxu0 }
 0xcb5   : > { %v8549_v38 = vpop.f32.mrb[37].mxu0 }
 0xcb6   : > { %v8550_v54 = vadd.f32 %v8549_v38, %v8548_v48  ;;  %v8551_v59 = vpop.f32.mrb[38].mxu0  ;;  %v17729_v38 = vld [vmem:[#allocation207_spill] sm:$0xff] }
 0xcb7   : > { %v8552_v58 = vpop.f32.mrb[39].mxu0 }
 0xcb8   : > { %v8553_v62 = vadd.f32 %v8552_v58, %v8551_v59  ;;  %3547 = vrot.lane.b32.xlu1 %v17707_v49, %s10340_s20  ;;  %v17732_v49 = vld [vmem:[#allocation188_spill] sm:$0xff] }
 0xcba   : > { %v5846_v56 = vpack.c.bf16 %v8553_v62, %v8550_v54  ;;  %v17730_v54 = vld [vmem:[#allocation206_spill] sm:$0xff] }
 0xcbb   : > { %v17731_v59 = vpack.c.bf16 %v17729_v38, %v17730_v54 }
 0xcbc   : > { %4718 = vrot.lane.b32.xlu1 %v17710_v44, %s10338_s1  ;;  %5887 = vrot.lane.b32.xlu0 %v5846_v56, %s10335_s29  ;;  %v8554_v12 = vpop.f32.mrb[40].mxu0  ;;  %v17733_v56 = vld [vmem:[#allocation187_spill] sm:$0xff]  ;;  %v17735_v44 = vld [vmem:[#allocation157_spill] sm:$0xff] }
 0xcbd   : > { %v8555_v37 = vpop.f32.mrb[41].mxu0  ;;  %v17734_v9 = vpack.c.bf16 %v17732_v49, %v17733_v56 }
 0xcbe   : > { %v8556_v33 = vadd.f32 %v8555_v37, %v8554_v12  ;;  %v8557_v10 = vpop.f32.mrb[42].mxu0  ;;  %v17736_v12 = vld [vmem:[#allocation60_spill] sm:$0xff] }
 0xcbf   : > { %v8558_v18 = vpop.f32.mrb[43].mxu0  ;;  %v17737_v37 = vpack.c.bf16 %v17735_v44, %v17736_v12 }
 0xcc0   : > { %v8559_v25 = vadd.f32 %v8558_v18, %v8557_v10  ;;  %3549 = vrot.lane.b32.xlu0 %v17713_v13, %s10340_s20 }
 0xcc2   : > { %v5847_v47 = vpack.c.bf16 %v8559_v25, %v8556_v33  ;;  %v17738_v25 = vld [vmem:[#allocation142_spill] sm:$0xff] }
 0xcc3   : > { %v17739_v41 = vpack.c.bf16 %v15005_v35, %v17738_v25 }
 0xcc4   : > { %4720 = vrot.lane.b32.xlu0 %v17716_v52, %s10338_s1  ;;  %5889 = vrot.lane.b32.xlu1 %v5847_v47, %s10335_s29  ;;  %v8560_v7 = vpop.f32.mrb[44].mxu0 }
 0xcc5   : > { %v8561_v28 = vpop.f32.mrb[45].mxu0 }
 0xcc6   : > { %v8562_v24 = vadd.f32 %v8561_v28, %v8560_v7  ;;  %v8563_v16 = vpop.f32.mrb[46].mxu0 }
 0xcc7   : > { %v8564_v57 = vpop.f32.mrb[47].mxu0 }
 0xcc8   : > { %v8565_v19 = vadd.f32 %v8564_v57, %v8563_v16  ;;  %3551 = vrot.lane.b32.xlu1 %v17719_v4, %s10340_s20 }
 0xcca   : > { %v5848_v17 = vpack.c.bf16 %v8565_v19, %v8562_v24 }
 0xccb   : > { %v5870_v61 = vpop.permute.xlu1 %5869 }
 0xccc   : > { %4722 = vrot.lane.b32.xlu1 %v17722_v45, %s10338_s1  ;;  %5891 = vrot.lane.b32.xlu0 %v5848_v17, %s10335_s29  ;;  %v8566_v55 = vpop.f32.mrb[48].mxu0  ;;  %5918 = vst.msk [vmem:[#allocation2] sm:$0xff] %vm5917_vm4, %v5870_v61 }
 0xccd   : > { %v8567_v6 = vpop.f32.mrb[49].mxu0 }
 0xcce   : > { %v8568_v2 = vadd.f32 %v8567_v6, %v8566_v55  ;;  %v8569_v15 = vpop.f32.mrb[50].mxu0 }
 0xccf   : > { %v8570_v27 = vpop.f32.mrb[51].mxu0  ;;  %v3532_v11 = vpop.permute.xlu1 %3531 }
 0xcd0   : > { %v8571_v60 = vadd.f32 %v8570_v27, %v8569_v15  ;;  %3553 = vrot.lane.b32.xlu0 %v17725_v31, %s10340_s20  ;;  %3578 = vst.msk [vmem:[#allocation2 + $0x10] sm:$0xff] %vm3575_vm2, %v3532_v11 }
 0xcd2   : > { %v5849_v63 = vpack.c.bf16 %v8571_v60, %v8568_v2 }
 0xcd3   : > { %v5872_v46 = vpop.permute.xlu0 %5871  ;;  %v4703_v21 = vpop.permute.xlu1 %4702  ;;  %v5934_v1 = vld [vmem:[#allocation2] sm:$0xff] }
 0xcd4   : > { %4724 = vrot.lane.b32.xlu0 %v17728_v40, %s10338_s1  ;;  %5893 = vrot.lane.b32.xlu1 %v5849_v63, %s10335_s29  ;;  %v8572_v23 = vpop.f32.mrb[52].mxu0  ;;  %5919 = vst.msk [vmem:[#allocation2 + $0x8] sm:$0xff] %vm5917_vm4, %v5872_v46 }
 0xcd5   : > { %4749 = vst.msk [vmem:[#allocation2 + $0x10] sm:$0xff] %vm4746_vm3, %v4703_v21  ;;  %v8573_v34 = vpop.f32.mrb[53].mxu0  ;;  %8658 = vmatprep.mubr.msk.bf16.mxu1 %vm459_vm0, %v5934_v1 }
 0xcd6   : > { %v8574_v50 = vadd.f32 %v8573_v34, %v8572_v23  ;;  %v8575_v53 = vpop.f32.mrb[54].mxu0 }
 0xcd7   : > { %v8576_v20 = vpop.f32.mrb[55].mxu0  ;;  %v3534_v22 = vpop.permute.xlu0 %3533 }
 0xcd8   : > { %v8577_v48 = vadd.f32 %v8576_v20, %v8575_v53  ;;  %3555 = vrot.lane.b32.xlu1 %v17731_v59, %s10340_s20  ;;  %3579 = vst.msk [vmem:[#allocation2 + $0x18] sm:$0xff] %vm3575_vm2, %v3534_v22 }
 0xcda   : > { %v5850_v58 = vpack.c.bf16 %v8577_v48, %v8574_v50 }
 0xcdb   : > { %v4705_v62 = vpop.permute.xlu0 %4704  ;;  %v5874_v32 = vpop.permute.xlu1 %5873  ;;  %v5935_v3 = vld [vmem:[#allocation2 + $0x8] sm:$0xff] }
 0xcdc   : > { %4726 = vrot.lane.b32.xlu1 %v17734_v9, %s10338_s1  ;;  %5895 = vrot.lane.b32.xlu0 %v5850_v58, %s10335_s29  ;;  %4750 = vst.msk [vmem:[#allocation2 + $0x18] sm:$0xff] %vm4746_vm3, %v4705_v62 }
 0xcdd   : > { %5920 = vst.msk [vmem:[#allocation2 + $0x10] sm:$0xff] %vm5917_vm4, %v5874_v32  ;;  %8659 = vmatmul.mubr.msk.bf16.vlgmr.msra.gmra.mrb[0].mxu1 %vm459_vm0, %v5935_v3 }
 0xcdf   : > { %v3536_v8 = vpop.permute.xlu1 %3535 }
 0xce0   : > { %3557 = vrot.lane.b32.xlu0 %v17737_v37, %s10340_s20  ;;  %3580 = vst.msk [vmem:[#allocation2 + $0x20] sm:$0xff] %vm3575_vm2, %v3536_v8 }
 0xce3   : > { %v5876_v33 = vpop.permute.xlu0 %5875  ;;  %v4707_v10 = vpop.permute.xlu1 %4706 }
 0xce4   : > { %v5936_v18 = vld [vmem:[#allocation2 + $0x10] sm:$0xff]  ;;  %4728 = vrot.lane.b32.xlu0 %v17739_v41, %s10338_s1  ;;  %5921 = vst.msk [vmem:[#allocation2 + $0x18] sm:$0xff] %vm5917_vm4, %v5876_v33 }
 0xce5   : > { %4751 = vst.msk [vmem:[#allocation2 + $0x20] sm:$0xff] %vm4746_vm3, %v4707_v10  ;;  %8662 = vmatprep.mubr.msk.bf16.mxu1 %vm459_vm0, %v5936_v18  ;;  %v15305_v10 = vld [vmem:[#allocation6 + $0x2] ss:$0 sm:$0xff] }
 0xce7   : > { %v3538_v36 = vpop.permute.xlu0 %3537 }
 0xce8   : > { %3581 = vst.msk [vmem:[#allocation2 + $0x28] sm:$0xff] %vm3575_vm2, %v3538_v36 }
 0xceb   : > { %v4709_v13 = vpop.permute.xlu0 %4708  ;;  %v5937_v47 = vld [vmem:[#allocation2 + $0x18] sm:$0xff] }
 0xcec   : > { %4752 = vst.msk [vmem:[#allocation2 + $0x28] sm:$0xff] %vm4746_vm3, %v4709_v13  ;;  %8663 = vmatmul.mubr.msk.bf16.gmra.mrb[4].mxu1 %vm459_vm0, %v5937_v47 }
 0xced   : > { %v5878_v39 = vpop.permute.xlu1 %5877 }
 0xcee   : > { %5922 = vst.msk [vmem:[#allocation2 + $0x20] sm:$0xff] %vm5917_vm4, %v5878_v39 }
 0xcf1   : > { %v8578_v35 = vpop.f32.mrb[56].mxu0  ;;  %v3540_v29 = vpop.permute.xlu1 %3539 }
 0xcf2   : > { %v8579_v52 = vpop.f32.mrb[57].mxu0  ;;  %3582 = vst.msk [vmem:[#allocation2 + $0x30] sm:$0xff] %vm3575_vm2, %v3540_v29  ;;  %v17740_v29 = vld [vmem:[#allocation20_spill] sm:$0xff] }
 0xcf3   : > { %v8580_v7 = vadd.f32 %v8579_v52, %v8578_v35  ;;  %v8581_v28 = vpop.f32.mrb[58].mxu0 }
 0xcf4   : > { %v8582_v24 = vpop.f32.mrb[59].mxu0 }
 0xcf5   : > { %v8583_v16 = vadd.f32 %v8582_v24, %v8581_v28  ;;  %v4711_v57 = vpop.permute.xlu1 %4710  ;;  %v5938_v19 = vld [vmem:[#allocation2 + $0x20] sm:$0xff]  ;;  %v17741_v28 = vld [vmem:[#allocation30_spill] sm:$0xff] }
 0xcf6   : > { %4753 = vst.msk [vmem:[#allocation2 + $0x30] sm:$0xff] %vm4746_vm3, %v4711_v57  ;;  %8666 = vmatprep.mubr.msk.bf16.mxu1 %vm459_vm0, %v5938_v19 }
 0xcf7   : > { %v5851_v30 = vpack.c.bf16 %v8583_v16, %v8580_v7  ;;  %v17742_v16 = vld [vmem:[#allocation23_spill] sm:$0xff] }
 0xcf9   : > { %5897 = vrot.lane.b32.xlu1 %v5851_v30, %s10335_s29  ;;  %v17743_v30 = vld [vmem:[#allocation26_spill] sm:$0xff] }
 0xd0e   : > { %v5880_v43 = vpop.permute.xlu0 %5879 }
 0xd0f   : > { %5923 = vst.msk [vmem:[#allocation2 + $0x28] sm:$0xff] %vm5917_vm4, %v5880_v43 }
 0xd12   : > { %v3542_v4 = vpop.permute.xlu0 %3541 }
 0xd13   : > { %3583 = vst.msk [vmem:[#allocation2 + $0x38] sm:$0xff] %vm3575_vm2, %v3542_v4 }
 0xd16   : > { %v4713_v17 = vpop.permute.xlu0 %4712  ;;  %v5882_v61 = vpop.permute.xlu1 %5881  ;;  %v5939_v42 = vld [vmem:[#allocation2 + $0x28] sm:$0xff] }
 0xd17   : > { %4754 = vst.msk [vmem:[#allocation2 + $0x38] sm:$0xff] %vm4746_vm3, %v4713_v17  ;;  %8667 = vmatmul.mubr.msk.bf16.gmra.mrb[8].mxu1 %vm459_vm0, %v5939_v42 }
 0xd18   : > { %5924 = vst.msk [vmem:[#allocation2 + $0x30] sm:$0xff] %vm5917_vm4, %v5882_v61 }
 0xd1a   : > { %v3544_v5 = vpop.permute.xlu1 %3543 }
 0xd1b   : > { %3584 = vst.msk [vmem:[#allocation2 + $0x40] sm:$0xff] %vm3575_vm2, %v3544_v5 }
 0xd1e   : > { %v5884_v45 = vpop.permute.xlu0 %5883  ;;  %v4715_v55 = vpop.permute.xlu1 %4714 }
 0xd1f   : > { %v5940_v6 = vld [vmem:[#allocation2 + $0x30] sm:$0xff]  ;;  %5925 = vst.msk [vmem:[#allocation2 + $0x38] sm:$0xff] %vm5917_vm4, %v5884_v45 }
 0xd20   : > { %4755 = vst.msk [vmem:[#allocation2 + $0x40] sm:$0xff] %vm4746_vm3, %v4715_v55  ;;  %8670 = vmatprep.mubr.msk.bf16.mxu1 %vm459_vm0, %v5940_v6 }
 0xd22   : > { %v3546_v2 = vpop.permute.xlu0 %3545 }
 0xd23   : > { %3585 = vst.msk [vmem:[#allocation2 + $0x48] sm:$0xff] %vm3575_vm2, %v3546_v2 }
 0xd26   : > { %v4717_v15 = vpop.permute.xlu0 %4716  ;;  %v5886_v27 = vpop.permute.xlu1 %5885  ;;  %v5941_v11 = vld [vmem:[#allocation2 + $0x38] sm:$0xff] }
 0xd27   : > { %4756 = vst.msk [vmem:[#allocation2 + $0x48] sm:$0xff] %vm4746_vm3, %v4717_v15  ;;  %8671 = vmatmul.mubr.msk.bf16.gmra.mrb[12].mxu1 %vm459_vm0, %v5941_v11 }
 0xd28   : > { %5926 = vst.msk [vmem:[#allocation2 + $0x40] sm:$0xff] %vm5917_vm4, %v5886_v27 }
 0xd2a   : > { %v3548_v60 = vpop.permute.xlu1 %3547 }
 0xd2b   : > { %3586 = vst.msk [vmem:[#allocation2 + $0x50] sm:$0xff] %vm3575_vm2, %v3548_v60 }
 0xd2e   : > { %v5888_v14 = vpop.permute.xlu0 %5887  ;;  %v4719_v51 = vpop.permute.xlu1 %4718 }
 0xd2f   : > { %v5942_v31 = vld [vmem:[#allocation2 + $0x40] sm:$0xff]  ;;  %5927 = vst.msk [vmem:[#allocation2 + $0x48] sm:$0xff] %vm5917_vm4, %v5888_v14  ;;  %v8584_v63 = vpop.f32.mrb[60].mxu0 }
 0xd30   : > { %4757 = vst.msk [vmem:[#allocation2 + $0x50] sm:$0xff] %vm4746_vm3, %v4719_v51  ;;  %8674 = vmatprep.mubr.msk.bf16.mxu1 %vm459_vm0, %v5942_v31  ;;  %v8585_v46 = vpop.f32.mrb[61].mxu0 }
 0xd31   : > { %v8586_v21 = vadd.f32 %v8585_v46, %v8584_v63  ;;  %v8587_v1 = vpop.f32.mrb[62].mxu0 }
 0xd32   : > { %v3550_v26 = vpop.permute.xlu0 %3549  ;;  %v8588_v0 = vpop.f32.mrb[63].mxu0 }
 0xd33   : > { %3587 = vst.msk [vmem:[#allocation2 + $0x58] sm:$0xff] %vm3575_vm2, %v3550_v26  ;;  %v8589_v40 = vadd.f32 %v8588_v0, %v8587_v1  ;;  %v17745_v0 = vld [vmem:[#allocation35_spill] sm:$0xff] }
 0xd35   : > { %v5852_v23 = vpack.c.bf16 %v8589_v40, %v8586_v21  ;;  %v17744_v21 = vld [vmem:[#allocation25_spill] sm:$0xff] }
 0xd36   : > { %v4721_v34 = vpop.permute.xlu0 %4720  ;;  %v5890_v50 = vpop.permute.xlu1 %5889  ;;  %v5943_v53 = vld [vmem:[#allocation2 + $0x48] sm:$0xff] }
 0xd37   : > { %4758 = vst.msk [vmem:[#allocation2 + $0x58] sm:$0xff] %vm4746_vm3, %v4721_v34  ;;  %5899 = vrot.lane.b32.xlu0 %v5852_v23, %s10335_s29  ;;  %8675 = vmatmul.mubr.msk.bf16.gmra.mrb[16].mxu1 %vm459_vm0, %v5943_v53  ;;  %v17746_v23 = vld [vmem:[#allocation40_spill] sm:$0xff]  ;;  %v17747_v53 = vld [vmem:[#allocation37_spill] sm:$0xff]  ;;  %s10244_s29 = scalar_lea.vmem %s15980_s17, 1024 }
 0xd38   : > { %5928 = vst.msk [vmem:[#allocation2 + $0x50] sm:$0xff] %vm5917_vm4, %v5890_v50  ;;  %p10245_p11 = scmp.ne.s32.totalorder %s15980_s17, %s10244_s29  ;;  %p10252_p1 = scmp.lt.s32.totalorder %s10250_s13, %s10244_s29 }
 0xd3a   : > { %v3552_v20 = vpop.permute.xlu1 %3551  ;;  %p10246_p5 = pnand %p10245_p11, %p17772_p13  ;;  %p10253_p3 = por %p10252_p1, %p10251_p4 }
 0xd3b   : > { %3588 = vst.msk [vmem:[#allocation2 + $0x60] sm:$0xff] %vm3575_vm2, %v3552_v20 }
 0xd3c   : > { %p10247_p7 = pneg %p10246_p5 }
 0xd3e   : > { %v5892_v22 = vpop.permute.xlu0 %5891  ;;  %v4723_v48 = vpop.permute.xlu1 %4722  ;;  %p10254_p8 = pnand %p10253_p3, %p10247_p7 }
 0xd3f   : > { %v5944_v38 = vld [vmem:[#allocation2 + $0x50] sm:$0xff]  ;;  %5929 = vst.msk [vmem:[#allocation2 + $0x58] sm:$0xff] %vm5917_vm4, %v5892_v22 }
 0xd40   : > { %4759 = vst.msk [vmem:[#allocation2 + $0x60] sm:$0xff] %vm4746_vm3, %v4723_v48  ;;  %8678 = vmatprep.mubr.msk.bf16.mxu1 %vm459_vm0, %v5944_v38 }
 0xd42   : > { %v3554_v54 = vpop.permute.xlu0 %3553 }
 0xd43   : > { %3589 = vst.msk [vmem:[#allocation2 + $0x68] sm:$0xff] %vm3575_vm2, %v3554_v54 }
 0xd46   : > { %v4725_v59 = vpop.permute.xlu0 %4724  ;;  %v5894_v58 = vpop.permute.xlu1 %5893  ;;  %v5945_v62 = vld [vmem:[#allocation2 + $0x58] sm:$0xff] }
 0xd47   : > { %4760 = vst.msk [vmem:[#allocation2 + $0x68] sm:$0xff] %vm4746_vm3, %v4725_v59  ;;  %8679 = vmatmul.mubr.msk.bf16.gmra.mrb[20].mxu1 %vm459_vm0, %v5945_v62 }
 0xd48   : > { %5930 = vst.msk [vmem:[#allocation2 + $0x60] sm:$0xff] %vm5917_vm4, %v5894_v58 }
 0xd4a   : > { %v3556_v32 = vpop.permute.xlu1 %3555 }
 0xd4b   : > { %3590 = vst.msk [vmem:[#allocation2 + $0x70] sm:$0xff] %vm3575_vm2, %v3556_v32 }
 0xd4e   : > { %v5896_v3 = vpop.permute.xlu0 %5895  ;;  %v4727_v49 = vpop.permute.xlu1 %4726 }
 0xd4f   : > { %v5946_v56 = vld [vmem:[#allocation2 + $0x60] sm:$0xff]  ;;  %5931 = vst.msk [vmem:[#allocation2 + $0x68] sm:$0xff] %vm5917_vm4, %v5896_v3 }
 0xd50   : > { %4761 = vst.msk [vmem:[#allocation2 + $0x70] sm:$0xff] %vm4746_vm3, %v4727_v49  ;;  %8682 = vmatprep.mubr.msk.bf16.mxu1 %vm459_vm0, %v5946_v56 }
 0xd52   : > { %v3558_v9 = vpop.permute.xlu0 %3557 }
 0xd53   : > { %3591 = vst.msk [vmem:[#allocation2 + $0x78] sm:$0xff] %vm3575_vm2, %v3558_v9  ;;  %v9106_v9 = vld [vmem:[#allocation11] sm:$0xff]  }
 0xd54   : > { %8690 = vmatprep.subr.bf16.mxu1 %v9106_v9 }
 0xd55   : > { %8691 = vmatpush3.bf16.msra.mxu1 %v9106_v9 }
 0xd56   : > { %v4729_v8 = vpop.permute.xlu0 %4728  ;;  %v5947_v44 = vld [vmem:[#allocation2 + $0x68] sm:$0xff] }
 0xd57   : > { %4762 = vst.msk [vmem:[#allocation2 + $0x78] sm:$0xff] %vm4746_vm3, %v4729_v8  ;;  %8683 = vmatmul.mubr.msk.bf16.gmra.mrb[24].mxu1 %vm459_vm0, %v5947_v44  ;;  %v9107_v8 = vld [vmem:[#allocation11 + $0x8] sm:$0xff]   ;;  %v9108_v44 = vld [vmem:[#allocation11 + $0x10] sm:$0xff]  }
 0xd58   : > { %8692 = vmatprep.subr.bf16.mxu1 %v9107_v8 }
 0xd59   : > { %8693 = vmatpush3.bf16.msra.mxu1 %v9107_v8 }
 0xd5a   : > { %8694 = vmatprep.subr.bf16.mxu1 %v9108_v44 }
 0xd5d   : > { %8695 = vmatpush3.bf16.msra.mxu1 %v9108_v44 }
 0xd6b   : > { %v5898_v12 = vpop.permute.xlu1 %5897 }
 0xd6c   : > { %5932 = vst.msk [vmem:[#allocation2 + $0x70] sm:$0xff] %vm5917_vm4, %v5898_v12  ;;  %v9109_v12 = vld [vmem:[#allocation11 + $0x18] sm:$0xff]  }
 0xd6d   : > { %8696 = vmatprep.subr.bf16.mxu1 %v9109_v12 }
 0xd6e   : > { %8697 = vmatpush3.bf16.msra.mxu1 %v9109_v12 }
 0xd73   : > { %v5948_v37 = vld [vmem:[#allocation2 + $0x70] sm:$0xff] }
 0xd74   : > { %8686 = vmatprep.mubr.msk.bf16.mxu1 %vm459_vm0, %v5948_v37 }
 0xda9   : > { %v5900_v33 = vpop.permute.xlu0 %5899 }
 0xdaa   : > { %5933 = vst.msk [vmem:[#allocation2 + $0x78] sm:$0xff] %vm5917_vm4, %v5900_v33 }
 0xdb0   : > { %v8660_v18 = vpop.f32.mrb[0].mxu1 }
 0xdb1   : > { %v6069_v25 = vpop.f32.mrb[1].mxu1  ;;  %v5949_v41 = vld [vmem:[#allocation2 + $0x78] sm:$0xff]  ;;  %v6078_v35 = vadd.f32 %v8660_v18, %v15305_v10 }
 0xdb2   : > { %v6070_v36 = vadd.f32 %v15305_v10, %v6069_v25  ;;  %8687 = vmatmul.mubr.msk.bf16.gmra.mrb[28].mxu1 %vm459_vm0, %v5949_v41  ;;  %v8661_v13 = vpop.f32.mrb[2].mxu1 }
 0xdb3   : > { %v6081_v47 = vadd.f32 %v8661_v13, %v15305_v10  ;;  %v6072_v39 = vpop.f32.mrb[3].mxu1  ;;  %v15324_v43 = vadd.f32 %v17743_v30, %v6078_v35  ;;  %v17748_v13 = vld [vmem:[#allocation41_spill] sm:$0xff]  ;;  %v17751_v30 = vld [vmem:[#allocation46_spill] sm:$0xff] }
 0xdb4   : > { %v15312_v52 = vadd.f32 %v17740_v29, %v6070_v36  ;;  %v6073_v7 = vadd.f32 %v15305_v10, %v6072_v39  ;;  %v17749_v29 = vld [vmem:[#allocation44_spill] sm:$0xff] }
 0xdb5   : > { %v15316_v24 = vadd.f32 %v17741_v28, %v6081_v47  ;;  %v6236_v42 = vsel %vm459_vm0, %v15324_v43, 0.0  ;;  %v6360_v27 = vmul.f32 %v15324_v43, %v15324_v43  ;;  %v17750_v28 = vld [vmem:[#allocation43_spill] sm:$0xff] }
 0xdb6   : > { %v15319_v57 = vadd.f32 %v17742_v16, %v6073_v7  ;;  %v6230_v19 = vsel %vm459_vm0, %v15312_v52, 0.0  ;;  %v6358_v5 = vmul.f32 %v15312_v52, %v15312_v52 }
 0xdb7   : > { %6231 = vadd.xlane.f32.xlu1 %v6230_v19  ;;  %v6239_v17 = vsel %vm459_vm0, %v15316_v24, 0.0  ;;  %v6361_v55 = vmul.f32 %v15316_v24, %v15316_v24  ;;  %v6396_v26 = vsel %vm459_vm0, %v6360_v27, 0.0 }
 0xdb8   : > { %v6233_v4 = vsel %vm459_vm0, %v15319_v57, 0.0  ;;  %v6359_v61 = vmul.f32 %v15319_v57, %v15319_v57  ;;  %v6390_v2 = vsel %vm459_vm0, %v6358_v5, 0.0 }
 0xdb9   : > { %6234 = vadd.xlane.f32.xlu0 %v6233_v4  ;;  %v6399_v14 = vsel %vm459_vm0, %v6361_v55, 0.0 }
 0xdba   : > { %v6393_v45 = vsel %vm459_vm0, %v6359_v61, 0.0 }
 0xdbb   : > { %6240 = vadd.xlane.f32.xlu1 %v6239_v17 }
 0xdbd   : > { %6237 = vadd.xlane.f32.xlu0 %v6236_v42 }
 0xdbf   : > { %6394 = vadd.xlane.f32.xlu1 %v6393_v45  ;;  %v8664_v6 = vpop.f32.mrb[4].mxu1 }
 0xdc0   : > { %v6085_v15 = vpop.f32.mrb[5].mxu1  ;;  %v6094_v46 = vadd.f32 %v8664_v6, %v15305_v10 }
 0xdc1   : > { %6391 = vadd.xlane.f32.xlu0 %v6390_v2  ;;  %v6086_v11 = vadd.f32 %v15305_v10, %v6085_v15  ;;  %v8665_v60 = vpop.f32.mrb[6].mxu1 }
 0xdc2   : > { %v6088_v51 = vpop.f32.mrb[7].mxu1  ;;  %v6097_v31 = vadd.f32 %v8665_v60, %v15305_v10  ;;  %v15360_v20 = vadd.f32 %v17747_v53, %v6094_v46  ;;  %v17752_v46 = vld [vmem:[#allocation47_spill] sm:$0xff] }
 0xdc3   : > { %6400 = vadd.xlane.f32.xlu1 %v6399_v14  ;;  %v6089_v63 = vadd.f32 %v15305_v10, %v6088_v51  ;;  %v15348_v1 = vadd.f32 %v17744_v21, %v6086_v11 }
 0xdc4   : > { %v15355_v34 = vadd.f32 %v17746_v23, %v6097_v31  ;;  %v6248_v54 = vsel %vm459_vm0, %v15360_v20, 0.0  ;;  %v6364_v3 = vmul.f32 %v15360_v20, %v15360_v20 }
 0xdc5   : > { %v15352_v40 = vadd.f32 %v17745_v0, %v6089_v63  ;;  %6397 = vadd.xlane.f32.xlu0 %v6396_v26  ;;  %v6242_v22 = vsel %vm459_vm0, %v15348_v1, 0.0  ;;  %v6362_v59 = vmul.f32 %v15348_v1, %v15348_v1 }
 0xdc6   : > { %v6251_v48 = vsel %vm459_vm0, %v15355_v34, 0.0  ;;  %v6365_v62 = vmul.f32 %v15355_v34, %v15355_v34  ;;  %v6408_v56 = vsel %vm459_vm0, %v6364_v3, 0.0 }
 0xdc7   : > { %v6245_v50 = vsel %vm459_vm0, %v15352_v40, 0.0  ;;  %v6363_v38 = vmul.f32 %v15352_v40, %v15352_v40  ;;  %v6402_v32 = vsel %vm459_vm0, %v6362_v59, 0.0 }
 0xdc8   : > { %6246 = vadd.xlane.f32.xlu1 %v6245_v50  ;;  %v6411_v49 = vsel %vm459_vm0, %v6365_v62, 0.0  ;;  %v17753_v50 = vld [vmem:[#allocation50_spill] sm:$0xff] }
 0xdc9   : > { %6243 = vadd.xlane.f32.xlu0 %v6242_v22  ;;  %v6405_v58 = vsel %vm459_vm0, %v6363_v38, 0.0  ;;  %v17754_v22 = vld [vmem:[#allocation49_spill] sm:$0xff] }
 0xdcc   : > { %6252 = vadd.xlane.f32.xlu1 %v6251_v48 }
 0xdcd   : > { %6249 = vadd.xlane.f32.xlu0 %v6248_v54  ;;  %v17755_v54 = vld [vmem:[#allocation36_spill] sm:$0xff] }
 0xdd0   : > { %6406 = vadd.xlane.f32.xlu1 %v6405_v58 }
 0xdd1   : > { %6403 = vadd.xlane.f32.xlu0 %v6402_v32 }
 0xdd4   : > { %6412 = vadd.xlane.f32.xlu1 %v6411_v49 }
 0xdd5   : > { %6409 = vadd.xlane.f32.xlu0 %v6408_v56 }
 0xdea   : > { %v8668_v37 = vpop.f32.mrb[8].mxu1 }
 0xdeb   : > { %v6101_v33 = vpop.f32.mrb[9].mxu1  ;;  %v6110_v18 = vadd.f32 %v8668_v37, %v15305_v10 }
 0xdec   : > { %v6102_v25 = vadd.f32 %v15305_v10, %v6101_v33  ;;  %v8669_v41 = vpop.f32.mrb[10].mxu1 }
 0xded   : > { %v6104_v36 = vpop.f32.mrb[11].mxu1  ;;  %v6113_v39 = vadd.f32 %v8669_v41, %v15305_v10  ;;  %v15388_v7 = vadd.f32 %v17749_v29, %v6110_v18 }
 0xdee   : > { %v15383_v47 = vadd.f32 %v17748_v13, %v6102_v25  ;;  %v6105_v35 = vadd.f32 %v15305_v10, %v6104_v36  ;;  %v17756_v13 = vld [vmem:[#allocation21_spill] sm:$0xff] }
 0xdef   : > { %v15396_v4 = vadd.f32 %v17751_v30, %v6113_v39  ;;  %v6260_v61 = vsel %vm459_vm0, %v15388_v7, 0.0  ;;  %v6368_v6 = vmul.f32 %v15388_v7, %v15388_v7 }
 0xdf0   : > { %v15391_v16 = vadd.f32 %v17750_v28, %v6105_v35  ;;  %v6254_v19 = vsel %vm459_vm0, %v15383_v47, 0.0  ;;  %v6366_v42 = vmul.f32 %v15383_v47, %v15383_v47 }
 0xdf1   : > { %6255 = vadd.xlane.f32.xlu0 %v6254_v19  ;;  %v6263_v5 = vsel %vm459_vm0, %v15396_v4, 0.0  ;;  %v6369_v27 = vmul.f32 %v15396_v4, %v15396_v4  ;;  %v6420_v31 = vsel %vm459_vm0, %v6368_v6, 0.0  ;;  %v17757_v19 = vld [vmem:[#allocation28_spill] sm:$0xff] }
 0xdf2   : > { %v6257_v17 = vsel %vm459_vm0, %v15391_v16, 0.0  ;;  %v6367_v45 = vmul.f32 %v15391_v16, %v15391_v16  ;;  %v6414_v55 = vsel %vm459_vm0, %v6366_v42, 0.0 }
 0xdf3   : > { %6258 = vadd.xlane.f32.xlu1 %v6257_v17  ;;  %v6423_v23 = vsel %vm459_vm0, %v6369_v27, 0.0  ;;  %v17758_v17 = vld [vmem:[#allocation22_spill] sm:$0xff] }
 0xdf4   : > { %v6417_v15 = vsel %vm459_vm0, %v6367_v45, 0.0 }
 0xdf5   : > { %6261 = vadd.xlane.f32.xlu0 %v6260_v61 }
 0xdf7   : > { %6264 = vadd.xlane.f32.xlu1 %v6263_v5  ;;  %v17759_v5 = vld [vmem:[#allocation24_spill] sm:$0xff] }
 0xdf9   : > { %6415 = vadd.xlane.f32.xlu0 %v6414_v55 }
 0xdfa   : > { %v8672_v2 = vpop.f32.mrb[12].mxu1 }
 0xdfb   : > { %6418 = vadd.xlane.f32.xlu1 %v6417_v15  ;;  %v6117_v11 = vpop.f32.mrb[13].mxu1  ;;  %v6126_v60 = vadd.f32 %v8672_v2, %v15305_v10 }
 0xdfc   : > { %v6118_v14 = vadd.f32 %v15305_v10, %v6117_v11  ;;  %v8673_v51 = vpop.f32.mrb[14].mxu1 }
 0xdfd   : > { %6421 = vadd.xlane.f32.xlu0 %v6420_v31  ;;  %v6120_v63 = vpop.f32.mrb[15].mxu1  ;;  %v6129_v26 = vadd.f32 %v8673_v51, %v15305_v10  ;;  %v15424_v53 = vadd.f32 %v17753_v50, %v6126_v60 }
 0xdfe   : > { %v15418_v21 = vadd.f32 %v17752_v46, %v6118_v14  ;;  %v6121_v0 = vadd.f32 %v15305_v10, %v6120_v63 }
 0xdff   : > { %6424 = vadd.xlane.f32.xlu1 %v6423_v23  ;;  %v15432_v59 = vadd.f32 %v17755_v54, %v6129_v26  ;;  %v6272_v62 = vsel %vm459_vm0, %v15424_v53, 0.0  ;;  %v6372_v9 = vmul.f32 %v15424_v53, %v15424_v53 }
 0xe00   : > { %v15427_v48 = vadd.f32 %v17754_v22, %v6121_v0  ;;  %v6266_v38 = vsel %vm459_vm0, %v15418_v21, 0.0  ;;  %v6370_v32 = vmul.f32 %v15418_v21, %v15418_v21  ;;  %v17760_v22 = vld [vmem:[#allocation32_spill] sm:$0xff] }
 0xe01   : > { %6267 = vadd.xlane.f32.xlu0 %v6266_v38  ;;  %v6275_v3 = vsel %vm459_vm0, %v15432_v59, 0.0  ;;  %v6373_v12 = vmul.f32 %v15432_v59, %v15432_v59  ;;  %v6432_v41 = vsel %vm459_vm0, %v6372_v9, 0.0 }
 0xe02   : > { %v6269_v58 = vsel %vm459_vm0, %v15427_v48, 0.0  ;;  %v6371_v49 = vmul.f32 %v15427_v48, %v15427_v48  ;;  %v6426_v56 = vsel %vm459_vm0, %v6370_v32, 0.0  ;;  %v17761_v32 = vld [vmem:[#allocation39_spill] sm:$0xff] }
 0xe03   : > { %6270 = vadd.xlane.f32.xlu1 %v6269_v58  ;;  %v6435_v28 = vsel %vm459_vm0, %v6373_v12, 0.0 }
 0xe04   : > { %v6429_v44 = vsel %vm459_vm0, %v6371_v49, 0.0  ;;  %v17762_v49 = vld [vmem:[#allocation27_spill] sm:$0xff] }
 0xe05   : > { %6273 = vadd.xlane.f32.xlu0 %v6272_v62 }
 0xe07   : > { %6276 = vadd.xlane.f32.xlu1 %v6275_v3 }
 0xe09   : > { %6427 = vadd.xlane.f32.xlu0 %v6426_v56 }
 0xe0a   : > { %v8676_v8 = vpop.f32.mrb[16].mxu1 }
 0xe0b   : > { %6430 = vadd.xlane.f32.xlu1 %v6429_v44  ;;  %v6133_v37 = vpop.f32.mrb[17].mxu1  ;;  %v6142_v33 = vadd.f32 %v8676_v8, %v15305_v10  ;;  %v17763_v8 = vld [vmem:[#allocation29_spill] sm:$0xff] }
 0xe0c   : > { %v6134_v18 = vadd.f32 %v15305_v10, %v6133_v37  ;;  %v8677_v25 = vpop.f32.mrb[18].mxu1 }
 0xe0d   : > { %6433 = vadd.xlane.f32.xlu0 %v6432_v41  ;;  %v6136_v36 = vpop.f32.mrb[19].mxu1  ;;  %v6145_v35 = vadd.f32 %v8677_v25, %v15305_v10  ;;  %v15460_v30 = vadd.f32 %v17757_v19, %v6142_v33 }
 0xe0e   : > { %v15454_v39 = vadd.f32 %v17756_v13, %v6134_v18  ;;  %v6137_v29 = vadd.f32 %v15305_v10, %v6136_v36 }
 0xe0f   : > { %6436 = vadd.xlane.f32.xlu1 %v6435_v28  ;;  %v15468_v45 = vadd.f32 %v17759_v5, %v6145_v35  ;;  %v6284_v6 = vsel %vm459_vm0, %v15460_v30, 0.0  ;;  %v6376_v60 = vmul.f32 %v15460_v30, %v15460_v30 }
 0xe10   : > { %v15463_v61 = vadd.f32 %v17758_v17, %v6137_v29  ;;  %v6278_v42 = vsel %vm459_vm0, %v15454_v39, 0.0  ;;  %v6374_v2 = vmul.f32 %v15454_v39, %v15454_v39 }
 0xe11   : > { %6279 = vadd.xlane.f32.xlu0 %v6278_v42  ;;  %v6287_v15 = vsel %vm459_vm0, %v15468_v45, 0.0  ;;  %v6377_v31 = vmul.f32 %v15468_v45, %v15468_v45  ;;  %v6444_v23 = vsel %vm459_vm0, %v6376_v60, 0.0  ;;  %v17765_v60 = vld [vmem:[#allocation45_spill] sm:$0xff] }
 0xe12   : > { %v6281_v55 = vsel %vm459_vm0, %v15463_v61, 0.0  ;;  %v6375_v27 = vmul.f32 %v15463_v61, %v15463_v61  ;;  %v6438_v11 = vsel %vm459_vm0, %v6374_v2, 0.0 }
 0xe13   : > { %6282 = vadd.xlane.f32.xlu1 %v6281_v55  ;;  %v6447_v62 = vsel %vm459_vm0, %v6377_v31, 0.0 }
 0xe14   : > { %v6441_v51 = vsel %vm459_vm0, %v6375_v27, 0.0 }
 0xe15   : > { %6285 = vadd.xlane.f32.xlu0 %v6284_v6  ;;  %v17764_v6 = vld [vmem:[#allocation42_spill] sm:$0xff] }
 0xe17   : > { %6288 = vadd.xlane.f32.xlu1 %v6287_v15 }
 0xe19   : > { %6439 = vadd.xlane.f32.xlu0 %v6438_v11 }
 0xe1a   : > { %v8680_v14 = vpop.f32.mrb[20].mxu1 }
 0xe1b   : > { %6442 = vadd.xlane.f32.xlu1 %v6441_v51  ;;  %v6149_v63 = vpop.f32.mrb[21].mxu1  ;;  %v6158_v46 = vadd.f32 %v8680_v14, %v15305_v10  ;;  %v17766_v51 = vld [vmem:[#allocation31_spill] sm:$0xff] }
 0xe1c   : > { %v6150_v26 = vadd.f32 %v15305_v10, %v6149_v63  ;;  %v8681_v0 = vpop.f32.mrb[22].mxu1 }
 0xe1d   : > { %6445 = vadd.xlane.f32.xlu0 %v6444_v23  ;;  %v6152_v50 = vpop.f32.mrb[23].mxu1  ;;  %v6161_v54 = vadd.f32 %v8681_v0, %v15305_v10  ;;  %v15496_v3 = vadd.f32 %v17761_v32, %v6158_v46  ;;  %v17767_v46 = vld [vmem:[#allocation33_spill] sm:$0xff] }
 0xe1e   : > { %v15490_v38 = vadd.f32 %v17760_v22, %v6150_v26  ;;  %v6153_v58 = vadd.f32 %v15305_v10, %v6152_v50 }
 0xe1f   : > { %6448 = vadd.xlane.f32.xlu1 %v6447_v62  ;;  %v15504_v44 = vadd.f32 %v17763_v8, %v6161_v54  ;;  %v6296_v37 = vsel %vm459_vm0, %v15496_v3, 0.0  ;;  %v6380_v36 = vmul.f32 %v15496_v3, %v15496_v3 }
 0xe20   : > { %v15499_v56 = vadd.f32 %v17762_v49, %v6153_v58  ;;  %v6290_v9 = vsel %vm459_vm0, %v15490_v38, 0.0  ;;  %v6378_v33 = vmul.f32 %v15490_v38, %v15490_v38 }
 0xe21   : > { %6291 = vadd.xlane.f32.xlu0 %v6290_v9  ;;  %v6299_v18 = vsel %vm459_vm0, %v15504_v44, 0.0  ;;  %v6381_v29 = vmul.f32 %v15504_v44, %v15504_v44  ;;  %v6456_v5 = vsel %vm459_vm0, %v6380_v36, 0.0 }
 0xe22   : > { %v6293_v12 = vsel %vm459_vm0, %v15499_v56, 0.0  ;;  %v6379_v25 = vmul.f32 %v15499_v56, %v15499_v56  ;;  %v6450_v41 = vsel %vm459_vm0, %v6378_v33, 0.0 }
 0xe23   : > { %6294 = vadd.xlane.f32.xlu1 %v6293_v12  ;;  %v6459_v11 = vsel %vm459_vm0, %v6381_v29, 0.0 }
 0xe24   : > { %v6453_v35 = vsel %vm459_vm0, %v6379_v25, 0.0 }
 0xe25   : > { %6297 = vadd.xlane.f32.xlu0 %v6296_v37 }
 0xe27   : > { %6300 = vadd.xlane.f32.xlu1 %v6299_v18 }
 0xe29   : > { %6451 = vadd.xlane.f32.xlu0 %v6450_v41 }
 0xe2a   : > { %v8684_v13 = vpop.f32.mrb[24].mxu1 }
 0xe2b   : > { %6454 = vadd.xlane.f32.xlu1 %v6453_v35  ;;  %v6165_v28 = vpop.f32.mrb[25].mxu1  ;;  %v6174_v19 = vadd.f32 %v8684_v13, %v15305_v10 }
 0xe2c   : > { %v6166_v17 = vadd.f32 %v15305_v10, %v6165_v28  ;;  %v8685_v42 = vpop.f32.mrb[26].mxu1 }
 0xe2d   : > { %6457 = vadd.xlane.f32.xlu0 %v6456_v5  ;;  %v6168_v55 = vpop.f32.mrb[27].mxu1  ;;  %v6177_v15 = vadd.f32 %v8685_v42, %v15305_v10  ;;  %v15532_v14 = vadd.f32 %v17765_v60, %v6174_v19 }
 0xe2e   : > { %v15526_v2 = vadd.f32 %v17764_v6, %v6166_v17  ;;  %v6169_v27 = vadd.f32 %v15305_v10, %v6168_v55 }
 0xe2f   : > { %6460 = vadd.xlane.f32.xlu1 %v6459_v11  ;;  %v15540_v26 = vadd.f32 %v17767_v46, %v6177_v15  ;;  %v6308_v23 = vsel %vm459_vm0, %v15532_v14, 0.0  ;;  %v6384_v62 = vmul.f32 %v15532_v14, %v15532_v14 }
 0xe30   : > { %v15535_v31 = vadd.f32 %v17766_v51, %v6169_v27  ;;  %v6302_v63 = vsel %vm459_vm0, %v15526_v2, 0.0  ;;  %v6382_v50 = vmul.f32 %v15526_v2, %v15526_v2 }
 0xe31   : > { %6303 = vadd.xlane.f32.xlu0 %v6302_v63  ;;  %v6311_v22 = vsel %vm459_vm0, %v15540_v26, 0.0  ;;  %v6385_v49 = vmul.f32 %v15540_v26, %v15540_v26  ;;  %v6468_v9 = vsel %vm459_vm0, %v6384_v62, 0.0 }
 0xe32   : > { %v6305_v0 = vsel %vm459_vm0, %v15535_v31, 0.0  ;;  %v6383_v54 = vmul.f32 %v15535_v31, %v15535_v31  ;;  %v6462_v58 = vsel %vm459_vm0, %v6382_v50, 0.0 }
 0xe33   : > { %6306 = vadd.xlane.f32.xlu1 %v6305_v0  ;;  %v6471_v8 = vsel %vm459_vm0, %v6385_v49, 0.0 }
 0xe34   : > { %v6465_v32 = vsel %vm459_vm0, %v6383_v54, 0.0 }
 0xe35   : > { %6309 = vadd.xlane.f32.xlu0 %v6308_v23 }
 0xe37   : > { %6312 = vadd.xlane.f32.xlu1 %v6311_v22 }
 0xe39   : > { %6463 = vadd.xlane.f32.xlu0 %v6462_v58 }
 0xe3b   : > { %6466 = vadd.xlane.f32.xlu1 %v6465_v32 }
 0xe3d   : > { %6469 = vadd.xlane.f32.xlu0 %v6468_v9 }
 0xe3f   : > { %6472 = vadd.xlane.f32.xlu1 %v6471_v8 }
 0xe44   : > { %v6232_v12 = vpop.xlane.xlu1 %6231 }
 0xe45   : > { %v6326_v41 = vmul.f32 0.015625, %v6232_v12 }
 0xe46   : > { %v6235_v37 = vpop.xlane.xlu0 %6234 }
 0xe47   : > { %v6327_v18 = vmul.f32 0.015625, %v6235_v37  ;;  %v6518_v17 = vmul.f32 %v6326_v41, %v6326_v41 }
 0xe48   : > { %v6241_v33 = vpop.xlane.xlu1 %6240 }
 0xe49   : > { %v6519_v13 = vmul.f32 %v6327_v18, %v6327_v18  ;;  %v6329_v35 = vmul.f32 0.015625, %v6241_v33  ;;  %v6583_v8 = vsub.f32 %v15319_v57, %v6327_v18 }
 0xe4a   : > { %v6238_v25 = vpop.xlane.xlu0 %6237 }
 0xe4b   : > { %v15560_v28 = vmul.f32 0.015625, %v6238_v25  ;;  %v6521_v6 = vmul.f32 %v6329_v35, %v6329_v35  ;;  %v6582_v25 = vsub.f32 %v15312_v52, %v6326_v41 }
 0xe4c   : > { %v6395_v36 = vpop.xlane.xlu1 %6394 }
 0xe4d   : > { %v6487_v29 = vmul.f32 0.015625, %v6395_v36  ;;  %v6520_v60 = vmul.f32 %v15560_v28, %v15560_v28  ;;  %v15568_v36 = vld [vmem:[#allocation6 + $0x3] ss:$0 sm:$0xff] }
 0xe4e   : > { %v6392_v19 = vpop.xlane.xlu0 %6391 }
 0xe4f   : > { %v6551_v42 = vsub.f32 %v6487_v29, %v6519_v13  ;;  %v6486_v5 = vmul.f32 0.015625, %v6392_v19 }
 0xe50   : > { %v6401_v55 = vpop.xlane.xlu1 %6400 }
 0xe51   : > { %v6615_v15 = vadd.f32 1e-05, %v6551_v42  ;;  %v6550_v27 = vsub.f32 %v6486_v5, %v6518_v17  ;;  %v6489_v11 = vmul.f32 0.015625, %v6401_v55 }
 0xe52   : > { %v6398_v51 = vpop.xlane.xlu0 %6397 }
 0xe53   : > { %9946 = vrsqrt.f32 %v6615_v15  ;;  %v6614_v63 = vadd.f32 1e-05, %v6550_v27  ;;  %v6553_v46 = vsub.f32 %v6489_v11, %v6521_v6  ;;  %v6488_v0 = vmul.f32 0.015625, %v6398_v51 }
 0xe54   : > { %v6585_v15 = vsub.f32 %v15316_v24, %v6329_v35 }
 0xe55   : > { %9948 = vrsqrt.f32 %v6614_v63  ;;  %v6617_v23 = vadd.f32 1e-05, %v6553_v46  ;;  %v6552_v50 = vsub.f32 %v6488_v0, %v6520_v60  ;;  %v6247_v22 = vpop.xlane.xlu1 %6246  ;;  %v6584_v60 = vsub.f32 %v15324_v43, %v15560_v28  ;;  %v15576_v0 = vld [vmem:[#allocation6 + $0x4] ss:$0 sm:$0xff] }
 0xe56   : > { %v6244_v54 = vpop.xlane.xlu0 %6243  ;;  %v6331_v32 = vmul.f32 0.015625, %v6247_v22 }
 0xe57   : > { %9950 = vrsqrt.f32 %v6617_v23  ;;  %v6616_v58 = vadd.f32 1e-05, %v6552_v50  ;;  %v6330_v9 = vmul.f32 0.015625, %v6244_v54 }
 0xe58   : > { %v6523_v13 = vmul.f32 %v6331_v32, %v6331_v32 }
 0xe59   : > { %9952 = vrsqrt.f32 %v6616_v58  ;;  %v6253_v62 = vpop.xlane.xlu1 %6252  ;;  %v6522_v5 = vmul.f32 %v6330_v9, %v6330_v9 }
 0xe5a   : > { %v6250_v49 = vpop.xlane.xlu0 %6249  ;;  %v15565_v37 = vmul.f32 0.015625, %v6253_v62 }
 0xe5b   : > { %v6332_v55 = vmul.f32 0.015625, %v6250_v49 }
 0xe5c   : > { %v6525_v41 = vmul.f32 %v15565_v37, %v15565_v37 }
 0xe5d   : > { %v9947_v12 = vpop.eup %9946  ;;  %v6407_v33 = vpop.xlane.xlu1 %6406  ;;  %v6524_v62 = vmul.f32 %v6332_v55, %v6332_v55 }
 0xe5e   : > { %v6404_v29 = vpop.xlane.xlu0 %6403  ;;  %v6491_v19 = vmul.f32 0.015625, %v6407_v33  ;;  %v6679_v17 = vmul.f32 %v9947_v12, %v6583_v8 }
 0xe5f   : > { %v9949_v42 = vpop.eup %9948  ;;  %v6490_v6 = vmul.f32 0.015625, %v6404_v29 }
 0xe60   : > { %v6555_v27 = vsub.f32 %v6491_v19, %v6523_v13  ;;  %v6678_v18 = vmul.f32 %v9949_v42, %v6582_v25  ;;  %v6715_v46 = vmul.f32 %v15568_v36, %v6679_v17 }
 0xe61   : > { %v9951_v11 = vpop.eup %9950  ;;  %v6554_v51 = vsub.f32 %v6490_v6, %v6522_v5  ;;  %v6413_v63 = vpop.xlane.xlu1 %6412 }
 0xe62   : > { %v6681_v23 = vmul.f32 %v9951_v11, %v6585_v15  ;;  %v6619_v50 = vadd.f32 1e-05, %v6555_v27  ;;  %v6410_v22 = vpop.xlane.xlu0 %6409  ;;  %v6493_v54 = vmul.f32 0.015625, %v6413_v63  ;;  %v6714_v35 = vmul.f32 %v15568_v36, %v6678_v18 }
 0xe63   : > { %v9953_v58 = vpop.eup %9952  ;;  %v6618_v49 = vadd.f32 1e-05, %v6554_v51  ;;  %v6492_v8 = vmul.f32 0.015625, %v6410_v22  ;;  %v6751_v29 = vadd.f32 %v15576_v0, %v6715_v46  ;;  %v6587_v18 = vsub.f32 %v15352_v40, %v6331_v32 }
 0xe64   : > { %v6717_v28 = vmul.f32 %v15568_v36, %v6681_v23  ;;  %v6680_v12 = vmul.f32 %v9953_v58, %v6584_v60  ;;  %9954 = vrsqrt.f32 %v6619_v50  ;;  %v6557_v33 = vsub.f32 %v6493_v54, %v6525_v41 }
 0xe65   : > { %9956 = vrsqrt.f32 %v6618_v49  ;;  %v6556_v25 = vsub.f32 %v6492_v8, %v6524_v62  ;;  %v6750_v13 = vadd.f32 %v15576_v0, %v6714_v35  ;;  %v6586_v60 = vsub.f32 %v15348_v1, %v6330_v9 }
 0xe66   : > { %v6716_v19 = vmul.f32 %v15568_v36, %v6680_v12  ;;  %v6621_v17 = vadd.f32 1e-05, %v6557_v33  ;;  %v6753_v6 = vadd.f32 %v15576_v0, %v6717_v28  ;;  %v6589_v46 = vsub.f32 %v15355_v34, %v15565_v37 }
 0xe67   : > { %v6620_v42 = vadd.f32 1e-05, %v6556_v25  ;;  %v6782_v5 = vpack.c.bf16 %v6751_v29, %v6750_v13  ;;  %v6588_v22 = vsub.f32 %v15360_v20, %v6332_v55 }
 0xe68   : > { %v6752_v15 = vadd.f32 %v15576_v0, %v6716_v19  ;;  %9958 = vrsqrt.f32 %v6621_v17 }
 0xe69   : > { %9960 = vrsqrt.f32 %v6620_v42  ;;  %8698 = vmatprep.mubr.msk.bf16.mxu1 %vm459_vm0, %v6782_v5 }
 0xe6a   : > { %v6783_v27 = vpack.c.bf16 %v6753_v6, %v6752_v15 }
 0xe6c   : > { %8699 = vmatmul.mubr.msk.bf16.vlgmr.msra.gmra.mrb[32].mxu1 %vm459_vm0, %v6783_v27 }
 0xe6e   : > { %v9955_v11 = vpop.eup %9954 }
 0xe6f   : > { %v9957_v41 = vpop.eup %9956  ;;  %v6683_v51 = vmul.f32 %v9955_v11, %v6587_v18 }
 0xe70   : > { %v6682_v63 = vmul.f32 %v9957_v41, %v6586_v60 }
 0xe71   : > { %v6719_v23 = vmul.f32 %v15568_v36, %v6683_v51 }
 0xe72   : > { %v9959_v50 = vpop.eup %9958  ;;  %v6718_v54 = vmul.f32 %v15568_v36, %v6682_v63 }
 0xe73   : > { %v9961_v35 = vpop.eup %9960  ;;  %v6685_v58 = vmul.f32 %v9959_v50, %v6589_v46  ;;  %v6755_v32 = vadd.f32 %v15576_v0, %v6719_v23 }
 0xe74   : > { %v6684_v62 = vmul.f32 %v9961_v35, %v6588_v22  ;;  %v6754_v9 = vadd.f32 %v15576_v0, %v6718_v54  ;;  %v17768_v22 = vld [vmem:[#allocation48_spill] sm:$0xff] }
 0xe75   : > { %v6721_v49 = vmul.f32 %v15568_v36, %v6685_v58 }
 0xe76   : > { %v6720_v8 = vmul.f32 %v15568_v36, %v6684_v62  ;;  %v6784_v28 = vpack.c.bf16 %v6755_v32, %v6754_v9 }
 0xe77   : > { %v6757_v37 = vadd.f32 %v15576_v0, %v6721_v49 }
 0xe78   : > { %v6756_v12 = vadd.f32 %v15576_v0, %v6720_v8  ;;  %8702 = vmatprep.mubr.msk.bf16.mxu1 %vm459_vm0, %v6784_v28  ;;  %v17769_v8 = vld [vmem:[#allocation34_spill] sm:$0xff] }
 0xe7a   : > { %v6785_v55 = vpack.c.bf16 %v6757_v37, %v6756_v12 }
 0xe7c   : > { %8703 = vmatmul.mubr.msk.bf16.gmra.mrb[36].mxu1 %vm459_vm0, %v6785_v55 }
 0xe7e   : > { %v6256_v33 = vpop.xlane.xlu0 %6255 }
 0xe7f   : > { %v15602_v29 = vmul.f32 0.015625, %v6256_v33  ;;  %v17770_v33 = vld [vmem:[#allocation51_spill] sm:$0xff] }
 0xe80   : > { %v6259_v25 = vpop.xlane.xlu1 %6258 }
 0xe81   : > { %v15604_v19 = vmul.f32 0.015625, %v6259_v25  ;;  %v6526_v27 = vmul.f32 %v15602_v29, %v15602_v29 }
 0xe82   : > { %v6262_v13 = vpop.xlane.xlu0 %6261 }
 0xe83   : > { %v15606_v5 = vmul.f32 0.015625, %v6262_v13  ;;  %v6527_v41 = vmul.f32 %v15604_v19, %v15604_v19 }
 0xe84   : > { %v6265_v17 = vpop.xlane.xlu1 %6264 }
 0xe85   : > { %v8688_v42 = vpop.f32.mrb[28].mxu1  ;;  %v15613_v51 = vmul.f32 0.015625, %v6265_v17  ;;  %v6528_v32 = vmul.f32 %v15606_v5, %v15606_v5 }
 0xe86   : > { %v6416_v6 = vpop.xlane.xlu0 %6415  ;;  %v6181_v15 = vpop.f32.mrb[29].mxu1  ;;  %v6190_v63 = vadd.f32 %v8688_v42, %v15305_v10 }
 0xe87   : > { %v6494_v18 = vmul.f32 0.015625, %v6416_v6  ;;  %v6182_v11 = vadd.f32 %v15305_v10, %v6181_v15  ;;  %v8689_v60 = vpop.f32.mrb[30].mxu1  ;;  %v6529_v55 = vmul.f32 %v15613_v51, %v15613_v51  ;;  %v17771_v15 = vld [vmem:[#allocation38_spill] sm:$0xff] }
 0xe88   : > { %v6184_v46 = vpop.f32.mrb[31].mxu1  ;;  %v6419_v23 = vpop.xlane.xlu1 %6418  ;;  %v6193_v62 = vadd.f32 %v8689_v60, %v15305_v10  ;;  %v15629_v25 = vadd.f32 %v17770_v33, %v6190_v63 }
 0xe89   : > { %v6558_v50 = vsub.f32 %v6494_v18, %v6526_v27  ;;  %v15617_v54 = vadd.f32 %v17768_v22, %v6182_v11  ;;  %v6185_v35 = vadd.f32 %v15305_v10, %v6184_v46  ;;  %v6495_v58 = vmul.f32 0.015625, %v6419_v23 }
 0xe8a   : > { %v6422_v9 = vpop.xlane.xlu0 %6421  ;;  %v15634_v27 = vadd.f32 %v17771_v15, %v6193_v62  ;;  %v6320_v63 = vsel %vm459_vm0, %v15629_v25, 0.0 }
 0xe8b   : > { %v6622_v49 = vadd.f32 1e-05, %v6558_v50  ;;  %v15624_v28 = vadd.f32 %v17769_v8, %v6185_v35  ;;  %v6559_v37 = vsub.f32 %v6495_v58, %v6527_v41  ;;  %v6496_v12 = vmul.f32 0.015625, %v6422_v9 }
 0xe8c   : > { %v6314_v13 = vsel %vm459_vm0, %v15617_v54, 0.0  ;;  %v6425_v17 = vpop.xlane.xlu1 %6424  ;;  %v6386_v23 = vmul.f32 %v15617_v54, %v15617_v54  ;;  %v6323_v35 = vsel %vm459_vm0, %v15634_v27, 0.0  ;;  %v6389_v33 = vmul.f32 %v15634_v27, %v15634_v27 }
 0xe8d   : > { %9962 = vrsqrt.f32 %v6622_v49  ;;  %v6623_v42 = vadd.f32 1e-05, %v6559_v37  ;;  %v6560_v10 = vsub.f32 %v6496_v12, %v6528_v32  ;;  %6315 = vadd.xlane.f32.xlu0 %v6314_v13  ;;  %v6497_v6 = vmul.f32 0.015625, %v6425_v17 }
 0xe8e   : > { %v6268_v18 = vpop.xlane.xlu0 %6267  ;;  %v6317_v11 = vsel %vm459_vm0, %v15624_v28, 0.0  ;;  %v6387_v58 = vmul.f32 %v15624_v28, %v15624_v28  ;;  %v6474_v62 = vsel %vm459_vm0, %v6386_v23, 0.0  ;;  %v6388_v49 = vmul.f32 %v15629_v25, %v15629_v25 }
 0xe8f   : > { %9964 = vrsqrt.f32 %v6623_v42  ;;  %v6624_v60 = vadd.f32 1e-05, %v6560_v10  ;;  %v6561_v41 = vsub.f32 %v6497_v6, %v6529_v55  ;;  %6318 = vadd.xlane.f32.xlu1 %v6317_v11  ;;  %v15646_v32 = vmul.f32 0.015625, %v6268_v18 }
 0xe90   : > { %v6271_v46 = vpop.xlane.xlu1 %6270  ;;  %v6590_v37 = vsub.f32 %v15383_v47, %v15602_v29  ;;  %v6477_v55 = vsel %vm459_vm0, %v6387_v58, 0.0  ;;  %v6591_v6 = vsub.f32 %v15391_v16, %v15604_v19  ;;  %v6480_v29 = vsel %vm459_vm0, %v6388_v49, 0.0 }
 0xe91   : > { %9966 = vrsqrt.f32 %v6624_v60  ;;  %v6625_v50 = vadd.f32 1e-05, %v6561_v41  ;;  %6321 = vadd.xlane.f32.xlu0 %v6320_v63  ;;  %v15651_v8 = vmul.f32 0.015625, %v6271_v46  ;;  %v6530_v17 = vmul.f32 %v15646_v32, %v15646_v32 }
 0xe92   : > { %v6274_v22 = vpop.xlane.xlu0 %6273  ;;  %v6592_v23 = vsub.f32 %v15388_v7, %v15606_v5 }
 0xe93   : > { %9968 = vrsqrt.f32 %v6625_v50  ;;  %6324 = vadd.xlane.f32.xlu1 %v6323_v35  ;;  %v15660_v42 = vmul.f32 0.015625, %v6274_v22  ;;  %v6531_v41 = vmul.f32 %v15651_v8, %v15651_v8  ;;  %v6483_v22 = vsel %vm459_vm0, %v6389_v33, 0.0 }
 0xe94   : > { %v6277_v9 = vpop.xlane.xlu1 %6276 }
 0xe95   : > { %6475 = vadd.xlane.f32.xlu0 %v6474_v62  ;;  %v15664_v15 = vmul.f32 0.015625, %v6277_v9  ;;  %v6532_v62 = vmul.f32 %v15660_v42, %v15660_v42 }
 0xe96   : > { %v6428_v12 = vpop.xlane.xlu0 %6427 }
 0xe97   : > { %v9963_v13 = vpop.eup %9962  ;;  %v6498_v10 = vmul.f32 0.015625, %v6428_v12  ;;  %6478 = vadd.xlane.f32.xlu1 %v6477_v55  ;;  %v6593_v12 = vsub.f32 %v15396_v4, %v15613_v51  ;;  %v6533_v5 = vmul.f32 %v15664_v15, %v15664_v15 }
 0xe98   : > { %v6431_v18 = vpop.xlane.xlu1 %6430  ;;  %v6686_v11 = vmul.f32 %v9963_v13, %v6590_v37 }
 0xe99   : > { %v9965_v60 = vpop.eup %9964  ;;  %v6562_v63 = vsub.f32 %v6498_v10, %v6530_v17  ;;  %6481 = vadd.xlane.f32.xlu0 %v6480_v29  ;;  %v6499_v46 = vmul.f32 0.015625, %v6431_v18 }
 0xe9a   : > { %v6434_v50 = vpop.xlane.xlu0 %6433  ;;  %v6687_v19 = vmul.f32 %v9965_v60, %v6591_v6  ;;  %v6722_v35 = vmul.f32 %v15568_v36, %v6686_v11 }
 0xe9b   : > { %v9967_v58 = vpop.eup %9966  ;;  %v6626_v9 = vadd.f32 1e-05, %v6562_v63  ;;  %v6563_v49 = vsub.f32 %v6499_v46, %v6531_v41  ;;  %v6500_v37 = vmul.f32 0.015625, %v6434_v50  ;;  %6484 = vadd.xlane.f32.xlu1 %v6483_v22 }
 0xe9c   : > { %v6688_v55 = vmul.f32 %v9967_v58, %v6592_v23  ;;  %v6437_v13 = vpop.xlane.xlu1 %6436  ;;  %v6723_v33 = vmul.f32 %v15568_v36, %v6687_v19  ;;  %v6758_v41 = vadd.f32 %v15576_v0, %v6722_v35 }
 0xe9d   : > { %v9969_v17 = vpop.eup %9968  ;;  %9970 = vrsqrt.f32 %v6626_v9  ;;  %v6627_v10 = vadd.f32 1e-05, %v6563_v49  ;;  %v6564_v6 = vsub.f32 %v6500_v37, %v6532_v62  ;;  %v6501_v29 = vmul.f32 0.015625, %v6437_v13 }
 0xe9e   : > { %v6724_v18 = vmul.f32 %v15568_v36, %v6688_v55  ;;  %v6689_v11 = vmul.f32 %v9969_v17, %v6593_v12  ;;  %v6280_v60 = vpop.xlane.xlu0 %6279  ;;  %v6759_v51 = vadd.f32 %v15576_v0, %v6723_v33  ;;  %v6594_v55 = vsub.f32 %v15418_v21, %v15646_v32 }
 0xe9f   : > { %9972 = vrsqrt.f32 %v6627_v10  ;;  %v6628_v63 = vadd.f32 1e-05, %v6564_v6  ;;  %v6565_v46 = vsub.f32 %v6501_v29, %v6533_v5  ;;  %v15687_v35 = vmul.f32 0.015625, %v6280_v60 }
 0xea0   : > { %v6725_v23 = vmul.f32 %v15568_v36, %v6689_v11  ;;  %v6283_v50 = vpop.xlane.xlu1 %6282  ;;  %v6786_v22 = vpack.c.bf16 %v6759_v51, %v6758_v41  ;;  %v6760_v58 = vadd.f32 %v15576_v0, %v6724_v18  ;;  %v6595_v6 = vsub.f32 %v15427_v48, %v15651_v8 }
 0xea1   : > { %9974 = vrsqrt.f32 %v6628_v63  ;;  %v6629_v19 = vadd.f32 1e-05, %v6565_v46  ;;  %v15689_v12 = vmul.f32 0.015625, %v6283_v50  ;;  %v6534_v33 = vmul.f32 %v15687_v35, %v15687_v35 }
 0xea2   : > { %v6761_v62 = vadd.f32 %v15576_v0, %v6725_v23  ;;  %v6286_v9 = vpop.xlane.xlu0 %6285  ;;  %8706 = vmatprep.mubr.msk.bf16.mxu1 %vm459_vm0, %v6786_v22  ;;  %v6596_v63 = vsub.f32 %v15424_v53, %v15660_v42 }
 0xea3   : > { %9976 = vrsqrt.f32 %v6629_v19  ;;  %v15696_v17 = vmul.f32 0.015625, %v6286_v9  ;;  %v6535_v32 = vmul.f32 %v15689_v12, %v15689_v12  ;;  %v6597_v9 = vsub.f32 %v15432_v59, %v15664_v15 }
 0xea4   : > { %v6787_v49 = vpack.c.bf16 %v6761_v62, %v6760_v58  ;;  %v6289_v37 = vpop.xlane.xlu1 %6288 }
 0xea5   : > { %v15700_v29 = vmul.f32 0.015625, %v6289_v37  ;;  %v6536_v8 = vmul.f32 %v15696_v17, %v15696_v17 }
 0xea6   : > { %v6440_v5 = vpop.xlane.xlu0 %6439  ;;  %8707 = vmatmul.mubr.msk.bf16.gmra.mrb[40].mxu1 %vm459_vm0, %v6787_v49 }
 0xea7   : > { %v9971_v13 = vpop.eup %9970  ;;  %v6502_v10 = vmul.f32 0.015625, %v6440_v5  ;;  %v6537_v37 = vmul.f32 %v15700_v29, %v15700_v29 }
 0xea8   : > { %v6443_v18 = vpop.xlane.xlu1 %6442  ;;  %v6690_v11 = vmul.f32 %v9971_v13, %v6594_v55 }
 0xea9   : > { %v9973_v60 = vpop.eup %9972  ;;  %v6566_v41 = vsub.f32 %v6502_v10, %v6534_v33  ;;  %v6503_v51 = vmul.f32 0.015625, %v6443_v18 }
 0xeaa   : > { %v6446_v46 = vpop.xlane.xlu0 %6445  ;;  %v6691_v23 = vmul.f32 %v9973_v60, %v6595_v6  ;;  %v6726_v50 = vmul.f32 %v15568_v36, %v6690_v11 }
 0xeab   : > { %v9975_v22 = vpop.eup %9974  ;;  %v6630_v19 = vadd.f32 1e-05, %v6566_v41  ;;  %v6567_v58 = vsub.f32 %v6503_v51, %v6535_v32  ;;  %v6504_v62 = vmul.f32 0.015625, %v6446_v46 }
 0xeac   : > { %v6692_v49 = vmul.f32 %v9975_v22, %v6596_v63  ;;  %v6449_v55 = vpop.xlane.xlu1 %6448  ;;  %v6727_v42 = vmul.f32 %v15568_v36, %v6691_v23  ;;  %v6762_v60 = vadd.f32 %v15576_v0, %v6726_v50 }
 0xead   : > { %v9977_v5 = vpop.eup %9976  ;;  %9978 = vrsqrt.f32 %v6630_v19  ;;  %v6631_v13 = vadd.f32 1e-05, %v6567_v58  ;;  %v6568_v33 = vsub.f32 %v6504_v62, %v6536_v8  ;;  %v6505_v10 = vmul.f32 0.015625, %v6449_v55 }
 0xeae   : > { %v6728_v6 = vmul.f32 %v15568_v36, %v6692_v49  ;;  %v6693_v18 = vmul.f32 %v9977_v5, %v6597_v9  ;;  %v6292_v11 = vpop.xlane.xlu0 %6291  ;;  %v6763_v15 = vadd.f32 %v15576_v0, %v6727_v42  ;;  %v6598_v49 = vsub.f32 %v15454_v39, %v15687_v35 }
 0xeaf   : > { %9980 = vrsqrt.f32 %v6631_v13  ;;  %v6632_v32 = vadd.f32 1e-05, %v6568_v33  ;;  %v6569_v41 = vsub.f32 %v6505_v10, %v6537_v37  ;;  %v15721_v50 = vmul.f32 0.015625, %v6292_v11 }
 0xeb0   : > { %v6729_v51 = vmul.f32 %v15568_v36, %v6693_v18  ;;  %v6295_v63 = vpop.xlane.xlu1 %6294  ;;  %v6788_v46 = vpack.c.bf16 %v6763_v15, %v6762_v60  ;;  %v6764_v22 = vadd.f32 %v15576_v0, %v6728_v6  ;;  %v6599_v33 = vsub.f32 %v15463_v61, %v15689_v12 }
 0xeb1   : > { %9982 = vrsqrt.f32 %v6632_v32  ;;  %v6633_v23 = vadd.f32 1e-05, %v6569_v41  ;;  %v15723_v9 = vmul.f32 0.015625, %v6295_v63  ;;  %v6538_v42 = vmul.f32 %v15721_v50, %v15721_v50 }
 0xeb2   : > { %v6765_v8 = vadd.f32 %v15576_v0, %v6729_v51  ;;  %v6298_v19 = vpop.xlane.xlu0 %6297  ;;  %8710 = vmatprep.mubr.msk.bf16.mxu1 %vm459_vm0, %v6788_v46  ;;  %v6600_v32 = vsub.f32 %v15460_v30, %v15696_v17 }
 0xeb3   : > { %9984 = vrsqrt.f32 %v6633_v23  ;;  %v15730_v5 = vmul.f32 0.015625, %v6298_v19  ;;  %v6539_v35 = vmul.f32 %v15723_v9, %v15723_v9  ;;  %v6601_v19 = vsub.f32 %v15468_v45, %v15700_v29 }
 0xeb4   : > { %v6789_v58 = vpack.c.bf16 %v6765_v8, %v6764_v22  ;;  %v6301_v62 = vpop.xlane.xlu1 %6300 }
 0xeb5   : > { %v15734_v10 = vmul.f32 0.015625, %v6301_v62  ;;  %v6540_v12 = vmul.f32 %v15730_v5, %v15730_v5 }
 0xeb6   : > { %v6452_v37 = vpop.xlane.xlu0 %6451  ;;  %8711 = vmatmul.mubr.msk.bf16.gmra.mrb[44].mxu1 %vm459_vm0, %v6789_v58 }
 0xeb7   : > { %v9979_v55 = vpop.eup %9978  ;;  %v6506_v13 = vmul.f32 0.015625, %v6452_v37  ;;  %v6541_v62 = vmul.f32 %v15734_v10, %v15734_v10 }
 0xeb8   : > { %v6455_v6 = vpop.xlane.xlu1 %6454  ;;  %v6694_v18 = vmul.f32 %v9979_v55, %v6598_v49 }
 0xeb9   : > { %v9981_v11 = vpop.eup %9980  ;;  %v6570_v60 = vsub.f32 %v6506_v13, %v6538_v42  ;;  %v6507_v15 = vmul.f32 0.015625, %v6455_v6 }
 0xeba   : > { %v6458_v41 = vpop.xlane.xlu0 %6457  ;;  %v6695_v51 = vmul.f32 %v9981_v11, %v6599_v33  ;;  %v6730_v63 = vmul.f32 %v15568_v36, %v6694_v18 }
 0xebb   : > { %v9983_v46 = vpop.eup %9982  ;;  %v6634_v23 = vadd.f32 1e-05, %v6570_v60  ;;  %v6571_v22 = vsub.f32 %v6507_v15, %v6539_v35  ;;  %v6508_v8 = vmul.f32 0.015625, %v6458_v41 }
 0xebc   : > { %v6696_v58 = vmul.f32 %v9983_v46, %v6600_v32  ;;  %v6461_v49 = vpop.xlane.xlu1 %6460  ;;  %v6731_v17 = vmul.f32 %v15568_v36, %v6695_v51  ;;  %v6766_v11 = vadd.f32 %v15576_v0, %v6730_v63 }
 0xebd   : > { %v9985_v37 = vpop.eup %9984  ;;  %9986 = vrsqrt.f32 %v6634_v23  ;;  %v6635_v55 = vadd.f32 1e-05, %v6571_v22  ;;  %v6572_v42 = vsub.f32 %v6508_v8, %v6540_v12  ;;  %v6509_v13 = vmul.f32 0.015625, %v6461_v49 }
 0xebe   : > { %v6732_v33 = vmul.f32 %v15568_v36, %v6696_v58  ;;  %v6697_v6 = vmul.f32 %v9985_v37, %v6601_v19  ;;  %v6304_v18 = vpop.xlane.xlu0 %6303  ;;  %v6767_v29 = vadd.f32 %v15576_v0, %v6731_v17  ;;  %v6602_v58 = vsub.f32 %v15490_v38, %v15721_v50 }
 0xebf   : > { %9988 = vrsqrt.f32 %v6635_v55  ;;  %v6636_v35 = vadd.f32 1e-05, %v6572_v42  ;;  %v6573_v60 = vsub.f32 %v6509_v13, %v6541_v62  ;;  %v15755_v63 = vmul.f32 0.015625, %v6304_v18 }
 0xec0   : > { %v6733_v15 = vmul.f32 %v15568_v36, %v6697_v6  ;;  %v6307_v32 = vpop.xlane.xlu1 %6306  ;;  %v6790_v41 = vpack.c.bf16 %v6767_v29, %v6766_v11  ;;  %v6768_v46 = vadd.f32 %v15576_v0, %v6732_v33  ;;  %v6603_v42 = vsub.f32 %v15499_v56, %v15723_v9 }
 0xec1   : > { %9990 = vrsqrt.f32 %v6636_v35  ;;  %v6637_v51 = vadd.f32 1e-05, %v6573_v60  ;;  %v15757_v19 = vmul.f32 0.015625, %v6307_v32  ;;  %v6542_v17 = vmul.f32 %v15755_v63, %v15755_v63 }
 0xec2   : > { %v6769_v12 = vadd.f32 %v15576_v0, %v6733_v15  ;;  %v6310_v23 = vpop.xlane.xlu0 %6309  ;;  %8714 = vmatprep.mubr.msk.bf16.mxu1 %vm459_vm0, %v6790_v41  ;;  %v6604_v35 = vsub.f32 %v15496_v3, %v15730_v5  ;;  %v6605_v60 = vsub.f32 %v15504_v44, %v15734_v10  ;;  %v9110_v41 = vld [vmem:[#allocation12] sm:$0xff]  }
 0xec3   : > { %9992 = vrsqrt.f32 %v6637_v51  ;;  %v15764_v37 = vmul.f32 0.015625, %v6310_v23  ;;  %v6543_v50 = vmul.f32 %v15757_v19, %v15757_v19  ;;  %8730 = vmatprep.subr.bf16.mxu0 %v9110_v41  ;;  %8770 = vmatprep.subr.bf16.mxu1 %v9110_v41 }
 0xec4   : > { %v6791_v22 = vpack.c.bf16 %v6769_v12, %v6768_v46  ;;  %v6313_v8 = vpop.xlane.xlu1 %6312  ;;  %8731 = vmatpush3.bf16.msra.mxu0 %v9110_v41  ;;  %8774 = vmatpush3.bf16.msra.mxu1 %v9110_v41 }
 0xec5   : > { %v15768_v13 = vmul.f32 0.015625, %v6313_v8  ;;  %v6544_v46 = vmul.f32 %v15764_v37, %v15764_v37 }
 0xec6   : > { %v6464_v62 = vpop.xlane.xlu0 %6463  ;;  %8715 = vmatmul.mubr.msk.bf16.gmra.mrb[48].mxu1 %vm459_vm0, %v6791_v22 }
 0xec7   : > { %v9987_v49 = vpop.eup %9986  ;;  %v6510_v55 = vmul.f32 0.015625, %v6464_v62 }
 0xec8   : > { %v6467_v33 = vpop.xlane.xlu1 %6466  ;;  %v6698_v6 = vmul.f32 %v9987_v49, %v6602_v58  ;;  %v6545_v58 = vmul.f32 %v15768_v13, %v15768_v13 }
 0xec9   : > { %v9989_v18 = vpop.eup %9988  ;;  %v6574_v11 = vsub.f32 %v6510_v55, %v6542_v17  ;;  %v6511_v29 = vmul.f32 0.015625, %v6467_v33 }
 0xeca   : > { %v6470_v15 = vpop.xlane.xlu0 %6469  ;;  %v6699_v32 = vmul.f32 %v9989_v18, %v6603_v42  ;;  %v6734_v9 = vmul.f32 %v15568_v36, %v6698_v6 }
 0xecb   : > { %v9991_v51 = vpop.eup %9990  ;;  %v6638_v12 = vadd.f32 1e-05, %v6574_v11  ;;  %v6575_v23 = vsub.f32 %v6511_v29, %v6543_v50  ;;  %v6512_v22 = vmul.f32 0.015625, %v6470_v15  ;;  %v9111_v50 = vld [vmem:[#allocation12 + $0x8] sm:$0xff]  }
 0xecc   : > { %v6700_v8 = vmul.f32 %v9991_v51, %v6604_v35  ;;  %v6473_v5 = vpop.xlane.xlu1 %6472  ;;  %v6735_v62 = vmul.f32 %v15568_v36, %v6699_v32  ;;  %v6770_v6 = vadd.f32 %v15576_v0, %v6734_v9  ;;  %8732 = vmatprep.subr.bf16.mxu0 %v9111_v50  ;;  %8771 = vmatprep.subr.bf16.mxu1 %v9111_v50  ;;  %v9112_v9 = vld [vmem:[#allocation12 + $0x10] sm:$0xff]  }
 0xecd   : > { %v9993_v10 = vpop.eup %9992  ;;  %9994 = vrsqrt.f32 %v6638_v12  ;;  %v6639_v49 = vadd.f32 1e-05, %v6575_v23  ;;  %v6576_v17 = vsub.f32 %v6512_v22, %v6544_v46  ;;  %v6513_v55 = vmul.f32 0.015625, %v6473_v5  ;;  %8733 = vmatpush3.bf16.msra.mxu0 %v9111_v50  ;;  %8775 = vmatpush3.bf16.msra.mxu1 %v9111_v50  ;;  %v9113_v12 = vld [vmem:[#allocation12 + $0x18] sm:$0xff]  }
 0xece   : > { %v6736_v42 = vmul.f32 %v15568_v36, %v6700_v8  ;;  %v6701_v33 = vmul.f32 %v9993_v10, %v6605_v60  ;;  %v6771_v18 = vadd.f32 %v15576_v0, %v6735_v62  ;;  %8734 = vmatprep.subr.bf16.mxu0 %v9112_v9  ;;  %8772 = vmatprep.subr.bf16.mxu1 %v9112_v9 }
 0xecf   : > { %9996 = vrsqrt.f32 %v6639_v49  ;;  %v6640_v11 = vadd.f32 1e-05, %v6576_v17  ;;  %v6577_v29 = vsub.f32 %v6513_v55, %v6545_v58  ;;  %v6606_v46 = vsub.f32 %v15526_v2, %v15755_v63 }
 0xed0   : > { %v6737_v35 = vmul.f32 %v15568_v36, %v6701_v33  ;;  %v6792_v15 = vpack.c.bf16 %v6771_v18, %v6770_v6  ;;  %v6772_v41 = vadd.f32 %v15576_v0, %v6736_v42  ;;  %v6607_v22 = vsub.f32 %v15535_v31, %v15757_v19 }
 0xed1   : > { %9998 = vrsqrt.f32 %v6640_v11  ;;  %v6641_v32 = vadd.f32 1e-05, %v6577_v29  ;;  %8735 = vmatpush3.bf16.msra.mxu0 %v9112_v9  ;;  %8776 = vmatpush3.bf16.msra.mxu1 %v9112_v9  ;;  %v6608_v5 = vsub.f32 %v15532_v14, %v15764_v37  ;;  %v6609_v49 = vsub.f32 %v15540_v26, %v15768_v13 }
 0xed2   : > { %v6773_v60 = vadd.f32 %v15576_v0, %v6737_v35  ;;  %8718 = vmatprep.mubr.msk.bf16.mxu1 %vm459_vm0, %v6792_v15  ;;  %8736 = vmatprep.subr.bf16.mxu0 %v9113_v12 }
 0xed3   : > { %10000 = vrsqrt.f32 %v6641_v32  ;;  %8773 = vmatprep.subr.bf16.mxu1 %v9113_v12 }
 0xed4   : > { %v6793_v51 = vpack.c.bf16 %v6773_v60, %v6772_v41 }
 0xed5   : > { %8737 = vmatpush3.bf16.msra.mxu0 %v9113_v12  ;;  %8777 = vmatpush3.bf16.msra.mxu1 %v9113_v12 }
 0xed6   : > { %8719 = vmatmul.mubr.msk.bf16.gmra.mrb[52].mxu1 %vm459_vm0, %v6793_v51 }
 0xed7   : > { %v9995_v23 = vpop.eup %9994 }
 0xed8   : > { %v6702_v8 = vmul.f32 %v9995_v23, %v6606_v46 }
 0xed9   : > { %v9997_v58 = vpop.eup %9996 }
 0xeda   : > { %v6703_v62 = vmul.f32 %v9997_v58, %v6607_v22  ;;  %v6738_v10 = vmul.f32 %v15568_v36, %v6702_v8 }
 0xedb   : > { %v9999_v63 = vpop.eup %9998 }
 0xedc   : > { %v6704_v17 = vmul.f32 %v9999_v63, %v6608_v5  ;;  %v6739_v55 = vmul.f32 %v15568_v36, %v6703_v62  ;;  %v6774_v6 = vadd.f32 %v15576_v0, %v6738_v10 }
 0xedd   : > { %v10001_v19 = vpop.eup %10000 }
 0xede   : > { %v6740_v42 = vmul.f32 %v15568_v36, %v6704_v17  ;;  %v6705_v33 = vmul.f32 %v10001_v19, %v6609_v49  ;;  %v6775_v18 = vadd.f32 %v15576_v0, %v6739_v55 }
 0xee0   : > { %v6741_v37 = vmul.f32 %v15568_v36, %v6705_v33  ;;  %v6794_v50 = vpack.c.bf16 %v6775_v18, %v6774_v6  ;;  %v6776_v11 = vadd.f32 %v15576_v0, %v6740_v42 }
 0xee2   : > { %v6777_v29 = vadd.f32 %v15576_v0, %v6741_v37  ;;  %8722 = vmatprep.mubr.msk.bf16.mxu1 %vm459_vm0, %v6794_v50 }
 0xee4   : > { %v6795_v13 = vpack.c.bf16 %v6777_v29, %v6776_v11 }
 0xee6   : > { %8723 = vmatmul.mubr.msk.bf16.gmra.mrb[56].mxu1 %vm459_vm0, %v6795_v13 }
 0xf1a   : > { %v6316_v35 = vpop.xlane.xlu0 %6315 }
 0xf1b   : > { %v6354_v41 = vmul.f32 0.015625, %v6316_v35 }
 0xf1c   : > { %v6319_v15 = vpop.xlane.xlu1 %6318 }
 0xf1d   : > { %v6355_v9 = vmul.f32 0.015625, %v6319_v15  ;;  %v6546_v46 = vmul.f32 %v6354_v41, %v6354_v41  ;;  %v6610_v29 = vsub.f32 %v15617_v54, %v6354_v41 }
 0xf1e   : > { %v6322_v32 = vpop.xlane.xlu0 %6321 }
 0xf1f   : > { %v6356_v12 = vmul.f32 0.015625, %v6322_v32  ;;  %v6547_v58 = vmul.f32 %v6355_v9, %v6355_v9  ;;  %v6611_v35 = vsub.f32 %v15624_v28, %v6355_v9 }
 0xf20   : > { %v6325_v60 = vpop.xlane.xlu1 %6324 }
 0xf21   : > { %v6357_v22 = vmul.f32 0.015625, %v6325_v60  ;;  %v6548_v63 = vmul.f32 %v6356_v12, %v6356_v12  ;;  %v6612_v60 = vsub.f32 %v15629_v25, %v6356_v12 }
 0xf22   : > { %v6476_v51 = vpop.xlane.xlu0 %6475 }
 0xf23   : > { %v6514_v23 = vmul.f32 0.015625, %v6476_v51  ;;  %v6549_v19 = vmul.f32 %v6357_v22, %v6357_v22 }
 0xf24   : > { %v6479_v8 = vpop.xlane.xlu1 %6478 }
 0xf25   : > { %v6578_v5 = vsub.f32 %v6514_v23, %v6546_v46  ;;  %v6515_v62 = vmul.f32 0.015625, %v6479_v8  ;;  %v6613_v8 = vsub.f32 %v15634_v27, %v6357_v22 }
 0xf26   : > { %v6482_v10 = vpop.xlane.xlu0 %6481 }
 0xf27   : > { %v6642_v49 = vadd.f32 1e-05, %v6578_v5  ;;  %v6579_v17 = vsub.f32 %v6515_v62, %v6547_v58  ;;  %v6516_v55 = vmul.f32 0.015625, %v6482_v10 }
 0xf28   : > { %v6485_v42 = vpop.xlane.xlu1 %6484 }
 0xf29   : > { %10002 = vrsqrt.f32 %v6642_v49  ;;  %v6643_v33 = vadd.f32 1e-05, %v6579_v17  ;;  %v6580_v6 = vsub.f32 %v6516_v55, %v6548_v63  ;;  %v6517_v18 = vmul.f32 0.015625, %v6485_v42  ;;  %v15818_v17 = vld [vmem:[#allocation6 + $0x5] ss:$0 sm:$0xff] }
 0xf2b   : > { %10004 = vrsqrt.f32 %v6643_v33  ;;  %v6644_v37 = vadd.f32 1e-05, %v6580_v6  ;;  %v6581_v50 = vsub.f32 %v6517_v18, %v6549_v19 }
 0xf2d   : > { %10006 = vrsqrt.f32 %v6644_v37  ;;  %v6645_v11 = vadd.f32 1e-05, %v6581_v50 }
 0xf2f   : > { %10008 = vrsqrt.f32 %v6645_v11 }
 0xf33   : > { %v10003_v13 = vpop.eup %10002 }
 0xf34   : > { %v6706_v15 = vmul.f32 %v10003_v13, %v6610_v29 }
 0xf35   : > { %v10005_v32 = vpop.eup %10004 }
 0xf36   : > { %v6707_v51 = vmul.f32 %v10005_v32, %v6611_v35  ;;  %v6742_v46 = vmul.f32 %v15568_v36, %v6706_v15 }
 0xf37   : > { %v10007_v23 = vpop.eup %10006 }
 0xf38   : > { %v6708_v58 = vmul.f32 %v10007_v23, %v6612_v60  ;;  %v6743_v5 = vmul.f32 %v15568_v36, %v6707_v51  ;;  %v6778_v63 = vadd.f32 %v15576_v0, %v6742_v46 }
 0xf39   : > { %v10009_v62 = vpop.eup %10008 }
 0xf3a   : > { %v6744_v10 = vmul.f32 %v15568_v36, %v6708_v58  ;;  %v6709_v41 = vmul.f32 %v10009_v62, %v6613_v8  ;;  %v6779_v9 = vadd.f32 %v15576_v0, %v6743_v5 }
 0xf3c   : > { %v6745_v49 = vmul.f32 %v15568_v36, %v6709_v41  ;;  %v6796_v12 = vpack.c.bf16 %v6779_v9, %v6778_v63  ;;  %v6780_v55 = vadd.f32 %v15576_v0, %v6744_v10 }
 0xf3e   : > { %v6781_v22 = vadd.f32 %v15576_v0, %v6745_v49  ;;  %8726 = vmatprep.mubr.msk.bf16.mxu1 %vm459_vm0, %v6796_v12 }
 0xf3f   : > { %v8700_v19 = vpop.f32.mrb[32].mxu1 }
 0xf40   : > { %v6797_v42 = vpack.c.bf16 %v6781_v22, %v6780_v55  ;;  %v6926_v33 = vadd.f32 %v8700_v19, %v15818_v17  ;;  %v6917_v6 = vpop.f32.mrb[33].mxu1 }
 0xf41   : > { %v6918_v18 = vadd.f32 %v15818_v17, %v6917_v6  ;;  %v8701_v37 = vpop.f32.mrb[34].mxu1 }
 0xf42   : > { %v7078_v50 = vmul.f32 0.70710677, %v6926_v33  ;;  %8727 = vmatmul.mubr.msk.bf16.gmra.mrb[60].mxu1 %vm459_vm0, %v6797_v42  ;;  %v6929_v36 = vadd.f32 %v8701_v37, %v15818_v17  ;;  %v6920_v11 = vpop.f32.mrb[35].mxu1  ;;  %v7046_v62 = vmul.f32 0.5, %v6926_v33 }
 0xf43   : > { %v7076_v29 = vmul.f32 0.70710677, %v6918_v18  ;;  %v6921_v13 = vadd.f32 %v15818_v17, %v6920_v11  ;;  %v7044_v49 = vmul.f32 0.5, %v6918_v18 }
 0xf44   : > { %10010 = verf.f32 %v7078_v50  ;;  %v7079_v0 = vmul.f32 0.70710677, %v6929_v36  ;;  %v7047_v10 = vmul.f32 0.5, %v6929_v36 }
 0xf45   : > { %10012 = verf.f32 %v7076_v29  ;;  %v7077_v35 = vmul.f32 0.70710677, %v6921_v13  ;;  %v7045_v12 = vmul.f32 0.5, %v6921_v13 }
 0xf46   : > { %10014 = verf.f32 %v7079_v0 }
 0xf47   : > { %10016 = verf.f32 %v7077_v35 }
 0xf4e   : > { %v10011_v15 = vpop.eup %10010 }
 0xf4f   : > { %v10013_v32 = vpop.eup %10012  ;;  %v7142_v60 = vadd.f32 1.0, %v10011_v15  ;;  %v8704_v51 = vpop.f32.mrb[36].mxu1 }
 0xf50   : > { %v10015_v46 = vpop.eup %10014  ;;  %v7140_v23 = vadd.f32 1.0, %v10013_v32  ;;  %v6942_v8 = vadd.f32 %v8704_v51, %v15818_v17  ;;  %v6933_v58 = vpop.f32.mrb[37].mxu1 }
 0xf51   : > { %v10017_v5 = vpop.eup %10016  ;;  %v7143_v41 = vadd.f32 1.0, %v10015_v46  ;;  %v6934_v63 = vadd.f32 %v15818_v17, %v6933_v58  ;;  %v8705_v9 = vpop.f32.mrb[38].mxu1  ;;  %v7174_v42 = vmul.f32 %v7142_v60, %v7046_v62 }
 0xf52   : > { %v7141_v55 = vadd.f32 1.0, %v10017_v5  ;;  %v7082_v22 = vmul.f32 0.70710677, %v6942_v8  ;;  %v6936_v19 = vpop.f32.mrb[39].mxu1  ;;  %v6945_v50 = vadd.f32 %v8705_v9, %v15818_v17  ;;  %v7172_v11 = vmul.f32 %v7140_v23, %v7044_v49 }
 0xf53   : > { %v7175_v6 = vmul.f32 %v7143_v41, %v7047_v10  ;;  %v7080_v37 = vmul.f32 0.70710677, %v6934_v63  ;;  %v6937_v33 = vadd.f32 %v15818_v17, %v6936_v19  ;;  %v7050_v23 = vmul.f32 0.5, %v6942_v8 }
 0xf54   : > { %v7173_v29 = vmul.f32 %v7141_v55, %v7045_v12  ;;  %10018 = verf.f32 %v7082_v22  ;;  %v7083_v0 = vmul.f32 0.70710677, %v6945_v50  ;;  %v7051_v58 = vmul.f32 0.5, %v6945_v50 }
 0xf55   : > { %v7205_v36 = vpack.c.bf16 %v7175_v6, %v7174_v42  ;;  %10020 = verf.f32 %v7080_v37  ;;  %v7081_v15 = vmul.f32 0.70710677, %v6937_v33  ;;  %v7048_v62 = vmul.f32 0.5, %v6934_v63 }
 0xf56   : > { %v7204_v35 = vpack.c.bf16 %v7173_v29, %v7172_v11  ;;  %10022 = verf.f32 %v7083_v0  ;;  %v7049_v10 = vmul.f32 0.5, %v6937_v33 }
 0xf57   : > { %10024 = verf.f32 %v7081_v15 }
 0xf58   : > { %8738 = vmatprep.mubr.msk.bf16.mxu0 %vm459_vm0, %v7204_v35 }
 0xf59   : > { %8739 = vmatmul.mubr.msk.bf16.vlgmr.msra.gmra.mrb[64].mxu0 %vm459_vm0, %v7205_v36 }
 0xf5e   : > { %v10019_v18 = vpop.eup %10018 }
 0xf5f   : > { %v10021_v13 = vpop.eup %10020  ;;  %v7146_v32 = vadd.f32 1.0, %v10019_v18 }
 0xf60   : > { %v10023_v60 = vpop.eup %10022  ;;  %v7144_v51 = vadd.f32 1.0, %v10021_v13 }
 0xf61   : > { %v10025_v46 = vpop.eup %10024  ;;  %v7147_v5 = vadd.f32 1.0, %v10023_v60  ;;  %v7178_v9 = vmul.f32 %v7146_v32, %v7050_v23 }
 0xf62   : > { %v7145_v41 = vadd.f32 1.0, %v10025_v46  ;;  %v7176_v12 = vmul.f32 %v7144_v51, %v7048_v62 }
 0xf63   : > { %v7179_v49 = vmul.f32 %v7147_v5, %v7051_v58 }
 0xf64   : > { %v7177_v55 = vmul.f32 %v7145_v41, %v7049_v10 }
 0xf65   : > { %v7207_v22 = vpack.c.bf16 %v7179_v49, %v7178_v9 }
 0xf66   : > { %v7206_v19 = vpack.c.bf16 %v7177_v55, %v7176_v12 }
 0xf68   : > { %8742 = vmatprep.mubr.msk.bf16.mxu0 %vm459_vm0, %v7206_v19 }
 0xf69   : > { %8743 = vmatmul.mubr.msk.bf16.gmra.mrb[68].mxu0 %vm459_vm0, %v7207_v22 }
 0xf79   : > { %v8708_v42 = vpop.f32.mrb[40].mxu1 }
 0xf7a   : > { %v6958_v6 = vadd.f32 %v8708_v42, %v15818_v17  ;;  %v6949_v37 = vpop.f32.mrb[41].mxu1 }
 0xf7b   : > { %v6950_v8 = vadd.f32 %v15818_v17, %v6949_v37  ;;  %v8709_v50 = vpop.f32.mrb[42].mxu1 }
 0xf7c   : > { %v7086_v63 = vmul.f32 0.70710677, %v6958_v6  ;;  %v6961_v11 = vadd.f32 %v8709_v50, %v15818_v17  ;;  %v6952_v29 = vpop.f32.mrb[43].mxu1  ;;  %v7054_v5 = vmul.f32 0.5, %v6958_v6 }
 0xf7d   : > { %v7084_v33 = vmul.f32 0.70710677, %v6950_v8  ;;  %v6953_v36 = vadd.f32 %v15818_v17, %v6952_v29  ;;  %v7052_v49 = vmul.f32 0.5, %v6950_v8 }
 0xf7e   : > { %10026 = verf.f32 %v7086_v63  ;;  %v7087_v0 = vmul.f32 0.70710677, %v6961_v11  ;;  %v7055_v62 = vmul.f32 0.5, %v6961_v11 }
 0xf7f   : > { %10028 = verf.f32 %v7084_v33  ;;  %v7085_v35 = vmul.f32 0.70710677, %v6953_v36  ;;  %v7053_v12 = vmul.f32 0.5, %v6953_v36 }
 0xf80   : > { %10030 = verf.f32 %v7087_v0 }
 0xf81   : > { %10032 = verf.f32 %v7085_v35 }
 0xf88   : > { %v10027_v15 = vpop.eup %10026 }
 0xf89   : > { %v10029_v18 = vpop.eup %10028  ;;  %v7150_v13 = vadd.f32 1.0, %v10027_v15  ;;  %v8712_v32 = vpop.f32.mrb[44].mxu1 }
 0xf8a   : > { %v10031_v60 = vpop.eup %10030  ;;  %v7148_v51 = vadd.f32 1.0, %v10029_v18  ;;  %v6974_v46 = vadd.f32 %v8712_v32, %v15818_v17  ;;  %v6965_v23 = vpop.f32.mrb[45].mxu1 }
 0xf8b   : > { %v10033_v58 = vpop.eup %10032  ;;  %v7151_v10 = vadd.f32 1.0, %v10031_v60  ;;  %v6966_v41 = vadd.f32 %v15818_v17, %v6965_v23  ;;  %v8713_v9 = vpop.f32.mrb[46].mxu1  ;;  %v7182_v42 = vmul.f32 %v7150_v13, %v7054_v5 }
 0xf8c   : > { %v7149_v55 = vadd.f32 1.0, %v10033_v58  ;;  %v7090_v22 = vmul.f32 0.70710677, %v6974_v46  ;;  %v6968_v19 = vpop.f32.mrb[47].mxu1  ;;  %v6977_v63 = vadd.f32 %v8713_v9, %v15818_v17  ;;  %v7180_v29 = vmul.f32 %v7148_v51, %v7052_v49 }
 0xf8d   : > { %v7183_v37 = vmul.f32 %v7151_v10, %v7055_v62  ;;  %v7088_v50 = vmul.f32 0.70710677, %v6966_v41  ;;  %v6969_v6 = vadd.f32 %v15818_v17, %v6968_v19  ;;  %v7058_v23 = vmul.f32 0.5, %v6974_v46 }
 0xf8e   : > { %v7181_v33 = vmul.f32 %v7149_v55, %v7053_v12  ;;  %10034 = verf.f32 %v7090_v22  ;;  %v7091_v0 = vmul.f32 0.70710677, %v6977_v63  ;;  %v7056_v9 = vmul.f32 0.5, %v6966_v41 }
 0xf8f   : > { %v7209_v11 = vpack.c.bf16 %v7183_v37, %v7182_v42  ;;  %10036 = verf.f32 %v7088_v50  ;;  %v7089_v15 = vmul.f32 0.70710677, %v6969_v6  ;;  %v7059_v49 = vmul.f32 0.5, %v6977_v63 }
 0xf90   : > { %v7208_v35 = vpack.c.bf16 %v7181_v33, %v7180_v29  ;;  %10038 = verf.f32 %v7091_v0  ;;  %v7057_v19 = vmul.f32 0.5, %v6969_v6 }
 0xf91   : > { %10040 = verf.f32 %v7089_v15 }
 0xf92   : > { %8746 = vmatprep.mubr.msk.bf16.mxu0 %vm459_vm0, %v7208_v35 }
 0xf93   : > { %8747 = vmatmul.mubr.msk.bf16.gmra.mrb[72].mxu0 %vm459_vm0, %v7209_v11 }
 0xf98   : > { %v10035_v8 = vpop.eup %10034 }
 0xf99   : > { %v10037_v36 = vpop.eup %10036  ;;  %v8716_v18 = vpop.f32.mrb[48].mxu1  ;;  %v7154_v13 = vadd.f32 1.0, %v10035_v8 }
 0xf9a   : > { %v6990_v32 = vadd.f32 %v8716_v18, %v15818_v17  ;;  %v6981_v60 = vpop.f32.mrb[49].mxu1  ;;  %v10039_v51 = vpop.eup %10038  ;;  %v7152_v58 = vadd.f32 1.0, %v10037_v36 }
 0xf9b   : > { %v6982_v5 = vadd.f32 %v15818_v17, %v6981_v60  ;;  %v8717_v62 = vpop.f32.mrb[50].mxu1  ;;  %v10041_v10 = vpop.eup %10040  ;;  %v7155_v12 = vadd.f32 1.0, %v10039_v51  ;;  %v7186_v29 = vmul.f32 %v7154_v13, %v7058_v23 }
 0xf9c   : > { %v7094_v55 = vmul.f32 0.70710677, %v6990_v32  ;;  %v6984_v22 = vpop.f32.mrb[51].mxu1  ;;  %v7153_v42 = vadd.f32 1.0, %v10041_v10  ;;  %v6993_v50 = vadd.f32 %v8717_v62, %v15818_v17  ;;  %v7184_v11 = vmul.f32 %v7152_v58, %v7056_v9 }
 0xf9d   : > { %v7092_v37 = vmul.f32 0.70710677, %v6982_v5  ;;  %v7187_v33 = vmul.f32 %v7155_v12, %v7059_v49  ;;  %v6985_v46 = vadd.f32 %v15818_v17, %v6984_v22  ;;  %v7062_v23 = vmul.f32 0.5, %v6990_v32 }
 0xf9e   : > { %10042 = verf.f32 %v7094_v55  ;;  %v7185_v0 = vmul.f32 %v7153_v42, %v7057_v19  ;;  %v7095_v35 = vmul.f32 0.70710677, %v6993_v50  ;;  %v7060_v49 = vmul.f32 0.5, %v6982_v5 }
 0xf9f   : > { %10044 = verf.f32 %v7092_v37  ;;  %v7211_v15 = vpack.c.bf16 %v7187_v33, %v7186_v29  ;;  %v7093_v41 = vmul.f32 0.70710677, %v6985_v46  ;;  %v7063_v12 = vmul.f32 0.5, %v6993_v50 }
 0xfa0   : > { %v7210_v63 = vpack.c.bf16 %v7185_v0, %v7184_v11  ;;  %10046 = verf.f32 %v7095_v35  ;;  %v7061_v42 = vmul.f32 0.5, %v6985_v46 }
 0xfa1   : > { %10048 = verf.f32 %v7093_v41 }
 0xfa2   : > { %8750 = vmatprep.mubr.msk.bf16.mxu0 %vm459_vm0, %v7210_v63 }
 0xfa3   : > { %8751 = vmatmul.mubr.msk.bf16.gmra.mrb[76].mxu0 %vm459_vm0, %v7211_v15 }
 0xfa8   : > { %v10043_v6 = vpop.eup %10042 }
 0xfa9   : > { %v10045_v8 = vpop.eup %10044  ;;  %v8720_v36 = vpop.f32.mrb[52].mxu1  ;;  %v7158_v18 = vadd.f32 1.0, %v10043_v6 }
 0xfaa   : > { %v7006_v13 = vadd.f32 %v8720_v36, %v15818_v17  ;;  %v6997_v60 = vpop.f32.mrb[53].mxu1  ;;  %v10047_v51 = vpop.eup %10046  ;;  %v7156_v58 = vadd.f32 1.0, %v10045_v8 }
 0xfab   : > { %v6998_v62 = vadd.f32 %v15818_v17, %v6997_v60  ;;  %v8721_v10 = vpop.f32.mrb[54].mxu1  ;;  %v10049_v9 = vpop.eup %10048  ;;  %v7159_v55 = vadd.f32 1.0, %v10047_v51  ;;  %v7190_v11 = vmul.f32 %v7158_v18, %v7062_v23 }
 0xfac   : > { %v7098_v22 = vmul.f32 0.70710677, %v7006_v13  ;;  %v7000_v19 = vpop.f32.mrb[55].mxu1  ;;  %v7157_v37 = vadd.f32 1.0, %v10049_v9  ;;  %v7009_v33 = vadd.f32 %v8721_v10, %v15818_v17  ;;  %v7188_v35 = vmul.f32 %v7156_v58, %v7060_v49 }
 0xfad   : > { %v7096_v29 = vmul.f32 0.70710677, %v6998_v62  ;;  %v7191_v0 = vmul.f32 %v7159_v55, %v7063_v12  ;;  %v7001_v32 = vadd.f32 %v15818_v17, %v7000_v19  ;;  %v7066_v23 = vmul.f32 0.5, %v7006_v13 }
 0xfae   : > { %10050 = verf.f32 %v7098_v22  ;;  %v7189_v15 = vmul.f32 %v7157_v37, %v7061_v42  ;;  %v7099_v41 = vmul.f32 0.70710677, %v7009_v33  ;;  %v7064_v12 = vmul.f32 0.5, %v6998_v62 }
 0xfaf   : > { %10052 = verf.f32 %v7096_v29  ;;  %v7213_v63 = vpack.c.bf16 %v7191_v0, %v7190_v11  ;;  %v7097_v5 = vmul.f32 0.70710677, %v7001_v32  ;;  %v7067_v55 = vmul.f32 0.5, %v7009_v33 }
 0xfb0   : > { %v7212_v50 = vpack.c.bf16 %v7189_v15, %v7188_v35  ;;  %10054 = verf.f32 %v7099_v41  ;;  %v7065_v37 = vmul.f32 0.5, %v7001_v32 }
 0xfb1   : > { %10056 = verf.f32 %v7097_v5 }
 0xfb2   : > { %8754 = vmatprep.mubr.msk.bf16.mxu0 %vm459_vm0, %v7212_v50 }
 0xfb3   : > { %8755 = vmatmul.mubr.msk.bf16.gmra.mrb[80].mxu0 %vm459_vm0, %v7213_v63 }
 0xfb8   : > { %v10051_v46 = vpop.eup %10050 }
 0xfb9   : > { %v10053_v6 = vpop.eup %10052  ;;  %v8724_v8 = vpop.f32.mrb[56].mxu1  ;;  %v7162_v36 = vadd.f32 1.0, %v10051_v46 }
 0xfba   : > { %v7022_v18 = vadd.f32 %v8724_v8, %v15818_v17  ;;  %v7013_v60 = vpop.f32.mrb[57].mxu1  ;;  %v10055_v51 = vpop.eup %10054  ;;  %v7160_v58 = vadd.f32 1.0, %v10053_v6 }
 0xfbb   : > { %v7014_v10 = vadd.f32 %v15818_v17, %v7013_v60  ;;  %v8725_v9 = vpop.f32.mrb[58].mxu1  ;;  %v10057_v49 = vpop.eup %10056  ;;  %v7163_v22 = vadd.f32 1.0, %v10055_v51  ;;  %v7194_v35 = vmul.f32 %v7162_v36, %v7066_v23 }
 0xfbc   : > { %v7102_v19 = vmul.f32 0.70710677, %v7022_v18  ;;  %v7016_v42 = vpop.f32.mrb[59].mxu1  ;;  %v7161_v29 = vadd.f32 1.0, %v10057_v49  ;;  %v7025_v0 = vadd.f32 %v8725_v9, %v15818_v17  ;;  %v7192_v41 = vmul.f32 %v7160_v58, %v7064_v12 }
 0xfbd   : > { %v7100_v11 = vmul.f32 0.70710677, %v7014_v10  ;;  %v7195_v15 = vmul.f32 %v7163_v22, %v7067_v55  ;;  %v7017_v13 = vadd.f32 %v15818_v17, %v7016_v42  ;;  %v7070_v51 = vmul.f32 0.5, %v7022_v18 }
 0xfbe   : > { %10058 = verf.f32 %v7102_v19  ;;  %v7193_v63 = vmul.f32 %v7161_v29, %v7065_v37  ;;  %v7103_v5 = vmul.f32 0.70710677, %v7025_v0  ;;  %v7071_v23 = vmul.f32 0.5, %v7025_v0 }
 0xfbf   : > { %10060 = verf.f32 %v7100_v11  ;;  %v7215_v50 = vpack.c.bf16 %v7195_v15, %v7194_v35  ;;  %v7101_v62 = vmul.f32 0.70710677, %v7017_v13  ;;  %v7068_v9 = vmul.f32 0.5, %v7014_v10 }
 0xfc0   : > { %v7214_v33 = vpack.c.bf16 %v7193_v63, %v7192_v41  ;;  %10062 = verf.f32 %v7103_v5  ;;  %v7069_v49 = vmul.f32 0.5, %v7017_v13 }
 0xfc1   : > { %10064 = verf.f32 %v7101_v62 }
 0xfc2   : > { %8758 = vmatprep.mubr.msk.bf16.mxu0 %vm459_vm0, %v7214_v33 }
 0xfc3   : > { %8759 = vmatmul.mubr.msk.bf16.gmra.mrb[84].mxu0 %vm459_vm0, %v7215_v50 }
 0xfc8   : > { %v10059_v32 = vpop.eup %10058 }
 0xfc9   : > { %v10061_v46 = vpop.eup %10060  ;;  %v7166_v6 = vadd.f32 1.0, %v10059_v32 }
 0xfca   : > { %v10063_v8 = vpop.eup %10062  ;;  %v7164_v36 = vadd.f32 1.0, %v10061_v46 }
 0xfcb   : > { %v10065_v60 = vpop.eup %10064  ;;  %v7167_v58 = vadd.f32 1.0, %v10063_v8  ;;  %v7198_v55 = vmul.f32 %v7166_v6, %v7070_v51 }
 0xfcc   : > { %v7165_v12 = vadd.f32 1.0, %v10065_v60  ;;  %v7196_v19 = vmul.f32 %v7164_v36, %v7068_v9 }
 0xfcd   : > { %v7199_v22 = vmul.f32 %v7167_v58, %v7071_v23 }
 0xfce   : > { %v7197_v42 = vmul.f32 %v7165_v12, %v7069_v49 }
 0xfcf   : > { %v7217_v37 = vpack.c.bf16 %v7199_v22, %v7198_v55 }
 0xfd0   : > { %v7216_v29 = vpack.c.bf16 %v7197_v42, %v7196_v19 }
 0xfd2   : > { %8762 = vmatprep.mubr.msk.bf16.mxu0 %vm459_vm0, %v7216_v29 }
 0xfd3   : > { %8763 = vmatmul.mubr.msk.bf16.gmra.mrb[88].mxu0 %vm459_vm0, %v7217_v37 }
0x1015   : > { %v8728_v11 = vpop.f32.mrb[60].mxu1 }
0x1016   : > { %v7038_v35 = vadd.f32 %v8728_v11, %v15818_v17  ;;  %v7029_v15 = vpop.f32.mrb[61].mxu1 }
0x1017   : > { %v7030_v18 = vadd.f32 %v15818_v17, %v7029_v15  ;;  %v8729_v0 = vpop.f32.mrb[62].mxu1 }
0x1018   : > { %v7106_v10 = vmul.f32 0.70710677, %v7038_v35  ;;  %v7041_v13 = vadd.f32 %v8729_v0, %v15818_v17  ;;  %v7032_v41 = vpop.f32.mrb[63].mxu1  ;;  %v7074_v60 = vmul.f32 0.5, %v7038_v35 }
0x1019   : > { %v7104_v63 = vmul.f32 0.70710677, %v7030_v18  ;;  %v7033_v5 = vadd.f32 %v15818_v17, %v7032_v41  ;;  %v7072_v58 = vmul.f32 0.5, %v7030_v18 }
0x101a   : > { %10066 = verf.f32 %v7106_v10  ;;  %v7107_v50 = vmul.f32 0.70710677, %v7041_v13  ;;  %v7075_v51 = vmul.f32 0.5, %v7041_v13 }
0x101b   : > { %10068 = verf.f32 %v7104_v63  ;;  %v7105_v62 = vmul.f32 0.70710677, %v7033_v5  ;;  %v7073_v9 = vmul.f32 0.5, %v7033_v5 }
0x101c   : > { %10070 = verf.f32 %v7107_v50 }
0x101d   : > { %10072 = verf.f32 %v7105_v62 }
0x1024   : > { %v10067_v33 = vpop.eup %10066 }
0x1025   : > { %v10069_v32 = vpop.eup %10068  ;;  %v7170_v46 = vadd.f32 1.0, %v10067_v33 }
0x1026   : > { %v10071_v6 = vpop.eup %10070  ;;  %v7168_v8 = vadd.f32 1.0, %v10069_v32 }
0x1027   : > { %v10073_v36 = vpop.eup %10072  ;;  %v7171_v23 = vadd.f32 1.0, %v10071_v6  ;;  %v7202_v12 = vmul.f32 %v7170_v46, %v7074_v60  ;;  %v15888_v46 = vld [vmem:[#allocation6 + $0x6] ss:$0 sm:$0xff] }
0x1028   : > { %v7169_v49 = vadd.f32 1.0, %v10073_v36  ;;  %v7200_v55 = vmul.f32 %v7168_v8, %v7072_v58 }
0x1029   : > { %v7203_v17 = vmul.f32 %v7171_v23, %v7075_v51 }
0x102a   : > { %v7201_v22 = vmul.f32 %v7169_v49, %v7073_v9 }
0x102b   : > { %v7219_v19 = vpack.c.bf16 %v7203_v17, %v7202_v12 }
0x102c   : > { %v7218_v42 = vpack.c.bf16 %v7201_v22, %v7200_v55  ;;  %v8740_v37 = vpop.f32.mrb[64].mxu0 }
0x102d   : > { %v7339_v29 = vpop.f32.mrb[65].mxu0  ;;  %v7348_v6 = vadd.f32 %v8740_v37, %v15888_v46 }
0x102e   : > { %8766 = vmatprep.mubr.msk.bf16.mxu1 %vm459_vm0, %v7218_v42  ;;  %v8741_v11 = vpop.f32.mrb[66].mxu0  ;;  %v7340_v8 = vadd.f32 %v15888_v46, %v7339_v29 }
0x102f   : > { %8767 = vmatmul.mubr.msk.bf16.vlgmr.msra.gmra.mrb[64].mxu1 %vm459_vm0, %v7219_v19  ;;  %v7342_v15 = vpop.f32.mrb[67].mxu0  ;;  %v7351_v60 = vadd.f32 %v8741_v11, %v15888_v46  ;;  %v7468_v12 = vadd.f32 %v7348_v6, %v15324_v43 }
0x1030   : > { %v7343_v58 = vadd.f32 %v15888_v46, %v7342_v15  ;;  %v7466_v19 = vadd.f32 %v7340_v8, %v15312_v52 }
0x1031   : > { %v7469_v29 = vadd.f32 %v7351_v60, %v15316_v24 }
0x103c   : > { %v8744_v35 = vpop.f32.mrb[68].mxu0 }
0x103d   : > { %v7355_v0 = vpop.f32.mrb[69].mxu0  ;;  %v7364_v52 = vadd.f32 %v8744_v35, %v15888_v46 }
0x103e   : > { %v8745_v10 = vpop.f32.mrb[70].mxu0 }
0x103f   : > { %v7358_v18 = vpop.f32.mrb[71].mxu0  ;;  %v7367_v24 = vadd.f32 %v8745_v10, %v15888_v46 }
0x1066   : > { %v15872_v13 = vpop.f32.mrb[72].mxu0 }
0x1067   : > { %v15874_v41 = vpop.f32.mrb[73].mxu0 }
0x1068   : > { %v15876_v63 = vpop.f32.mrb[74].mxu0 }
0x1069   : > { %v15878_v5 = vpop.f32.mrb[75].mxu0 }
0x1076   : > { %v15880_v50 = vpop.f32.mrb[76].mxu0 }
0x1077   : > { %v15882_v62 = vpop.f32.mrb[77].mxu0 }
0x1078   : > { %v15884_v33 = vpop.f32.mrb[78].mxu0 }
0x1079   : > { %v15886_v32 = vpop.f32.mrb[79].mxu0 }
0x1086   : > { %v8756_v36 = vpop.f32.mrb[80].mxu0 }
0x1087   : > { %v7412_v51 = vadd.f32 %v8756_v36, %v15888_v46  ;;  %v7403_v23 = vpop.f32.mrb[81].mxu0  ;;  %v7467_v36 = vadd.f32 %v7343_v58, %v15319_v57  ;;  %v7359_v57 = vadd.f32 %v15888_v46, %v7358_v18  ;;  %v7472_v58 = vadd.f32 %v7364_v52, %v15360_v20 }
0x1088   : > { %v7404_v9 = vadd.f32 %v15888_v46, %v7403_v23  ;;  %v8757_v49 = vpop.f32.mrb[82].mxu0 }
0x1089   : > { %v7484_v17 = vadd.f32 %v7412_v51, %v15460_v30  ;;  %v7415_v55 = vadd.f32 %v8757_v49, %v15888_v46  ;;  %v7406_v22 = vpop.f32.mrb[83].mxu0 }
0x108a   : > { %v7482_v42 = vadd.f32 %v7404_v9, %v15454_v39  ;;  %v7407_v37 = vadd.f32 %v15888_v46, %v7406_v22  ;;  %v7356_v39 = vadd.f32 %v15888_v46, %v7355_v0  ;;  %v7471_v22 = vadd.f32 %v7359_v57, %v15352_v40 }
0x108b   : > { %v9022_v11 = vpack.i.bf16 %v7484_v17, %v7468_v12  ;;  %v7485_v15 = vadd.f32 %v7415_v55, %v15468_v45  ;;  %v7473_v17 = vadd.f32 %v7367_v24, %v15355_v34 }
0x108c   : > { %v9018_v23 = vpack.i.bf16 %v7482_v42, %v7466_v19  ;;  %v7483_v43 = vadd.f32 %v7407_v37, %v15463_v61  ;;  %v7470_v0 = vadd.f32 %v7356_v39, %v15348_v1  ;;  %v7380_v1 = vadd.f32 %v15872_v13, %v15888_v46 }
0x108d   : > { %v9024_v30 = vpack.i.bf16 %v7485_v15, %v7469_v29 }
0x108e   : > { %v9020_v6 = vpack.i.bf16 %v7483_v43, %v7467_v36  ;;  %9019 = vxpose.xlu0.b32.start [1/16] (narrow) %v9018_v23, 64  ;;  %v7476_v15 = vadd.f32 %v7380_v1, %v15388_v7 }
0x1092   : > { %9021 = vxpose.xlu0.b32.cont [2/16] (narrow) %v9020_v6, 64 }
0x1096   : > { %9023 = vxpose.xlu0.b32.cont [3/16] (narrow) %v9022_v11, 64  ;;  %v8760_v8 = vpop.f32.mrb[84].mxu0 }
0x1097   : > { %v7428_v60 = vadd.f32 %v8760_v8, %v15888_v46  ;;  %v7419_v45 = vpop.f32.mrb[85].mxu0 }
0x1098   : > { %v7420_v51 = vadd.f32 %v15888_v46, %v7419_v45  ;;  %v8761_v61 = vpop.f32.mrb[86].mxu0 }
0x1099   : > { %v7488_v9 = vadd.f32 %v7428_v60, %v15496_v3  ;;  %v7431_v35 = vadd.f32 %v8761_v61, %v15888_v46  ;;  %v7422_v49 = vpop.f32.mrb[87].mxu0 }
0x109a   : > { %v7486_v12 = vadd.f32 %v7420_v51, %v15490_v38  ;;  %v7423_v10 = vadd.f32 %v15888_v46, %v7422_v49  ;;  %9025 = vxpose.xlu0.b32.cont [4/16] (narrow) %v9024_v30, 64  ;;  %v7372_v38 = vadd.f32 %v15888_v46, %v15874_v41 }
0x109b   : > { %v9030_v18 = vpack.i.bf16 %v7488_v9, %v7472_v58  ;;  %v7489_v55 = vadd.f32 %v7431_v35, %v15504_v44  ;;  %v7383_v44 = vadd.f32 %v15876_v63, %v15888_v46 }
0x109c   : > { %v9026_v20 = vpack.i.bf16 %v7486_v12, %v7470_v0  ;;  %v7487_v3 = vadd.f32 %v7423_v10, %v15499_v56  ;;  %v7375_v56 = vadd.f32 %v15888_v46, %v15878_v5  ;;  %v7474_v23 = vadd.f32 %v7372_v38, %v15383_v47 }
0x109d   : > { %v9032_v19 = vpack.i.bf16 %v7489_v55, %v7473_v17  ;;  %v7477_v30 = vadd.f32 %v7383_v44, %v15396_v4  ;;  %v7396_v47 = vadd.f32 %v15880_v50, %v15888_v46  ;;  %v7388_v4 = vadd.f32 %v15888_v46, %v15882_v62 }
0x109e   : > { %v9028_v42 = vpack.i.bf16 %v7487_v3, %v7471_v22  ;;  %9027 = vxpose.xlu0.b32.cont [5/16] (narrow) %v9026_v20, 64  ;;  %v7475_v52 = vadd.f32 %v7375_v56, %v15391_v16 }
0x109f   : > { %v7480_v57 = vadd.f32 %v7396_v47, %v15424_v53  ;;  %v7478_v61 = vadd.f32 %v7388_v4, %v15418_v21 }
0x10a2   : > { %9029 = vxpose.xlu0.b32.cont [6/16] (narrow) %v9028_v42, 64 }
0x10a6   : > { %9031 = vxpose.xlu0.b32.cont [7/16] (narrow) %v9030_v18, 64  ;;  %v8764_v34 = vpop.f32.mrb[88].mxu0 }
0x10a7   : > { %v7444_v40 = vadd.f32 %v8764_v34, %v15888_v46  ;;  %v7435_v37 = vpop.f32.mrb[89].mxu0 }
0x10a8   : > { %v7436_v29 = vadd.f32 %v15888_v46, %v7435_v37  ;;  %v8765_v11 = vpop.f32.mrb[90].mxu0 }
0x10a9   : > { %v7492_v13 = vadd.f32 %v7444_v40, %v15532_v14  ;;  %v7447_v41 = vadd.f32 %v8765_v11, %v15888_v46  ;;  %v7438_v36 = vpop.f32.mrb[91].mxu0 }
0x10aa   : > { %v7490_v63 = vadd.f32 %v7436_v29, %v15526_v2  ;;  %v7439_v43 = vadd.f32 %v15888_v46, %v7438_v36  ;;  %9033 = vxpose.xlu0.b32.cont [8/16] (narrow) %v9032_v19, 64 }
0x10ab   : > { %v9038_v5 = vpack.i.bf16 %v7492_v13, %v7476_v15  ;;  %v7493_v6 = vadd.f32 %v7447_v41, %v15540_v26  ;;  %v7399_v26 = vadd.f32 %v15884_v33, %v15888_v46 }
0x10ac   : > { %v9034_v7 = vpack.i.bf16 %v7490_v63, %v7474_v23  ;;  %v7491_v14 = vadd.f32 %v7439_v43, %v15535_v31  ;;  %v7391_v31 = vadd.f32 %v15888_v46, %v15886_v32 }
0x10ad   : > { %v9040_v39 = vpack.i.bf16 %v7493_v6, %v7477_v30  ;;  %v7481_v9 = vadd.f32 %v7399_v26, %v15432_v59 }
0x10ae   : > { %v9036_v8 = vpack.i.bf16 %v7491_v14, %v7475_v52  ;;  %9035 = vxpose.xlu0.b32.cont [9/16] (narrow) %v9034_v7, 64  ;;  %v7479_v49 = vadd.f32 %v7391_v31, %v15427_v48 }
0x10b2   : > { %9037 = vxpose.xlu0.b32.cont [10/16] (narrow) %v9036_v8, 64 }
0x10b6   : > { %9039 = vxpose.xlu0.b32.cont [11/16] (narrow) %v9038_v5, 64 }
0x10ba   : > { %9041 = vxpose.xlu0.b32.cont [12/16] (narrow) %v9040_v39, 64 }
0x1102   : > { %v8768_v2 = vpop.f32.mrb[64].mxu1 }
0x1103   : > { %v7460_v16 = vadd.f32 %v8768_v2, %v15888_v46  ;;  %v7451_v24 = vpop.f32.mrb[65].mxu1 }
0x1104   : > { %v7452_v60 = vadd.f32 %v15888_v46, %v7451_v24  ;;  %v8769_v45 = vpop.f32.mrb[66].mxu1 }
0x1105   : > { %v7496_v50 = vadd.f32 %v7460_v16, %v15629_v25  ;;  %v7463_v51 = vadd.f32 %v8769_v45, %v15888_v46  ;;  %v7454_v62 = vpop.f32.mrb[67].mxu1 }
0x1106   : > { %v7494_v33 = vadd.f32 %v7452_v60, %v15617_v54  ;;  %v7455_v58 = vadd.f32 %v15888_v46, %v7454_v62 }
0x1107   : > { %v9046_v35 = vpack.i.bf16 %v7496_v50, %v7480_v57  ;;  %v7497_v32 = vadd.f32 %v7463_v51, %v15634_v27 }
0x1108   : > { %v9042_v53 = vpack.i.bf16 %v7494_v33, %v7478_v61  ;;  %v7495_v25 = vadd.f32 %v7455_v58, %v15624_v28 }
0x1109   : > { %v9048_v0 = vpack.i.bf16 %v7497_v32, %v7481_v9 }
0x110a   : > { %v9044_v12 = vpack.i.bf16 %v7495_v25, %v7479_v49  ;;  %9043 = vxpose.xlu0.b32.cont [13/16] (narrow) %v9042_v53, 64 }
0x110e   : > { %9045 = vxpose.xlu0.b32.cont [14/16] (narrow) %v9044_v12, 64 }
0x1112   : > { %9047 = vxpose.xlu0.b32.cont [15/16] (narrow) %v9046_v35, 64 }
0x1116   : > { %9049 = vxpose.xlu0.b32.end [16/16] (narrow) %v9048_v0, 64 }
0x115a   : > { %v9050_v21 = vpop.trf.xlu0 }
0x115b   : > { %v9054_v54 = vunpack.i.h.bf16 %v9050_v21  ;;  %v9051_v46 = vunpack.i.l.bf16 %v9050_v21 }
0x115d   : > { %v7941_v10 = vpack.c.bf16 %v9054_v54, %v9051_v46 }
0x115e   : > { %v9055_v59 = vpop.trf.xlu0 }
0x115f   : > { %7610 = vst [vmem:[%s15964_s16] sm:$0xff] %v7941_v10  ;;  %v9059_v48 = vunpack.i.h.bf16 %v9055_v59  ;;  %v9056_v28 = vunpack.i.l.bf16 %v9055_v59 }
0x1161   : > { %v7942_v27 = vpack.c.bf16 %v9059_v48, %v9056_v28 }
0x1162   : > { %v9060_v17 = vpop.trf.xlu0 }
0x1163   : > { %7611 = vst [vmem:[%s15964_s16 + $0x8] sm:$0xff] %v7942_v27  ;;  %v9064_v18 = vunpack.i.h.bf16 %v9060_v17  ;;  %v9061_v55 = vunpack.i.l.bf16 %v9060_v17 }
0x1165   : > { %v7943_v22 = vpack.c.bf16 %v9064_v18, %v9061_v55 }
0x1166   : > { %v9065_v20 = vpop.trf.xlu0 }
0x1167   : > { %7612 = vst [vmem:[%s15964_s16 + $0x10] sm:$0xff] %v7943_v22  ;;  %v9069_v3 = vunpack.i.h.bf16 %v9065_v20  ;;  %v9066_v19 = vunpack.i.l.bf16 %v9065_v20 }
0x1169   : > { %v7944_v42 = vpack.c.bf16 %v9069_v3, %v9066_v19 }
0x116a   : > { %v9070_v1 = vpop.trf.xlu0 }
0x116b   : > { %7613 = vst [vmem:[%s15964_s16 + $0x18] sm:$0xff] %v7944_v42  ;;  %v9074_v38 = vunpack.i.h.bf16 %v9070_v1  ;;  %v9071_v34 = vunpack.i.l.bf16 %v9070_v1 }
0x116d   : > { %v7945_v44 = vpack.c.bf16 %v9074_v38, %v9071_v34 }
0x116e   : > { %v9075_v40 = vpop.trf.xlu0 }
0x116f   : > { %7614 = vst [vmem:[%s15964_s16 + $0x20] sm:$0xff] %v7945_v44  ;;  %v9079_v37 = vunpack.i.h.bf16 %v9075_v40  ;;  %v9076_v56 = vunpack.i.l.bf16 %v9075_v40 }
0x1171   : > { %v7946_v29 = vpack.c.bf16 %v9079_v37, %v9076_v56 }
0x1172   : > { %v9080_v11 = vpop.trf.xlu0 }
0x1173   : > { %7615 = vst [vmem:[%s15964_s16 + $0x28] sm:$0xff] %v7946_v29  ;;  %v9084_v15 = vunpack.i.h.bf16 %v9080_v11  ;;  %v9081_v13 = vunpack.i.l.bf16 %v9080_v11 }
0x1175   : > { %v7947_v41 = vpack.c.bf16 %v9084_v15, %v9081_v13 }
0x1176   : > { %v9085_v36 = vpop.trf.xlu0 }
0x1177   : > { %7616 = vst [vmem:[%s15964_s16 + $0x30] sm:$0xff] %v7947_v41  ;;  %v9089_v23 = vunpack.i.h.bf16 %v9085_v36  ;;  %v9086_v63 = vunpack.i.l.bf16 %v9085_v36 }
0x1179   : > { %v7948_v43 = vpack.c.bf16 %v9089_v23, %v9086_v63 }
0x117b   : > { %7617 = vst [vmem:[%s15964_s16 + $0x38] sm:$0xff] %v7948_v43 }
0x117c   : > { %10257 = shalt.err (!%p10254_p8)
}
0x117d   : > { %s10258_s1 = scalar_lea.hbm %s15978_s8, 1024  ;;  %s10262_s15 = scalar_lea.hbm %s16032_s7, 2048 }
0x117e   : > { %p10259_p6 = scmp.ne.s32.totalorder %s15978_s8, %s10258_s1  ;;  %p10263_p9 = scmp.lt.u32.totalorder %s15978_s8, %s16032_s7 }
0x117f   : > { %p10264_p10 = scmp.lt.u32.totalorder %s10262_s15, %s10258_s1  ;;  %p10266_p11 = scmp.lt.u32.totalorder %s10258_s1, %s15978_s8 }
0x1180   : > { %p10260_p0 = pnand %p10259_p6, %p17772_p13 }
0x1181   : > { %p10265_p12 = por %p10264_p10, %p10263_p9 }
0x1182   : > { %p10261_p2 = pneg %p10260_p0 }
0x1183   : > { %p10267_p5 = por %p10266_p11, %p10265_p12 }
0x1185   : > { %p10268_p7 = pnand %p10267_p5, %p10261_p2 }
0x1187   : > { %10271 = shalt.err (!%p10268_p7)
}
0x1188   : > { %s10343_s9 = smov 128   ;;  %s10344_s11 = smov 8  }
0x1189   : > { %8832 = dma.vmem_to_hbm [thread:$0]  (%p17772_p13), %s15980_s17, 1024, %s15978_s8, %s7619_s18, %s10343_s9, %s10343_s9, %s10344_s11  }
0x118a PF: > { %s7647_s29 = sand.u32 1, %s10310_s24   ;;  %p17773_p4 = scmp.ne.s32.totalorder %s16645_s22, 0 }
0x118b   : > { %p17774_p1 = scmp.ge.s32.totalorder %s10322_s27, 2  ;;  %s7648_s30 = scalar_lea.sflag [#allocation5], %s7647_s29 }
0x118d   : > { %p8855_p3 = pnand %p17774_p1, %p17773_p4 }
0x118f   : > { %10305 = dma.done.wait (!%p8855_p3), %s7648_s30, 1024  }
0x1190   : > { %10307 = vsyncadd (!%p8855_p3), %s7648_s30, 4294966272  ;;  %p23_p8 = scmp.ge.s32.totalorder %s10548_s19, 4   ;;  %s17775_s24 = smov %s10314_s25 }
0x1191   : > { %s17776_s25 = smov %s10318_s26  ;;  %s17777_s26 = smov %s10560_s28 }
0x1192   : > { %s17778_s27 = smov %s10548_s19  ;;  %25 = sbr.rel (!%p23_p8) target bundleno = 10 (0xa), region = 113 }
0x1199   :  { %7653 = vsyncpa [#allocation4], 1 }
0x119a   :  { %7655 = vsyncpa [#allocation4 + $0x1], 1 }
0x119b   :  { %7656 = vsyncpa [#allocation7], 1 }
0x119c   :  { %7657 = vsyncpa [#allocation10], 1 }
0x119d   :  { %7658 = vsyncpa [#allocation13], 1 }
0x119e   :  { %7659 = vsyncpa [#allocation5], 1 }
0x119f   :  { %7661 = vsyncpa [#allocation5 + $0x1], 1 }

</bundles_post_ra>
